<compile_context>
chip_gen: v7x
topology: tpu7x:2x2x1
jax: 0.10.0
libtpu: 0.0.40
codegen_flags: <defaults>
</compile_context>

<pallas_src>
import functools

import jax
import jax.numpy as jnp
from jax import lax
from jax.experimental import pallas as pl
from jax.experimental.pallas import tpu as pltpu


PAD = 2  # max halo any branch needs (5x5 conv); 3x3 conv and the maxpool use 1.


# ---------------------------------------------------------------------------
# Fused Inception kernel (one batch element per grid step)
# ---------------------------------------------------------------------------
def _inception_kernel(x_ref, w1x1_ref, b1x1_ref, w23_ref, b23_ref,
                      w35_ref, b35_ref, w43_ref, b43_ref, o_ref, *,
                      H, W, c1, c2a, c2b, c3a, c3b, c4):
    """x_ref:   (1, Hp, Wp, Cin) bf16 zero-padded NHWC canvas.
    w1x1_ref: (Cin, c1+c2a+c3a) bf16 merged 1x1 weights; b1x1_ref: (1, .) f32.
    w23_ref:  (9*c2a,  c2b) bf16  3x3 weights in im2col ((ky,kx,ci), cout) layout.
    w35_ref:  (25*c3a, c3b) bf16  5x5 weights in im2col layout.
    w43_ref:  (Cin, c4) bf16      1x1 after the 3x3 maxpool.
    o_ref:    (1, c1+c2b+c3b+c4, H*W) f32 lane-dense output slab.
    """
    Hp, Wp, Cin = x_ref.shape[1], x_ref.shape[2], x_ref.shape[3]
    HW = H * W
    x = x_ref[0]                                          # (Hp, Wp, Cin) bf16

    # Interior mask: True on the original HxW image inside the padded canvas.
    rows = lax.broadcasted_iota(jnp.int32, (Hp, Wp, 1), 0)
    cols = lax.broadcasted_iota(jnp.int32, (Hp, Wp, 1), 1)
    inter = ((rows >= PAD) & (rows < PAD + H) &
             (cols >= PAD) & (cols < PAD + W))            # (Hp, Wp, 1) bool

    # ---- merged 1x1 convs (branch1 | branch2-reduce | branch3-reduce):
    # a single MXU matmul over the whole canvas, split in-register afterwards.
    y = jnp.dot(x.reshape(Hp * Wp, Cin), w1x1_ref[...],
                preferred_element_type=jnp.float32) + b1x1_ref[...]

    # branch 1: plain 1x1 conv (bias, no ReLU -- matches nn.Conv2d), interior only.
    b1 = (y[:, :c1].reshape(Hp, Wp, c1)
          [PAD:PAD + H, PAD:PAD + W, :].reshape(HW, c1))  # (HW, c1) f32

    # branches 2/3 reduced activations: ONE relu+mask pass over the combined
    # (c2a+c3a) slice; halo forced to zero so the KxK "same" convs see zero
    # padding.  Cast to bf16 once -- everything downstream feeds the MXU.
    t23 = jnp.where(inter,
                    jnp.maximum(y[:, c1:], 0.0).reshape(Hp, Wp, c2a + c3a),
                    0.0).astype(jnp.bfloat16)

    # ---- KxK conv (+bias+ReLU) as a single im2col matmul per branch.
    def conv_relu_im2col(t, w_ref, b_ref, K):
        off = PAD - (K - 1) // 2
        cin_b = t.shape[-1]
        cols_ = [t[off + ky:off + ky + H, off + kx:off + kx + W, :]
                 .reshape(HW, cin_b)
                 for ky in range(K) for kx in range(K)]
        patches = jnp.concatenate(cols_, axis=-1)         # (HW, K*K*cin_b) bf16
        acc = jnp.dot(patches, w_ref[...], preferred_element_type=jnp.float32)
        return jnp.maximum(acc + b_ref[...], 0.0)         # (HW, cout) f32

    b2 = conv_relu_im2col(t23[..., :c2a], w23_ref, b23_ref, 3)   # (HW, c2b)
    b3 = conv_relu_im2col(t23[..., c2a:], w35_ref, b35_ref, 5)   # (HW, c3b)

    # ---- branch 4: 3x3/s1/p1 max-pool (halo acts as -inf), then 1x1 conv+ReLU.
    # Pool maxima run in f32 on the VPU (v5e has no native bf16 VALU).
    big_neg = jnp.float32(-3.0e38)
    xm = jnp.where(inter, x.astype(jnp.float32), big_neg)  # (Hp, Wp, Cin) f32
    m = xm[1:1 + H, 1:1 + W, :]
    for ky in range(3):
        for kx in range(3):
            if ky == 0 and kx == 0:
                continue
            m = jnp.maximum(m, xm[1 + ky:1 + ky + H, 1 + kx:1 + kx + W, :])
    pooled = m.reshape(HW, Cin).astype(jnp.bfloat16)
    b4 = jnp.maximum(
        jnp.dot(pooled, w43_ref[...], preferred_element_type=jnp.float32)
        + b43_ref[...], 0.0)                              # (HW, c4)

    # ---- channel concat: ONE concat + ONE transpose + ONE lane-dense store
    # (last dim of the store is H*W >= 128, a multiple of 128).
    out = jnp.concatenate([b1, b2, b3, b4], axis=-1)      # (HW, Ct) f32
    o_ref[0] = out.T.astype(o_ref.dtype)                  # (Ct, HW)


# ---------------------------------------------------------------------------
# Wrapper
# ---------------------------------------------------------------------------
def inception_v1_forward(x_nchw, p):
    N, Cin, H, W = x_nchw.shape
    c1 = p["w1_1"].shape[-1]
    c2a, c2b = p["w2_1"].shape[-1], p["w2_3"].shape[-1]
    c3a, c3b = p["w3_1"].shape[-1], p["w3_5"].shape[-1]
    c4 = p["w4_3"].shape[-1]
    Ct = c1 + c2b + c3b + c4

    # Canvas: halo of PAD on each side; round the width up to a multiple of 8
    # (extra zero columns are inert) so in-kernel reshapes stay layout-trivial.
    extra_w = (-(W + 2 * PAD)) % 8
    Hp, Wp = H + 2 * PAD, W + 2 * PAD + extra_w

    # Weight prep (tiny, constant-folded by XLA): merge the three 1x1 convs,
    # reshape KxK weights to im2col layout, cast MXU operands to bf16, keep
    # biases (VPU side) in f32.
    bf16 = jnp.bfloat16
    w1x1 = jnp.concatenate([p["w1_1"], p["w2_1"], p["w3_1"]],
                           axis=-1)[0, 0].astype(bf16)          # (Cin, c1+c2a+c3a)
    b1x1 = jnp.concatenate([p["b1_1"], p["b2_1"], p["b3_1"]])[None, :].astype(jnp.float32)
    w23 = p["w2_3"].reshape(9 * c2a, c2b).astype(bf16)          # (9*c2a,  c2b)
    w35 = p["w3_5"].reshape(25 * c3a, c3b).astype(bf16)         # (25*c3a, c3b)
    w43 = p["w4_3"][0, 0].astype(bf16)                          # (Cin, c4)
    b23 = p["b2_3"][None, :].astype(jnp.float32)
    b35 = p["b3_5"][None, :].astype(jnp.float32)
    b43 = p["b4_3"][None, :].astype(jnp.float32)

    # Single zero-pad of the input, cast to bf16 (halves per-step input DMA);
    # NCHW -> NHWC for channels-last matmuls.
    xp = jnp.pad(jnp.transpose(x_nchw, (0, 2, 3, 1)),
                 ((0, 0), (PAD, PAD), (PAD, PAD + extra_w), (0, 0))).astype(bf16)

    kernel = functools.partial(_inception_kernel, H=H, W=W, c1=c1, c2a=c2a,
                               c2b=c2b, c3a=c3a, c3b=c3b, c4=c4)

    def full(shape):
        return pl.BlockSpec(shape, lambda n, _r=len(shape): (0,) * _r)

    out = pl.pallas_call(
        kernel,
        out_shape=jax.ShapeDtypeStruct((N, Ct, H * W), x_nchw.dtype),
        grid=(N,),
        in_specs=[
            pl.BlockSpec((1, Hp, Wp, Cin), lambda n: (n, 0, 0, 0)),
            full(w1x1.shape), full(b1x1.shape),
            full(w23.shape), full(b23.shape),
            full(w35.shape), full(b35.shape),
            full(w43.shape), full(b43.shape),
        ],
        out_specs=pl.BlockSpec((1, Ct, H * W), lambda n: (n, 0, 0)),
        compiler_params=pltpu.CompilerParams(
            dimension_semantics=("parallel",),
            vmem_limit_bytes=32 * 1024 * 1024),
    )(xp, w1x1, b1x1, w23, b23, w35, b35, w43, b43)

    # (N, Ct, H*W) -> (N, Ct, H, W): contiguous reshape, no HBM transpose/concat.
    return out.reshape(N, Ct, H, W)


def init_params(key, in_dim, hid1_1, hid2_1, hid2_3, hid3_1, hid3_5, hid4_3):
    def conv_p(k, K, cin, cout):
        kw, kb = jax.random.split(k)
        w = 0.05 * jax.random.normal(kw, (K, K, cin, cout), jnp.float32)
        b = 0.05 * jax.random.normal(kb, (cout,), jnp.float32)
        return w, b

    ks = jax.random.split(key, 6)
    p = {}
    p["w1_1"], p["b1_1"] = conv_p(ks[0], 1, in_dim, hid1_1)   # branch 1 (no relu)
    p["w2_1"], p["b2_1"] = conv_p(ks[1], 1, in_dim, hid2_1)   # branch 2: 1x1 relu
    p["w2_3"], p["b2_3"] = conv_p(ks[2], 3, hid2_1, hid2_3)   # branch 2: 3x3 relu
    p["w3_1"], p["b3_1"] = conv_p(ks[3], 1, in_dim, hid3_1)   # branch 3: 1x1 relu
    p["w3_5"], p["b3_5"] = conv_p(ks[4], 5, hid3_1, hid3_5)   # branch 3: 5x5 relu
    p["w4_3"], p["b4_3"] = conv_p(ks[5], 1, in_dim, hid4_3)   # branch 4: 1x1 relu
    return p


# ---------------------------------------------------------------------------
# Pure-JAX reference (f32) for correctness check
# ---------------------------------------------------------------------------
def _ref_conv(x_nchw, w, b, pad):
    w_oihw = jnp.transpose(w, (3, 2, 0, 1))
    y = jax.lax.conv_general_dilated(
        x_nchw, w_oihw, window_strides=(1, 1),
        padding=((pad, pad), (pad, pad)),
        dimension_numbers=("NCHW", "OIHW", "NCHW"))
    return y + b.reshape(1, -1, 1, 1)


def inception_v1_reference(x, p):
    b1 = _ref_conv(x, p["w1_1"], p["b1_1"], 0)
    b2 = jax.nn.relu(_ref_conv(
        jax.nn.relu(_ref_conv(x, p["w2_1"], p["b2_1"], 0)),
        p["w2_3"], p["b2_3"], 1))
    b3 = jax.nn.relu(_ref_conv(
        jax.nn.relu(_ref_conv(x, p["w3_1"], p["b3_1"], 0)),
        p["w3_5"], p["b3_5"], 2))
    xp = jnp.pad(x, ((0, 0), (0, 0), (1, 1), (1, 1)), constant_values=-jnp.inf)
    mp = jax.lax.reduce_window(xp, -jnp.inf, jax.lax.max,
                               (1, 1, 3, 3), (1, 1, 1, 1), "VALID")
    b4 = jax.nn.relu(_ref_conv(mp, p["w4_3"], p["b4_3"], 0))
    return jnp.concatenate([b1, b2, b3, b4], axis=1)


if __name__ == "__main__":
    key = jax.random.PRNGKey(0)
    k_x, k_p = jax.random.split(key)

    # small shapes consistent with the module: NCHW input
    N, C_in, H, W = 2, 4, 16, 16
    hid1_1, hid2_1, hid2_3, hid3_1, hid3_5, hid4_3 = 8, 4, 8, 4, 8, 8

    x = jax.random.normal(k_x, (N, C_in, H, W), jnp.float32)
    params = init_params(k_p, C_in, hid1_1, hid2_1, hid2_3, hid3_1, hid3_5, hid4_3)

    out = jax.jit(inception_v1_forward)(x, params)
    out = jax.block_until_ready(out)

    expected_channels = hid1_1 + hid2_3 + hid3_5 + hid4_3
    assert out.shape == (N, expected_channels, H, W), out.shape

    ref = inception_v1_reference(x, params)
    # matmul inputs (and the input canvas) are bf16 with f32 accumulation,
    # so allow a small tolerance vs. the f32 reference.
    assert jnp.allclose(out, ref, atol=2e-2, rtol=2e-2), (
        "mismatch vs reference; max abs diff = %f" % float(jnp.max(jnp.abs(out - ref))))

    print("KERNEL_OK")
</pallas_src>

<mosaic_0001>
module attributes {stable_mosaic.version = 11 : i64} {
  func.func @_inception_kernel(%arg0: i32, %arg1: memref<1x20x24x4xbf16, #tpu.memory_space<vmem>>, %arg2: memref<4x16xbf16, #tpu.memory_space<vmem>>, %arg3: memref<1x16xf32, #tpu.memory_space<vmem>>, %arg4: memref<36x8xbf16, #tpu.memory_space<vmem>>, %arg5: memref<1x8xf32, #tpu.memory_space<vmem>>, %arg6: memref<100x8xbf16, #tpu.memory_space<vmem>>, %arg7: memref<1x8xf32, #tpu.memory_space<vmem>>, %arg8: memref<4x8xbf16, #tpu.memory_space<vmem>>, %arg9: memref<1x8xf32, #tpu.memory_space<vmem>>, %arg10: memref<1x32x256xf32, #tpu.memory_space<vmem>>) attributes {dimension_semantics = [#tpu.dimension_semantics<parallel>], iteration_bounds = array<i64: 2>, scalar_prefetch = 0 : i64, scratch_operands = 0 : i64, tpu.core_type = #tpu.core_type<tc>, window_params = [{transform_indices = @transform_0, window_bounds = array<i64: 1, 20, 24, 4>}, {pipeline_mode = #tpu.pipeline_mode<synchronous>, transform_indices = @transform_1, window_bounds = array<i64: 4, 16>}, {pipeline_mode = #tpu.pipeline_mode<synchronous>, transform_indices = @transform_2, window_bounds = array<i64: 1, 16>}, {pipeline_mode = #tpu.pipeline_mode<synchronous>, transform_indices = @transform_3, window_bounds = array<i64: 36, 8>}, {pipeline_mode = #tpu.pipeline_mode<synchronous>, transform_indices = @transform_4, window_bounds = array<i64: 1, 8>}, {pipeline_mode = #tpu.pipeline_mode<synchronous>, transform_indices = @transform_5, window_bounds = array<i64: 100, 8>}, {pipeline_mode = #tpu.pipeline_mode<synchronous>, transform_indices = @transform_6, window_bounds = array<i64: 1, 8>}, {pipeline_mode = #tpu.pipeline_mode<synchronous>, transform_indices = @transform_7, window_bounds = array<i64: 4, 8>}, {pipeline_mode = #tpu.pipeline_mode<synchronous>, transform_indices = @transform_8, window_bounds = array<i64: 1, 8>}, {transform_indices = @transform_9, window_bounds = array<i64: 1, 32, 256>}]} {
    %c0 = arith.constant 0 : index
    %c0_0 = arith.constant 0 : index
    %c0_1 = arith.constant 0 : index
    %c0_2 = arith.constant 0 : index
    %0 = vector.load %arg1[%c0, %c0_0, %c0_1, %c0_2] : memref<1x20x24x4xbf16, #tpu.memory_space<vmem>>, vector<1x20x24x4xbf16>
    %1 = vector.shape_cast %0 : vector<1x20x24x4xbf16> to vector<20x24x4xbf16>
    %2 = tpu.iota {dimensions = array<i32: 0>} : vector<20x24x1xi32>
    %3 = tpu.iota {dimensions = array<i32: 1>} : vector<20x24x1xi32>
    %c2_i32 = arith.constant 2 : i32
    %4 = vector.broadcast %c2_i32 : i32 to vector<20x24x1xi32>
    %5 = arith.cmpi sge, %2, %4 : vector<20x24x1xi32>
    %c18_i32 = arith.constant 18 : i32
    %6 = vector.broadcast %c18_i32 : i32 to vector<20x24x1xi32>
    %7 = arith.cmpi slt, %2, %6 : vector<20x24x1xi32>
    %8 = arith.andi %5, %7 : vector<20x24x1xi1>
    %c2_i32_3 = arith.constant 2 : i32
    %9 = vector.broadcast %c2_i32_3 : i32 to vector<20x24x1xi32>
    %10 = arith.cmpi sge, %3, %9 : vector<20x24x1xi32>
    %11 = arith.andi %8, %10 : vector<20x24x1xi1>
    %c18_i32_4 = arith.constant 18 : i32
    %12 = vector.broadcast %c18_i32_4 : i32 to vector<20x24x1xi32>
    %13 = arith.cmpi slt, %3, %12 : vector<20x24x1xi32>
    %14 = arith.andi %11, %13 : vector<20x24x1xi1>
    %15 = vector.shape_cast %1 : vector<20x24x4xbf16> to vector<480x4xbf16>
    %c0_5 = arith.constant 0 : index
    %c0_6 = arith.constant 0 : index
    %16 = vector.load %arg2[%c0_5, %c0_6] : memref<4x16xbf16, #tpu.memory_space<vmem>>, vector<4x16xbf16>
    %cst = arith.constant dense<0.000000e+00> : vector<480x16xf32>
    %17 = tpu.matmul %15, %16, %cst {dimension_numbers = #tpu.dot_dimension_numbers<[1], [0], [0], [1], [0, 0, 1, 1], [], []>} : vector<480x4xbf16>, vector<4x16xbf16>, vector<480x16xf32> -> vector<480x16xf32>
    %c0_7 = arith.constant 0 : index
    %c0_8 = arith.constant 0 : index
    %18 = vector.load %arg3[%c0_7, %c0_8] : memref<1x16xf32, #tpu.memory_space<vmem>>, vector<1x16xf32>
    %19 = vector.broadcast %18 : vector<1x16xf32> to vector<480x16xf32>
    %20 = arith.addf %17, %19 : vector<480x16xf32>
    %21 = vector.extract_strided_slice %20 {offsets = [0, 0], sizes = [480, 8], strides = [1, 1]} : vector<480x16xf32> to vector<480x8xf32>
    %22 = vector.shape_cast %21 : vector<480x8xf32> to vector<20x24x8xf32>
    %23 = vector.extract_strided_slice %22 {offsets = [2, 2, 0], sizes = [16, 16, 8], strides = [1, 1, 1]} : vector<20x24x8xf32> to vector<16x16x8xf32>
    %24 = vector.shape_cast %23 : vector<16x16x8xf32> to vector<256x8xf32>
    %25 = vector.extract_strided_slice %20 {offsets = [0, 8], sizes = [480, 8], strides = [1, 1]} : vector<480x16xf32> to vector<480x8xf32>
    %cst_9 = arith.constant 0.000000e+00 : f32
    %26 = vector.broadcast %cst_9 : f32 to vector<480x8xf32>
    %27 = arith.maximumf %25, %26 : vector<480x8xf32>
    %28 = vector.shape_cast %27 : vector<480x8xf32> to vector<20x24x8xf32>
    %cst_10 = arith.constant 0.000000e+00 : f32
    %29 = vector.shape_cast %14 : vector<20x24x1xi1> to vector<20x24x1xi1>
    %30 = vector.broadcast %29 : vector<20x24x1xi1> to vector<20x24x8xi1>
    %31 = vector.broadcast %cst_10 : f32 to vector<20x24x8xf32>
    %32 = arith.select %30, %28, %31 : vector<20x24x8xi1>, vector<20x24x8xf32>
    %33 = arith.truncf %32 : vector<20x24x8xf32> to vector<20x24x8xbf16>
    %34 = vector.extract_strided_slice %33 {offsets = [0, 0, 0], sizes = [20, 24, 4], strides = [1, 1, 1]} : vector<20x24x8xbf16> to vector<20x24x4xbf16>
    %35 = vector.extract_strided_slice %34 {offsets = [1, 1, 0], sizes = [16, 16, 4], strides = [1, 1, 1]} : vector<20x24x4xbf16> to vector<16x16x4xbf16>
    %36 = vector.shape_cast %35 : vector<16x16x4xbf16> to vector<256x4xbf16>
    %37 = vector.extract_strided_slice %34 {offsets = [1, 2, 0], sizes = [16, 16, 4], strides = [1, 1, 1]} : vector<20x24x4xbf16> to vector<16x16x4xbf16>
    %38 = vector.shape_cast %37 : vector<16x16x4xbf16> to vector<256x4xbf16>
    %39 = vector.extract_strided_slice %34 {offsets = [1, 3, 0], sizes = [16, 16, 4], strides = [1, 1, 1]} : vector<20x24x4xbf16> to vector<16x16x4xbf16>
    %40 = vector.shape_cast %39 : vector<16x16x4xbf16> to vector<256x4xbf16>
    %41 = vector.extract_strided_slice %34 {offsets = [2, 1, 0], sizes = [16, 16, 4], strides = [1, 1, 1]} : vector<20x24x4xbf16> to vector<16x16x4xbf16>
    %42 = vector.shape_cast %41 : vector<16x16x4xbf16> to vector<256x4xbf16>
    %43 = vector.extract_strided_slice %34 {offsets = [2, 2, 0], sizes = [16, 16, 4], strides = [1, 1, 1]} : vector<20x24x4xbf16> to vector<16x16x4xbf16>
    %44 = vector.shape_cast %43 : vector<16x16x4xbf16> to vector<256x4xbf16>
    %45 = vector.extract_strided_slice %34 {offsets = [2, 3, 0], sizes = [16, 16, 4], strides = [1, 1, 1]} : vector<20x24x4xbf16> to vector<16x16x4xbf16>
    %46 = vector.shape_cast %45 : vector<16x16x4xbf16> to vector<256x4xbf16>
    %47 = vector.extract_strided_slice %34 {offsets = [3, 1, 0], sizes = [16, 16, 4], strides = [1, 1, 1]} : vector<20x24x4xbf16> to vector<16x16x4xbf16>
    %48 = vector.shape_cast %47 : vector<16x16x4xbf16> to vector<256x4xbf16>
    %49 = vector.extract_strided_slice %34 {offsets = [3, 2, 0], sizes = [16, 16, 4], strides = [1, 1, 1]} : vector<20x24x4xbf16> to vector<16x16x4xbf16>
    %50 = vector.shape_cast %49 : vector<16x16x4xbf16> to vector<256x4xbf16>
    %51 = vector.extract_strided_slice %34 {offsets = [3, 3, 0], sizes = [16, 16, 4], strides = [1, 1, 1]} : vector<20x24x4xbf16> to vector<16x16x4xbf16>
    %52 = vector.shape_cast %51 : vector<16x16x4xbf16> to vector<256x4xbf16>
    %53 = tpu.concatenate %36, %38, %40, %42, %44, %46, %48, %50, %52 in 1 : vector<256x4xbf16>, vector<256x4xbf16>, vector<256x4xbf16>, vector<256x4xbf16>, vector<256x4xbf16>, vector<256x4xbf16>, vector<256x4xbf16>, vector<256x4xbf16>, vector<256x4xbf16> -> vector<256x36xbf16>
    %c0_11 = arith.constant 0 : index
    %c0_12 = arith.constant 0 : index
    %54 = vector.load %arg4[%c0_11, %c0_12] : memref<36x8xbf16, #tpu.memory_space<vmem>>, vector<36x8xbf16>
    %cst_13 = arith.constant dense<0.000000e+00> : vector<256x8xf32>
    %55 = tpu.matmul %53, %54, %cst_13 {dimension_numbers = #tpu.dot_dimension_numbers<[1], [0], [0], [1], [0, 0, 1, 1], [], []>} : vector<256x36xbf16>, vector<36x8xbf16>, vector<256x8xf32> -> vector<256x8xf32>
    %c0_14 = arith.constant 0 : index
    %c0_15 = arith.constant 0 : index
    %56 = vector.load %arg5[%c0_14, %c0_15] : memref<1x8xf32, #tpu.memory_space<vmem>>, vector<1x8xf32>
    %57 = vector.broadcast %56 : vector<1x8xf32> to vector<256x8xf32>
    %58 = arith.addf %55, %57 : vector<256x8xf32>
    %cst_16 = arith.constant 0.000000e+00 : f32
    %59 = vector.broadcast %cst_16 : f32 to vector<256x8xf32>
    %60 = arith.maximumf %58, %59 : vector<256x8xf32>
    %61 = vector.extract_strided_slice %33 {offsets = [0, 0, 4], sizes = [20, 24, 4], strides = [1, 1, 1]} : vector<20x24x8xbf16> to vector<20x24x4xbf16>
    %62 = vector.extract_strided_slice %61 {offsets = [0, 0, 0], sizes = [16, 16, 4], strides = [1, 1, 1]} : vector<20x24x4xbf16> to vector<16x16x4xbf16>
    %63 = vector.shape_cast %62 : vector<16x16x4xbf16> to vector<256x4xbf16>
    %64 = vector.extract_strided_slice %61 {offsets = [0, 1, 0], sizes = [16, 16, 4], strides = [1, 1, 1]} : vector<20x24x4xbf16> to vector<16x16x4xbf16>
    %65 = vector.shape_cast %64 : vector<16x16x4xbf16> to vector<256x4xbf16>
    %66 = vector.extract_strided_slice %61 {offsets = [0, 2, 0], sizes = [16, 16, 4], strides = [1, 1, 1]} : vector<20x24x4xbf16> to vector<16x16x4xbf16>
    %67 = vector.shape_cast %66 : vector<16x16x4xbf16> to vector<256x4xbf16>
    %68 = vector.extract_strided_slice %61 {offsets = [0, 3, 0], sizes = [16, 16, 4], strides = [1, 1, 1]} : vector<20x24x4xbf16> to vector<16x16x4xbf16>
    %69 = vector.shape_cast %68 : vector<16x16x4xbf16> to vector<256x4xbf16>
    %70 = vector.extract_strided_slice %61 {offsets = [0, 4, 0], sizes = [16, 16, 4], strides = [1, 1, 1]} : vector<20x24x4xbf16> to vector<16x16x4xbf16>
    %71 = vector.shape_cast %70 : vector<16x16x4xbf16> to vector<256x4xbf16>
    %72 = vector.extract_strided_slice %61 {offsets = [1, 0, 0], sizes = [16, 16, 4], strides = [1, 1, 1]} : vector<20x24x4xbf16> to vector<16x16x4xbf16>
    %73 = vector.shape_cast %72 : vector<16x16x4xbf16> to vector<256x4xbf16>
    %74 = vector.extract_strided_slice %61 {offsets = [1, 1, 0], sizes = [16, 16, 4], strides = [1, 1, 1]} : vector<20x24x4xbf16> to vector<16x16x4xbf16>
    %75 = vector.shape_cast %74 : vector<16x16x4xbf16> to vector<256x4xbf16>
    %76 = vector.extract_strided_slice %61 {offsets = [1, 2, 0], sizes = [16, 16, 4], strides = [1, 1, 1]} : vector<20x24x4xbf16> to vector<16x16x4xbf16>
    %77 = vector.shape_cast %76 : vector<16x16x4xbf16> to vector<256x4xbf16>
    %78 = vector.extract_strided_slice %61 {offsets = [1, 3, 0], sizes = [16, 16, 4], strides = [1, 1, 1]} : vector<20x24x4xbf16> to vector<16x16x4xbf16>
    %79 = vector.shape_cast %78 : vector<16x16x4xbf16> to vector<256x4xbf16>
    %80 = vector.extract_strided_slice %61 {offsets = [1, 4, 0], sizes = [16, 16, 4], strides = [1, 1, 1]} : vector<20x24x4xbf16> to vector<16x16x4xbf16>
    %81 = vector.shape_cast %80 : vector<16x16x4xbf16> to vector<256x4xbf16>
    %82 = vector.extract_strided_slice %61 {offsets = [2, 0, 0], sizes = [16, 16, 4], strides = [1, 1, 1]} : vector<20x24x4xbf16> to vector<16x16x4xbf16>
    %83 = vector.shape_cast %82 : vector<16x16x4xbf16> to vector<256x4xbf16>
    %84 = vector.extract_strided_slice %61 {offsets = [2, 1, 0], sizes = [16, 16, 4], strides = [1, 1, 1]} : vector<20x24x4xbf16> to vector<16x16x4xbf16>
    %85 = vector.shape_cast %84 : vector<16x16x4xbf16> to vector<256x4xbf16>
    %86 = vector.extract_strided_slice %61 {offsets = [2, 2, 0], sizes = [16, 16, 4], strides = [1, 1, 1]} : vector<20x24x4xbf16> to vector<16x16x4xbf16>
    %87 = vector.shape_cast %86 : vector<16x16x4xbf16> to vector<256x4xbf16>
    %88 = vector.extract_strided_slice %61 {offsets = [2, 3, 0], sizes = [16, 16, 4], strides = [1, 1, 1]} : vector<20x24x4xbf16> to vector<16x16x4xbf16>
    %89 = vector.shape_cast %88 : vector<16x16x4xbf16> to vector<256x4xbf16>
    %90 = vector.extract_strided_slice %61 {offsets = [2, 4, 0], sizes = [16, 16, 4], strides = [1, 1, 1]} : vector<20x24x4xbf16> to vector<16x16x4xbf16>
    %91 = vector.shape_cast %90 : vector<16x16x4xbf16> to vector<256x4xbf16>
    %92 = vector.extract_strided_slice %61 {offsets = [3, 0, 0], sizes = [16, 16, 4], strides = [1, 1, 1]} : vector<20x24x4xbf16> to vector<16x16x4xbf16>
    %93 = vector.shape_cast %92 : vector<16x16x4xbf16> to vector<256x4xbf16>
    %94 = vector.extract_strided_slice %61 {offsets = [3, 1, 0], sizes = [16, 16, 4], strides = [1, 1, 1]} : vector<20x24x4xbf16> to vector<16x16x4xbf16>
    %95 = vector.shape_cast %94 : vector<16x16x4xbf16> to vector<256x4xbf16>
    %96 = vector.extract_strided_slice %61 {offsets = [3, 2, 0], sizes = [16, 16, 4], strides = [1, 1, 1]} : vector<20x24x4xbf16> to vector<16x16x4xbf16>
    %97 = vector.shape_cast %96 : vector<16x16x4xbf16> to vector<256x4xbf16>
    %98 = vector.extract_strided_slice %61 {offsets = [3, 3, 0], sizes = [16, 16, 4], strides = [1, 1, 1]} : vector<20x24x4xbf16> to vector<16x16x4xbf16>
    %99 = vector.shape_cast %98 : vector<16x16x4xbf16> to vector<256x4xbf16>
    %100 = vector.extract_strided_slice %61 {offsets = [3, 4, 0], sizes = [16, 16, 4], strides = [1, 1, 1]} : vector<20x24x4xbf16> to vector<16x16x4xbf16>
    %101 = vector.shape_cast %100 : vector<16x16x4xbf16> to vector<256x4xbf16>
    %102 = vector.extract_strided_slice %61 {offsets = [4, 0, 0], sizes = [16, 16, 4], strides = [1, 1, 1]} : vector<20x24x4xbf16> to vector<16x16x4xbf16>
    %103 = vector.shape_cast %102 : vector<16x16x4xbf16> to vector<256x4xbf16>
    %104 = vector.extract_strided_slice %61 {offsets = [4, 1, 0], sizes = [16, 16, 4], strides = [1, 1, 1]} : vector<20x24x4xbf16> to vector<16x16x4xbf16>
    %105 = vector.shape_cast %104 : vector<16x16x4xbf16> to vector<256x4xbf16>
    %106 = vector.extract_strided_slice %61 {offsets = [4, 2, 0], sizes = [16, 16, 4], strides = [1, 1, 1]} : vector<20x24x4xbf16> to vector<16x16x4xbf16>
    %107 = vector.shape_cast %106 : vector<16x16x4xbf16> to vector<256x4xbf16>
    %108 = vector.extract_strided_slice %61 {offsets = [4, 3, 0], sizes = [16, 16, 4], strides = [1, 1, 1]} : vector<20x24x4xbf16> to vector<16x16x4xbf16>
    %109 = vector.shape_cast %108 : vector<16x16x4xbf16> to vector<256x4xbf16>
    %110 = vector.extract_strided_slice %61 {offsets = [4, 4, 0], sizes = [16, 16, 4], strides = [1, 1, 1]} : vector<20x24x4xbf16> to vector<16x16x4xbf16>
    %111 = vector.shape_cast %110 : vector<16x16x4xbf16> to vector<256x4xbf16>
    %112 = tpu.concatenate %63, %65, %67, %69, %71, %73, %75, %77, %79, %81, %83, %85, %87, %89, %91, %93 in 1 : vector<256x4xbf16>, vector<256x4xbf16>, vector<256x4xbf16>, vector<256x4xbf16>, vector<256x4xbf16>, vector<256x4xbf16>, vector<256x4xbf16>, vector<256x4xbf16>, vector<256x4xbf16>, vector<256x4xbf16>, vector<256x4xbf16>, vector<256x4xbf16>, vector<256x4xbf16>, vector<256x4xbf16>, vector<256x4xbf16>, vector<256x4xbf16> -> vector<256x64xbf16>
    %113 = tpu.concatenate %95, %97, %99, %101, %103, %105, %107, %109, %111 in 1 : vector<256x4xbf16>, vector<256x4xbf16>, vector<256x4xbf16>, vector<256x4xbf16>, vector<256x4xbf16>, vector<256x4xbf16>, vector<256x4xbf16>, vector<256x4xbf16>, vector<256x4xbf16> -> vector<256x36xbf16>
    %114 = tpu.concatenate %112, %113 in 1 : vector<256x64xbf16>, vector<256x36xbf16> -> vector<256x100xbf16>
    %c0_17 = arith.constant 0 : index
    %c0_18 = arith.constant 0 : index
    %115 = vector.load %arg6[%c0_17, %c0_18] : memref<100x8xbf16, #tpu.memory_space<vmem>>, vector<100x8xbf16>
    %cst_19 = arith.constant dense<0.000000e+00> : vector<256x8xf32>
    %116 = tpu.matmul %114, %115, %cst_19 {dimension_numbers = #tpu.dot_dimension_numbers<[1], [0], [0], [1], [0, 0, 1, 1], [], []>} : vector<256x100xbf16>, vector<100x8xbf16>, vector<256x8xf32> -> vector<256x8xf32>
    %c0_20 = arith.constant 0 : index
    %c0_21 = arith.constant 0 : index
    %117 = vector.load %arg7[%c0_20, %c0_21] : memref<1x8xf32, #tpu.memory_space<vmem>>, vector<1x8xf32>
    %118 = vector.broadcast %117 : vector<1x8xf32> to vector<256x8xf32>
    %119 = arith.addf %116, %118 : vector<256x8xf32>
    %cst_22 = arith.constant 0.000000e+00 : f32
    %120 = vector.broadcast %cst_22 : f32 to vector<256x8xf32>
    %121 = arith.maximumf %119, %120 : vector<256x8xf32>
    %122 = arith.extf %1 : vector<20x24x4xbf16> to vector<20x24x4xf32>
    %cst_23 = arith.constant -3.000000e+38 : f32
    %123 = vector.shape_cast %14 : vector<20x24x1xi1> to vector<20x24x1xi1>
    %124 = vector.broadcast %123 : vector<20x24x1xi1> to vector<20x24x4xi1>
    %125 = vector.broadcast %cst_23 : f32 to vector<20x24x4xf32>
    %126 = arith.select %124, %122, %125 : vector<20x24x4xi1>, vector<20x24x4xf32>
    %127 = vector.extract_strided_slice %126 {offsets = [1, 1, 0], sizes = [16, 16, 4], strides = [1, 1, 1]} : vector<20x24x4xf32> to vector<16x16x4xf32>
    %128 = vector.extract_strided_slice %126 {offsets = [1, 2, 0], sizes = [16, 16, 4], strides = [1, 1, 1]} : vector<20x24x4xf32> to vector<16x16x4xf32>
    %129 = arith.maximumf %127, %128 : vector<16x16x4xf32>
    %130 = vector.extract_strided_slice %126 {offsets = [1, 3, 0], sizes = [16, 16, 4], strides = [1, 1, 1]} : vector<20x24x4xf32> to vector<16x16x4xf32>
    %131 = arith.maximumf %129, %130 : vector<16x16x4xf32>
    %132 = vector.extract_strided_slice %126 {offsets = [2, 1, 0], sizes = [16, 16, 4], strides = [1, 1, 1]} : vector<20x24x4xf32> to vector<16x16x4xf32>
    %133 = arith.maximumf %131, %132 : vector<16x16x4xf32>
    %134 = vector.extract_strided_slice %126 {offsets = [2, 2, 0], sizes = [16, 16, 4], strides = [1, 1, 1]} : vector<20x24x4xf32> to vector<16x16x4xf32>
    %135 = arith.maximumf %133, %134 : vector<16x16x4xf32>
    %136 = vector.extract_strided_slice %126 {offsets = [2, 3, 0], sizes = [16, 16, 4], strides = [1, 1, 1]} : vector<20x24x4xf32> to vector<16x16x4xf32>
    %137 = arith.maximumf %135, %136 : vector<16x16x4xf32>
    %138 = vector.extract_strided_slice %126 {offsets = [3, 1, 0], sizes = [16, 16, 4], strides = [1, 1, 1]} : vector<20x24x4xf32> to vector<16x16x4xf32>
    %139 = arith.maximumf %137, %138 : vector<16x16x4xf32>
    %140 = vector.extract_strided_slice %126 {offsets = [3, 2, 0], sizes = [16, 16, 4], strides = [1, 1, 1]} : vector<20x24x4xf32> to vector<16x16x4xf32>
    %141 = arith.maximumf %139, %140 : vector<16x16x4xf32>
    %142 = vector.extract_strided_slice %126 {offsets = [3, 3, 0], sizes = [16, 16, 4], strides = [1, 1, 1]} : vector<20x24x4xf32> to vector<16x16x4xf32>
    %143 = arith.maximumf %141, %142 : vector<16x16x4xf32>
    %144 = vector.shape_cast %143 : vector<16x16x4xf32> to vector<256x4xf32>
    %145 = arith.truncf %144 : vector<256x4xf32> to vector<256x4xbf16>
    %c0_24 = arith.constant 0 : index
    %c0_25 = arith.constant 0 : index
    %146 = vector.load %arg8[%c0_24, %c0_25] : memref<4x8xbf16, #tpu.memory_space<vmem>>, vector<4x8xbf16>
    %cst_26 = arith.constant dense<0.000000e+00> : vector<256x8xf32>
    %147 = tpu.matmul %145, %146, %cst_26 {dimension_numbers = #tpu.dot_dimension_numbers<[1], [0], [0], [1], [0, 0, 1, 1], [], []>} : vector<256x4xbf16>, vector<4x8xbf16>, vector<256x8xf32> -> vector<256x8xf32>
    %c0_27 = arith.constant 0 : index
    %c0_28 = arith.constant 0 : index
    %148 = vector.load %arg9[%c0_27, %c0_28] : memref<1x8xf32, #tpu.memory_space<vmem>>, vector<1x8xf32>
    %149 = vector.broadcast %148 : vector<1x8xf32> to vector<256x8xf32>
    %150 = arith.addf %147, %149 : vector<256x8xf32>
    %cst_29 = arith.constant 0.000000e+00 : f32
    %151 = vector.broadcast %cst_29 : f32 to vector<256x8xf32>
    %152 = arith.maximumf %150, %151 : vector<256x8xf32>
    %153 = tpu.concatenate %24, %60, %121, %152 in 1 : vector<256x8xf32>, vector<256x8xf32>, vector<256x8xf32>, vector<256x8xf32> -> vector<256x32xf32>
    %154 = tpu.transpose %153, [1, 0] : vector<256x32xf32> -> vector<32x256xf32>
    %c0_30 = arith.constant 0 : index
    %c0_31 = arith.constant 0 : index
    %c0_32 = arith.constant 0 : index
    %155 = vector.load %arg10[%c0_30, %c0_31, %c0_32] : memref<1x32x256xf32, #tpu.memory_space<vmem>>, vector<1x32x256xf32>
    %156 = vector.shape_cast %155 : vector<1x32x256xf32> to vector<32x256xf32>
    %157 = vector.shape_cast %154 : vector<32x256xf32> to vector<1x32x256xf32>
    tpu.vector_store %arg10[%c0_30, %c0_31, %c0_32], %157 {strides = array<i32>} : memref<1x32x256xf32, #tpu.memory_space<vmem>>, vector<1x32x256xf32>,
    return
  }
  func.func @transform_0(%arg0: i32) -> (i32, i32, i32, i32) {
    %c0_i32 = arith.constant 0 : i32
    %c0_i32_0 = arith.constant 0 : i32
    %c0_i32_1 = arith.constant 0 : i32
    %c0_i32_2 = arith.constant 0 : i32
    return %arg0, %c0_i32, %c0_i32_0, %c0_i32_1 : i32, i32, i32, i32
  }
  func.func @transform_1(%arg0: i32) -> (i32, i32) {
    %c0_i32 = arith.constant 0 : i32
    %c0_i32_0 = arith.constant 0 : i32
    %c0_i32_1 = arith.constant 0 : i32
    return %c0_i32, %c0_i32_0 : i32, i32
  }
  func.func @transform_2(%arg0: i32) -> (i32, i32) {
    %c0_i32 = arith.constant 0 : i32
    %c0_i32_0 = arith.constant 0 : i32
    %c0_i32_1 = arith.constant 0 : i32
    return %c0_i32, %c0_i32_0 : i32, i32
  }
  func.func @transform_3(%arg0: i32) -> (i32, i32) {
    %c0_i32 = arith.constant 0 : i32
    %c0_i32_0 = arith.constant 0 : i32
    %c0_i32_1 = arith.constant 0 : i32
    return %c0_i32, %c0_i32_0 : i32, i32
  }
  func.func @transform_4(%arg0: i32) -> (i32, i32) {
    %c0_i32 = arith.constant 0 : i32
    %c0_i32_0 = arith.constant 0 : i32
    %c0_i32_1 = arith.constant 0 : i32
    return %c0_i32, %c0_i32_0 : i32, i32
  }
  func.func @transform_5(%arg0: i32) -> (i32, i32) {
    %c0_i32 = arith.constant 0 : i32
    %c0_i32_0 = arith.constant 0 : i32
    %c0_i32_1 = arith.constant 0 : i32
    return %c0_i32, %c0_i32_0 : i32, i32
  }
  func.func @transform_6(%arg0: i32) -> (i32, i32) {
    %c0_i32 = arith.constant 0 : i32
    %c0_i32_0 = arith.constant 0 : i32
    %c0_i32_1 = arith.constant 0 : i32
    return %c0_i32, %c0_i32_0 : i32, i32
  }
  func.func @transform_7(%arg0: i32) -> (i32, i32) {
    %c0_i32 = arith.constant 0 : i32
    %c0_i32_0 = arith.constant 0 : i32
    %c0_i32_1 = arith.constant 0 : i32
    return %c0_i32, %c0_i32_0 : i32, i32
  }
  func.func @transform_8(%arg0: i32) -> (i32, i32) {
    %c0_i32 = arith.constant 0 : i32
    %c0_i32_0 = arith.constant 0 : i32
    %c0_i32_1 = arith.constant 0 : i32
    return %c0_i32, %c0_i32_0 : i32, i32
  }
  func.func @transform_9(%arg0: i32) -> (i32, i32, i32) {
    %c0_i32 = arith.constant 0 : i32
    %c0_i32_0 = arith.constant 0 : i32
    %c0_i32_1 = arith.constant 0 : i32
    return %arg0, %c0_i32, %c0_i32_0 : i32, i32, i32
  }
}

</mosaic_0001>

<bundles_post_ra>
// kernel: inception_v1_forward.1
= control target key start
LH: loop header
LB: loop body
LE: loop exit
PB: predicated region body
PF: predicated region fallthrough
CT: control target
= control target key end

     0   :  { %s6902_s30 = smov 0   ;;  %s12379_s0 = inlined_call_operand.vmem [shape: bf16[2,20,24,4], index: 0, kind: input, shape index: {}]   ;;  %s12380_s1 = inlined_call_operand.vmem [shape: bf16[4,16], index: 1, kind: input, shape index: {}]   ;;  %s12381_s2 = inlined_call_operand.vmem [shape: f32[1,16], index: 2, kind: input, shape index: {}]   ;;  %s12382_s3 = inlined_call_operand.vmem [shape: bf16[36,8], index: 3, kind: input, shape index: {}]   ;;  %s12383_s4 = inlined_call_operand.vmem [shape: f32[1,8], index: 4, kind: input, shape index: {}]   ;;  %s12384_s5 = inlined_call_operand.vmem [shape: bf16[100,8], index: 5, kind: input, shape index: {}]   ;;  %s12385_s6 = inlined_call_operand.vmem [shape: f32[1,8], index: 6, kind: input, shape index: {}]   ;;  %s12386_s7 = inlined_call_operand.vmem [shape: bf16[4,8], index: 7, kind: input, shape index: {}]   ;;  %s12387_s8 = inlined_call_operand.vmem [shape: f32[1,8], index: 8, kind: input, shape index: {}]   ;;  %s12388_s9 = inlined_call_operand.vmem [shape: f32[2,32,256], index: 9, kind: output, shape index: {}]  }
   0x1 LB: > { %s6294_s10 = sadd.s32 4294967295, %s6831_s30   ;;  %p6298_p0 = scmp.ge.s32.totalorder %s6831_s30, 1  ;;  %s6831_s30 = sphi %s6902_s30, %s19_s30  }
   0x2   : > { %p287_p1 = scmp.lt.s32.totalorder %s6831_s30, 3 }
   0x4   : > { %p288_p2 = pnand %p6298_p0, %p287_p1 }
   0x6   : > { %291 = sbr.rel (%p288_p2) target bundleno = 1894 (0x766), region = 56 }
   0xd   : > { %v416_v0 = vld [vmem:[%s12380_s1] sm:$0x3]  ;;  %vm665_vm0 = vcmask 1041408   ;;  %p323_p3 = scmp.lt.s32.totalorder %s6294_s10, 1  ;;  %v394_v1 = vlaneseq  ;;  %v6833_v4 = vmov 0   ;;  %s6834_s14 = smov 16  }
   0xe   : > { %6699 = vmatprep.subr.msk.bf16.mxu0 %vm665_vm0, %v416_v0  ;;  %6700 = vmatprep.subr.msk.bf16.mxu1 %vm665_vm0, %v416_v0  ;;  %v667_v2 = vsel %vm665_vm0, %v416_v0, 0  ;;  %v6920_v5 = vrot.slane %v6833_v4, 1  ;;  %vm574_vm1 = vcmask 31744   ;;  %v1551_v7 = vrot.slane %v6833_v4, 2  ;;  %s6837_s18 = smov 120   ;;  %s6838_s19 = smov 20  }
   0xf   : > { %6518 = vmatpush3.bf16.msra.mxu0 %v667_v2  ;;  %6698 = vmatpush3.bf16.msra.mxu1 %v667_v2  ;;  %s14099_s10 = smov (!%p323_p3, %s6294_s10), 1  ;;  %v6918_v3 = vshrl.u32 %v394_v1, 7  ;;  %v12393_v8 = vmov 0.0|0.0   ;;  %v6836_v11 = vmov -3e+38   ;;  %s6839_s20 = smov 124  }
  0x10   : > { %12793 = vst [vmem:[#allocation3_spill] sm:$0xff] %v6920_v5  ;;  %s6704_s13 = smul.u32 240, %s14099_s10  ;;  %1936 = vrot.lane.b32.xlu1 %v6920_v5, %s6834_s14  ;;  %v6927_v6 = vpack.i.bf16 %v6920_v5, %v6920_v5  ;;  %v6930_v9 = vrot.slane %v12393_v8, 1  ;;  %v6940_v12 = vrot.slane %v6836_v11, 1  ;;  %v6955_v19 = vor.u32 %v1551_v7, %v6920_v5  ;;  %s6840_s21 = smov 24  }
  0x11   : > { %12792 = vst [vmem:[#allocation2_spill] sm:$0xff] %v6918_v3  ;;  %v6938_v10 = vadd.s32 16, %v6918_v3  ;;  %vm398_vm2 = vcmp.ge.s32.totalorder %v6918_v3, 2  ;;  %vm12704_vm4 = vcmask 1045504   ;;  %vm1500_vm5 = vcmask 1046528   ;;  %s6841_s22 = smov 116  }
  0x12   : > { %12794 = vst [vmem:[#allocation4_spill] sm:$0xff] %v6927_v6  ;;  %12795 = vst [vmem:[#allocation5_spill] sm:$0xff] %v6930_v9  ;;  %s6935_s17 = scalar_lea.vmem %s12379_s0, %s6704_s13  ;;  %6733 = vrot.lane.b32.xlu0 %v6927_v6, %s6837_s18  ;;  %v6983_v32 = vrot.slane %v6836_v11, 2  ;;  %v4709_v36 = vmax.f32 %v6940_v12, -3e+38  ;;  %v7027_v49 = vrot.slane %v12393_v8, 2 }
  0x13   : > { %12796 = vst [vmem:[#allocation6_spill] sm:$0xff] %v6940_v12  ;;  %v6742_v13 = vld [vmem:[%s6935_s17] sm:$0xff]   ;;  %v6744_v17 = vld [vmem:[%s6935_s17 + $0x8] sm:$0xff]   ;;  %12798 = vst [vmem:[#allocation8_spill] sm:$0xff] %v6955_v19  ;;  %vm409_vm3 = vcmp.lt.s32.totalorder %v6938_v10, 18  ;;  %s6842_s23 = smov 4  }
  0x14   : > { %v382_v14 = vld [vmem:[%s6935_s17 + $0xc0] sm:$0xff]   ;;  %1968 = vrot.lane.b32.xlu1 %v6930_v9, %s6838_s19  ;;  %6519 = vmatprep.mubr.msk.bf16.mxu0 %vm574_vm1, %v6742_v13  ;;  %v384_v18 = vld [vmem:[%s6935_s17 + $0xc8] sm:$0xff]   ;;  %v6746_v21 = vld [vmem:[%s6935_s17 + $0x10] sm:$0xff]   ;;  %12802 = vst [vmem:[#allocation12_spill] sm:$0xff] %v6983_v32  ;;  %v7034_v53 = vmax.f32 %v4709_v36, %v6983_v32  ;;  %s6843_s24 = smov 8   ;;  %s6844_s27 = smov 12  }
  0x15   : > { %v4469_v15 = vunpack.c.l.bf16 %v382_v14  ;;  %v6950_v16 = vunpack.c.h.bf16 %v382_v14  ;;  %v4471_v20 = vunpack.c.l.bf16 %v384_v18  ;;  %v386_v22 = vld [vmem:[%s6935_s17 + $0xd0] sm:$0xff]   ;;  %6567 = vmatprep.mubr.msk.bf16.mxu1 %vm574_vm1, %v382_v14  ;;  %6520 = vmatmul.mubr.msk.bf16.vlgmr.msra.gmra.mrb[0].mxu0 %vm574_vm1, %v6744_v17  ;;  %v4472_v25 = vunpack.c.h.bf16 %v384_v18  ;;  %v340_v30 = vld [vmem:[%s6935_s17 + $0x18] sm:$0xff]   ;;  %v342_v48 = vld [vmem:[%s6935_s17 + $0x20] sm:$0xff]   ;;  %12810 = vst [vmem:[#allocation20_spill] sm:$0xff] %v7027_v49  ;;  %s6845_s26 = smov 28   ;;  %s6846_s28 = smov 32  }
  0x16   : > { %1778 = vrot.lane.b32.xlu0 %v6930_v9, %s6839_s20  ;;  %6568 = vmatmul.mubr.msk.bf16.vlgmr.msra.gmra.mrb[0].mxu1 %vm574_vm1, %v384_v18  ;;  %v4474_v35 = vunpack.c.h.bf16 %v386_v22  ;;  %v4427_v39 = vunpack.c.l.bf16 %v340_v30  ;;  %v4428_v43 = vunpack.c.h.bf16 %v340_v30  ;;  %v6749_v44 = vld [vmem:[%s6935_s17 + $0xd8] sm:$0xff]   ;;  %12812 = vst [vmem:[#allocation22_spill] sm:$0xff] %v7034_v53  ;;  %v344_v58 = vld [vmem:[%s6935_s17 + $0x28] sm:$0xff]   ;;  %v4429_v59 = vunpack.c.l.bf16 %v342_v48  ;;  %v346_v4 = vld [vmem:[%s6935_s17 + $0x30] sm:$0xff]   ;;  %s6847_s29 = smov 36   ;;  %s6848_s11 = smov 40  }
  0x17   : > { %12797 = vst [vmem:[#allocation7_spill] sm:$0xff] %v6950_v16  ;;  %v6965_v23 = vsel %vm398_vm2, %v4469_v15, -3e+38  ;;  %v12390_v24 = vrot.slane %v6950_v16, 1  ;;  %v12389_v28 = vrot.slane %v6950_v16, 2  ;;  %6523 = vmatprep.mubr.msk.bf16.mxu0 %vm574_vm1, %v6746_v21  ;;  %6571 = vmatprep.mubr.msk.bf16.mxu1 %vm574_vm1, %v386_v22  ;;  %v4430_v60 = vunpack.c.h.bf16 %v342_v48  ;;  %v348_v17 = vld [vmem:[%s6935_s17 + $0x38] sm:$0xff]  }
  0x18   : > { %12799 = vst [vmem:[#allocation9_spill] sm:$0xff] %v6965_v23  ;;  %v4656_v26 = vrot.slane %v6965_v23, 1  ;;  %v4832_v27 = vrot.slane %v6965_v23, 2  ;;  %v6975_v29 = vsel %vm409_vm3, %v4471_v20, -3e+38  ;;  %2000 = vrot.lane.b32.xlu1 %v6955_v19, %s6840_s21  ;;  %v4587_v51 = vrot.slane %v4428_v43, 1 }
  0x19   : > { %12800 = vst [vmem:[#allocation10_spill] sm:$0xff] %v6975_v29  ;;  %v6980_v31 = vrot.slane %v6975_v29, 1  ;;  %v6993_v34 = vrot.slane %v6975_v29, 2  ;;  %v7009_v41 = vsel %vm398_vm2, %v4472_v25, -3e+38  ;;  %v4763_v52 = vrot.slane %v4428_v43, 2 }
  0x1a   : > { %v6990_v33 = vsel %vm1500_vm5, %v4656_v26, %v12390_v24  ;;  %2650 = vrot.lane.b32.xlu0 %v12393_v8, %s6841_s22  ;;  %v7005_v40 = vsel %vm12704_vm4, %v4832_v27, %v12389_v28  ;;  %12806 = vst [vmem:[#allocation16_spill] sm:$0xff] %v7009_v41  ;;  %v7013_v42 = vsel %vm409_vm3, %v4474_v35, -3e+38  ;;  %v7031_v50 = vsel %vm398_vm2, %v4427_v39, -3e+38  ;;  %v358_v25 = vld [vmem:[%s6935_s17 + $0x60] sm:$0xff]  }
  0x1b   : > { %12801 = vst [vmem:[#allocation11_spill] sm:$0xff] %v6980_v31  ;;  %12803 = vst [vmem:[#allocation13_spill] sm:$0xff] %v6990_v33  ;;  %v4754_v37 = vmax.f32 %v6965_v23, %v6990_v33  ;;  %v4756_v38 = vmax.f32 %v6975_v29, %v6980_v31  ;;  %v7021_v47 = vrot.slane %v7013_v42, 1  ;;  %v4586_v56 = vrot.slane %v7031_v50, 1  ;;  %v366_v33 = vld [vmem:[%s6935_s17 + $0x80] sm:$0xff]   ;;  %s6849_s12 = smov 44  }
  0x1c   : > { %12804 = vst [vmem:[#allocation14_spill] sm:$0xff] %v6993_v34  ;;  %12805 = vst [vmem:[#allocation15_spill] sm:$0xff] %v7005_v40  ;;  %2652 = vrot.lane.b32.xlu1 %v12393_v8, %s6841_s22  ;;  %v4762_v57 = vrot.slane %v7031_v50, 2  ;;  %v4934_v1 = vmax.f32 %v7034_v53, %v4428_v43  ;;  %v7063_v2 = vsel %vm409_vm3, %v4429_v59, -3e+38  ;;  %v4432_v15 = vunpack.c.h.bf16 %v344_v58  ;;  %s6850_s13 = smov 48  }
  0x1d   : > { %12807 = vst [vmem:[#allocation17_spill] sm:$0xff] %v7013_v42  ;;  %v7017_v45 = vmax.f32 %v4754_v37, %v7005_v40  ;;  %v4932_v46 = vmax.f32 %v4756_v38, %v6993_v34  ;;  %12809 = vst [vmem:[#allocation19_spill] sm:$0xff] %v7021_v47  ;;  %6524 = vmatmul.mubr.msk.bf16.gmra.mrb[4].mxu0 %vm574_vm1, %v340_v30  ;;  %v7050_v62 = vsel %vm1500_vm5, %v4586_v56, %v4587_v51  ;;  %vm1275_vm6 = vsmask.f32 7424 }
  0x1e   : > { %12811 = vst [vmem:[#allocation21_spill] sm:$0xff] %v7031_v50  ;;  %2684 = vrot.lane.b32.xlu0 %v6930_v9, %s6839_s20  ;;  %6572 = vmatmul.mubr.msk.bf16.gmra.mrb[4].mxu1 %vm574_vm1, %v6749_v44  ;;  %12814 = vst [vmem:[#allocation24_spill] sm:$0xff] %v7050_v62  ;;  %v7053_v63 = vsel %vm12704_vm4, %v4762_v57, %v4763_v52  ;;  %v4712_v0 = vmax.f32 %v7031_v50, %v7050_v62  ;;  %v7070_v7 = vsel %vm398_vm2, %v4430_v60, -3e+38  ;;  %vm1549_vm7 = vsmask.f32 6400 }
  0x1f   : > { %12808 = vst [vmem:[#allocation18_spill] sm:$0xff] %v7017_v45  ;;  %v4980_v55 = vmax.f32 %v4932_v46, %v7013_v42  ;;  %12815 = vst [vmem:[#allocation25_spill] sm:$0xff] %v7053_v63  ;;  %6527 = vmatprep.mubr.msk.bf16.mxu0 %vm574_vm1, %v342_v48  ;;  %v7073_v11 = vrot.slane %v7063_v2, 1  ;;  %v7076_v13 = vrot.slane %v7063_v2, 2  ;;  %v7100_v30 = vsel %vm409_vm3, %v4432_v15, -3e+38 }
  0x20   : > { %2686 = vrot.lane.b32.xlu1 %v7027_v49, %s6842_s23  ;;  %12816 = vst [vmem:[#allocation26_spill] sm:$0xff] %v7063_v2  ;;  %12817 = vst [vmem:[#allocation27_spill] sm:$0xff] %v7070_v7  ;;  %v7079_v14 = vmax.f32 %v4712_v0, %v7053_v63  ;;  %v4433_v35 = vunpack.c.l.bf16 %v346_v4  ;;  %v7106_v37 = vrot.slane %v7100_v30, 1  ;;  %v7109_v38 = vrot.slane %v7100_v30, 2  ;;  %v350_v15 = vld [vmem:[%s6935_s17 + $0x40] sm:$0xff]   ;;  %v362_v45 = vld [vmem:[%s6935_s17 + $0x70] sm:$0xff]  }
  0x21   : > { %v7047_v61 = vmax.f32 %v4980_v55, %v7021_v47  ;;  %12818 = vst [vmem:[#allocation28_spill] sm:$0xff] %v7073_v11  ;;  %12819 = vst [vmem:[#allocation29_spill] sm:$0xff] %v7076_v13  ;;  %v4590_v18 = vsel %vm1500_vm5, %v4587_v51, %v7073_v11  ;;  %v4714_v20 = vmax.f32 %v7063_v2, %v7073_v11  ;;  %v7112_v39 = vunpack.c.h.bf16 %v346_v4 }
  0x22   : > { %2688 = vrot.lane.b32.xlu0 %v7027_v49, %s6842_s23  ;;  %12820 = vst [vmem:[#allocation30_spill] sm:$0xff] %v7079_v14  ;;  %v7088_v21 = vsel %vm12704_vm4, %v4763_v52, %v7076_v13  ;;  %v4713_v22 = vmax.f32 %v4428_v43, %v4590_v18  ;;  %v7094_v26 = vmax.f32 %v4934_v1, %v4590_v18  ;;  %12823 = vst [vmem:[#allocation33_spill] sm:$0xff] %v7100_v30  ;;  %vm2050_vm8 = vcmask 64512  }
  0x23   : > { %12813 = vst [vmem:[#allocation23_spill] sm:$0xff] %v7047_v61  ;;  %12821 = vst [vmem:[#allocation31_spill] sm:$0xff] %v7088_v21  ;;  %v4890_v27 = vmax.f32 %v4714_v20, %v7076_v13  ;;  %v7117_v44 = vsel %vm398_vm2, %v4433_v35, -3e+38  ;;  %v4435_v46 = vunpack.c.l.bf16 %v348_v17  ;;  %v4717_v48 = vmax.f32 %v7100_v30, %v7106_v37 }
  0x24   : > { %2718 = vrot.lane.b32.xlu1 %v12393_v8, %s6843_s24  ;;  %12822 = vst [vmem:[#allocation32_spill] sm:$0xff] %v7094_v26  ;;  %v7103_v36 = vmax.f32 %v4713_v22, %v7088_v21  ;;  %12825 = vst [vmem:[#allocation35_spill] sm:$0xff] %v7106_v37  ;;  %v4596_v51 = vrot.slane %v7117_v44, 1  ;;  %v12392_v52 = vrot.slane %v7112_v39, 1  ;;  %v4772_v55 = vrot.slane %v7117_v44, 2  ;;  %v360_v8 = vld [vmem:[%s6935_s17 + $0x68] sm:$0xff]  }
  0x25   : > { %6528 = vmatmul.mubr.msk.bf16.gmra.mrb[8].mxu0 %vm574_vm1, %v344_v58  ;;  %12826 = vst [vmem:[#allocation36_spill] sm:$0xff] %v7109_v38  ;;  %12827 = vst [vmem:[#allocation37_spill] sm:$0xff] %v7112_v39  ;;  %v4938_v43 = vmax.f32 %v4890_v27, %v7100_v30  ;;  %v12391_v57 = vrot.slane %v7112_v39, 2  ;;  %v4436_v58 = vunpack.c.h.bf16 %v348_v17  ;;  %v4489_v59 = vsel %vm409_vm3, %v4435_v46, -3e+38 }
  0x26   : > { %12824 = vst [vmem:[#allocation34_spill] sm:$0xff] %v7103_v36  ;;  %6531 = vmatprep.mubr.msk.bf16.mxu0 %vm574_vm1, %v346_v4  ;;  %12828 = vst [vmem:[#allocation38_spill] sm:$0xff] %v7117_v44  ;;  %v7131_v60 = vsel %vm1500_vm5, %v4596_v51, %v12392_v52  ;;  %v7133_v0 = vrot.slane %v4489_v59, 1  ;;  %v7135_v1 = vrot.slane %v4489_v59, 2  ;;  %v4893_v4 = vmax.f32 %v4717_v48, %v7109_v38 }
  0x27   : > { %v4997_v56 = vmax.f32 %v4938_v43, %v7106_v37  ;;  %12829 = vst [vmem:[#allocation39_spill] sm:$0xff] %v7131_v60  ;;  %v4718_v18 = vmax.f32 %v7117_v44, %v7131_v60  ;;  %v7144_v20 = vsel %vm12704_vm4, %v4772_v55, %v12391_v57  ;;  %v7149_v27 = vsel %vm398_vm2, %v4436_v58, -3e+38  ;;  %v356_v58 = vld [vmem:[%s6935_s17 + $0x58] sm:$0xff]  }
  0x28   : > { %12830 = vst [vmem:[#allocation40_spill] sm:$0xff] %v7133_v0  ;;  %12831 = vst [vmem:[#allocation41_spill] sm:$0xff] %v7135_v1  ;;  %v4720_v35 = vmax.f32 %v4489_v59, %v7133_v0  ;;  %v4941_v43 = vmax.f32 %v4893_v4, %v4489_v59  ;;  %v4438_v55 = vunpack.c.h.bf16 %v350_v15  ;;  %v354_v4 = vld [vmem:[%s6935_s17 + $0x50] sm:$0xff]   ;;  %v4450_v47 = vunpack.c.h.bf16 %v362_v45 }
  0x29   : > { %12832 = vst [vmem:[#allocation42_spill] sm:$0xff] %v7144_v20  ;;  %v5053_v22 = vmax.f32 %v4997_v56, %v7109_v38  ;;  %12833 = vst [vmem:[#allocation43_spill] sm:$0xff] %v7149_v27  ;;  %v7154_v46 = vmax.f32 %v4718_v18, %v7144_v20  ;;  %v352_v56 = vld [vmem:[%s6935_s17 + $0x48] sm:$0xff]   ;;  %v4453_v34 = vunpack.c.l.bf16 %v366_v33  ;;  %vm2083_vm9 = vcmask 97280  }
  0x2a   : > { %v7157_v51 = vmax.f32 %v4941_v43, %v7133_v0  ;;  %v4896_v54 = vmax.f32 %v4720_v35, %v7135_v1  ;;  %vm2116_vm10 = vcmask 130048   ;;  %vm2149_vm11 = vcmask 162816  }
  0x2b   : > { %12834 = vst [vmem:[#allocation44_spill] sm:$0xff] %v7154_v46  ;;  %v5101_v48 = vmax.f32 %v5053_v22, %v4489_v59  ;;  %v4441_v59 = vunpack.c.l.bf16 %v354_v4  ;;  %vm2182_vm12 = vcmask 195584   ;;  %vm2215_vm13 = vcmask 228352  }
  0x2c   : > { %12835 = vst [vmem:[#allocation45_spill] sm:$0xff] %v7157_v51  ;;  %vm2308_vm14 = vcmask 293888   ;;  %vm12770_vm15 = vcmask 261120  }
  0x2d   : > { %6532 = vmatmul.mubr.msk.bf16.gmra.mrb[12].mxu0 %vm574_vm1, %v348_v17  ;;  %v5160_v28 = vmax.f32 %v5101_v48, %v7133_v0  ;;  %v7168_v17 = vsel %vm409_vm3, %v4438_v55, -3e+38 }
  0x2e   : > { %6535 = vmatprep.mubr.msk.bf16.mxu0 %vm574_vm1, %v350_v15  ;;  %12836 = vst [vmem:[#allocation46_spill] sm:$0xff] %v7168_v17  ;;  %v7174_v22 = vrot.slane %v7168_v17, 1  ;;  %v4944_v35 = vmax.f32 %v4896_v54, %v7168_v17  ;;  %v7179_v15 = vsel %vm409_vm3, %v4441_v59, -3e+38  ;;  %v7184_v48 = vrot.slane %v7168_v17, 2 }
  0x2f   : > { %v7171_v18 = vmax.f32 %v5160_v28, %v7135_v1  ;;  %12839 = vst [vmem:[#allocation49_spill] sm:$0xff] %v7179_v15  ;;  %v7190_v55 = vrot.slane %v7179_v15, 1  ;;  %v7193_v24 = vrot.slane %v7179_v15, 2 }
  0x30   : > { %12838 = vst [vmem:[#allocation48_spill] sm:$0xff] %v7174_v22  ;;  %v4723_v43 = vmax.f32 %v7168_v17, %v7174_v22  ;;  %12840 = vst [vmem:[#allocation50_spill] sm:$0xff] %v7184_v48  ;;  %v7187_v28 = vmax.f32 %v4944_v35, %v7174_v22  ;;  %v4444_v35 = vunpack.c.h.bf16 %v356_v58 }
  0x31   : > { %12837 = vst [vmem:[#allocation47_spill] sm:$0xff] %v7171_v18  ;;  %12842 = vst [vmem:[#allocation52_spill] sm:$0xff] %v7190_v55  ;;  %v4726_v59 = vmax.f32 %v7179_v15, %v7190_v55 }
  0x32   : > { %12841 = vst [vmem:[#allocation51_spill] sm:$0xff] %v7187_v28  ;;  %12843 = vst [vmem:[#allocation53_spill] sm:$0xff] %v7193_v24  ;;  %v4899_v54 = vmax.f32 %v4723_v43, %v7184_v48 }
  0x33   : > { %v4902_v52 = vmax.f32 %v4726_v59, %v7193_v24 }
  0x34   : > { %v4947_v57 = vmax.f32 %v4899_v54, %v7179_v15 }
  0x35   : > { %6536 = vmatmul.mubr.msk.bf16.gmra.mrb[16].mxu0 %vm574_vm1, %v352_v56  ;;  %v7210_v56 = vsel %vm409_vm3, %v4444_v35, -3e+38 }
  0x36   : > { %6539 = vmatprep.mubr.msk.bf16.mxu0 %vm574_vm1, %v354_v4  ;;  %v7206_v32 = vmax.f32 %v4947_v57, %v7190_v55  ;;  %12845 = vst [vmem:[#allocation55_spill] sm:$0xff] %v7210_v56  ;;  %v4447_v4 = vunpack.c.l.bf16 %v360_v8  ;;  %v7213_v43 = vrot.slane %v7210_v56, 1  ;;  %v4950_v54 = vmax.f32 %v4902_v52, %v7210_v56 }
  0x37   : > { %v7233_v52 = vrot.slane %v7210_v56, 2 }
  0x38   : > { %12844 = vst [vmem:[#allocation54_spill] sm:$0xff] %v7206_v32  ;;  %12846 = vst [vmem:[#allocation56_spill] sm:$0xff] %v7213_v43  ;;  %v7218_v12 = vsel %vm409_vm3, %v4447_v4, -3e+38  ;;  %v4729_v59 = vmax.f32 %v7210_v56, %v7213_v43  ;;  %v7223_v57 = vmax.f32 %v4950_v54, %v7213_v43 }
  0x39   : > { %12847 = vst [vmem:[#allocation57_spill] sm:$0xff] %v7218_v12  ;;  %v7226_v35 = vrot.slane %v7218_v12, 1  ;;  %v7229_v61 = vrot.slane %v7218_v12, 2  ;;  %12851 = vst [vmem:[#allocation61_spill] sm:$0xff] %v7233_v52 }
  0x3a   : > { %12848 = vst [vmem:[#allocation58_spill] sm:$0xff] %v7223_v57  ;;  %v4905_v54 = vmax.f32 %v4729_v59, %v7233_v52 }
  0x3b   : > { %12849 = vst [vmem:[#allocation59_spill] sm:$0xff] %v7226_v35  ;;  %12850 = vst [vmem:[#allocation60_spill] sm:$0xff] %v7229_v61  ;;  %v4732_v4 = vmax.f32 %v7218_v12, %v7226_v35 }
  0x3c   : > { %v4953_v23 = vmax.f32 %v4905_v54, %v7218_v12 }
  0x3d   : > { %6540 = vmatmul.mubr.msk.bf16.gmra.mrb[20].mxu0 %vm574_vm1, %v356_v58  ;;  %v4908_v40 = vmax.f32 %v4732_v4, %v7229_v61  ;;  %v7245_v58 = vsel %vm409_vm3, %v4450_v47, -3e+38  ;;  %v7264_v47 = vsel %vm409_vm3, %v4453_v34, -3e+38 }
  0x3e   : > { %6543 = vmatprep.mubr.msk.bf16.mxu0 %vm574_vm1, %v358_v25  ;;  %12852 = vst [vmem:[#allocation62_spill] sm:$0xff] %v7245_v58  ;;  %v7248_v25 = vrot.slane %v7245_v58, 1  ;;  %v7252_v59 = vmax.f32 %v4953_v23, %v7226_v35  ;;  %v7257_v16 = vrot.slane %v7245_v58, 2  ;;  %12857 = vst [vmem:[#allocation67_spill] sm:$0xff] %v7264_v47  ;;  %v7271_v23 = vrot.slane %v7264_v47, 2 }
  0x3f   : > { %v4956_v31 = vmax.f32 %v4908_v40, %v7245_v58  ;;  %v7268_v40 = vrot.slane %v7264_v47, 1 }
  0x40   : > { %12853 = vst [vmem:[#allocation63_spill] sm:$0xff] %v7248_v25  ;;  %12854 = vst [vmem:[#allocation64_spill] sm:$0xff] %v7252_v59  ;;  %v4735_v4 = vmax.f32 %v7245_v58, %v7248_v25  ;;  %v364_v58 = vld [vmem:[%s6935_s17 + $0x78] sm:$0xff]  }
  0x41   : > { %12855 = vst [vmem:[#allocation65_spill] sm:$0xff] %v7257_v16  ;;  %v7260_v54 = vmax.f32 %v4956_v31, %v7248_v25  ;;  %12858 = vst [vmem:[#allocation68_spill] sm:$0xff] %v7268_v40  ;;  %v4738_v34 = vmax.f32 %v7264_v47, %v7268_v40 }
  0x42   : > { %12859 = vst [vmem:[#allocation69_spill] sm:$0xff] %v7271_v23  ;;  %v4911_v31 = vmax.f32 %v4735_v4, %v7257_v16 }
  0x43   : > { %12856 = vst [vmem:[#allocation66_spill] sm:$0xff] %v7260_v54  ;;  %v368_v54 = vld [vmem:[%s6935_s17 + $0x88] sm:$0xff]   ;;  %v4914_v12 = vmax.f32 %v4738_v34, %v7271_v23 }
  0x44   : > { %v4456_v59 = vunpack.c.h.bf16 %v368_v54 }
  0x45   : > { %6544 = vmatmul.mubr.msk.bf16.gmra.mrb[24].mxu0 %vm574_vm1, %v360_v8  ;;  %v4959_v8 = vmax.f32 %v4911_v31, %v7264_v47  ;;  %v372_v31 = vld [vmem:[%s6935_s17 + $0x98] sm:$0xff]  }
  0x46   : > { %6547 = vmatprep.mubr.msk.bf16.mxu0 %vm574_vm1, %v362_v45  ;;  %v7282_v25 = vsel %vm409_vm3, %v4456_v59, -3e+38  ;;  %v370_v59 = vld [vmem:[%s6935_s17 + $0x90] sm:$0xff]  }
  0x47   : > { %12860 = vst [vmem:[#allocation70_spill] sm:$0xff] %v7282_v25  ;;  %v7286_v45 = vmax.f32 %v4959_v8, %v7268_v40  ;;  %v7289_v61 = vrot.slane %v7282_v25, 1  ;;  %v4962_v4 = vmax.f32 %v4914_v12, %v7282_v25  ;;  %v7305_v12 = vrot.slane %v7282_v25, 2 }
  0x49   : > { %12861 = vst [vmem:[#allocation71_spill] sm:$0xff] %v7286_v45  ;;  %12862 = vst [vmem:[#allocation72_spill] sm:$0xff] %v7289_v61  ;;  %v7294_v16 = vmax.f32 %v4962_v4, %v7289_v61  ;;  %v4741_v34 = vmax.f32 %v7282_v25, %v7289_v61  ;;  %v376_v25 = vld [vmem:[%s6935_s17 + $0xa8] sm:$0xff]  }
  0x4a   : > { %12864 = vst [vmem:[#allocation74_spill] sm:$0xff] %v7305_v12 }
  0x4b   : > { %12863 = vst [vmem:[#allocation73_spill] sm:$0xff] %v7294_v16  ;;  %v4917_v8 = vmax.f32 %v4741_v34, %v7305_v12  ;;  %v374_v34 = vld [vmem:[%s6935_s17 + $0xa0] sm:$0xff]  }
  0x4d   : > { %6548 = vmatmul.mubr.msk.bf16.gmra.mrb[28].mxu0 %vm574_vm1, %v364_v58  ;;  %v4459_v58 = vunpack.c.l.bf16 %v372_v31 }
  0x4e   : > { %6551 = vmatprep.mubr.msk.bf16.mxu0 %vm574_vm1, %v366_v33 }
  0x4f   : > { %v7310_v33 = vsel %vm409_vm3, %v4459_v58, -3e+38  ;;  %v4462_v58 = vunpack.c.h.bf16 %v374_v34 }
  0x50   : > { %12865 = vst [vmem:[#allocation75_spill] sm:$0xff] %v7310_v33  ;;  %v7316_v4 = vrot.slane %v7310_v33, 2 }
  0x51   : > { %v7330_v12 = vsel %vm409_vm3, %v4462_v58, -3e+38 }
  0x52   : > { %12867 = vst [vmem:[#allocation77_spill] sm:$0xff] %v7316_v4  ;;  %12869 = vst [vmem:[#allocation79_spill] sm:$0xff] %v7330_v12 }
  0x55   : > { %6552 = vmatmul.mubr.msk.bf16.gmra.mrb[32].mxu0 %vm574_vm1, %v368_v54  ;;  %v7313_v54 = vrot.slane %v7310_v33, 1 }
  0x56   : > { %6555 = vmatprep.mubr.msk.bf16.mxu0 %vm574_vm1, %v370_v59  ;;  %v4965_v59 = vmax.f32 %v4917_v8, %v7310_v33  ;;  %v7334_v8 = vrot.slane %v7330_v12, 1 }
  0x57   : > { %12866 = vst [vmem:[#allocation76_spill] sm:$0xff] %v7313_v54  ;;  %v4744_v16 = vmax.f32 %v7310_v33, %v7313_v54 }
  0x58   : > { %12870 = vst [vmem:[#allocation80_spill] sm:$0xff] %v7334_v8 }
  0x59   : > { %v4920_v45 = vmax.f32 %v4744_v16, %v7316_v4  ;;  %v7343_v16 = vrot.slane %v7330_v12, 2  ;;  %v380_v4 = vld [vmem:[%s6935_s17 + $0xb8] sm:$0xff]  }
  0x5b   : > { %v4968_v33 = vmax.f32 %v4920_v45, %v7330_v12  ;;  %12872 = vst [vmem:[#allocation82_spill] sm:$0xff] %v7343_v16 }
  0x5d   : > { %6556 = vmatmul.mubr.msk.bf16.gmra.mrb[36].mxu0 %vm574_vm1, %v372_v31  ;;  %v7322_v31 = vmax.f32 %v4965_v59, %v7313_v54  ;;  %v7338_v59 = vmax.f32 %v4968_v33, %v7334_v8 }
  0x5e   : > { %6559 = vmatprep.mubr.msk.bf16.mxu0 %vm574_vm1, %v374_v34  ;;  %v378_v34 = vld [vmem:[%s6935_s17 + $0xb0] sm:$0xff]  }
  0x5f   : > { %12868 = vst [vmem:[#allocation78_spill] sm:$0xff] %v7322_v31  ;;  %12871 = vst [vmem:[#allocation81_spill] sm:$0xff] %v7338_v59  ;;  %v4747_v31 = vmax.f32 %v7330_v12, %v7334_v8  ;;  %v4465_v58 = vunpack.c.l.bf16 %v378_v34 }
  0x61   : > { %v4923_v54 = vmax.f32 %v4747_v31, %v7343_v16  ;;  %v7351_v45 = vsel %vm409_vm3, %v4465_v58, -3e+38 }
  0x62   : > { %12873 = vst [vmem:[#allocation83_spill] sm:$0xff] %v7351_v45  ;;  %v7354_v33 = vrot.slane %v7351_v45, 1 }
  0x63   : > { %v4971_v59 = vmax.f32 %v4923_v54, %v7351_v45 }
  0x64   : > { %12874 = vst [vmem:[#allocation84_spill] sm:$0xff] %v7354_v33  ;;  %v4750_v31 = vmax.f32 %v7351_v45, %v7354_v33 }
  0x65   : > { %6560 = vmatmul.mubr.msk.bf16.gmra.mrb[40].mxu0 %vm574_vm1, %v376_v25  ;;  %v4468_v25 = vunpack.c.h.bf16 %v380_v4  ;;  %v7371_v16 = vmax.f32 %v4971_v59, %v7354_v33  ;;  %v7391_v59 = vld [vmem:[%s12381_s2] ss:$0 sm:$0xff] }
  0x66   : > { %6563 = vmatprep.mubr.msk.bf16.mxu0 %vm574_vm1, %v378_v34  ;;  %v7365_v34 = vrot.slane %v7351_v45, 2 }
  0x67   : > { %v7360_v12 = vsel %vm409_vm3, %v4468_v25, -3e+38  ;;  %12878 = vst [vmem:[#allocation88_spill] sm:$0xff] %v7371_v16 }
  0x68   : > { %12875 = vst [vmem:[#allocation85_spill] sm:$0xff] %v7360_v12  ;;  %12876 = vst [vmem:[#allocation86_spill] sm:$0xff] %v7365_v34  ;;  %v7368_v58 = vrot.slane %v7360_v12, 1  ;;  %v7376_v54 = vrot.slane %v7360_v12, 2  ;;  %v4926_v25 = vmax.f32 %v4750_v31, %v7365_v34 }
  0x6a   : > { %12877 = vst [vmem:[#allocation87_spill] sm:$0xff] %v7368_v58  ;;  %12879 = vst [vmem:[#allocation89_spill] sm:$0xff] %v7376_v54  ;;  %v4974_v45 = vmax.f32 %v4926_v25, %v7360_v12 }
  0x6c   : > { %v7386_v47 = vmax.f32 %v4974_v45, %v7368_v58 }
  0x6d   : > { %6564 = vmatmul.mubr.msk.bf16.gmra.mrb[44].mxu0 %vm574_vm1, %v380_v4  ;;  %v4753_v4 = vmax.f32 %v7360_v12, %v7368_v58 }
  0x6e   : > { %12881 = vst [vmem:[#allocation91_spill] sm:$0xff] %v7386_v47 }
  0x6f   : > { %v7380_v8 = vmax.f32 %v4753_v4, %v7376_v54 }
  0x71   : > { %12880 = vst [vmem:[#allocation90_spill] sm:$0xff] %v7380_v8 }
  0xe8   : > { %v6521_v16 = vpop.f32.mrb[0].mxu0 }
  0xe9   : > { %v6569_v33 = vpop.f32.mrb[0].mxu1  ;;  %v703_v23 = vpop.f32.mrb[1].mxu0 }
  0xea   : > { %v904_v31 = vadd.f32 %v6569_v33, %v7391_v59  ;;  %v895_v4 = vpop.f32.mrb[1].mxu1  ;;  %v6522_v54 = vpop.f32.mrb[2].mxu0 }
  0xeb   : > { %v896_v25 = vadd.f32 %v7391_v59, %v895_v4  ;;  %v6570_v12 = vpop.f32.mrb[2].mxu1  ;;  %v706_v34 = vpop.f32.mrb[3].mxu0 }
  0xec   : > { %v1153_v61 = vmax.f32 %v904_v31, 0.0  ;;  %v898_v8 = vpop.f32.mrb[3].mxu1  ;;  %v7396_v29 = vadd.f32 %v6570_v12, %v7391_v59  ;;  %v1064_v58 = vrot.slane %v904_v31, 2 }
  0xed   : > { %v1151_v45 = vmax.f32 %v896_v25, 0.0  ;;  %v899_v47 = vadd.f32 %v7391_v59, %v898_v8  ;;  %v1061_v34 = vrot.slane %v896_v25, 2 }
  0xee   : > { %v1225_v16 = vsel %vm409_vm3, %v1153_v61, 0.0  ;;  %v1154_v57 = vmax.f32 %v7396_v29, 0.0 }
  0xef   : > { %v7401_v23 = vpack.c.bf16 %v1225_v16, %v1225_v16  ;;  %v1223_v33 = vsel %vm398_vm2, %v1151_v45, 0.0  ;;  %v1062_v54 = vrot.slane %v899_v47, 2  ;;  %v1152_v4 = vmax.f32 %v899_v47, 0.0 }
  0xf0   : > { %v6525_v40 = vpop.f32.mrb[4].mxu0 }
  0xf1   : > { %12882 = vst [vmem:[#allocation92_spill] sm:$0xff] %v7401_v23  ;;  %v7406_v35 = vpack.c.bf16 %v1152_v4, %v1223_v33  ;;  %v6573_v12 = vpop.f32.mrb[4].mxu1  ;;  %v719_v56 = vpop.f32.mrb[5].mxu0  ;;  %v728_v32 = vadd.f32 %v6525_v40, %v7391_v59  ;;  %v7410_v16 = vsel %vm12704_vm4, %v1062_v54, %v1064_v58  ;;  %v7413_v45 = vsel %vm12704_vm4, %v1061_v34, %v1062_v54 }
  0xf2   : > { %v911_v8 = vpop.f32.mrb[5].mxu1  ;;  %v6526_v61 = vpop.f32.mrb[6].mxu0  ;;  %12884 = vst [vmem:[#allocation94_spill] sm:$0xff] %v7410_v16  ;;  %12885 = vst [vmem:[#allocation95_spill] sm:$0xff] %v7413_v45  ;;  %v1547_v47 = vrot.slane %v7401_v23, 1  ;;  %v1226_v58 = vsel %vm398_vm2, %v1154_v57, 0.0 }
  0xf3   : > { %12883 = vst [vmem:[#allocation93_spill] sm:$0xff] %v7406_v35  ;;  %v7417_v31 = vadd.f32 %v7391_v59, %v911_v8  ;;  %v6574_v25 = vpop.f32.mrb[6].mxu1  ;;  %v722_v33 = vpop.f32.mrb[7].mxu0  ;;  %v991_v12 = vrot.slane %v728_v32, 2  ;;  %v1109_v56 = vmax.f32 %v728_v32, 0.0  ;;  %v1546_v52 = vrot.slane %v7406_v35, 1 }
  0xf4   : > { %v914_v4 = vpop.f32.mrb[7].mxu1  ;;  %v7421_v40 = vadd.f32 %v6526_v61, %v7391_v59  ;;  %v1464_v61 = vshll.u32 %v7401_v23, 16  ;;  %v1457_v57 = vshrl.u32 %v7406_v35, 16 }
  0xf5   : > { %v1155_v54 = vmax.f32 %v7417_v31, 0.0  ;;  %v7427_v34 = vadd.f32 %v7391_v59, %v914_v4  ;;  %v1181_v8 = vsel %vm398_vm2, %v1109_v56, 0.0  ;;  %v7432_v25 = vsel %vm1500_vm5, %v1546_v52, %v1547_v47 }
  0xf6   : > { %12886 = vst [vmem:[#allocation96_spill] sm:$0xff] %v7432_v25  ;;  %v12468_v32 = vrot.slane %v7421_v40, 2  ;;  %v1110_v33 = vmax.f32 %v7421_v40, 0.0  ;;  %1870 = vrot.lane.b32.xlu0 %v7432_v25, %s6843_s24  ;;  %1808 = vrot.lane.b32.xlu1 %v7432_v25, %s6839_s20  ;;  %v1688_v4 = vshrl.u32 %v7401_v23, 16  ;;  %v1459_v56 = vshll.u32 %v7406_v35, 16 }
  0xf7   : > { %v7437_v45 = vpack.c.bf16 %v1155_v54, %v1226_v58  ;;  %v1156_v54 = vmax.f32 %v7427_v34, 0.0  ;;  %v1685_v28 = vrot.slane %v1457_v57, 1  ;;  %v1691_v51 = vrot.slane %v1464_v61, 2 }
  0xf8   : > { %v7445_v52 = vpack.c.bf16 %v1110_v33, %v1181_v8  ;;  %v6529_v47 = vpop.f32.mrb[8].mxu0  ;;  %v7451_v58 = vsel %vm12704_vm4, %v991_v12, %v12468_v32  ;;  %v1461_v15 = vrot.slane %v1459_v56, 1  ;;  %v1686_v24 = vrot.slane %v1459_v56, 2 }
  0xf9   : > { %12887 = vst [vmem:[#allocation97_spill] sm:$0xff] %v7437_v45  ;;  %12889 = vst [vmem:[#allocation99_spill] sm:$0xff] %v7451_v58  ;;  %v735_v16 = vpop.f32.mrb[9].mxu0  ;;  %v7455_v43 = vadd.f32 %v6529_v47, %v7391_v59  ;;  %v1466_v33 = vrot.slane %v1464_v61, 1  ;;  %v1690_v55 = vrot.slane %v1688_v4, 1  ;;  %v1228_v47 = vsel %vm409_vm3, %v1156_v54, 0.0 }
  0xfa   : > { %12888 = vst [vmem:[#allocation98_spill] sm:$0xff] %v7445_v52  ;;  %v6530_v17 = vpop.f32.mrb[10].mxu0  ;;  %1964 = vrot.lane.b32.xlu1 %v7432_v25, %s6838_s19  ;;  %v1462_v12 = vor.u32 %v1461_v15, %v1457_v57  ;;  %v1687_v46 = vor.u32 %v1686_v24, %v1685_v28  ;;  %v7475_v4 = vpack.c.bf16 %v1228_v47, %v1228_v47  ;;  %v1289_v0 = vshrl.u32 %v7445_v52, 16 }
  0xfb   : > { %v738_v8 = vpop.f32.mrb[11].mxu0  ;;  %v1113_v58 = vmax.f32 %v7455_v43, 0.0  ;;  %v1692_v61 = vor.u32 %v1691_v51, %v1690_v55  ;;  %v7490_v55 = vadd.f32 %v7391_v59, %v735_v16  ;;  %v12899_v37 = vshll.u32 %v7445_v52, 16 }
  0xfc   : > { %v7460_v32 = vadd.f32 %v7391_v59, %v738_v8  ;;  %v7466_v56 = vsel %vm1275_vm6, %v1462_v12, %v1466_v33  ;;  %12891 = vst [vmem:[#allocation101_spill] sm:$0xff] %v7475_v4  ;;  %v1697_v8 = vshll.u32 %v7437_v45, 16  ;;  %v1709_v47 = vrot.slane %v7475_v4, 1 }
  0xfd   : > { %12890 = vst [vmem:[#allocation100_spill] sm:$0xff] %v7466_v56  ;;  %1838 = vrot.lane.b32.xlu0 %v7466_v56, %s6842_s23  ;;  %v7481_v28 = vsel %vm1549_vm7, %v1687_v46, %v1692_v61  ;;  %v1702_v46 = vshll.u32 %v7475_v4, 16  ;;  %v1708_v61 = vrot.slane %v7437_v45, 1  ;;  %v1111_v16 = vmax.f32 %v7490_v55, 0.0 }
  0xfe   : > { %1776 = vrot.lane.b32.xlu1 %v7466_v56, %s6837_s18  ;;  %v1112_v15 = vmax.f32 %v7460_v32, 0.0  ;;  %12892 = vst [vmem:[#allocation102_spill] sm:$0xff] %v7481_v28  ;;  %v1293_v6 = vrot.slane %v12899_v37, 1  ;;  %v1559_v25 = vrot.slane %v1289_v0, 1 }
  0xff   : > { %v7503_v20 = vsel %vm1500_vm5, %v1708_v61, %v1709_v47  ;;  %v1704_v22 = vrot.slane %v1702_v46, 1  ;;  %v1717_v13 = vrot.slane %v1702_v46, 2  ;;  %v1712_v46 = vrot.slane %v1697_v8, 2 }
 0x100   : > { %v7473_v57 = vpop.f32.mrb[12].mxu0  ;;  %v1184_v54 = vsel %vm398_vm2, %v1112_v15, 0.0  ;;  %v1699_v15 = vrot.slane %v1697_v8, 1  ;;  %12894 = vst [vmem:[#allocation104_spill] sm:$0xff] %v7503_v20  ;;  %v1294_v11 = vor.u32 %v1293_v6, %v1289_v0 }
 0x101   : > { %v751_v24 = vpop.f32.mrb[13].mxu0  ;;  %v7483_v33 = vpack.c.bf16 %v1113_v58, %v1184_v54  ;;  %1902 = vrot.lane.b32.xlu0 %v7481_v28, %s6844_s27  ;;  %v1714_v58 = vshrl.u32 %v7475_v4, 16  ;;  %v1695_v54 = vshrl.u32 %v7437_v45, 16 }
 0x102   : > { %v6534_v12 = vpop.f32.mrb[14].mxu0  ;;  %1932 = vrot.lane.b32.xlu1 %v7466_v56, %s6834_s14  ;;  %v7506_v30 = vadd.f32 %v7391_v59, %v751_v24  ;;  %v7521_v24 = vadd.f32 %v6530_v17, %v7391_v59 }
 0x103   : > { %12893 = vst [vmem:[#allocation103_spill] sm:$0xff] %v7483_v33  ;;  %v754_v51 = vpop.f32.mrb[15].mxu0  ;;  %v1700_v60 = vor.u32 %v1699_v15, %v1695_v54  ;;  %v1716_v44 = vrot.slane %v1714_v58, 1  ;;  %v7509_v26 = vadd.f32 %v6534_v12, %v7391_v59  ;;  %v1711_v15 = vrot.slane %v1695_v54, 1 }
 0x104   : > { %v7512_v21 = vadd.f32 %v7391_v59, %v754_v51  ;;  %v1115_v12 = vmax.f32 %v7506_v30, 0.0  ;;  %v1183_v51 = vsel %vm409_vm3, %v1111_v16, 0.0  ;;  %v1114_v8 = vmax.f32 %v7521_v24, 0.0 }
 0x105   : > { %2654 = vrot.lane.b32.xlu0 %v7445_v52, %s6841_s22  ;;  %v7528_v61 = vsel %vm1275_vm6, %v1700_v60, %v1704_v22  ;;  %v1718_v38 = vor.u32 %v1717_v13, %v1716_v44  ;;  %v1118_v36 = vmax.f32 %v7509_v26, 0.0  ;;  %v1713_v54 = vor.u32 %v1712_v46, %v1711_v15 }
 0x106   : > { %1996 = vrot.lane.b32.xlu1 %v7481_v28, %s6840_s21  ;;  %v1116_v58 = vmax.f32 %v7512_v21, 0.0  ;;  %12895 = vst [vmem:[#allocation105_spill] sm:$0xff] %v7528_v61  ;;  %v1187_v14 = vsel %vm398_vm2, %v1115_v12, 0.0  ;;  %v7540_v60 = vpack.c.bf16 %v1183_v51, %v1183_v51  ;;  %v1507_v62 = vrot.slane %v7483_v33, 1 }
 0x107   : > { %v1190_v15 = vsel %vm398_vm2, %v1118_v36, 0.0  ;;  %v1504_v36 = vrot.slane %v7445_v52, 1  ;;  %v1301_v4 = vshrl.u32 %v7483_v33, 16 }
 0x108   : > { %v6537_v48 = vpop.f32.mrb[16].mxu0  ;;  %v7537_v17 = vpack.c.bf16 %v1116_v58, %v1187_v14  ;;  %v7554_v14 = vsel %vm1549_vm7, %v1713_v54, %v1718_v38  ;;  %v1186_v38 = vsel %vm409_vm3, %v1114_v8, 0.0  ;;  %v1505_v54 = vrot.slane %v7540_v60, 1 }
 0x109   : > { %v767_v1 = vpop.f32.mrb[17].mxu0  ;;  %2720 = vrot.lane.b32.xlu0 %v7445_v52, %s6843_s24  ;;  %v7543_v13 = vadd.f32 %v6537_v48, %v7391_v59  ;;  %12897 = vst [vmem:[#allocation107_spill] sm:$0xff] %v7554_v14  ;;  %v1296_v18 = vshll.u32 %v7540_v60, 16  ;;  %v2571_v6 = vrot.slane %v7540_v60, 2  ;;  %v1562_v23 = vshrl.u32 %v7540_v60, 16 }
 0x10a   : > { %v6538_v63 = vpop.f32.mrb[18].mxu0  ;;  %1872 = vrot.lane.b32.xlu1 %v7503_v20, %s6843_s24  ;;  %12896 = vst [vmem:[#allocation106_spill] sm:$0xff] %v7537_v17  ;;  %v7546_v44 = vadd.f32 %v7391_v59, %v767_v1 }
 0x10b   : > { %v7518_v47 = vpop.f32.mrb[19].mxu0  ;;  %v7549_v22 = vadd.f32 %v6538_v63, %v7391_v59  ;;  %v1121_v63 = vmax.f32 %v7543_v13, 0.0  ;;  %v1298_v37 = vrot.slane %v1296_v18, 1 }
 0x10c   : > { %v1119_v1 = vmax.f32 %v7546_v44, 0.0 }
 0x10d   : > { %1966 = vrot.lane.b32.xlu0 %v7503_v20, %s6838_s19  ;;  %v1122_v51 = vmax.f32 %v7549_v22, 0.0  ;;  %v1193_v58 = vsel %vm398_vm2, %v1121_v63, 0.0  ;;  %v7588_v63 = vpack.c.bf16 %v1186_v38, %v1186_v38  ;;  %v2570_v38 = vrot.slane %v7445_v52, 2 }
 0x10e   : > { %1840 = vrot.lane.b32.xlu1 %v7528_v61, %s6842_s23  ;;  %v7574_v39 = vpack.c.bf16 %v1119_v1, %v1190_v15  ;;  %v7591_v1 = vsel %vm1500_vm5, %v1504_v36, %v1505_v54  ;;  %v7601_v42 = vsel %vm1275_vm6, %v1294_v11, %v1298_v37  ;;  %v1303_v36 = vshll.u32 %v7483_v33, 16 }
 0x10f   : > { %v7580_v27 = vpack.c.bf16 %v1122_v51, %v1193_v58  ;;  %12900 = vst [vmem:[#allocation109_spill] sm:$0xff] %v7591_v1  ;;  %v1508_v51 = vrot.slane %v7588_v63, 1  ;;  %12901 = vst [vmem:[#allocation110_spill] sm:$0xff] %v7601_v42  ;;  %v1308_v41 = vshll.u32 %v7588_v63, 16  ;;  %v7620_v37 = vadd.f32 %v7473_v57, %v7391_v59 }
 0x110   : > { %v6541_v16 = vpop.f32.mrb[20].mxu0  ;;  %12898 = vst [vmem:[#allocation108_spill] sm:$0xff] %v7574_v39  ;;  %v7626_v50 = vsel %vm12704_vm4, %v2570_v38, %v2571_v6  ;;  %v1569_v60 = vrot.slane %v1303_v36, 2 }
 0x111   : > { %v7551_v12 = vpop.f32.mrb[21].mxu0  ;;  %1934 = vrot.lane.b32.xlu0 %v7528_v61, %s6834_s14  ;;  %v7606_v54 = vadd.f32 %v6541_v16, %v7391_v59  ;;  %v7616_v11 = vsel %vm1500_vm5, %v1507_v62, %v1508_v51  ;;  %12903 = vst [vmem:[#allocation112_spill] sm:$0xff] %v7626_v50  ;;  %v1117_v51 = vmax.f32 %v7620_v37, 0.0  ;;  %v1310_v45 = vrot.slane %v1308_v41, 1 }
 0x112   : > { %v7559_v46 = vpop.f32.mrb[22].mxu0  ;;  %1904 = vrot.lane.b32.xlu1 %v7554_v14, %s6844_s27  ;;  %12902 = vst [vmem:[#allocation111_spill] sm:$0xff] %v7616_v11  ;;  %v1574_v28 = vrot.slane %v1308_v41, 2  ;;  %v12905_v41 = vshll.u32 %v7445_v52, 16 }
 0x113   : > { %v786_v48 = vpop.f32.mrb[23].mxu0  ;;  %v1125_v20 = vmax.f32 %v7606_v54, 0.0 }
 0x114   : > { %v7623_v16 = vadd.f32 %v7391_v59, %v786_v48  ;;  %v1571_v48 = vshrl.u32 %v7588_v63, 16  ;;  %v1560_v0 = vrot.slane %v12905_v41, 2 }
 0x115   : > { %1998 = vrot.lane.b32.xlu0 %v7554_v14, %s6840_s21  ;;  %v1305_v14 = vrot.slane %v1303_v36, 1  ;;  %v6770_v36 = vld [vmem:[%s6935_s17 + $0xe0] sm:$0xff]  }
 0x116   : > { %2656 = vrot.lane.b32.xlu1 %v7483_v33, %s6841_s22  ;;  %v1124_v62 = vmax.f32 %v7623_v16, 0.0  ;;  %6575 = vmatprep.mubr.msk.bf16.mxu1 %vm574_vm1, %v6770_v36  ;;  %v1561_v52 = vor.u32 %v1560_v0, %v1559_v25 }
 0x117   : > { %v1306_v6 = vor.u32 %v1305_v14, %v1301_v4  ;;  %v1189_v14 = vsel %vm409_vm3, %v1117_v51, 0.0 }
 0x118   : > { %v7586_v8 = vpop.f32.mrb[24].mxu0  ;;  %v1196_v38 = vsel %vm398_vm2, %v1124_v62, 0.0  ;;  %v1568_v62 = vrot.slane %v1301_v4, 1 }
 0x119   : > { %v799_v15 = vpop.f32.mrb[25].mxu0  ;;  %1842 = vrot.lane.b32.xlu0 %v7591_v1, %s6843_s24  ;;  %v7644_v49 = vpack.c.bf16 %v1125_v20, %v1196_v38  ;;  %v2573_v20 = vrot.slane %v7483_v33, 2  ;;  %v7658_v9 = vsel %vm1275_vm6, %v1306_v6, %v1310_v45 }
 0x11a   : > { %v6546_v7 = vpop.f32.mrb[26].mxu0  ;;  %2722 = vrot.lane.b32.xlu1 %v7483_v33, %s6843_s24  ;;  %12904 = vst [vmem:[#allocation113_spill] sm:$0xff] %v7658_v9  ;;  %v1244_v33 = vpack.c.bf16 %v1189_v14, %v1189_v14  ;;  %v1570_v45 = vor.u32 %v1569_v60, %v1568_v62  ;;  %v7671_v6 = vadd.f32 %v7391_v59, %v799_v15  ;;  %v1510_v15 = vrot.slane %v7537_v17, 1 }
 0x11b   : > { %v802_v58 = vpop.f32.mrb[27].mxu0 }
 0x11d   : > { %1748 = vrot.lane.b32.xlu0 %v7601_v42, %s6837_s18 }
 0x11e   : > { %1780 = vrot.lane.b32.xlu1 %v7591_v1, %s6839_s20  ;;  %v1565_v1 = vrot.slane %v1296_v18, 2  ;;  %v1564_v18 = vrot.slane %v1562_v23, 1  ;;  %v7677_v23 = vadd.f32 %v7391_v59, %v802_v58 }
 0x120   : > { %v7612_v2 = vpop.f32.mrb[28].mxu0  ;;  %v1128_v14 = vmax.f32 %v7677_v23, 0.0 }
 0x121   : > { %v815_v53 = vpop.f32.mrb[29].mxu0  ;;  %1782 = vrot.lane.b32.xlu0 %v7616_v11, %s6839_s20  ;;  %v7705_v60 = vadd.f32 %v7612_v2, %v7391_v59 }
 0x122   : > { %v7630_v61 = vpop.f32.mrb[30].mxu0  ;;  %2690 = vrot.lane.b32.xlu1 %v7626_v50, %s6842_s23  ;;  %v1573_v50 = vrot.slane %v1571_v48, 1  ;;  %v2574_v48 = vrot.slane %v7588_v63, 2  ;;  %v7674_v63 = vadd.f32 %v6546_v7, %v7391_v59  ;;  %v1127_v7 = vmax.f32 %v7671_v6, 0.0 }
 0x123   : > { %v7637_v57 = vpop.f32.mrb[31].mxu0 }
 0x124   : > { %v1575_v51 = vor.u32 %v1574_v28, %v1573_v50  ;;  %v7681_v41 = vsel %vm12704_vm4, %v2573_v20, %v2574_v48  ;;  %v6771_v50 = vld [vmem:[%s6935_s17 + $0xe8] sm:$0xff]   ;;  %v1511_v28 = vrot.slane %v1244_v33, 1  ;;  %v1130_v58 = vmax.f32 %v7674_v63, 0.0 }
 0x125   : > { %1810 = vrot.lane.b32.xlu0 %v7601_v42, %s6842_s23  ;;  %12906 = vst [vmem:[#allocation114_spill] sm:$0xff] %v7681_v41  ;;  %6576 = vmatmul.mubr.msk.bf16.gmra.mrb[8].mxu1 %vm574_vm1, %v6771_v50  ;;  %v7708_v48 = vadd.f32 %v7391_v59, %v815_v53  ;;  %v7723_v53 = vadd.f32 %v7630_v61, %v7391_v59  ;;  %v2576_v50 = vrot.slane %v7537_v17, 2 }
 0x126   : > { %1844 = vrot.lane.b32.xlu1 %v7616_v11, %s6843_s24  ;;  %v7694_v25 = vsel %vm1549_vm7, %v1570_v45, %v1575_v51  ;;  %v1202_v0 = vsel %vm398_vm2, %v1130_v58, 0.0  ;;  %v1320_v58 = vshll.u32 %v1244_v33, 16 }
 0x127   : > { %12907 = vst [vmem:[#allocation115_spill] sm:$0xff] %v7694_v25  ;;  %v1131_v2 = vmax.f32 %v7708_v48, 0.0  ;;  %v1134_v51 = vmax.f32 %v7723_v53, 0.0 }
 0x128   : > { %v7650_v56 = vpop.f32.mrb[32].mxu0 }
 0x129   : > { %v7655_v38 = vpop.f32.mrb[33].mxu0  ;;  %1938 = vrot.lane.b32.xlu0 %v7616_v11, %s6838_s19  ;;  %v1566_v11 = vor.u32 %v1565_v1, %v1564_v18  ;;  %v1199_v1 = vsel %vm398_vm2, %v1127_v7, 0.0  ;;  %v7727_v36 = vpack.c.bf16 %v1131_v2, %v1202_v0  ;;  %v2577_v7 = vrot.slane %v1244_v33, 2 }
 0x12a   : > { %1750 = vrot.lane.b32.xlu1 %v7658_v9, %s6837_s18  ;;  %v7667_v4 = vpop.f32.mrb[34].mxu0  ;;  %v7701_v20 = vpack.c.bf16 %v1128_v14, %v1199_v1  ;;  %v1580_v14 = vshrl.u32 %v1244_v33, 16  ;;  %v7754_v1 = vadd.f32 %v7391_v59, %v7518_v47  ;;  %v7758_v0 = vadd.f32 %v7650_v56, %v7391_v59 }
 0x12b   : > { %v834_v42 = vpop.f32.mrb[35].mxu0  ;;  %v7699_v62 = vsel %vm1549_vm7, %v1561_v52, %v1566_v11  ;;  %v7717_v52 = vsel %vm1500_vm5, %v1510_v15, %v1511_v28  ;;  %v1133_v11 = vmax.f32 %v7705_v60, 0.0  ;;  %12910 = vst [vmem:[#allocation118_spill] sm:$0xff] %v7727_v36  ;;  %v7742_v61 = vsel %vm12704_vm4, %v2576_v50, %v2577_v7  ;;  %v6772_v15 = vld [vmem:[%s12382_s3] sm:$0xff]  }
 0x12c   : > { %12908 = vst [vmem:[#allocation116_spill] sm:$0xff] %v7699_v62  ;;  %12909 = vst [vmem:[#allocation117_spill] sm:$0xff] %v7717_v52  ;;  %v1315_v28 = vshll.u32 %v7537_v17, 16  ;;  %6579 = vmatprep.subr.bf16.mxu1 %v6772_v15  ;;  %v1322_v33 = vrot.slane %v1320_v58, 1  ;;  %v1582_v47 = vrot.slane %v1580_v14, 1  ;;  %v1583_v56 = vrot.slane %v1320_v58, 2 }
 0x12d   : > { %2692 = vrot.lane.b32.xlu0 %v7681_v41, %s6842_s23  ;;  %v1205_v18 = vsel %vm398_vm2, %v1133_v11, 0.0  ;;  %12912 = vst [vmem:[#allocation120_spill] sm:$0xff] %v7742_v61  ;;  %6580 = vmatpush3.bf16.msra.mxu1 %v6772_v15  ;;  %v1313_v11 = vshrl.u32 %v7537_v17, 16  ;;  %v1120_v50 = vmax.f32 %v7754_v1, 0.0  ;;  %v1137_v7 = vmax.f32 %v7758_v0, 0.0 }
 0x12e   : > { %1812 = vrot.lane.b32.xlu1 %v7658_v9, %s6842_s23  ;;  %v7734_v45 = vpack.c.bf16 %v1134_v51, %v1205_v18  ;;  %v1317_v2 = vrot.slane %v1315_v28, 1  ;;  %v6773_v18 = vld [vmem:[%s12382_s3 + $0x8] sm:$0xff]   ;;  %v7769_v51 = vadd.f32 %v7391_v59, %v834_v42  ;;  %v6774_v15 = vld [vmem:[%s12382_s3 + $0x10] ss:$0 sps:$4 sm:$0x33]   ;;  %v1578_v41 = vrot.slane %v1315_v28, 2  ;;  %v7779_v42 = vpop.permute.xlu1 %1936 }
 0x12f   : > { %6581 = vmatprep.subr.bf16.mxu1 %v6773_v18  ;;  %12913 = vst [vmem:[#allocation121_spill] sm:$0xff] %v7779_v42  ;;  %v1192_v14 = vsel %vm409_vm3, %v1120_v50, 0.0  ;;  %v1584_v28 = vor.u32 %v1583_v56, %v1582_v47  ;;  %v1327_v50 = vshll.u32 %v7574_v39, 16  ;;  %v2342_v47 = vsel %vm665_vm0, %v6774_v15, 0 }
 0x130   : > { %12911 = vst [vmem:[#allocation119_spill] sm:$0xff] %v7734_v45  ;;  %v1136_v35 = vmax.f32 %v7769_v51, 0.0  ;;  %v7797_v42 = vpack.c.bf16 %v1192_v14, %v1192_v14 }
 0x131   : > { %1874 = vrot.lane.b32.xlu0 %v7699_v62, %s6844_s27  ;;  %6582 = vmatpush3.bf16.msra.mxu1 %v6773_v18  ;;  %v1587_v36 = vrot.slane %v1327_v50, 2 }
 0x132   : > { %1876 = vrot.lane.b32.xlu1 %v7694_v25, %s6844_s27  ;;  %v1208_v58 = vsel %vm398_vm2, %v1136_v35, 0.0  ;;  %6701 = vmatprep.subr.msk.bf16.mxu1 %vm665_vm0, %v6774_v15  ;;  %v7799_v35 = vpop.permute.xlu1 %1968  ;;  %v1589_v56 = vshrl.u32 %v7797_v42, 16  ;;  %v1514_v15 = vrot.slane %v7797_v42, 1 }
 0x133   : > { %12916 = vst [vmem:[#allocation124_spill] sm:$0xff] %v7799_v35  ;;  %v1329_v35 = vrot.slane %v1327_v50, 1 }
 0x134   : > { %v1591_v62 = vrot.slane %v1589_v56, 1 }
 0x135   : > { %1906 = vrot.lane.b32.xlu0 %v7658_v9, %s6834_s14  ;;  %6584 = vmatpush3.bf16.msra.mxu1 %v2342_v47  ;;  %v994_v47 = vrot.slane %v7490_v55, 2 }
 0x136   : > { %1784 = vrot.lane.b32.xlu1 %v7717_v52, %s6839_s20 }
 0x139   : > { %1970 = vrot.lane.b32.xlu0 %v7694_v25, %s6840_s21  ;;  %v7832_v25 = vpop.permute.xlu1 %2000 }
 0x13a   : > { %1940 = vrot.lane.b32.xlu1 %v7717_v52, %s6838_s19  ;;  %12922 = vst [vmem:[#allocation130_spill] sm:$0xff] %v7832_v25 }
 0x13d   : > { %2658 = vrot.lane.b32.xlu0 %v7537_v17, %s6841_s22 }
 0x13e   : > { %2694 = vrot.lane.b32.xlu1 %v7742_v61, %s6842_s23  ;;  %v1577_v61 = vrot.slane %v1313_v11, 1 }
 0x140   : > { %v1579_v18 = vor.u32 %v1578_v41, %v1577_v61  ;;  %v7810_v41 = vpop.permute.xlu0 %6733  ;;  %v7816_v61 = vpop.f32.mrb[36].mxu0 }
 0x141   : > { %2724 = vrot.lane.b32.xlu0 %v7537_v17, %s6843_s24  ;;  %v1318_v17 = vor.u32 %v1317_v2, %v1313_v11  ;;  %v7788_v11 = vpack.c.bf16 %v1137_v7, %v1208_v58  ;;  %12918 = vst [vmem:[#allocation126_spill] sm:$0xff] %v7810_v41  ;;  %12919 = vst [vmem:[#allocation127_spill] sm:$0xff] %v7816_v61  ;;  %v847_v7 = vpop.f32.mrb[37].mxu0  ;;  %v1325_v58 = vshrl.u32 %v7574_v39, 16 }
 0x142   : > { %2660 = vrot.lane.b32.xlu1 %v7574_v39, %s6841_s22  ;;  %v7824_v14 = vadd.f32 %v7391_v59, %v847_v7 }
 0x143   : > { %12914 = vst [vmem:[#allocation122_spill] sm:$0xff] %v7788_v11  ;;  %v7791_v2 = vsel %vm1275_vm6, %v1318_v17, %v1322_v33  ;;  %v7808_v17 = vadd.f32 %v7391_v59, %v7551_v12  ;;  %v1332_v33 = vshll.u32 %v7797_v42, 16  ;;  %v1513_v12 = vrot.slane %v7574_v39, 1 }
 0x144   : > { %12915 = vst [vmem:[#allocation123_spill] sm:$0xff] %v7791_v2  ;;  %12920 = vst [vmem:[#allocation128_spill] sm:$0xff] %v7824_v14  ;;  %v1139_v7 = vmax.f32 %v7824_v14, 0.0  ;;  %v7843_v19 = vpop.permute.xlu0 %1778  ;;  %v1586_v45 = vrot.slane %v1325_v58, 1 }
 0x145   : > { %1846 = vrot.lane.b32.xlu0 %v7717_v52, %s6843_s24  ;;  %v7802_v52 = vsel %vm1549_vm7, %v1579_v18, %v1584_v28  ;;  %v6558_v28 = vpop.f32.mrb[38].mxu0  ;;  %v1123_v5 = vmax.f32 %v7808_v17, 0.0  ;;  %v1592_v61 = vrot.slane %v1332_v33, 2  ;;  %12924 = vst [vmem:[#allocation132_spill] sm:$0xff] %v7843_v19  ;;  %v7846_v25 = vsel %vm1500_vm5, %v1513_v12, %v1514_v15 }
 0x146   : > { %2726 = vrot.lane.b32.xlu1 %v7574_v39, %s6843_s24  ;;  %12917 = vst [vmem:[#allocation125_spill] sm:$0xff] %v7802_v52  ;;  %v850_v9 = vpop.f32.mrb[39].mxu0  ;;  %12925 = vst [vmem:[#allocation133_spill] sm:$0xff] %v7846_v25  ;;  %v996_v15 = vrot.slane %v7460_v32, 2 }
 0x147   : > { %v7840_v18 = vadd.f32 %v7391_v59, %v850_v9  ;;  %v6561_v11 = vpop.f32.mrb[40].mxu0  ;;  %v1330_v9 = vor.u32 %v1329_v35, %v1325_v58  ;;  %v1593_v12 = vor.u32 %v1592_v61, %v1591_v62  ;;  %v1588_v61 = vor.u32 %v1587_v36, %v1586_v45 }
 0x148   : > { %v863_v41 = vpop.f32.mrb[41].mxu0  ;;  %v7852_v56 = vadd.f32 %v6561_v11, %v7391_v59  ;;  %v1002_v45 = vrot.slane %v7512_v21, 2 }
 0x149   : > { %1814 = vrot.lane.b32.xlu0 %v7791_v2, %s6842_s23  ;;  %12923 = vst [vmem:[#allocation131_spill] sm:$0xff] %v7840_v18  ;;  %v1140_v14 = vmax.f32 %v7840_v18, 0.0  ;;  %v6562_v11 = vpop.f32.mrb[42].mxu0  ;;  %v795_v18 = vadd.f32 %v7559_v46, %v7391_v59  ;;  %v1001_v46 = vrot.slane %v7506_v30, 2  ;;  %v1009_v30 = vrot.slane %v7754_v1, 2 }
 0x14a   : > { %1752 = vrot.lane.b32.xlu1 %v7791_v2, %s6837_s18  ;;  %12926 = vst [vmem:[#allocation134_spill] sm:$0xff] %v7852_v56  ;;  %v7871_v58 = vpop.f32.mrb[43].mxu0  ;;  %v7880_v62 = vadd.f32 %v6562_v11, %v7391_v59  ;;  %v1067_v1 = vrot.slane %v7417_v31, 2 }
 0x14b   : > { %v1019_v21 = vrot.slane %v795_v18, 2 }
 0x14c   : > { %v1146_v36 = vmax.f32 %v7880_v62, 0.0 }
 0x14d   : > { %1878 = vrot.lane.b32.xlu0 %v7802_v52, %s6844_s27 }
 0x14e   : > { %1908 = vrot.lane.b32.xlu1 %v7791_v2, %s6834_s14  ;;  %v7828_v2 = vadd.f32 %v6558_v28, %v7391_v59  ;;  %v1334_v28 = vrot.slane %v1332_v33, 1  ;;  %v7855_v33 = vadd.f32 %v7391_v59, %v863_v41  ;;  %v1195_v41 = vsel %vm409_vm3, %v1123_v5, 0.0 }
 0x150   : > { %12921 = vst [vmem:[#allocation129_spill] sm:$0xff] %v7828_v2  ;;  %v1142_v55 = vmax.f32 %v7828_v2, 0.0  ;;  %v999_v2 = vrot.slane %v7521_v24, 2  ;;  %v1145_v24 = vmax.f32 %v7852_v56, 0.0  ;;  %v1143_v32 = vmax.f32 %v7855_v33, 0.0  ;;  %v7892_v56 = vpop.permute.xlu0 %2650 }
 0x151   : > { %2662 = vrot.lane.b32.xlu0 %v7580_v27, %s6841_s22  ;;  %v7883_v5 = vsel %vm1275_vm6, %v1330_v9, %v1334_v28  ;;  %12929 = vst [vmem:[#allocation137_spill] sm:$0xff] %v7892_v56  ;;  %v7904_v28 = vpack.c.bf16 %v1195_v41, %v1195_v41  ;;  %v1011_v41 = vrot.slane %v7543_v13, 2 }
 0x152   : > { %1972 = vrot.lane.b32.xlu1 %v7802_v52, %s6840_s21  ;;  %v1211_v52 = vsel %vm398_vm2, %v1139_v7, 0.0  ;;  %v1214_v35 = vsel %vm398_vm2, %v1142_v55, 0.0  ;;  %v7873_v7 = vpop.permute.xlu1 %2652  ;;  %v2579_v55 = vrot.slane %v7574_v39, 2  ;;  %v1006_v39 = vrot.slane %v7509_v26, 2 }
 0x153   : > { %v7865_v50 = vpack.c.bf16 %v1140_v14, %v1211_v52  ;;  %12928 = vst [vmem:[#allocation136_spill] sm:$0xff] %v7873_v7  ;;  %v2580_v52 = vrot.slane %v7797_v42, 2  ;;  %v1217_v14 = vsel %vm398_vm2, %v1145_v24, 0.0  ;;  %v1004_v7 = vrot.slane %v7620_v37, 2 }
 0x154   : > { %v1007_v42 = vrot.slane %v7546_v44, 2  ;;  %v1012_v37 = vrot.slane %v7549_v22, 2  ;;  %v1017_v26 = vrot.slane %v7606_v54, 2  ;;  %v7906_v9 = vpack.c.bf16 %v1146_v36, %v1217_v14 }
 0x155   : > { %1786 = vrot.lane.b32.xlu0 %v7846_v25, %s6839_s20  ;;  %12927 = vst [vmem:[#allocation135_spill] sm:$0xff] %v7865_v50  ;;  %v7887_v50 = vpack.c.bf16 %v1143_v32, %v1214_v35  ;;  %v12931_v35 = vrot.slane %v7421_v40, 2  ;;  %v1014_v24 = vrot.slane %v7808_v17, 2  ;;  %v7915_v44 = vsel %vm12704_vm4, %v2579_v55, %v2580_v52  ;;  %v7945_v52 = vpop.permute.xlu0 %2684 }
 0x156   : > { %1848 = vrot.lane.b32.xlu1 %v7846_v25, %s6843_s24  ;;  %12930 = vst [vmem:[#allocation138_spill] sm:$0xff] %v7906_v9  ;;  %12933 = vst [vmem:[#allocation140_spill] sm:$0xff] %v7915_v44  ;;  %v7918_v22 = vsel %vm1549_vm7, %v1588_v61, %v1593_v12  ;;  %v1066_v54 = vrot.slane %v7396_v29, 2  ;;  %v7923_v32 = vpop.permute.xlu1 %2686  ;;  %v12936_v40 = vrot.slane %v7455_v43, 2  ;;  %v1016_v29 = vrot.slane %v7623_v16, 2 }
 0x157   : > { %v7911_v11 = vsel %vm12704_vm4, %v12931_v35, %v994_v47  ;;  %12934 = vst [vmem:[#allocation141_spill] sm:$0xff] %v7918_v22  ;;  %12935 = vst [vmem:[#allocation142_spill] sm:$0xff] %v7923_v32  ;;  %v1069_v47 = vrot.slane %v7427_v34, 2  ;;  %v7937_v31 = vsel %vm12704_vm4, %v1002_v45, %v1004_v7  ;;  %v1517_v55 = vrot.slane %v7904_v28, 1 }
 0x158   : > { %12932 = vst [vmem:[#allocation139_spill] sm:$0xff] %v7911_v11  ;;  %v7932_v17 = vsel %vm12704_vm4, %v12936_v40, %v999_v2  ;;  %12938 = vst [vmem:[#allocation144_spill] sm:$0xff] %v7937_v31  ;;  %v12939_v13 = vmov %v12936_v40  ;;  %v1126_v61 = vmax.f32 %v795_v18, 0.0  ;;  %v1516_v2 = vrot.slane %v7580_v27, 1 }
 0x159   : > { %1942 = vrot.lane.b32.xlu0 %v7846_v25, %s6838_s19  ;;  %12937 = vst [vmem:[#allocation143_spill] sm:$0xff] %v7932_v17  ;;  %v7942_v12 = vsel %vm12704_vm4, %v996_v15, %v12939_v13  ;;  %12941 = vst [vmem:[#allocation146_spill] sm:$0xff] %v7945_v52  ;;  %v7949_v14 = vsel %vm12704_vm4, %v1007_v42, %v1009_v30  ;;  %v7952_v34 = vsel %vm12704_vm4, %v1001_v46, %v1002_v45  ;;  %v7994_v35 = vpop.permute.xlu0 %2688 }
 0x15a   : > { %1816 = vrot.lane.b32.xlu1 %v7883_v5, %s6842_s23  ;;  %12940 = vst [vmem:[#allocation145_spill] sm:$0xff] %v7942_v12  ;;  %12942 = vst [vmem:[#allocation147_spill] sm:$0xff] %v7949_v14  ;;  %v7955_v16 = vsel %vm12704_vm4, %v1012_v37, %v1014_v24  ;;  %v7958_v43 = vsel %vm12704_vm4, %v1006_v39, %v1007_v42  ;;  %v7961_v15 = vsel %vm12704_vm4, %v1017_v26, %v1019_v21  ;;  %v7983_v45 = vpop.permute.xlu1 %2718 }
 0x15b   : > { %12943 = vst [vmem:[#allocation148_spill] sm:$0xff] %v7952_v34  ;;  %12944 = vst [vmem:[#allocation149_spill] sm:$0xff] %v7955_v16  ;;  %v7968_v18 = vsel %vm12704_vm4, %v1011_v41, %v1012_v37  ;;  %v7972_v7 = vadd.f32 %v7586_v8, %v7391_v59  ;;  %v7975_v46 = vsel %vm12704_vm4, %v1016_v29, %v1017_v26  ;;  %v1198_v42 = vsel %vm409_vm3, %v1126_v61, 0.0  ;;  %v7992_v26 = vpop.f32.mrb[44].mxu0 }
 0x15c   : > { %12945 = vst [vmem:[#allocation150_spill] sm:$0xff] %v7958_v43  ;;  %12946 = vst [vmem:[#allocation151_spill] sm:$0xff] %v7961_v15  ;;  %v7978_v39 = vsel %vm12704_vm4, %v1067_v1, %v1069_v47  ;;  %v7981_v36 = vsel %vm12704_vm4, %v1066_v54, %v1067_v1  ;;  %v7988_v37 = vsel %vm1500_vm5, %v1516_v2, %v1517_v55  ;;  %v1339_v8 = vshll.u32 %v7580_v27, 16  ;;  %v8004_v41 = vpop.f32.mrb[45].mxu0 }
 0x15d   : > { %2696 = vrot.lane.b32.xlu0 %v7915_v44, %s6842_s23  ;;  %12947 = vst [vmem:[#allocation152_spill] sm:$0xff] %v7968_v18  ;;  %12948 = vst [vmem:[#allocation153_spill] sm:$0xff] %v7975_v46  ;;  %v1024_v30 = vrot.slane %v7972_v7, 2  ;;  %v1021_v24 = vrot.slane %v7671_v6, 2  ;;  %v1026_v21 = vrot.slane %v7674_v63, 2  ;;  %v1022_v54 = vrot.slane %v7677_v23, 2 }
 0x15e   : > { %1880 = vrot.lane.b32.xlu1 %v7918_v22, %s6844_s27  ;;  %12949 = vst [vmem:[#allocation154_spill] sm:$0xff] %v7978_v39  ;;  %12950 = vst [vmem:[#allocation155_spill] sm:$0xff] %v7981_v36  ;;  %v12576_v1 = vrot.slane %v7708_v48, 2  ;;  %v1344_v40 = vshll.u32 %v7904_v28, 16  ;;  %v2582_v29 = vrot.slane %v7580_v27, 2  ;;  %v1250_v13 = vpack.c.bf16 %v1198_v42, %v1198_v42 }
 0x15f   : > { %12951 = vst [vmem:[#allocation156_spill] sm:$0xff] %v7983_v45  ;;  %12952 = vst [vmem:[#allocation157_spill] sm:$0xff] %v7988_v37  ;;  %v2583_v55 = vrot.slane %v7904_v28, 2  ;;  %v1337_v61 = vshrl.u32 %v7580_v27, 16  ;;  %v1341_v6 = vrot.slane %v1339_v8, 1  ;;  %v8019_v23 = vsel %vm12704_vm4, %v1022_v54, %v1024_v30  ;;  %v8086_v45 = vpop.f32.mrb[46].mxu0 }
 0x160   : > { %12953 = vst [vmem:[#allocation158_spill] sm:$0xff] %v7994_v35  ;;  %12956 = vst [vmem:[#allocation161_spill] sm:$0xff] %v8019_v23  ;;  %v8022_v2 = vsel %vm12704_vm4, %v1021_v24, %v1022_v54  ;;  %v8027_v42 = vsel %vm12704_vm4, %v1026_v21, %v12576_v1  ;;  %v1346_v39 = vrot.slane %v1344_v40, 1  ;;  %v1520_v31 = vrot.slane %v1250_v13, 1 }
 0x161   : > { %1754 = vrot.lane.b32.xlu0 %v7883_v5, %s6837_s18  ;;  %12957 = vst [vmem:[#allocation162_spill] sm:$0xff] %v8022_v2  ;;  %12958 = vst [vmem:[#allocation163_spill] sm:$0xff] %v8027_v42  ;;  %v8032_v34 = vsel %vm12704_vm4, %v2582_v29, %v2583_v55  ;;  %v1519_v46 = vrot.slane %v7644_v49, 1  ;;  %v1342_v18 = vor.u32 %v1341_v6, %v1337_v61  ;;  %v1598_v30 = vshrl.u32 %v7904_v28, 16 }
 0x162   : > { %2664 = vrot.lane.b32.xlu1 %v7644_v49, %s6841_s22  ;;  %12960 = vst [vmem:[#allocation165_spill] sm:$0xff] %v8032_v34  ;;  %v8056_v55 = vadd.f32 %v7391_v59, %v7655_v38  ;;  %v1601_v6 = vrot.slane %v1344_v40, 2  ;;  %v1356_v2 = vshll.u32 %v1250_v13, 16  ;;  %v1607_v38 = vshrl.u32 %v1250_v13, 16 }
 0x163   : > { %v8045_v54 = vsel %vm1500_vm5, %v1519_v46, %v1520_v31  ;;  %v8048_v29 = vsel %vm1275_vm6, %v1342_v18, %v1346_v39  ;;  %v1600_v28 = vrot.slane %v1598_v30, 1  ;;  %v1595_v31 = vrot.slane %v1337_v61, 1 }
 0x164   : > { %12963 = vst [vmem:[#allocation168_spill] sm:$0xff] %v8045_v54  ;;  %12964 = vst [vmem:[#allocation169_spill] sm:$0xff] %v8048_v29  ;;  %v1596_v46 = vrot.slane %v1339_v8, 2  ;;  %v8064_v18 = vadd.f32 %v7391_v59, %v7637_v57  ;;  %v1351_v39 = vshll.u32 %v7644_v49, 16  ;;  %v1032_v40 = vrot.slane %v7723_v53, 2 }
 0x165   : > { %1910 = vrot.lane.b32.xlu0 %v7883_v5, %s6834_s14  ;;  %v1034_v8 = vrot.slane %v8056_v55, 2  ;;  %v2585_v23 = vrot.slane %v7644_v49, 2  ;;  %v2586_v15 = vrot.slane %v1250_v13, 2  ;;  %v1129_v43 = vmax.f32 %v7972_v7, 0.0 }
 0x166   : > { %1788 = vrot.lane.b32.xlu1 %v7988_v37, %s6839_s20  ;;  %v1029_v30 = vrot.slane %v8064_v18, 2  ;;  %v1031_v16 = vrot.slane %v7705_v60, 2  ;;  %v1602_v14 = vor.u32 %v1601_v6, %v1600_v28  ;;  %v1597_v12 = vor.u32 %v1596_v46, %v1595_v31 }
 0x167   : > { %v1349_v17 = vshrl.u32 %v7644_v49, 16  ;;  %v1353_v53 = vrot.slane %v1351_v39, 1  ;;  %v1358_v11 = vrot.slane %v1356_v2, 1  ;;  %v1609_v35 = vrot.slane %v1607_v38, 1 }
 0x168   : > { %v8007_v47 = vpop.permute.xlu1 %1808  ;;  %v8014_v63 = vpop.permute.xlu0 %1870  ;;  %v1610_v13 = vrot.slane %v1356_v2, 2  ;;  %v12969_v7 = vrot.slane %v7708_v48, 2  ;;  %v8094_v28 = vsel %vm12704_vm4, %v1032_v40, %v1034_v8  ;;  %v8099_v31 = vsel %vm12704_vm4, %v2585_v23, %v2586_v15 }
 0x169   : > { %12954 = vst [vmem:[#allocation159_spill] sm:$0xff] %v8007_v47  ;;  %1974 = vrot.lane.b32.xlu0 %v7918_v22, %s6840_s21  ;;  %12955 = vst [vmem:[#allocation160_spill] sm:$0xff] %v8014_v63  ;;  %v1201_v46 = vsel %vm409_vm3, %v1129_v43, 0.0  ;;  %v8107_v2 = vadd.f32 %v7992_v26, %v7391_v59  ;;  %v8110_v48 = vsel %vm12704_vm4, %v1031_v16, %v1032_v40  ;;  %v1604_v8 = vrot.slane %v1349_v17, 1  ;;  %v882_v15 = vpop.f32.mrb[47].mxu0 }
 0x16a   : > { %1944 = vrot.lane.b32.xlu1 %v7988_v37, %s6838_s19  ;;  %v8091_v60 = vsel %vm12704_vm4, %v12969_v7, %v1029_v30  ;;  %12971 = vst [vmem:[#allocation175_spill] sm:$0xff] %v8094_v28  ;;  %12973 = vst [vmem:[#allocation177_spill] sm:$0xff] %v8099_v31  ;;  %v8113_v38 = vsel %vm1549_vm7, %v1597_v12, %v1602_v14  ;;  %v1354_v30 = vor.u32 %v1353_v53, %v1349_v17 }
 0x16b   : > { %12970 = vst [vmem:[#allocation174_spill] sm:$0xff] %v8091_v60  ;;  %12975 = vst [vmem:[#allocation179_spill] sm:$0xff] %v8110_v48  ;;  %v1605_v7 = vrot.slane %v1351_v39, 2  ;;  %v8120_v43 = vadd.f32 %v7391_v59, %v882_v15  ;;  %v1252_v26 = vpack.c.bf16 %v1201_v46, %v1201_v46  ;;  %v1149_v12 = vmax.f32 %v8107_v2, 0.0 }
 0x16c   : > { %v8029_v36 = vpop.permute.xlu1 %1964  ;;  %12976 = vst [vmem:[#allocation180_spill] sm:$0xff] %v8113_v38  ;;  %v1611_v14 = vor.u32 %v1610_v13, %v1609_v35  ;;  %v8129_v39 = vsel %vm1275_vm6, %v1354_v30, %v1358_v11  ;;  %v1522_v53 = vrot.slane %v7701_v20, 1  ;;  %v1361_v52 = vshrl.u32 %v7701_v20, 16 }
 0x16d   : > { %12959 = vst [vmem:[#allocation164_spill] sm:$0xff] %v8029_v36  ;;  %1850 = vrot.lane.b32.xlu0 %v7988_v37, %s6843_s24  ;;  %v1148_v17 = vmax.f32 %v8120_v43, 0.0  ;;  %v1606_v40 = vor.u32 %v1605_v7, %v1604_v8  ;;  %v1523_v59 = vrot.slane %v1252_v26, 1  ;;  %v1616_v28 = vshrl.u32 %v1252_v26, 16 }
 0x16e   : > { %2698 = vrot.lane.b32.xlu1 %v8032_v34, %s6842_s23 }
 0x16f   : > { %v8040_v24 = vpop.permute.xlu0 %1838  ;;  %v1220_v46 = vsel %vm398_vm2, %v1148_v17, 0.0  ;;  %v8145_v11 = vsel %vm1549_vm7, %v1606_v40, %v1611_v14  ;;  %v8152_v13 = vsel %vm1500_vm5, %v1522_v53, %v1523_v59  ;;  %v8169_v17 = vld [vmem:[%s12381_s2] ss:$0 sm:$0xff]  ;;  %v2588_v40 = vrot.slane %v7701_v20, 2 }
 0x170   : > { %12961 = vst [vmem:[#allocation166_spill] sm:$0xff] %v8040_v24  ;;  %v8042_v21 = vpop.permute.xlu1 %1776  ;;  %v8142_v35 = vpack.c.bf16 %v1149_v12, %v1220_v46  ;;  %12981 = vst [vmem:[#allocation185_spill] sm:$0xff] %v8145_v11  ;;  %v8173_v14 = vadd.f32 %v8169_v17, %v7667_v4  ;;  %v2589_v59 = vrot.slane %v1252_v26, 2  ;;  %v1363_v53 = vshll.u32 %v7701_v20, 16  ;;  %v13019_v24 = vld [vmem:[#allocation116_spill] sm:$0xff] }
 0x171   : > { %12962 = vst [vmem:[#allocation167_spill] sm:$0xff] %v8042_v21  ;;  %1790 = vrot.lane.b32.xlu0 %v8045_v54, %s6839_s20  ;;  %12982 = vst [vmem:[#allocation186_spill] sm:$0xff] %v8152_v13  ;;  %v1368_v46 = vshll.u32 %v1252_v26, 16  ;;  %v1037_v4 = vrot.slane %v7758_v0, 2  ;;  %v1618_v3 = vrot.slane %v1616_v28, 1  ;;  %v12993_v28 = vld [vmem:[#allocation118_spill] sm:$0xff] }
 0x172   : > { %1756 = vrot.lane.b32.xlu1 %v8048_v29, %s6837_s18  ;;  %v1365_v56 = vrot.slane %v1363_v53, 1 }
 0x173   : > { %v8058_v1 = vpop.permute.xlu0 %1902  ;;  %v1370_v26 = vrot.slane %v1368_v46, 1  ;;  %v1619_v34 = vrot.slane %v1368_v46, 2 }
 0x174   : > { %12965 = vst [vmem:[#allocation170_spill] sm:$0xff] %v8058_v1  ;;  %v8060_v42 = vpop.permute.xlu1 %1932  ;;  %v1366_v44 = vor.u32 %v1365_v56, %v1361_v52  ;;  %v12994_v56 = vld [vmem:[#allocation126_spill] sm:$0xff] }
 0x175   : > { %12966 = vst [vmem:[#allocation171_spill] sm:$0xff] %v8060_v42  ;;  %1818 = vrot.lane.b32.xlu0 %v8048_v29, %s6842_s23 }
 0x176   : > { %1852 = vrot.lane.b32.xlu1 %v8045_v54, %s6843_s24 }
 0x177   : > { %v8074_v61 = vpop.permute.xlu0 %2654 }
 0x178   : > { %12967 = vst [vmem:[#allocation172_spill] sm:$0xff] %v8074_v61  ;;  %v8076_v57 = vpop.permute.xlu1 %1996  ;;  %v8189_v61 = vsel %vm12704_vm4, %v2588_v40, %v2589_v59  ;;  %v1132_v59 = vmax.f32 %v8064_v18, 0.0 }
 0x179   : > { %12968 = vst [vmem:[#allocation173_spill] sm:$0xff] %v8076_v57  ;;  %1946 = vrot.lane.b32.xlu0 %v8045_v54, %s6838_s19  ;;  %12988 = vst [vmem:[#allocation192_spill] sm:$0xff] %v8189_v61  ;;  %v1614_v57 = vrot.slane %v1363_v53, 2 }
 0x17a   : > { %1912 = vrot.lane.b32.xlu1 %v8048_v29, %s6834_s14 }
 0x17b   : > { %v8096_v6 = vpop.permute.xlu0 %2720 }
 0x17c   : > { %12972 = vst [vmem:[#allocation176_spill] sm:$0xff] %v8096_v6  ;;  %v8103_v32 = vpop.permute.xlu1 %1872  ;;  %v1039_v6 = vrot.slane %v8173_v14, 2 }
 0x17d   : > { %12974 = vst [vmem:[#allocation178_spill] sm:$0xff] %v8103_v32  ;;  %2700 = vrot.lane.b32.xlu0 %v8099_v31, %s6842_s23 }
 0x17e   : > { %1976 = vrot.lane.b32.xlu1 %v8113_v38, %s6840_s21 }
 0x17f   : > { %v8122_v23 = vpop.permute.xlu0 %1966 }
 0x180   : > { %12977 = vst [vmem:[#allocation181_spill] sm:$0xff] %v8122_v23  ;;  %v8124_v16 = vpop.permute.xlu1 %1840 }
 0x181   : > { %12978 = vst [vmem:[#allocation182_spill] sm:$0xff] %v8124_v16  ;;  %1882 = vrot.lane.b32.xlu0 %v8113_v38, %s6844_s27 }
 0x182   : > { %1820 = vrot.lane.b32.xlu1 %v8129_v39, %s6842_s23 }
 0x183   : > { %v8138_v15 = vpop.permute.xlu0 %1934 }
 0x184   : > { %12979 = vst [vmem:[#allocation183_spill] sm:$0xff] %v8138_v15  ;;  %v8140_v48 = vpop.permute.xlu1 %1904  ;;  %v1135_v15 = vmax.f32 %v8056_v55, 0.0 }
 0x185   : > { %12980 = vst [vmem:[#allocation184_spill] sm:$0xff] %v8140_v48  ;;  %1758 = vrot.lane.b32.xlu0 %v8129_v39, %s6837_s18  ;;  %v12998_v48 = vld [vmem:[#allocation119_spill] sm:$0xff] }
 0x186   : > { %1884 = vrot.lane.b32.xlu1 %v8145_v11, %s6844_s27 }
 0x187   : > { %v8154_v30 = vpop.permute.xlu0 %1998 }
 0x188   : > { %12983 = vst [vmem:[#allocation187_spill] sm:$0xff] %v8154_v30  ;;  %v8156_v8 = vpop.permute.xlu1 %2656  ;;  %v1613_v30 = vrot.slane %v1361_v52, 1  ;;  %v12587_v52 = vunpack.i.l.bf16 %v12994_v56 }
 0x189   : > { %12984 = vst [vmem:[#allocation188_spill] sm:$0xff] %v8156_v8  ;;  %1914 = vrot.lane.b32.xlu0 %v8129_v39, %s6834_s14  ;;  %v1036_v8 = vrot.slane %v7769_v51, 2  ;;  %v8201_v51 = vsel %vm12704_vm4, %v1037_v4, %v1039_v6  ;;  %v1204_v6 = vsel %vm409_vm3, %v1132_v59, 0.0  ;;  %v1525_v59 = vrot.slane %v12993_v28, 1 }
 0x18a   : > { %1792 = vrot.lane.b32.xlu1 %v8152_v13, %s6839_s20  ;;  %12991 = vst [vmem:[#allocation195_spill] sm:$0xff] %v8201_v51  ;;  %v1615_v18 = vor.u32 %v1614_v57, %v1613_v30  ;;  %v1254_v53 = vpack.c.bf16 %v1204_v6, %v1204_v6  ;;  %v1373_v6 = vshrl.u32 %v12993_v28, 16 }
 0x18b   : > { %v8162_v7 = vpop.permute.xlu0 %1842  ;;  %v8204_v40 = vsel %vm12704_vm4, %v1036_v8, %v1037_v4  ;;  %v8216_v8 = vsel %vm1275_vm6, %v1366_v44, %v1370_v26  ;;  %v2004_v44 = vsel %vm574_vm1, %v12587_v52, %v7843_v19  ;;  %v12999_v52 = vld [vmem:[#allocation8_spill] sm:$0xff] }
 0x18c   : > { %v8164_v12 = vpop.permute.xlu1 %2722  ;;  %12992 = vst [vmem:[#allocation196_spill] sm:$0xff] %v8204_v40  ;;  %v1380_v57 = vshll.u32 %v1254_v53, 16  ;;  %v1625_v51 = vshrl.u32 %v1254_v53, 16  ;;  %v2052_v19 = vsel %vm2050_vm8, %v2004_v44, %v12999_v52  ;;  %v1622_v44 = vrot.slane %v1373_v6, 1 }
 0x18d   : > { %12985 = vst [vmem:[#allocation189_spill] sm:$0xff] %v8164_v12  ;;  %1978 = vrot.lane.b32.xlu0 %v8145_v11, %s6840_s21  ;;  %v2592_v63 = vrot.slane %v1254_v53, 2 }
 0x18e   : > { %1948 = vrot.lane.b32.xlu1 %v8152_v13, %s6838_s19  ;;  %v1382_v32 = vrot.slane %v1380_v57, 1  ;;  %v1627_v16 = vrot.slane %v1625_v51, 1  ;;  %v1628_v42 = vrot.slane %v1380_v57, 2 }
 0x18f   : > { %v8181_v60 = vpop.permute.xlu0 %1748 }
 0x190   : > { %12986 = vst [vmem:[#allocation190_spill] sm:$0xff] %v8181_v60  ;;  %v8183_v12 = vpop.permute.xlu1 %1780 }
 0x191   : > { %12987 = vst [vmem:[#allocation191_spill] sm:$0xff] %v8183_v12  ;;  %2666 = vrot.lane.b32.xlu0 %v7701_v20, %s6841_s22 }
 0x192   : > { %2702 = vrot.lane.b32.xlu1 %v8189_v61, %s6842_s23 }
 0x193   : > { %v8196_v0 = vpop.permute.xlu0 %1782 }
 0x194   : > { %12989 = vst [vmem:[#allocation193_spill] sm:$0xff] %v8196_v0  ;;  %v8198_v31 = vpop.permute.xlu1 %2690 }
 0x195   : > { %12990 = vst [vmem:[#allocation194_spill] sm:$0xff] %v8198_v31  ;;  %1854 = vrot.lane.b32.xlu0 %v8152_v13, %s6843_s24  ;;  %v1620_v31 = vor.u32 %v1619_v34, %v1618_v3  ;;  %v1375_v34 = vshll.u32 %v12993_v28, 16 }
 0x196   : > { %2668 = vrot.lane.b32.xlu1 %v12993_v28, %s6841_s22 }
 0x197   : > { %v1811_v46 = vpop.permute.xlu0 %1810  ;;  %v8226_v3 = vsel %vm1549_vm7, %v1615_v18, %v1620_v31  ;;  %v1526_v31 = vrot.slane %v1254_v53, 1  ;;  %v1377_v18 = vrot.slane %v1375_v34, 1 }
 0x198   : > { %v8211_v61 = vpop.permute.xlu1 %1844  ;;  %12996 = vst [vmem:[#allocation197_spill] sm:$0xff] %v8226_v3 }
 0x199   : > { %1822 = vrot.lane.b32.xlu0 %v8216_v8, %s6842_s23  ;;  %v8254_v36 = vsel %vm1500_vm5, %v1525_v59, %v1526_v31  ;;  %v1378_v1 = vor.u32 %v1377_v18, %v1373_v6  ;;  %v2591_v18 = vrot.slane %v12993_v28, 2  ;;  %v1629_v6 = vor.u32 %v1628_v42, %v1627_v16 }
 0x19a   : > { %1760 = vrot.lane.b32.xlu1 %v8216_v8, %s6837_s18  ;;  %13000 = vst [vmem:[#allocation199_spill] sm:$0xff] %v8254_v36 }
 0x19b   : > { %v1939_v4 = vpop.permute.xlu0 %1938  ;;  %v8267_v57 = vsel %vm1275_vm6, %v1378_v1, %v1382_v32  ;;  %v8283_v16 = vsel %vm12704_vm4, %v2591_v18, %v2592_v63  ;;  %v1138_v63 = vmax.f32 %v8173_v14, 0.0 }
 0x19c   : > { %v8223_v40 = vpop.permute.xlu1 %1750  ;;  %13002 = vst [vmem:[#allocation201_spill] sm:$0xff] %v8283_v16 }
 0x19d   : > { %12995 = vst [vmem:[#allocation118_spill] sm:$0xff] %v8223_v40  ;;  %1886 = vrot.lane.b32.xlu0 %v8226_v3, %s6844_s27 }
 0x19e   : > { %1916 = vrot.lane.b32.xlu1 %v8216_v8, %s6834_s14 }
 0x19f   : > { %v8237_v30 = vpop.permute.xlu0 %2692 }
 0x1a0   : > { %12997 = vst [vmem:[#allocation198_spill] sm:$0xff] %v8237_v30  ;;  %v8239_v26 = vpop.permute.xlu1 %1812  ;;  %v2085_v30 = vsel %vm2083_vm9, %v2052_v19, %v1811_v46  ;;  %v1623_v19 = vrot.slane %v1375_v34, 2  ;;  %v1207_v34 = vsel %vm409_vm3, %v1135_v15, 0.0 }
 0x1a1   : > { %2670 = vrot.lane.b32.xlu0 %v12998_v48, %s6841_s22  ;;  %v2118_v46 = vsel %vm2116_vm10, %v2085_v30, %v8162_v7  ;;  %v8279_v53 = vpack.c.bf16 %v1207_v34, %v1207_v34  ;;  %v1387_v34 = vshll.u32 %v12998_v48, 16 }
 0x1a2   : > { %1980 = vrot.lane.b32.xlu1 %v8226_v3, %s6840_s21  ;;  %v1624_v7 = vor.u32 %v1623_v19, %v1622_v44  ;;  %v1528_v19 = vrot.slane %v12998_v48, 1 }
 0x1a3   : > { %v1875_v56 = vpop.permute.xlu0 %1874  ;;  %v1529_v44 = vrot.slane %v8279_v53, 1 }
 0x1a4   : > { %v8250_v23 = vpop.permute.xlu1 %1876  ;;  %v2151_v55 = vsel %vm2149_vm11, %v2118_v46, %v1875_v56  ;;  %v8289_v15 = vsel %vm1549_vm7, %v1624_v7, %v1629_v6  ;;  %v13006_v46 = vld [vmem:[#allocation122_spill] sm:$0xff]  ;;  %v1210_v6 = vsel %vm409_vm3, %v1138_v63, 0.0  ;;  %v1392_v63 = vshll.u32 %v8279_v53, 16 }
 0x1a5   : > { %1794 = vrot.lane.b32.xlu0 %v8254_v36, %s6839_s20  ;;  %13003 = vst [vmem:[#allocation202_spill] sm:$0xff] %v8289_v15  ;;  %v8315_v14 = vsel %vm1500_vm5, %v1528_v19, %v1529_v44  ;;  %v2007_v44 = vsel %vm574_vm1, %v8181_v60, %v8183_v12 }
 0x1a6   : > { %1856 = vrot.lane.b32.xlu1 %v8254_v36, %s6843_s24  ;;  %13010 = vst [vmem:[#allocation205_spill] sm:$0xff] %v8315_v14  ;;  %v2054_v21 = vsel %vm2050_vm8, %v2007_v44, %v13019_v24 }
 0x1a7   : > { %v1907_v31 = vpop.permute.xlu0 %1906  ;;  %v2087_v47 = vsel %vm2083_vm9, %v2054_v21, %v8239_v26 }
 0x1a8   : > { %v8263_v59 = vpop.permute.xlu1 %1784  ;;  %v2184_v51 = vsel %vm2182_vm12, %v2151_v55, %v1907_v31  ;;  %v13007_v55 = vld [vmem:[#allocation127_spill] sm:$0xff]  ;;  %v2120_v44 = vsel %vm2116_vm10, %v2087_v47, %v8211_v61  ;;  %v8392_v61 = vadd.f32 %v8169_v17, %v8004_v41  ;;  %v1632_v41 = vrot.slane %v1387_v34, 2 }
 0x1a9   : > { %13001 = vst [vmem:[#allocation200_spill] sm:$0xff] %v8263_v59  ;;  %1950 = vrot.lane.b32.xlu0 %v8254_v36, %s6838_s19  ;;  %v2217_v56 = vsel %vm2215_vm13, %v2184_v51, %v1939_v4  ;;  %v8306_v31 = vadd.f32 %v8169_v17, %v13007_v55  ;;  %v2153_v21 = vsel %vm2149_vm11, %v2120_v44, %v8250_v23  ;;  %v1052_v44 = vrot.slane %v7880_v62, 2 }
 0x1aa   : > { %1824 = vrot.lane.b32.xlu1 %v8267_v57, %s6842_s23 }
 0x1ab   : > { %v1971_v32 = vpop.permute.xlu0 %1970  ;;  %v1044_v7 = vrot.slane %v8306_v31, 2 }
 0x1ac   : > { %v8277_v1 = vpop.permute.xlu1 %1940  ;;  %v2250_v42 = vsel %vm12770_vm15, %v2217_v56, %v1971_v32  ;;  %v13011_v56 = vld [vmem:[#allocation128_spill] sm:$0xff] }
 0x1ad   : > { %2704 = vrot.lane.b32.xlu0 %v8283_v16, %s6842_s23  ;;  %6585 = vmatprep.mubr.msk.bf16.mxu1 %vm2308_vm14, %v2250_v42  ;;  %v1041_v32 = vrot.slane %v13011_v56, 2  ;;  %v13012_v42 = vld [vmem:[#allocation129_spill] sm:$0xff]  ;;  %v8335_v56 = vpack.c.bf16 %v1210_v6, %v1210_v6  ;;  %v1389_v16 = vrot.slane %v1387_v34, 1 }
 0x1ae   : > { %1888 = vrot.lane.b32.xlu1 %v8289_v15, %s6844_s27  ;;  %v1046_v55 = vrot.slane %v13012_v42, 2  ;;  %v2594_v42 = vrot.slane %v12998_v48, 2 }
 0x1af   : > { %v8293_v4 = vpop.permute.xlu0 %2658  ;;  %v1643_v34 = vshrl.u32 %v8335_v56, 16 }
 0x1b0   : > { %13004 = vst [vmem:[#allocation203_spill] sm:$0xff] %v8293_v4  ;;  %v8295_v30 = vpop.permute.xlu1 %2694 }
 0x1b1   : > { %13005 = vst [vmem:[#allocation204_spill] sm:$0xff] %v8295_v30  ;;  %1762 = vrot.lane.b32.xlu0 %v8267_v57, %s6837_s18  ;;  %v13013_v30 = vld [vmem:[#allocation131_spill] sm:$0xff] }
 0x1b2   : > { %2672 = vrot.lane.b32.xlu1 %v13006_v46, %s6841_s22 }
 0x1b3   : > { %v8308_v51 = vpop.permute.xlu0 %2724 }
 0x1b4   : > { %13008 = vst [vmem:[#allocation122_spill] sm:$0xff] %v8308_v51  ;;  %v8310_v18 = vpop.permute.xlu1 %2660  ;;  %v1042_v51 = vrot.slane %v13013_v30, 2  ;;  %v2595_v30 = vrot.slane %v8279_v53, 2 }
 0x1b5   : > { %13009 = vst [vmem:[#allocation127_spill] sm:$0xff] %v8310_v18  ;;  %1918 = vrot.lane.b32.xlu0 %v8267_v57, %s6834_s14  ;;  %v1385_v18 = vshrl.u32 %v12998_v48, 16 }
 0x1b6   : > { %1796 = vrot.lane.b32.xlu1 %v8315_v14, %s6839_s20  ;;  %v8343_v12 = vsel %vm12704_vm4, %v1042_v51, %v1044_v7  ;;  %v8346_v60 = vsel %vm12704_vm4, %v1041_v32, %v1042_v51  ;;  %v1532_v51 = vrot.slane %v8335_v56, 1  ;;  %v1531_v32 = vrot.slane %v13006_v46, 1 }
 0x1b7   : > { %v8331_v19 = vpop.permute.xlu0 %1846  ;;  %13015 = vst [vmem:[#allocation129_spill] sm:$0xff] %v8343_v12  ;;  %13016 = vst [vmem:[#allocation131_spill] sm:$0xff] %v8346_v60  ;;  %v1394_v60 = vrot.slane %v1392_v63, 1  ;;  %v1634_v12 = vshrl.u32 %v8279_v53, 16 }
 0x1b8   : > { %v8333_v4 = vpop.permute.xlu1 %2726  ;;  %v8380_v24 = vsel %vm1500_vm5, %v1531_v32, %v1532_v51  ;;  %v1637_v51 = vrot.slane %v1392_v63, 2  ;;  %v1631_v32 = vrot.slane %v1385_v18, 1  ;;  %v1054_v63 = vrot.slane %v8392_v61, 2 }
 0x1b9   : > { %13014 = vst [vmem:[#allocation128_spill] sm:$0xff] %v8333_v4  ;;  %1982 = vrot.lane.b32.xlu0 %v8289_v15, %s6840_s21  ;;  %v13017_v4 = vrot.slane %v7855_v33, 2  ;;  %13022 = vst [vmem:[#allocation209_spill] sm:$0xff] %v8380_v24 }
 0x1ba   : > { %1952 = vrot.lane.b32.xlu1 %v8315_v14, %s6838_s19  ;;  %v1633_v62 = vor.u32 %v1632_v41, %v1631_v32  ;;  %v1645_v41 = vrot.slane %v1643_v34, 1 }
 0x1bb   : > { %v8351_v6 = vsel %vm12704_vm4, %v1046_v55, %v13017_v4  ;;  %v8359_v52 = vpop.permute.xlu0 %1814  ;;  %v8368_v4 = vsel %vm12704_vm4, %v2594_v42, %v2595_v30  ;;  %v1390_v55 = vor.u32 %v1389_v16, %v1385_v18  ;;  %v1636_v30 = vrot.slane %v1634_v12, 1  ;;  %v13024_v12 = vld [vmem:[#allocation134_spill] sm:$0xff] }
 0x1bc   : > { %13018 = vst [vmem:[#allocation206_spill] sm:$0xff] %v8351_v6  ;;  %v8361_v7 = vpop.permute.xlu1 %1752  ;;  %13021 = vst [vmem:[#allocation208_spill] sm:$0xff] %v8368_v4  ;;  %v1404_v18 = vshll.u32 %v8335_v56, 16 }
 0x1bd   : > { %13020 = vst [vmem:[#allocation207_spill] sm:$0xff] %v8361_v7  ;;  %1858 = vrot.lane.b32.xlu0 %v8315_v14, %s6843_s24  ;;  %v8386_v47 = vsel %vm1275_vm6, %v1390_v55, %v1394_v60  ;;  %v8401_v60 = vadd.f32 %v8169_v17, %v7871_v58  ;;  %v1399_v55 = vshll.u32 %v13006_v46, 16  ;;  %v13026_v14 = vrot.slane %v7855_v33, 2 }
 0x1be   : > { %2706 = vrot.lane.b32.xlu1 %v8368_v4, %s6842_s23 }
 0x1bf   : > { %v8376_v26 = vpop.permute.xlu0 %1878  ;;  %v1049_v58 = vrot.slane %v8401_v60, 2  ;;  %v1401_v4 = vrot.slane %v1399_v55, 1 }
 0x1c0   : > { %v1909_v6 = vpop.permute.xlu1 %1908 }
 0x1c1   : > { %v2186_v42 = vsel %vm2182_vm12, %v2153_v21, %v1909_v6  ;;  %1798 = vrot.lane.b32.xlu0 %v8380_v24, %s6839_s20  ;;  %v8430_v13 = vsel %vm12704_vm4, %v13026_v14, %v1049_v58  ;;  %v1641_v58 = vrot.slane %v1399_v55, 2  ;;  %v13033_v55 = vld [vmem:[#allocation115_spill] sm:$0xff] }
 0x1c2   : > { %1764 = vrot.lane.b32.xlu1 %v8386_v47, %s6837_s18  ;;  %v2219_v16 = vsel %vm2215_vm13, %v2186_v42, %v8277_v1  ;;  %v1051_v1 = vrot.slane %v13024_v12, 2  ;;  %v1638_v12 = vor.u32 %v1637_v51, %v1636_v30  ;;  %13027 = vst [vmem:[#allocation211_spill] sm:$0xff] %v8430_v13  ;;  %v1406_v30 = vrot.slane %v1404_v18, 1 }
 0x1c3   : > { %v8394_v23 = vpop.permute.xlu0 %2662 }
 0x1c4   : > { %13023 = vst [vmem:[#allocation210_spill] sm:$0xff] %v8394_v23  ;;  %v1973_v53 = vpop.permute.xlu1 %1972  ;;  %v1397_v23 = vshrl.u32 %v13006_v46, 16  ;;  %v8448_v14 = vsel %vm1549_vm7, %v1633_v62, %v1638_v12 }
 0x1c5   : > { %v2252_v6 = vsel %vm12770_vm15, %v2219_v16, %v1973_v53  ;;  %1826 = vrot.lane.b32.xlu0 %v8386_v47, %s6842_s23  ;;  %v2597_v53 = vrot.slane %v13006_v46, 2  ;;  %v2598_v16 = vrot.slane %v8335_v56, 2  ;;  %v8433_v56 = vsel %vm12704_vm4, %v1052_v44, %v1054_v63  ;;  %13031 = vst [vmem:[#allocation215_spill] sm:$0xff] %v8448_v14 }
 0x1c6   : > { %6586 = vmatmul.mubr.msk.bf16.vlgmr.msra.gmra.mrb[12].mxu1 %vm2308_vm14, %v2252_v6  ;;  %1860 = vrot.lane.b32.xlu1 %v8380_v24, %s6843_s24  ;;  %v1141_v6 = vmax.f32 %v8306_v31, 0.0  ;;  %13028 = vst [vmem:[#allocation212_spill] sm:$0xff] %v8433_v56  ;;  %v8436_v31 = vsel %vm12704_vm4, %v1051_v1, %v1052_v44  ;;  %v1402_v1 = vor.u32 %v1401_v4, %v1397_v23  ;;  %v1640_v44 = vrot.slane %v1397_v23, 1 }
 0x1c7   : > { %v8414_v21 = vpop.permute.xlu0 %1786  ;;  %13029 = vst [vmem:[#allocation213_spill] sm:$0xff] %v8436_v31  ;;  %v8441_v37 = vsel %vm12704_vm4, %v2597_v53, %v2598_v16  ;;  %v2010_v63 = vsel %vm574_vm1, %v8223_v40, %v8196_v0 }
 0x1c8   : > { %13025 = vst [vmem:[#allocation134_spill] sm:$0xff] %v8414_v21  ;;  %v8416_v42 = vpop.permute.xlu1 %1848  ;;  %13030 = vst [vmem:[#allocation214_spill] sm:$0xff] %v8441_v37  ;;  %v1213_v33 = vsel %vm409_vm3, %v1141_v6, 0.0  ;;  %v8462_v4 = vsel %vm1275_vm6, %v1402_v1, %v1406_v30  ;;  %v1642_v23 = vor.u32 %v1641_v58, %v1640_v44  ;;  %v2056_v6 = vsel %vm2050_vm8, %v2010_v63, %v13033_v55 }
 0x1c9   : > { %1954 = vrot.lane.b32.xlu0 %v8380_v24, %s6838_s19  ;;  %v1646_v24 = vrot.slane %v1404_v18, 2  ;;  %v1260_v18 = vpack.c.bf16 %v1213_v33, %v1213_v33  ;;  %v2089_v12 = vsel %vm2083_vm9, %v2056_v6, %v8359_v52 }
 0x1ca   : > { %1920 = vrot.lane.b32.xlu1 %v8386_v47, %s6834_s14  ;;  %v2122_v1 = vsel %vm2116_vm10, %v2089_v12, %v8331_v19 }
 0x1cb   : > { %v1943_v51 = vpop.permute.xlu0 %1942  ;;  %v1647_v16 = vor.u32 %v1646_v24, %v1645_v41  ;;  %v1535_v62 = vrot.slane %v1260_v18, 1  ;;  %v13036_v41 = vld [vmem:[#allocation135_spill] sm:$0xff]  ;;  %v2155_v52 = vsel %vm2149_vm11, %v2122_v1, %v8376_v26  ;;  %v8499_v26 = vadd.f32 %v8169_v17, %v8086_v45 }
 0x1cc   : > { %v8438_v32 = vpop.permute.xlu1 %1816  ;;  %v1534_v31 = vrot.slane %v13036_v41, 1  ;;  %v2601_v1 = vrot.slane %v1260_v18, 2  ;;  %v1057_v17 = vrot.slane %v8107_v2, 2  ;;  %v2013_v2 = vsel %vm574_vm1, %v8361_v7, %v8263_v59  ;;  %v13046_v59 = vld [vmem:[#allocation125_spill] sm:$0xff] }
 0x1cd   : > { %2708 = vrot.lane.b32.xlu0 %v8441_v37, %s6842_s23  ;;  %v8478_v30 = vsel %vm1549_vm7, %v1642_v23, %v1647_v16 }
 0x1ce   : > { %1984 = vrot.lane.b32.xlu1 %v8448_v14, %s6840_s21  ;;  %13037 = vst [vmem:[#allocation219_spill] sm:$0xff] %v8478_v30  ;;  %v8489_v63 = vsel %vm1500_vm5, %v1534_v31, %v1535_v62  ;;  %v1411_v31 = vshll.u32 %v13036_v41, 16  ;;  %v2600_v62 = vrot.slane %v13036_v41, 2 }
 0x1cf   : > { %v8455_v34 = vpop.permute.xlu0 %2696  ;;  %13039 = vst [vmem:[#allocation221_spill] sm:$0xff] %v8489_v63 }
 0x1d0   : > { %13032 = vst [vmem:[#allocation216_spill] sm:$0xff] %v8455_v34  ;;  %v8457_v53 = vpop.permute.xlu1 %1880  ;;  %v1650_v40 = vrot.slane %v1411_v31, 2 }
 0x1d1   : > { %1890 = vrot.lane.b32.xlu0 %v8448_v14, %s6844_s27 }
 0x1d2   : > { %1828 = vrot.lane.b32.xlu1 %v8462_v4, %s6842_s23 }
 0x1d3   : > { %v8470_v33 = vpop.permute.xlu0 %1754 }
 0x1d4   : > { %13034 = vst [vmem:[#allocation217_spill] sm:$0xff] %v8470_v33  ;;  %v8472_v24 = vpop.permute.xlu1 %2664 }
 0x1d5   : > { %13035 = vst [vmem:[#allocation218_spill] sm:$0xff] %v8472_v24  ;;  %1766 = vrot.lane.b32.xlu0 %v8462_v4, %s6837_s18 }
 0x1d6   : > { %1892 = vrot.lane.b32.xlu1 %v8478_v30, %s6844_s27 }
 0x1d7   : > { %v1911_v44 = vpop.permute.xlu0 %1910 }
 0x1d8   : > { %v8486_v58 = vpop.permute.xlu1 %1788  ;;  %v2188_v6 = vsel %vm2182_vm12, %v2155_v52, %v1911_v44  ;;  %v1416_v52 = vshll.u32 %v1260_v18, 16 }
 0x1d9   : > { %13038 = vst [vmem:[#allocation220_spill] sm:$0xff] %v8486_v58  ;;  %1922 = vrot.lane.b32.xlu0 %v8462_v4, %s6834_s14  ;;  %v2221_v19 = vsel %vm2215_vm13, %v2188_v6, %v1943_v51  ;;  %v1652_v51 = vshrl.u32 %v1260_v18, 16  ;;  %v1059_v6 = vrot.slane %v8499_v26, 2  ;;  %v8520_v18 = vsel %vm12704_vm4, %v2600_v62, %v2601_v1 }
 0x1da   : > { %1800 = vrot.lane.b32.xlu1 %v8489_v63, %s6839_s20  ;;  %13041 = vst [vmem:[#allocation223_spill] sm:$0xff] %v8520_v18  ;;  %v1418_v56 = vrot.slane %v1416_v52, 1  ;;  %v1655_v34 = vrot.slane %v1416_v52, 2  ;;  %v1144_v1 = vmax.f32 %v8401_v60, 0.0  ;;  %v2058_v52 = vsel %vm2050_vm8, %v2013_v2, %v13046_v59 }
 0x1db   : > { %v1975_v16 = vpop.permute.xlu0 %1974  ;;  %v1654_v13 = vrot.slane %v1652_v51, 1  ;;  %v8532_v24 = vsel %vm12704_vm4, %v1057_v17, %v1059_v6  ;;  %v2091_v6 = vsel %vm2083_vm9, %v2058_v52, %v8438_v32 }
 0x1dc   : > { %v1945_v23 = vpop.permute.xlu1 %1944  ;;  %v2254_v12 = vsel %vm12770_vm15, %v2221_v19, %v1975_v16  ;;  %v1056_v19 = vrot.slane %v8120_v43, 2  ;;  %v1409_v16 = vshrl.u32 %v13036_v41, 16  ;;  %13044 = vst [vmem:[#allocation226_spill] sm:$0xff] %v8532_v24  ;;  %v1216_v60 = vsel %vm409_vm3, %v1144_v1, 0.0 }
 0x1dd   : > { %1986 = vrot.lane.b32.xlu0 %v8478_v30, %s6840_s21  ;;  %6589 = vmatprep.mubr.msk.bf16.mxu1 %vm2308_vm14, %v2254_v12  ;;  %v1413_v12 = vrot.slane %v1411_v31, 1 }
 0x1de   : > { %1956 = vrot.lane.b32.xlu1 %v8489_v63, %s6838_s19  ;;  %v8535_v62 = vsel %vm12704_vm4, %v1056_v19, %v1057_v17  ;;  %v1649_v0 = vrot.slane %v1409_v16, 1  ;;  %v1656_v19 = vor.u32 %v1655_v34, %v1654_v13  ;;  %v1262_v13 = vpack.c.bf16 %v1216_v60, %v1216_v60 }
 0x1df   : > { %v8509_v44 = vpop.permute.xlu0 %1850  ;;  %13045 = vst [vmem:[#allocation227_spill] sm:$0xff] %v8535_v62  ;;  %v1414_v51 = vor.u32 %v1413_v12, %v1409_v16  ;;  %v2124_v12 = vsel %vm2116_vm10, %v2091_v6, %v8416_v42  ;;  %v1537_v60 = vrot.slane %v7887_v50, 1 }
 0x1e0   : > { %v8511_v45 = vpop.permute.xlu1 %2698  ;;  %v1651_v16 = vor.u32 %v1650_v40, %v1649_v0  ;;  %v2157_v32 = vsel %vm2149_vm11, %v2124_v12, %v8457_v53  ;;  %v1423_v40 = vshll.u32 %v7887_v50, 16  ;;  %v1428_v42 = vshll.u32 %v1262_v13, 16 }
 0x1e1   : > { %13040 = vst [vmem:[#allocation222_spill] sm:$0xff] %v8511_v45  ;;  %2674 = vrot.lane.b32.xlu0 %v13036_v41, %s6841_s22  ;;  %v8551_v31 = vsel %vm1275_vm6, %v1414_v51, %v1418_v56  ;;  %v1538_v52 = vrot.slane %v1262_v13, 1  ;;  %v1661_v6 = vshrl.u32 %v1262_v13, 16 }
 0x1e2   : > { %2710 = vrot.lane.b32.xlu1 %v8520_v18, %s6842_s23  ;;  %v8562_v1 = vsel %vm1549_vm7, %v1651_v16, %v1656_v19  ;;  %v1421_v16 = vshrl.u32 %v7887_v50, 16  ;;  %v1425_v12 = vrot.slane %v1423_v40, 1  ;;  %v1664_v62 = vrot.slane %v1428_v42, 2 }
 0x1e3   : > { %v8527_v43 = vpop.permute.xlu0 %1790  ;;  %13047 = vst [vmem:[#allocation228_spill] sm:$0xff] %v8562_v1  ;;  %v1659_v7 = vrot.slane %v1423_v40, 2  ;;  %v1147_v18 = vmax.f32 %v8392_v61, 0.0 }
 0x1e4   : > { %13042 = vst [vmem:[#allocation224_spill] sm:$0xff] %v8527_v43  ;;  %v8529_v45 = vpop.permute.xlu1 %1756 }
 0x1e5   : > { %13043 = vst [vmem:[#allocation225_spill] sm:$0xff] %v8529_v45  ;;  %1862 = vrot.lane.b32.xlu0 %v8489_v63, %s6843_s24 }
 0x1e6   : > { %2676 = vrot.lane.b32.xlu1 %v7887_v50, %s6841_s22 }
 0x1e7   : > { %v1819_v24 = vpop.permute.xlu0 %1818 }
 0x1e8   : > { %v8546_v17 = vpop.permute.xlu1 %1852 }
 0x1e9   : > { %1830 = vrot.lane.b32.xlu0 %v8551_v31, %s6842_s23 }
 0x1ea   : > { %1768 = vrot.lane.b32.xlu1 %v8551_v31, %s6837_s18 }
 0x1eb   : > { %v1947_v34 = vpop.permute.xlu0 %1946 }
 0x1ec   : > { %v1913_v2 = vpop.permute.xlu1 %1912 }
 0x1ed   : > { %v2190_v0 = vsel %vm2182_vm12, %v2157_v32, %v1913_v2  ;;  %1894 = vrot.lane.b32.xlu0 %v8562_v1, %s6844_s27 }
 0x1ee   : > { %1924 = vrot.lane.b32.xlu1 %v8551_v31, %s6834_s14  ;;  %v2223_v53 = vsel %vm2215_vm13, %v2190_v0, %v1945_v23  ;;  %v2016_v23 = vsel %vm574_vm1, %v8470_v33, %v8414_v21  ;;  %v1430_v0 = vrot.slane %v1428_v42, 1  ;;  %v2603_v42 = vrot.slane %v7887_v50, 2 }
 0x1ef   : > { %v8570_v56 = vpop.permute.xlu0 %2700  ;;  %v2060_v21 = vsel %vm2050_vm8, %v2016_v23, %v7918_v22 }
 0x1f0   : > { %13048 = vst [vmem:[#allocation229_spill] sm:$0xff] %v8570_v56  ;;  %v1977_v51 = vpop.permute.xlu1 %1976  ;;  %v1658_v56 = vrot.slane %v1421_v16, 1 }
 0x1f1   : > { %v2256_v19 = vsel %vm12770_vm15, %v2223_v53, %v1977_v51  ;;  %2678 = vrot.lane.b32.xlu0 %v7906_v9, %s6841_s22  ;;  %v1663_v53 = vrot.slane %v1661_v6, 1  ;;  %v8587_v51 = vsel %vm1500_vm5, %v1537_v60, %v1538_v52  ;;  %v2093_v6 = vsel %vm2083_vm9, %v2060_v21, %v1819_v24 }
 0x1f2   : > { %6590 = vmatmul.mubr.msk.bf16.gmra.mrb[16].mxu1 %vm2308_vm14, %v2256_v19  ;;  %1988 = vrot.lane.b32.xlu1 %v8562_v1, %s6840_s21  ;;  %13049 = vst [vmem:[#allocation230_spill] sm:$0xff] %v8587_v51  ;;  %v1426_v19 = vor.u32 %v1425_v12, %v1421_v16  ;;  %v2604_v60 = vrot.slane %v1262_v13, 2  ;;  %v1660_v40 = vor.u32 %v1659_v7, %v1658_v56  ;;  %v1219_v16 = vsel %vm409_vm3, %v1147_v18, 0.0 }
 0x1f3   : > { %v1883_v32 = vpop.permute.xlu0 %1882  ;;  %v1665_v12 = vor.u32 %v1664_v62, %v1663_v53  ;;  %v2126_v21 = vsel %vm2116_vm10, %v2093_v6, %v8509_v44  ;;  %v8620_v7 = vpack.c.bf16 %v1219_v16, %v1219_v16  ;;  %v1150_v6 = vmax.f32 %v8499_v26, 0.0 }
 0x1f4   : > { %v8584_v2 = vpop.permute.xlu1 %1820  ;;  %v8605_v61 = vsel %vm1275_vm6, %v1426_v19, %v1430_v0  ;;  %v2159_v24 = vsel %vm2149_vm11, %v2126_v21, %v1883_v32  ;;  %v8618_v0 = vsel %vm12704_vm4, %v2603_v42, %v2604_v60  ;;  %v1540_v42 = vrot.slane %v7906_v9, 1 }
 0x1f5   : > { %1802 = vrot.lane.b32.xlu0 %v8587_v51, %s6839_s20  ;;  %13052 = vst [vmem:[#allocation233_spill] sm:$0xff] %v8618_v0  ;;  %v8625_v44 = vsel %vm1549_vm7, %v1660_v40, %v1665_v12  ;;  %v1541_v19 = vrot.slane %v8620_v7, 1  ;;  %v1222_v26 = vsel %vm409_vm3, %v1150_v6, 0.0  ;;  %v2607_v6 = vrot.slane %v8620_v7, 2 }
 0x1f6   : > { %1864 = vrot.lane.b32.xlu1 %v8587_v51, %s6843_s24  ;;  %13053 = vst [vmem:[#allocation234_spill] sm:$0xff] %v8625_v44  ;;  %v1670_v37 = vshrl.u32 %v8620_v7, 16  ;;  %vm3329_vm3 = vcmask 326656  }
 0x1f7   : > { %v8597_v33 = vpop.permute.xlu0 %1758  ;;  %v8648_v21 = vsel %vm1500_vm5, %v1540_v42, %v1541_v19  ;;  %v2606_v19 = vrot.slane %v7906_v9, 2  ;;  %v1433_v42 = vshrl.u32 %v7906_v9, 16 }
 0x1f8   : > { %13050 = vst [vmem:[#allocation231_spill] sm:$0xff] %v8597_v33  ;;  %v8599_v52 = vpop.permute.xlu1 %1884  ;;  %v6577_v60 = vpop.f32.mrb[8].mxu1  ;;  %13056 = vst [vmem:[#allocation237_spill] sm:$0xff] %v8648_v21 }
 0x1f9   : > { %1958 = vrot.lane.b32.xlu0 %v8587_v51, %s6838_s19 }
 0x1fa   : > { %1832 = vrot.lane.b32.xlu1 %v8605_v61, %s6842_s23 }
 0x1fb   : > { %v1915_v13 = vpop.permute.xlu0 %1914 }
 0x1fc   : > { %v8614_v62 = vpop.permute.xlu1 %1792  ;;  %v2192_v23 = vsel %vm2182_vm12, %v2159_v24, %v1915_v13  ;;  %v1435_v24 = vshll.u32 %v7906_v9, 16 }
 0x1fd   : > { %13051 = vst [vmem:[#allocation232_spill] sm:$0xff] %v8614_v62  ;;  %2712 = vrot.lane.b32.xlu0 %v8618_v0, %s6842_s23  ;;  %v2225_v18 = vsel %vm2215_vm13, %v2192_v23, %v1947_v34  ;;  %v927_v34 = vpop.f32.mrb[9].mxu1  ;;  %v2019_v23 = vsel %vm574_vm1, %v8529_v45, %v8486_v58  ;;  %v1543_v58 = vrot.slane %v8142_v35, 1 }
 0x1fe   : > { %1896 = vrot.lane.b32.xlu1 %v8625_v44, %s6844_s27  ;;  %v6578_v16 = vpop.f32.mrb[10].mxu1  ;;  %v1437_v60 = vrot.slane %v1435_v24, 1  ;;  %v2062_v34 = vsel %vm2050_vm8, %v2019_v23, %v8113_v38 }
 0x1ff   : > { %v1979_v56 = vpop.permute.xlu0 %1978  ;;  %v930_v13 = vpop.f32.mrb[11].mxu1  ;;  %v2095_v16 = vsel %vm2083_vm9, %v2062_v34, %v8584_v2 }
 0x200   : > { %v1949_v32 = vpop.permute.xlu1 %1948  ;;  %v2258_v53 = vsel %vm12770_vm15, %v2225_v18, %v1979_v56  ;;  %v1440_v56 = vshll.u32 %v8620_v7, 16  ;;  %v1438_v23 = vor.u32 %v1437_v60, %v1433_v42  ;;  %v2128_v45 = vsel %vm2116_vm10, %v2095_v16, %v8546_v17 }
 0x201   : > { %1770 = vrot.lane.b32.xlu0 %v8605_v61, %s6837_s18  ;;  %6593 = vmatprep.mubr.msk.bf16.mxu1 %vm2308_vm14, %v2258_v53  ;;  %v1266_v53 = vpack.c.bf16 %v1222_v26, %v1222_v26  ;;  %v2161_v2 = vsel %vm2149_vm11, %v2128_v45, %v8599_v52  ;;  %v1672_v7 = vrot.slane %v1670_v37, 1  ;;  %v1667_v60 = vrot.slane %v1433_v42, 1 }
 0x202   : > { %2680 = vrot.lane.b32.xlu1 %v8142_v35, %s6841_s22 }
 0x203   : > { %v8639_v12 = vpop.permute.xlu0 %2666  ;;  %v1452_v37 = vshll.u32 %v1266_v53, 16  ;;  %v2610_v42 = vrot.slane %v1266_v53, 2 }
 0x204   : > { %13054 = vst [vmem:[#allocation235_spill] sm:$0xff] %v8639_v12  ;;  %v8641_v40 = vpop.permute.xlu1 %2702  ;;  %v8680_v12 = vsel %vm12704_vm4, %v2606_v19, %v2607_v6 }
 0x205   : > { %13055 = vst [vmem:[#allocation236_spill] sm:$0xff] %v8641_v40  ;;  %1926 = vrot.lane.b32.xlu0 %v8605_v61, %s6834_s14  ;;  %v1544_v40 = vrot.slane %v1266_v53, 1  ;;  %13059 = vst [vmem:[#allocation240_spill] sm:$0xff] %v8680_v12  ;;  %v1682_v38 = vrot.slane %v1452_v37, 2 }
 0x206   : > { %1804 = vrot.lane.b32.xlu1 %v8648_v21, %s6839_s20 }
 0x207   : > { %v8656_v18 = vpop.permute.xlu0 %1854 }
 0x208   : > { %v8658_v10 = vpop.permute.xlu1 %2668 }
 0x209   : > { %13057 = vst [vmem:[#allocation238_spill] sm:$0xff] %v8658_v10  ;;  %1990 = vrot.lane.b32.xlu0 %v8625_v44, %s6840_s21  ;;  %v1442_v10 = vrot.slane %v1440_v56, 1  ;;  %v8690_v44 = vsel %vm1500_vm5, %v1543_v58, %v1544_v40  ;;  %v1673_v40 = vrot.slane %v1440_v56, 2  ;;  %v2609_v56 = vrot.slane %v8142_v35, 2 }
 0x20a   : > { %1960 = vrot.lane.b32.xlu1 %v8648_v21, %s6838_s19  ;;  %13060 = vst [vmem:[#allocation241_spill] sm:$0xff] %v8690_v44 }
 0x20b   : > { %v8672_v26 = vpop.permute.xlu0 %1822  ;;  %v8696_v17 = vsel %vm1275_vm6, %v1438_v23, %v1442_v10  ;;  %v1447_v10 = vshll.u32 %v8142_v35, 16  ;;  %v1679_v23 = vshrl.u32 %v1266_v53, 16  ;;  %v8721_v59 = vsel %vm12704_vm4, %v2609_v56, %v2610_v42 }
 0x20c   : > { %v8674_v13 = vpop.permute.xlu1 %1760  ;;  %13061 = vst [vmem:[#allocation242_spill] sm:$0xff] %v8696_v17  ;;  %13064 = vst [vmem:[#allocation245_spill] sm:$0xff] %v8721_v59 }
 0x20d   : > { %13058 = vst [vmem:[#allocation239_spill] sm:$0xff] %v8674_v13  ;;  %1866 = vrot.lane.b32.xlu0 %v8648_v21, %s6843_s24 }
 0x20e   : > { %2714 = vrot.lane.b32.xlu1 %v8680_v12, %s6842_s23  ;;  %v1681_v12 = vrot.slane %v1679_v23, 1 }
 0x20f   : > { %v1887_v34 = vpop.permute.xlu0 %1886 }
 0x210   : > { %v1917_v0 = vpop.permute.xlu1 %1916  ;;  %v1683_v56 = vor.u32 %v1682_v38, %v1681_v12 }
 0x211   : > { %v2194_v19 = vsel %vm2182_vm12, %v2161_v2, %v1917_v0  ;;  %1806 = vrot.lane.b32.xlu0 %v8690_v44, %s6839_s20  ;;  %v1668_v0 = vrot.slane %v1435_v24, 2  ;;  %v1674_v2 = vor.u32 %v1673_v40, %v1672_v7  ;;  %v1445_v24 = vshrl.u32 %v8142_v35, 16 }
 0x212   : > { %1772 = vrot.lane.b32.xlu1 %v8696_v17, %s6837_s18  ;;  %v2227_v45 = vsel %vm2215_vm13, %v2194_v19, %v1949_v32 }
 0x213   : > { %v8700_v6 = vpop.permute.xlu0 %2670  ;;  %v1669_v19 = vor.u32 %v1668_v0, %v1667_v60  ;;  %v1676_v40 = vrot.slane %v1445_v24, 1  ;;  %v1677_v60 = vrot.slane %v1447_v10, 2  ;;  %v2022_v0 = vsel %vm574_vm1, %v8597_v33, %v8527_v43 }
 0x214   : > { %13062 = vst [vmem:[#allocation243_spill] sm:$0xff] %v8700_v6  ;;  %v1981_v52 = vpop.permute.xlu1 %1980  ;;  %v1454_v6 = vrot.slane %v1452_v37, 1 }
 0x215   : > { %v2260_v58 = vsel %vm12770_vm15, %v2227_v45, %v1981_v52  ;;  %1834 = vrot.lane.b32.xlu0 %v8696_v17, %s6842_s23  ;;  %v1449_v45 = vrot.slane %v1447_v10, 1  ;;  %v8726_v53 = vsel %vm1549_vm7, %v1669_v19, %v1674_v2  ;;  %v1678_v2 = vor.u32 %v1677_v60, %v1676_v40 }
 0x216   : > { %6594 = vmatmul.mubr.msk.bf16.gmra.mrb[20].mxu1 %vm2308_vm14, %v2260_v58  ;;  %1868 = vrot.lane.b32.xlu1 %v8690_v44, %s6843_s24  ;;  %v2064_v10 = vsel %vm2050_vm8, %v2022_v0, %v8145_v11 }
 0x217   : > { %v8710_v16 = vpop.permute.xlu0 %1794  ;;  %v1450_v7 = vor.u32 %v1449_v45, %v1445_v24  ;;  %v2097_v19 = vsel %vm2083_vm9, %v2064_v10, %v8672_v26  ;;  %v8753_v38 = vsel %vm1549_vm7, %v1678_v2, %v1683_v56  ;;  %v2025_v10 = vsel %vm574_vm1, %v8674_v13, %v8614_v62 }
 0x218   : > { %13063 = vst [vmem:[#allocation244_spill] sm:$0xff] %v8710_v16  ;;  %v8712_v32 = vpop.permute.xlu1 %1856  ;;  %13068 = vst [vmem:[#allocation249_spill] sm:$0xff] %v8753_v38  ;;  %v2130_v12 = vsel %vm2116_vm10, %v2097_v19, %v8656_v18  ;;  %vm3395_vm7 = vcmask 392192  }
 0x219   : > { %1962 = vrot.lane.b32.xlu0 %v8690_v44, %s6838_s19  ;;  %v8738_v42 = vsel %vm1275_vm6, %v1450_v7, %v1454_v6  ;;  %v2163_v6 = vsel %vm2149_vm11, %v2130_v12, %v1887_v34  ;;  %v2066_v12 = vsel %vm2050_vm8, %v2025_v10, %v8226_v3  ;;  %vm3362_vm6 = vcmask 359424  }
 0x21a   : > { %1928 = vrot.lane.b32.xlu1 %v8696_v17, %s6834_s14 }
 0x21b   : > { %v1951_v52 = vpop.permute.xlu0 %1950 }
 0x21c   : > { %v1825_v58 = vpop.permute.xlu1 %1824 }
 0x21d   : > { %2716 = vrot.lane.b32.xlu0 %v8721_v59, %s6842_s23 }
 0x21e   : > { %1992 = vrot.lane.b32.xlu1 %v8726_v53, %s6840_s21 }
 0x21f   : > { %v8733_v37 = vpop.permute.xlu0 %2704 }
 0x220   : > { %13065 = vst [vmem:[#allocation246_spill] sm:$0xff] %v8733_v37  ;;  %v1889_v23 = vpop.permute.xlu1 %1888 }
 0x221   : > { %1898 = vrot.lane.b32.xlu0 %v8726_v53, %s6844_s27 }
 0x222   : > { %1836 = vrot.lane.b32.xlu1 %v8738_v42, %s6842_s23 }
 0x223   : > { %v8746_v24 = vpop.permute.xlu0 %1762 }
 0x224   : > { %13066 = vst [vmem:[#allocation247_spill] sm:$0xff] %v8746_v24  ;;  %v8748_v45 = vpop.permute.xlu1 %2672 }
 0x225   : > { %13067 = vst [vmem:[#allocation248_spill] sm:$0xff] %v8748_v45  ;;  %1774 = vrot.lane.b32.xlu0 %v8738_v42, %s6837_s18 }
 0x226   : > { %1900 = vrot.lane.b32.xlu1 %v8753_v38, %s6844_s27 }
 0x227   : > { %v1919_v7 = vpop.permute.xlu0 %1918 }
 0x228   : > { %v2196_v26 = vsel %vm2182_vm12, %v2163_v6, %v1919_v7  ;;  %v8761_v40 = vpop.permute.xlu1 %1796  ;;  %v2099_v7 = vsel %vm2083_vm9, %v2066_v12, %v1825_v58  ;;  %v13073_v58 = vld [vmem:[#allocation3_spill] sm:$0xff] }
 0x229   : > { %13069 = vst [vmem:[#allocation250_spill] sm:$0xff] %v8761_v40  ;;  %1930 = vrot.lane.b32.xlu0 %v8738_v42, %s6834_s14  ;;  %v2229_v60 = vsel %vm2215_vm13, %v2196_v26, %v1951_v52 }
 0x22a   : > { %2730 = vrot.lane.b32.xlu1 %v7644_v49, %s6843_s24 }
 0x22b   : > { %v1983_v0 = vpop.permute.xlu0 %1982 }
 0x22c   : > { %v2262_v18 = vsel %vm12770_vm15, %v2229_v60, %v1983_v0  ;;  %v1953_v56 = vpop.permute.xlu1 %1952  ;;  %v2132_v60 = vsel %vm2116_vm10, %v2099_v7, %v8712_v32 }
 0x22d   : > { %1994 = vrot.lane.b32.xlu0 %v8753_v38, %s6840_s21  ;;  %6597 = vmatprep.mubr.msk.bf16.mxu1 %vm2308_vm14, %v2262_v18  ;;  %v2165_v18 = vsel %vm2149_vm11, %v2132_v60, %v1889_v23  ;;  %v13075_v23 = vld [vmem:[#allocation113_spill] sm:$0xff] }
 0x22e   : > { %2734 = vrot.lane.b32.xlu1 %v12993_v28, %s6843_s24 }
 0x22f   : > { %v1859_v34 = vpop.permute.xlu0 %1858 }
 0x230   : > { %v8774_v2 = vpop.permute.xlu1 %2706 }
 0x231   : > { %13070 = vst [vmem:[#allocation251_spill] sm:$0xff] %v8774_v2  ;;  %2728 = vrot.lane.b32.xlu0 %v7580_v27, %s6843_s24 }
 0x232   : > { %2738 = vrot.lane.b32.xlu1 %v13006_v46, %s6843_s24 }
 0x233   : > { %v8780_v52 = vpop.permute.xlu0 %1798 }
 0x234   : > { %13071 = vst [vmem:[#allocation252_spill] sm:$0xff] %v8780_v52  ;;  %v8785_v19 = vpop.permute.xlu1 %1764 }
 0x235   : > { %13072 = vst [vmem:[#allocation253_spill] sm:$0xff] %v8785_v19  ;;  %2732 = vrot.lane.b32.xlu0 %v7701_v20, %s6843_s24 }
 0x236   : > { %2742 = vrot.lane.b32.xlu1 %v7887_v50, %s6843_s24 }
 0x237   : > { %v1827_v6 = vpop.permute.xlu0 %1826 }
 0x238   : > { %v1861_v26 = vpop.permute.xlu1 %1860 }
 0x239   : > { %2736 = vrot.lane.b32.xlu0 %v12998_v48, %s6843_s24 }
 0x23a   : > { %2746 = vrot.lane.b32.xlu1 %v8142_v35, %s6843_s24 }
 0x23b   : > { %v1955_v0 = vpop.permute.xlu0 %1954 }
 0x23c   : > { %v1921_v2 = vpop.permute.xlu1 %1920 }
 0x23d   : > { %2740 = vrot.lane.b32.xlu0 %v13036_v41, %s6843_s24  ;;  %v2198_v10 = vsel %vm2182_vm12, %v2165_v18, %v1921_v2  ;;  %v2028_v2 = vsel %vm574_vm1, %v8746_v24, %v8710_v16  ;;  %v13076_v18 = vld [vmem:[#allocation93_spill] sm:$0xff] }
 0x23e   : > { %2750 = vrot.lane.b32.xlu1 %v13073_v58, %s6844_s27  ;;  %v2231_v37 = vsel %vm2215_vm13, %v2198_v10, %v1953_v56  ;;  %v2068_v56 = vsel %vm2050_vm8, %v2028_v2, %v8289_v15 }
 0x23f   : > { %v8806_v12 = vpop.permute.xlu0 %2708 }
 0x240   : > { %13074 = vst [vmem:[#allocation254_spill] sm:$0xff] %v8806_v12  ;;  %v1985_v62 = vpop.permute.xlu1 %1984 }
 0x241   : > { %2744 = vrot.lane.b32.xlu0 %v7906_v9, %s6843_s24  ;;  %v2264_v32 = vsel %vm12770_vm15, %v2231_v37, %v1985_v62  ;;  %v2101_v62 = vsel %vm2083_vm9, %v2068_v56, %v1827_v6  ;;  %v13080_v6 = vld [vmem:[#allocation123_spill] sm:$0xff] }
 0x242   : > { %2754 = vrot.lane.b32.xlu1 %v13075_v23, %s6844_s27  ;;  %6598 = vmatmul.mubr.msk.bf16.gmra.mrb[24].mxu1 %vm2308_vm14, %v2264_v32  ;;  %v13078_v32 = vld [vmem:[#allocation110_spill] sm:$0xff]  ;;  %v2134_v12 = vsel %vm2116_vm10, %v2101_v62, %v1859_v34 }
 0x243   : > { %v1891_v7 = vpop.permute.xlu0 %1890 }
 0x244   : > { %v1829_v60 = vpop.permute.xlu1 %1828  ;;  %v2167_v16 = vsel %vm2149_vm11, %v2134_v12, %v1891_v7 }
 0x245   : > { %2748 = vrot.lane.b32.xlu0 %v13076_v18, %s6843_s24 }
 0x246   : > { %2758 = vrot.lane.b32.xlu1 %v7883_v5, %s6844_s27 }
 0x247   : > { %v8825_v37 = vpop.permute.xlu0 %1766 }
 0x248   : > { %13077 = vst [vmem:[#allocation113_spill] sm:$0xff] %v8825_v37  ;;  %v1893_v10 = vpop.permute.xlu1 %1892 }
 0x249   : > { %2752 = vrot.lane.b32.xlu0 %v13078_v32, %s6844_s27 }
 0x24a   : > { %2762 = vrot.lane.b32.xlu1 %v8129_v39, %s6844_s27 }
 0x24b   : > { %v1923_v43 = vpop.permute.xlu0 %1922 }
 0x24c   : > { %v2200_v2 = vsel %vm2182_vm12, %v2167_v16, %v1923_v43  ;;  %v8834_v45 = vpop.permute.xlu1 %1800 }
 0x24d   : > { %13079 = vst [vmem:[#allocation110_spill] sm:$0xff] %v8834_v45  ;;  %2756 = vrot.lane.b32.xlu0 %v13080_v6, %s6844_s27  ;;  %v2233_v56 = vsel %vm2215_vm13, %v2200_v2, %v1955_v0  ;;  %v2031_v0 = vsel %vm574_vm1, %v8785_v19, %v8761_v40  ;;  %v13085_v40 = vld [vmem:[#allocation5_spill] sm:$0xff] }
 0x24e   : > { %2766 = vrot.lane.b32.xlu1 %v8267_v57, %s6844_s27  ;;  %v2070_v7 = vsel %vm2050_vm8, %v2031_v0, %v8448_v14 }
 0x24f   : > { %v1987_v24 = vpop.permute.xlu0 %1986 }
 0x250   : > { %v2266_v34 = vsel %vm12770_vm15, %v2233_v56, %v1987_v24  ;;  %v1957_v62 = vpop.permute.xlu1 %1956  ;;  %v2103_v56 = vsel %vm2083_vm9, %v2070_v7, %v1829_v60  ;;  %v13086_v60 = vld [vmem:[#allocation111_spill] sm:$0xff] }
 0x251   : > { %2760 = vrot.lane.b32.xlu0 %v8048_v29, %s6844_s27  ;;  %6601 = vmatprep.mubr.msk.bf16.mxu1 %vm2308_vm14, %v2266_v34  ;;  %v2136_v19 = vsel %vm2116_vm10, %v2103_v56, %v1861_v26  ;;  %v13091_v56 = vld [vmem:[#allocation117_spill] sm:$0xff] }
 0x252   : > { %2770 = vrot.lane.b32.xlu1 %v8462_v4, %s6844_s27  ;;  %v2169_v33 = vsel %vm2149_vm11, %v2136_v19, %v1893_v10 }
 0x253   : > { %v8847_v43 = vpop.permute.xlu0 %2674 }
 0x254   : > { %13081 = vst [vmem:[#allocation255_spill] sm:$0xff] %v8847_v43  ;;  %v8849_v16 = vpop.permute.xlu1 %2710  ;;  %v13094_v43 = vld [vmem:[#allocation209_spill] sm:$0xff] }
 0x255   : > { %13082 = vst [vmem:[#allocation256_spill] sm:$0xff] %v8849_v16  ;;  %2764 = vrot.lane.b32.xlu0 %v8216_v8, %s6844_s27 }
 0x256   : > { %2774 = vrot.lane.b32.xlu1 %v8605_v61, %s6844_s27 }
 0x257   : > { %v1863_v24 = vpop.permute.xlu0 %1862 }
 0x258   : > { %v8858_v12 = vpop.permute.xlu1 %2676 }
 0x259   : > { %13083 = vst [vmem:[#allocation257_spill] sm:$0xff] %v8858_v12  ;;  %2768 = vrot.lane.b32.xlu0 %v8386_v47, %s6844_s27 }
 0x25a   : > { %2778 = vrot.lane.b32.xlu1 %v8738_v42, %s6844_s27 }
 0x25b   : > { %v1831_v2 = vpop.permute.xlu0 %1830 }
 0x25c   : > { %v8867_v34 = vpop.permute.xlu1 %1768 }
 0x25d   : > { %13084 = vst [vmem:[#allocation258_spill] sm:$0xff] %v8867_v34  ;;  %2772 = vrot.lane.b32.xlu0 %v8551_v31, %s6844_s27 }
 0x25e   : > { %2782 = vrot.lane.b32.xlu1 %v13085_v40, %s6834_s14  ;;  %v13088_v40 = vld [vmem:[#allocation100_spill] sm:$0xff] }
 0x25f   : > { %v1895_v13 = vpop.permute.xlu0 %1894 }
 0x260   : > { %v1925_v58 = vpop.permute.xlu1 %1924 }
 0x261   : > { %2776 = vrot.lane.b32.xlu0 %v8696_v17, %s6844_s27  ;;  %v2202_v0 = vsel %vm2182_vm12, %v2169_v33, %v1925_v58  ;;  %v13090_v58 = vld [vmem:[#allocation109_spill] sm:$0xff] }
 0x262   : > { %2786 = vrot.lane.b32.xlu1 %v13086_v60, %s6834_s14  ;;  %v2235_v12 = vsel %vm2215_vm13, %v2202_v0, %v1957_v62 }
 0x263   : > { %v8880_v7 = vpop.permute.xlu0 %2678 }
 0x264   : > { %13087 = vst [vmem:[#allocation259_spill] sm:$0xff] %v8880_v7  ;;  %v1989_v16 = vpop.permute.xlu1 %1988 }
 0x265   : > { %2780 = vrot.lane.b32.xlu0 %v13088_v40, %s6844_s27  ;;  %v2268_v26 = vsel %vm12770_vm15, %v2235_v12, %v1989_v16  ;;  %v2034_v16 = vsel %vm574_vm1, %v8825_v37, %v8780_v52  ;;  %v13097_v52 = vld [vmem:[#allocation186_spill] sm:$0xff] }
 0x266   : > { %2790 = vrot.lane.b32.xlu1 %v7846_v25, %s6834_s14  ;;  %6602 = vmatmul.mubr.msk.bf16.gmra.mrb[28].mxu1 %vm2308_vm14, %v2268_v26  ;;  %v13093_v26 = vld [vmem:[#allocation157_spill] sm:$0xff]  ;;  %v2072_v7 = vsel %vm2050_vm8, %v2034_v16, %v8478_v30 }
 0x267   : > { %v8889_v19 = vpop.permute.xlu0 %1802 }
 0x268   : > { %13089 = vst [vmem:[#allocation260_spill] sm:$0xff] %v8889_v19  ;;  %v1865_v33 = vpop.permute.xlu1 %1864 }
 0x269   : > { %2784 = vrot.lane.b32.xlu0 %v13090_v58, %s6834_s14 }
 0x26a   : > { %2794 = vrot.lane.b32.xlu1 %v8045_v54, %s6834_s14  ;;  %v2105_v54 = vsel %vm2083_vm9, %v2072_v7, %v1831_v2  ;;  %v13099_v2 = vld [vmem:[#allocation205_spill] sm:$0xff] }
 0x26b   : > { %v1959_v10 = vpop.permute.xlu0 %1958  ;;  %v2138_v37 = vsel %vm2116_vm10, %v2105_v54, %v1863_v24 }
 0x26c   : > { %v1833_v62 = vpop.permute.xlu1 %1832 }
 0x26d   : > { %2788 = vrot.lane.b32.xlu0 %v13091_v56, %s6834_s14 }
 0x26e   : > { %2798 = vrot.lane.b32.xlu1 %v8254_v36, %s6834_s14 }
 0x26f   : > { %v8902_v12 = vpop.permute.xlu0 %2712 }
 0x270   : > { %13092 = vst [vmem:[#allocation109_spill] sm:$0xff] %v8902_v12  ;;  %v1897_v0 = vpop.permute.xlu1 %1896  ;;  %v2171_v12 = vsel %vm2149_vm11, %v2138_v37, %v1895_v13  ;;  %v13100_v13 = vld [vmem:[#allocation8_spill] sm:$0xff] }
 0x271   : > { %2792 = vrot.lane.b32.xlu0 %v13093_v26, %s6834_s14 }
 0x272   : > { %2802 = vrot.lane.b32.xlu1 %v13094_v43, %s6834_s14 }
 0x273   : > { %v8911_v25 = vpop.permute.xlu0 %1770 }
 0x274   : > { %13095 = vst [vmem:[#allocation261_spill] sm:$0xff] %v8911_v25  ;;  %v8913_v36 = vpop.permute.xlu1 %2680 }
 0x275   : > { %13096 = vst [vmem:[#allocation262_spill] sm:$0xff] %v8913_v36  ;;  %2796 = vrot.lane.b32.xlu0 %v13097_v52, %s6834_s14 }
 0x276   : > { %2806 = vrot.lane.b32.xlu1 %v8587_v51, %s6834_s14 }
 0x277   : > { %v1927_v16 = vpop.permute.xlu0 %1926 }
 0x278   : > { %v2204_v60 = vsel %vm2182_vm12, %v2171_v12, %v1927_v16  ;;  %v8922_v43 = vpop.permute.xlu1 %1804  ;;  %v13104_v16 = vld [vmem:[#allocation96_spill] sm:$0xff] }
 0x279   : > { %13098 = vst [vmem:[#allocation263_spill] sm:$0xff] %v8922_v43  ;;  %2800 = vrot.lane.b32.xlu0 %v13099_v2, %s6834_s14  ;;  %v2237_v7 = vsel %vm2215_vm13, %v2204_v60, %v1959_v10 }
 0x27a   : > { %2810 = vrot.lane.b32.xlu1 %v8690_v44, %s6834_s14 }
 0x27b   : > { %v1991_v36 = vpop.permute.xlu0 %1990 }
 0x27c   : > { %v2270_v54 = vsel %vm12770_vm15, %v2237_v7, %v1991_v36  ;;  %v1961_v24 = vpop.permute.xlu1 %1960  ;;  %v2037_v36 = vsel %vm574_vm1, %v8867_v34, %v8834_v45 }
 0x27d   : > { %2804 = vrot.lane.b32.xlu0 %v8489_v63, %s6834_s14  ;;  %6605 = vmatprep.mubr.msk.bf16.mxu1 %vm2308_vm14, %v2270_v54  ;;  %v2074_v7 = vsel %vm2050_vm8, %v2037_v36, %v8562_v1 }
 0x27e   : > { %2814 = vrot.lane.b32.xlu1 %v13100_v13, %s6838_s19  ;;  %v2107_v13 = vsel %vm2083_vm9, %v2074_v7, %v1833_v62 }
 0x27f   : > { %v1867_v37 = vpop.permute.xlu0 %1866  ;;  %v2140_v45 = vsel %vm2116_vm10, %v2107_v13, %v1865_v33 }
 0x280   : > { %v8935_v12 = vpop.permute.xlu1 %2714  ;;  %v2173_v44 = vsel %vm2149_vm11, %v2140_v45, %v1897_v0  ;;  %v13108_v45 = vld [vmem:[#allocation180_spill] sm:$0xff] }
 0x281   : > { %13101 = vst [vmem:[#allocation264_spill] sm:$0xff] %v8935_v12  ;;  %2808 = vrot.lane.b32.xlu0 %v8648_v21, %s6834_s14 }
 0x282   : > { %2818 = vrot.lane.b32.xlu1 %v13033_v55, %s6838_s19  ;;  %v13105_v55 = vld [vmem:[#allocation116_spill] sm:$0xff] }
 0x283   : > { %v8941_v60 = vpop.permute.xlu0 %1806 }
 0x284   : > { %13102 = vst [vmem:[#allocation265_spill] sm:$0xff] %v8941_v60  ;;  %v8946_v10 = vpop.permute.xlu1 %1772 }
 0x285   : > { %13103 = vst [vmem:[#allocation266_spill] sm:$0xff] %v8946_v10  ;;  %2812 = vrot.lane.b32.xlu0 %v13104_v16, %s6834_s14  ;;  %v2043_v33 = vsel %vm574_vm1, %v8946_v10, %v8922_v43 }
 0x286   : > { %2822 = vrot.lane.b32.xlu1 %v7918_v22, %s6838_s19  ;;  %v13106_v22 = vld [vmem:[#allocation125_spill] sm:$0xff] }
 0x287   : > { %v1835_v54 = vpop.permute.xlu0 %1834 }
 0x288   : > { %v1869_v12 = vpop.permute.xlu1 %1868 }
 0x289   : > { %2816 = vrot.lane.b32.xlu0 %v13105_v55, %s6838_s19 }
 0x28a   : > { %2826 = vrot.lane.b32.xlu1 %v8145_v11, %s6838_s19 }
 0x28b   : > { %v1963_v34 = vpop.permute.xlu0 %1962 }
 0x28c   : > { %v1929_v51 = vpop.permute.xlu1 %1928 }
 0x28d   : > { %2820 = vrot.lane.b32.xlu0 %v13106_v22, %s6838_s19  ;;  %v2206_v36 = vsel %vm2182_vm12, %v2173_v44, %v1929_v51  ;;  %v2040_v51 = vsel %vm574_vm1, %v8911_v25, %v8889_v19  ;;  %v13111_v19 = vld [vmem:[#allocation159_spill] sm:$0xff] }
 0x28e   : > { %2830 = vrot.lane.b32.xlu1 %v8289_v15, %s6838_s19  ;;  %v2239_v7 = vsel %vm2215_vm13, %v2206_v36, %v1961_v24  ;;  %v2078_v24 = vsel %vm2050_vm8, %v2043_v33, %v8726_v53  ;;  %v13112_v25 = vld [vmem:[#allocation167_spill] sm:$0xff] }
 0x28f   : > { %v8966_v62 = vpop.permute.xlu0 %2716  ;;  %v2049_v33 = vsel %vm574_vm1, %v13112_v25, %v13111_v19  ;;  %v13115_v19 = vld [vmem:[#allocation166_spill] sm:$0xff] }
 0x290   : > { %13107 = vst [vmem:[#allocation267_spill] sm:$0xff] %v8966_v62  ;;  %v1993_v55 = vpop.permute.xlu1 %1992 }
 0x291   : > { %2824 = vrot.lane.b32.xlu0 %v13108_v45, %s6838_s19  ;;  %v2272_v0 = vsel %vm12770_vm15, %v2239_v7, %v1993_v55  ;;  %v13109_v55 = vld [vmem:[#allocation234_spill] sm:$0xff] }
 0x292   : > { %2834 = vrot.lane.b32.xlu1 %v8478_v30, %s6838_s19  ;;  %6606 = vmatmul.mubr.msk.bf16.gmra.mrb[32].mxu1 %vm2308_vm14, %v2272_v0  ;;  %v2076_v7 = vsel %vm2050_vm8, %v2040_v51, %v13109_v55 }
 0x293   : > { %v1899_v44 = vpop.permute.xlu0 %1898  ;;  %v2109_v0 = vsel %vm2083_vm9, %v2076_v7, %v1835_v54 }
 0x294   : > { %v1837_v13 = vpop.permute.xlu1 %1836  ;;  %v2142_v25 = vsel %vm2116_vm10, %v2109_v0, %v1867_v37 }
 0x295   : > { %2828 = vrot.lane.b32.xlu0 %v8226_v3, %s6838_s19  ;;  %v2111_v36 = vsel %vm2083_vm9, %v2078_v24, %v1837_v13 }
 0x296   : > { %2838 = vrot.lane.b32.xlu1 %v13109_v55, %s6838_s19  ;;  %v2144_v24 = vsel %vm2116_vm10, %v2111_v36, %v1869_v12  ;;  %v13117_v36 = vld [vmem:[#allocation102_spill] sm:$0xff]  ;;  %v13129_v55 = vld [vmem:[#allocation184_spill] sm:$0xff] }
 0x297   : > { %v8991_v62 = vpop.permute.xlu0 %1774 }
 0x298   : > { %13110 = vst [vmem:[#allocation268_spill] sm:$0xff] %v8991_v62  ;;  %v2046_v43 = vsel %vm574_vm1, %v8991_v62, %v8941_v60  ;;  %v1901_v13 = vpop.permute.xlu1 %1900  ;;  %v13118_v62 = vld [vmem:[#allocation160_spill] sm:$0xff] }
 0x299   : > { %v9000_v10 = vpop.f32.mrb[12].mxu1  ;;  %v2080_v51 = vsel %vm2050_vm8, %v2046_v43, %v8753_v38  ;;  %2832 = vrot.lane.b32.xlu0 %v8448_v14, %s6838_s19  ;;  %v2177_v54 = vsel %vm2149_vm11, %v2144_v24, %v1901_v13  ;;  %v2082_v43 = vsel %vm2050_vm8, %v2049_v33, %v13117_v36  ;;  %v13119_v13 = vld [vmem:[#allocation171_spill] sm:$0xff] }
 0x29a   : > { %13113 = vst [vmem:[#allocation159_spill] sm:$0xff] %v9000_v10  ;;  %v9007_v7 = vpop.f32.mrb[13].mxu1  ;;  %v2113_v60 = vsel %vm2083_vm9, %v2080_v51, %v13115_v19  ;;  %2842 = vrot.lane.b32.xlu1 %v8753_v38, %s6838_s19  ;;  %v2175_v10 = vsel %vm2149_vm11, %v2142_v25, %v1899_v44  ;;  %v13121_v51 = vld [vmem:[#allocation182_spill] sm:$0xff]  ;;  %v13126_v25 = vld [vmem:[#allocation183_spill] sm:$0xff] }
 0x29b   : > { %13114 = vst [vmem:[#allocation167_spill] sm:$0xff] %v9007_v7  ;;  %v9014_v12 = vpop.f32.mrb[14].mxu1  ;;  %v2146_v24 = vsel %vm2116_vm10, %v2113_v60, %v13118_v62  ;;  %v2210_v7 = vsel %vm2182_vm12, %v2177_v54, %v13119_v13  ;;  %v1931_v37 = vpop.permute.xlu0 %1930  ;;  %v2115_v19 = vsel %vm2083_vm9, %v2082_v43, %v13121_v51  ;;  %v13123_v44 = vld [vmem:[#allocation170_spill] sm:$0xff]  ;;  %v13124_v60 = vld [vmem:[#allocation20_spill] sm:$0xff] }
 0x29c   : > { %13116 = vst [vmem:[#allocation166_spill] sm:$0xff] %v9014_v12  ;;  %v9023_v0 = vpop.f32.mrb[15].mxu1  ;;  %v2208_v38 = vsel %vm2182_vm12, %v2175_v10, %v1931_v37  ;;  %v9028_v12 = vpop.permute.xlu1 %2730  ;;  %v2179_v33 = vsel %vm2149_vm11, %v2146_v24, %v13123_v44  ;;  %v13125_v62 = vld [vmem:[#allocation164_spill] sm:$0xff]  ;;  %v13127_v43 = vld [vmem:[#allocation178_spill] sm:$0xff] }
 0x29d   : > { %13120 = vst [vmem:[#allocation160_spill] sm:$0xff] %v9023_v0  ;;  %13122 = vst [vmem:[#allocation171_spill] sm:$0xff] %v9028_v12  ;;  %2836 = vrot.lane.b32.xlu0 %v8562_v1, %s6838_s19  ;;  %v2243_v54 = vsel %vm2215_vm13, %v2210_v7, %v13125_v62  ;;  %v2212_v13 = vsel %vm2182_vm12, %v2179_v33, %v13126_v25  ;;  %v2148_v10 = vsel %vm2116_vm10, %v2115_v19, %v13127_v43  ;;  %v13128_v12 = vld [vmem:[#allocation181_spill] sm:$0xff] }
 0x29e   : > { %2846 = vrot.lane.b32.xlu1 %v13124_v60, %s6840_s21  ;;  %v2241_v37 = vsel %vm2215_vm13, %v2208_v38, %v1963_v34  ;;  %v2245_v0 = vsel %vm2215_vm13, %v2212_v13, %v13128_v12  ;;  %v2181_v24 = vsel %vm2149_vm11, %v2148_v10, %v13129_v55  ;;  %v13131_v7 = vld [vmem:[#allocation173_spill] sm:$0xff]  ;;  %v13132_v38 = vld [vmem:[#allocation187_spill] sm:$0xff]  ;;  %v13133_v12 = vld [vmem:[#allocation114_spill] sm:$0xff] }
 0x29f   : > { %v1995_v51 = vpop.permute.xlu0 %1994  ;;  %v2276_v19 = vsel %vm12770_vm15, %v2243_v54, %v13131_v7  ;;  %v2278_v34 = vsel %vm12770_vm15, %v2245_v0, %v13132_v38  ;;  %v13134_v55 = vld [vmem:[#allocation121_spill] sm:$0xff]  ;;  %v13137_v54 = vld [vmem:[#allocation140_spill] sm:$0xff] }
 0x2a0   : > { %v2274_v44 = vsel %vm12770_vm15, %v2241_v37, %v1995_v51  ;;  %v9048_v60 = vpop.permute.xlu1 %2734  ;;  %v2214_v33 = vsel %vm2182_vm12, %v2181_v24, %v13134_v55  ;;  %v13138_v13 = vld [vmem:[#allocation124_spill] sm:$0xff]  ;;  %v13142_v51 = vld [vmem:[#allocation130_spill] sm:$0xff] }
 0x2a1   : > { %13130 = vst [vmem:[#allocation182_spill] sm:$0xff] %v9048_v60  ;;  %2840 = vrot.lane.b32.xlu0 %v8726_v53, %s6838_s19  ;;  %6609 = vmatprep.mubr.msk.bf16.mxu1 %vm2308_vm14, %v2274_v44  ;;  %v2247_v0 = vsel %vm2215_vm13, %v2214_v33, %v13138_v13  ;;  %v13141_v37 = vld [vmem:[#allocation112_spill] sm:$0xff]  ;;  %v13143_v44 = vld [vmem:[#allocation177_spill] sm:$0xff] }
 0x2a2   : > { %6610 = vmatmul.mubr.msk.bf16.gmra.mrb[36].mxu1 %vm2308_vm14, %v2276_v19  ;;  %2850 = vrot.lane.b32.xlu1 %v13133_v12, %s6840_s21  ;;  %v2280_v24 = vsel %vm12770_vm15, %v2247_v0, %v13142_v51  ;;  %v13146_v38 = vld [vmem:[#allocation120_spill] sm:$0xff]  ;;  %v13150_v13 = vld [vmem:[#allocation165_spill] sm:$0xff]  ;;  %v13151_v0 = vld [vmem:[#allocation214_spill] sm:$0xff] }
 0x2a3   : > { %6613 = vmatprep.mubr.msk.bf16.mxu1 %vm2308_vm14, %v2278_v34  ;;  %v9063_v62 = vpop.permute.xlu0 %2728  ;;  %v13147_v34 = vld [vmem:[#allocation201_spill] sm:$0xff] }
 0x2a4   : > { %13135 = vst [vmem:[#allocation170_spill] sm:$0xff] %v9063_v62  ;;  %v9065_v25 = vpop.permute.xlu1 %2738 }
 0x2a5   : > { %13136 = vst [vmem:[#allocation164_spill] sm:$0xff] %v9065_v25  ;;  %2844 = vrot.lane.b32.xlu0 %v13117_v36, %s6838_s19 }
 0x2a6   : > { %2854 = vrot.lane.b32.xlu1 %v13137_v54, %s6840_s21 }
 0x2a7   : > { %v9073_v43 = vpop.permute.xlu0 %2732 }
 0x2a8   : > { %13139 = vst [vmem:[#allocation183_spill] sm:$0xff] %v9073_v43  ;;  %v9075_v10 = vpop.permute.xlu1 %2742  ;;  %v13155_v43 = vld [vmem:[#allocation233_spill] sm:$0xff] }
 0x2a9   : > { %13140 = vst [vmem:[#allocation178_spill] sm:$0xff] %v9075_v10  ;;  %2848 = vrot.lane.b32.xlu0 %v13141_v37, %s6840_s21  ;;  %v13165_v10 = vld [vmem:[#allocation240_spill] sm:$0xff] }
 0x2aa   : > { %6614 = vmatmul.mubr.msk.bf16.gmra.mrb[40].mxu1 %vm2308_vm14, %v2280_v24  ;;  %2858 = vrot.lane.b32.xlu1 %v13143_v44, %s6840_s21 }
 0x2ab   : > { %v9084_v7 = vpop.permute.xlu0 %2736 }
 0x2ac   : > { %13144 = vst [vmem:[#allocation181_spill] sm:$0xff] %v9084_v7  ;;  %v9086_v19 = vpop.permute.xlu1 %2746  ;;  %v13154_v7 = vld [vmem:[#allocation192_spill] sm:$0xff] }
 0x2ad   : > { %13145 = vst [vmem:[#allocation184_spill] sm:$0xff] %v9086_v19  ;;  %2852 = vrot.lane.b32.xlu0 %v13146_v38, %s6840_s21  ;;  %v2612_v19 = vrot.slane %v13076_v18, 2 }
 0x2ae   : > { %2862 = vrot.lane.b32.xlu1 %v13147_v34, %s6840_s21 }
 0x2af   : > { %v9092_v55 = vpop.permute.xlu0 %2740 }
 0x2b0   : > { %13148 = vst [vmem:[#allocation173_spill] sm:$0xff] %v9092_v55  ;;  %v9094_v33 = vpop.permute.xlu1 %2750 }
 0x2b1   : > { %13149 = vst [vmem:[#allocation187_spill] sm:$0xff] %v9094_v33  ;;  %2856 = vrot.lane.b32.xlu0 %v13150_v13, %s6840_s21  ;;  %v13158_v33 = vld [vmem:[#allocation208_spill] sm:$0xff] }
 0x2b2   : > { %2866 = vrot.lane.b32.xlu1 %v13151_v0, %s6840_s21 }
 0x2b3   : > { %v9100_v51 = vpop.permute.xlu0 %2744 }
 0x2b4   : > { %13152 = vst [vmem:[#allocation121_spill] sm:$0xff] %v9100_v51  ;;  %v9102_v24 = vpop.permute.xlu1 %2754  ;;  %v13162_v51 = vld [vmem:[#allocation98_spill] sm:$0xff] }
 0x2b5   : > { %13153 = vst [vmem:[#allocation124_spill] sm:$0xff] %v9102_v24  ;;  %2860 = vrot.lane.b32.xlu0 %v13154_v7, %s6840_s21  ;;  %v13161_v24 = vld [vmem:[#allocation223_spill] sm:$0xff] }
 0x2b6   : > { %2870 = vrot.lane.b32.xlu1 %v13155_v43, %s6840_s21 }
 0x2b7   : > { %v9108_v25 = vpop.permute.xlu0 %2748 }
 0x2b8   : > { %13156 = vst [vmem:[#allocation112_spill] sm:$0xff] %v9108_v25  ;;  %v9110_v55 = vpop.permute.xlu1 %2758 }
 0x2b9   : > { %13157 = vst [vmem:[#allocation130_spill] sm:$0xff] %v9110_v55  ;;  %2864 = vrot.lane.b32.xlu0 %v13158_v33, %s6840_s21 }
 0x2ba   : > { %2874 = vrot.lane.b32.xlu1 %v8721_v59, %s6840_s21 }
 0x2bb   : > { %v9116_v62 = vpop.permute.xlu0 %2752 }
 0x2bc   : > { %13159 = vst [vmem:[#allocation120_spill] sm:$0xff] %v9116_v62  ;;  %v9118_v60 = vpop.permute.xlu1 %2762  ;;  %v13166_v62 = vld [vmem:[#allocation106_spill] sm:$0xff] }
 0x2bd   : > { %13160 = vst [vmem:[#allocation269_spill] sm:$0xff] %v9118_v60  ;;  %2868 = vrot.lane.b32.xlu0 %v13161_v24, %s6840_s21  ;;  %v13167_v60 = vld [vmem:[#allocation92_spill] sm:$0xff] }
 0x2be   : > { %2878 = vrot.lane.b32.xlu1 %v13162_v51, %s6845_s26  ;;  %v2613_v59 = vrot.slane %v13167_v60, 2 }
 0x2bf   : > { %v9124_v25 = vpop.permute.xlu0 %2756 }
 0x2c0   : > { %13163 = vst [vmem:[#allocation98_spill] sm:$0xff] %v9124_v25  ;;  %v9126_v55 = vpop.permute.xlu1 %2766  ;;  %v9137_v0 = vsel %vm12704_vm4, %v2612_v19, %v2613_v59  ;;  %v13176_v19 = vld [vmem:[#allocation103_spill] sm:$0xff] }
 0x2c1   : > { %13164 = vst [vmem:[#allocation270_spill] sm:$0xff] %v9126_v55  ;;  %2872 = vrot.lane.b32.xlu0 %v13165_v10, %s6840_s21  ;;  %13169 = vst [vmem:[#allocation271_spill] sm:$0xff] %v9137_v0 }
 0x2c2   : > { %2882 = vrot.lane.b32.xlu1 %v13166_v62, %s6845_s26 }
 0x2c3   : > { %v9134_v43 = vpop.permute.xlu0 %2760 }
 0x2c4   : > { %13168 = vst [vmem:[#allocation92_spill] sm:$0xff] %v9134_v43  ;;  %v9139_v51 = vpop.permute.xlu1 %2770 }
 0x2c5   : > { %13170 = vst [vmem:[#allocation272_spill] sm:$0xff] %v9139_v51  ;;  %v9141_v25 = vpop.f32.mrb[16].mxu1  ;;  %2876 = vrot.lane.b32.xlu0 %v9137_v0, %s6840_s21 }
 0x2c6   : > { %13171 = vst [vmem:[#allocation273_spill] sm:$0xff] %v9141_v25  ;;  %v9145_v55 = vpop.f32.mrb[17].mxu1  ;;  %2886 = vrot.lane.b32.xlu1 %v7580_v27, %s6845_s26  ;;  %v13178_v25 = vld [vmem:[#allocation108_spill] sm:$0xff] }
 0x2c7   : > { %13172 = vst [vmem:[#allocation274_spill] sm:$0xff] %v9145_v55  ;;  %v9149_v62 = vpop.f32.mrb[18].mxu1  ;;  %v9151_v60 = vpop.permute.xlu0 %2764 }
 0x2c8   : > { %13173 = vst [vmem:[#allocation275_spill] sm:$0xff] %v9149_v62  ;;  %13174 = vst [vmem:[#allocation276_spill] sm:$0xff] %v9151_v60  ;;  %v9153_v43 = vpop.f32.mrb[19].mxu1  ;;  %v9155_v59 = vpop.permute.xlu1 %2774 }
 0x2c9   : > { %13175 = vst [vmem:[#allocation277_spill] sm:$0xff] %v9153_v43  ;;  %2880 = vrot.lane.b32.xlu0 %v13176_v19, %s6845_s26 }
 0x2ca   : > { %2890 = vrot.lane.b32.xlu1 %v7701_v20, %s6845_s26 }
 0x2cb   : > { %v9161_v51 = vpop.permute.xlu0 %2768 }
 0x2cc   : > { %13177 = vst [vmem:[#allocation103_spill] sm:$0xff] %v9161_v51  ;;  %v9163_v55 = vpop.permute.xlu1 %2778 }
 0x2cd   : > { %2884 = vrot.lane.b32.xlu0 %v13178_v25, %s6845_s26 }
 0x2ce   : > { %2894 = vrot.lane.b32.xlu1 %v12998_v48, %s6845_s26 }
 0x2cf   : > { %v9169_v60 = vpop.permute.xlu0 %2772 }
 0x2d0   : > { %13179 = vst [vmem:[#allocation108_spill] sm:$0xff] %v9169_v60  ;;  %v9171_v43 = vpop.permute.xlu1 %2782 }
 0x2d1   : > { %13180 = vst [vmem:[#allocation278_spill] sm:$0xff] %v9171_v43  ;;  %2888 = vrot.lane.b32.xlu0 %v7644_v49, %s6845_s26 }
 0x2d2   : > { %2898 = vrot.lane.b32.xlu1 %v13036_v41, %s6845_s26 }
 0x2d3   : > { %v9177_v62 = vpop.permute.xlu0 %2776 }
 0x2d4   : > { %v9179_v51 = vpop.permute.xlu1 %2786 }
 0x2d5   : > { %13181 = vst [vmem:[#allocation279_spill] sm:$0xff] %v9179_v51  ;;  %2892 = vrot.lane.b32.xlu0 %v12993_v28, %s6845_s26 }
 0x2d6   : > { %2902 = vrot.lane.b32.xlu1 %v7906_v9, %s6845_s26 }
 0x2d7   : > { %v9185_v48 = vpop.permute.xlu0 %2780 }
 0x2d8   : > { %v9187_v60 = vpop.permute.xlu1 %2790 }
 0x2d9   : > { %13182 = vst [vmem:[#allocation280_spill] sm:$0xff] %v9187_v60  ;;  %2896 = vrot.lane.b32.xlu0 %v13006_v46, %s6845_s26 }
 0x2da   : > { %2906 = vrot.lane.b32.xlu1 %v13076_v18, %s6845_s26  ;;  %v13189_v18 = vld [vmem:[#allocation97_spill] sm:$0xff] }
 0x2db   : > { %v9193_v43 = vpop.permute.xlu0 %2784 }
 0x2dc   : > { %13183 = vst [vmem:[#allocation281_spill] sm:$0xff] %v9193_v43  ;;  %v9195_v41 = vpop.permute.xlu1 %2794 }
 0x2dd   : > { %13184 = vst [vmem:[#allocation282_spill] sm:$0xff] %v9195_v41  ;;  %2900 = vrot.lane.b32.xlu0 %v7887_v50, %s6845_s26 }
 0x2de   : > { %2910 = vrot.lane.b32.xlu1 %v13078_v32, %s6846_s28 }
 0x2df   : > { %v9201_v51 = vpop.permute.xlu0 %2788 }
 0x2e0   : > { %13185 = vst [vmem:[#allocation283_spill] sm:$0xff] %v9201_v51  ;;  %v9203_v60 = vpop.permute.xlu1 %2798 }
 0x2e1   : > { %13186 = vst [vmem:[#allocation284_spill] sm:$0xff] %v9203_v60  ;;  %2904 = vrot.lane.b32.xlu0 %v8142_v35, %s6845_s26 }
 0x2e2   : > { %2914 = vrot.lane.b32.xlu1 %v13080_v6, %s6846_s28 }
 0x2e3   : > { %v9209_v43 = vpop.permute.xlu0 %2792 }
 0x2e4   : > { %13187 = vst [vmem:[#allocation285_spill] sm:$0xff] %v9209_v43  ;;  %v9211_v41 = vpop.permute.xlu1 %2802 }
 0x2e5   : > { %13188 = vst [vmem:[#allocation286_spill] sm:$0xff] %v9211_v41  ;;  %2908 = vrot.lane.b32.xlu0 %v13189_v18, %s6845_s26 }
 0x2e6   : > { %2918 = vrot.lane.b32.xlu1 %v8048_v29, %s6846_s28 }
 0x2e7   : > { %v9217_v32 = vpop.permute.xlu0 %2796 }
 0x2e8   : > { %13190 = vst [vmem:[#allocation97_spill] sm:$0xff] %v9217_v32  ;;  %v9219_v51 = vpop.permute.xlu1 %2806 }
 0x2e9   : > { %v9221_v60 = vpop.f32.mrb[20].mxu1  ;;  %2912 = vrot.lane.b32.xlu0 %v13075_v23, %s6846_s28 }
 0x2ea   : > { %13191 = vst [vmem:[#allocation287_spill] sm:$0xff] %v9221_v60  ;;  %v9225_v6 = vpop.f32.mrb[21].mxu1  ;;  %2922 = vrot.lane.b32.xlu1 %v8216_v8, %s6846_s28 }
 0x2eb   : > { %13192 = vst [vmem:[#allocation288_spill] sm:$0xff] %v9225_v6  ;;  %v9229_v41 = vpop.f32.mrb[22].mxu1  ;;  %v9231_v43 = vpop.permute.xlu0 %2800 }
 0x2ec   : > { %13193 = vst [vmem:[#allocation289_spill] sm:$0xff] %v9229_v41  ;;  %13194 = vst [vmem:[#allocation290_spill] sm:$0xff] %v9231_v43  ;;  %v9233_v9 = vpop.f32.mrb[23].mxu1  ;;  %v9235_v29 = vpop.permute.xlu1 %2810 }
 0x2ed   : > { %13195 = vst [vmem:[#allocation291_spill] sm:$0xff] %v9233_v9  ;;  %2916 = vrot.lane.b32.xlu0 %v7883_v5, %s6846_s28 }
 0x2ee   : > { %2926 = vrot.lane.b32.xlu1 %v8386_v47, %s6846_s28 }
 0x2ef   : > { %v9241_v32 = vpop.permute.xlu0 %2804 }
 0x2f0   : > { %13196 = vst [vmem:[#allocation292_spill] sm:$0xff] %v9241_v32  ;;  %v9243_v6 = vpop.permute.xlu1 %2814 }
 0x2f1   : > { %13197 = vst [vmem:[#allocation293_spill] sm:$0xff] %v9243_v6  ;;  %2920 = vrot.lane.b32.xlu0 %v8129_v39, %s6846_s28 }
 0x2f2   : > { %2930 = vrot.lane.b32.xlu1 %v8551_v31, %s6846_s28 }
 0x2f3   : > { %v9249_v43 = vpop.permute.xlu0 %2808 }
 0x2f4   : > { %v9251_v9 = vpop.permute.xlu1 %2818 }
 0x2f5   : > { %13198 = vst [vmem:[#allocation294_spill] sm:$0xff] %v9251_v9  ;;  %2924 = vrot.lane.b32.xlu0 %v8267_v57, %s6846_s28 }
 0x2f6   : > { %2934 = vrot.lane.b32.xlu1 %v8696_v17, %s6846_s28  ;;  %v13213_v17 = vld [vmem:[#allocation168_spill] sm:$0xff] }
 0x2f7   : > { %v9257_v41 = vpop.permute.xlu0 %2812 }
 0x2f8   : > { %v9259_v32 = vpop.permute.xlu1 %2822 }
 0x2f9   : > { %13199 = vst [vmem:[#allocation295_spill] sm:$0xff] %v9259_v32  ;;  %2928 = vrot.lane.b32.xlu0 %v8462_v4, %s6846_s28 }
 0x2fa   : > { %2938 = vrot.lane.b32.xlu1 %v13088_v40, %s6846_s28  ;;  %v13206_v40 = vld [vmem:[#allocation105_spill] sm:$0xff] }
 0x2fb   : > { %v9265_v6 = vpop.permute.xlu0 %2816 }
 0x2fc   : > { %13200 = vst [vmem:[#allocation296_spill] sm:$0xff] %v9265_v6  ;;  %v9267_v60 = vpop.permute.xlu1 %2826 }
 0x2fd   : > { %13201 = vst [vmem:[#allocation297_spill] sm:$0xff] %v9267_v60  ;;  %2932 = vrot.lane.b32.xlu0 %v8605_v61, %s6846_s28 }
 0x2fe   : > { %2942 = vrot.lane.b32.xlu1 %v13090_v58, %s6847_s29 }
 0x2ff   : > { %v9273_v9 = vpop.permute.xlu0 %2820 }
 0x300   : > { %13202 = vst [vmem:[#allocation298_spill] sm:$0xff] %v9273_v9  ;;  %v9275_v32 = vpop.permute.xlu1 %2830 }
 0x301   : > { %13203 = vst [vmem:[#allocation299_spill] sm:$0xff] %v9275_v32  ;;  %2936 = vrot.lane.b32.xlu0 %v8738_v42, %s6846_s28  ;;  %v13208_v32 = vld [vmem:[#allocation111_spill] sm:$0xff] }
 0x302   : > { %2946 = vrot.lane.b32.xlu1 %v13091_v56, %s6847_s29 }
 0x303   : > { %v9281_v6 = vpop.permute.xlu0 %2824 }
 0x304   : > { %13204 = vst [vmem:[#allocation300_spill] sm:$0xff] %v9281_v6  ;;  %v9283_v60 = vpop.permute.xlu1 %2834 }
 0x305   : > { %13205 = vst [vmem:[#allocation301_spill] sm:$0xff] %v9283_v60  ;;  %2940 = vrot.lane.b32.xlu0 %v13206_v40, %s6846_s28  ;;  %v13210_v60 = vld [vmem:[#allocation133_spill] sm:$0xff] }
 0x306   : > { %2950 = vrot.lane.b32.xlu1 %v13093_v26, %s6847_s29 }
 0x307   : > { %v9289_v58 = vpop.permute.xlu0 %2828 }
 0x308   : > { %13207 = vst [vmem:[#allocation105_spill] sm:$0xff] %v9289_v58  ;;  %v9291_v9 = vpop.permute.xlu1 %2838 }
 0x309   : > { %2944 = vrot.lane.b32.xlu0 %v13208_v32, %s6847_s29  ;;  %v13215_v32 = vld [vmem:[#allocation199_spill] sm:$0xff] }
 0x30a   : > { %2954 = vrot.lane.b32.xlu1 %v13097_v52, %s6847_s29 }
 0x30b   : > { %v9297_v56 = vpop.permute.xlu0 %2832 }
 0x30c   : > { %13209 = vst [vmem:[#allocation302_spill] sm:$0xff] %v9297_v56  ;;  %v9299_v6 = vpop.permute.xlu1 %2842 }
 0x30d   : > { %2948 = vrot.lane.b32.xlu0 %v13210_v60, %s6847_s29 }
 0x30e   : > { %2958 = vrot.lane.b32.xlu1 %v13099_v2, %s6847_s29 }
 0x30f   : > { %v9305_v26 = vpop.permute.xlu0 %2836 }
 0x310   : > { %13211 = vst [vmem:[#allocation303_spill] sm:$0xff] %v9305_v26  ;;  %v9307_v58 = vpop.permute.xlu1 %2846 }
 0x311   : > { %13212 = vst [vmem:[#allocation304_spill] sm:$0xff] %v9307_v58  ;;  %2952 = vrot.lane.b32.xlu0 %v13213_v17, %s6847_s29 }
 0x312   : > { %2962 = vrot.lane.b32.xlu1 %v8489_v63, %s6847_s29 }
 0x313   : > { %v9313_v52 = vpop.permute.xlu0 %2840 }
 0x314   : > { %v9315_v56 = vpop.permute.xlu1 %2850 }
 0x315   : > { %13214 = vst [vmem:[#allocation305_spill] sm:$0xff] %v9315_v56  ;;  %2956 = vrot.lane.b32.xlu0 %v13215_v32, %s6847_s29  ;;  %v9319_v60 = vpop.f32.mrb[24].mxu1  ;;  %v13221_v56 = vld [vmem:[#allocation209_spill] sm:$0xff] }
 0x316   : > { %13216 = vst [vmem:[#allocation306_spill] sm:$0xff] %v9319_v60  ;;  %2966 = vrot.lane.b32.xlu1 %v8648_v21, %s6847_s29  ;;  %v9323_v26 = vpop.f32.mrb[25].mxu1  ;;  %v13228_v21 = vld [vmem:[#allocation241_spill] sm:$0xff] }
 0x317   : > { %13217 = vst [vmem:[#allocation307_spill] sm:$0xff] %v9323_v26  ;;  %v9325_v58 = vpop.permute.xlu0 %2844  ;;  %v9327_v2 = vpop.f32.mrb[26].mxu1  ;;  %v13224_v26 = vld [vmem:[#allocation230_spill] sm:$0xff] }
 0x318   : > { %13218 = vst [vmem:[#allocation308_spill] sm:$0xff] %v9327_v2  ;;  %v9329_v17 = vpop.permute.xlu1 %2854  ;;  %v9331_v63 = vpop.f32.mrb[27].mxu1  ;;  %v13225_v2 = vld [vmem:[#allocation116_spill] sm:$0xff] }
 0x319   : > { %13219 = vst [vmem:[#allocation309_spill] sm:$0xff] %v9329_v17  ;;  %13220 = vst [vmem:[#allocation310_spill] sm:$0xff] %v9331_v63  ;;  %2960 = vrot.lane.b32.xlu0 %v13221_v56, %s6847_s29 }
 0x31a   : > { %2970 = vrot.lane.b32.xlu1 %v13104_v16, %s6847_s29  ;;  %v13231_v16 = vld [vmem:[#allocation104_spill] sm:$0xff] }
 0x31b   : > { %v9337_v60 = vpop.permute.xlu0 %2848 }
 0x31c   : > { %13222 = vst [vmem:[#allocation209_spill] sm:$0xff] %v9337_v60  ;;  %v9339_v32 = vpop.permute.xlu1 %2858 }
 0x31d   : > { %13223 = vst [vmem:[#allocation311_spill] sm:$0xff] %v9339_v32  ;;  %2964 = vrot.lane.b32.xlu0 %v13224_v26, %s6847_s29 }
 0x31e   : > { %2974 = vrot.lane.b32.xlu1 %v13225_v2, %s6848_s11 }
 0x31f   : > { %v9345_v17 = vpop.permute.xlu0 %2852 }
 0x320   : > { %13226 = vst [vmem:[#allocation312_spill] sm:$0xff] %v9345_v17  ;;  %v9347_v63 = vpop.permute.xlu1 %2862 }
 0x321   : > { %13227 = vst [vmem:[#allocation313_spill] sm:$0xff] %v9347_v63  ;;  %2968 = vrot.lane.b32.xlu0 %v13228_v21, %s6847_s29  ;;  %v13233_v63 = vld [vmem:[#allocation115_spill] sm:$0xff] }
 0x322   : > { %2978 = vrot.lane.b32.xlu1 %v13106_v22, %s6848_s11 }
 0x323   : > { %v9353_v60 = vpop.permute.xlu0 %2856 }
 0x324   : > { %13229 = vst [vmem:[#allocation314_spill] sm:$0xff] %v9353_v60  ;;  %v9355_v32 = vpop.permute.xlu1 %2866 }
 0x325   : > { %13230 = vst [vmem:[#allocation315_spill] sm:$0xff] %v9355_v32  ;;  %2972 = vrot.lane.b32.xlu0 %v13231_v16, %s6847_s29  ;;  %v13235_v32 = vld [vmem:[#allocation141_spill] sm:$0xff] }
 0x326   : > { %2982 = vrot.lane.b32.xlu1 %v13108_v45, %s6848_s11 }
 0x327   : > { %v9361_v2 = vpop.permute.xlu0 %2860 }
 0x328   : > { %13232 = vst [vmem:[#allocation316_spill] sm:$0xff] %v9361_v2  ;;  %v9363_v17 = vpop.permute.xlu1 %2870 }
 0x329   : > { %2976 = vrot.lane.b32.xlu0 %v13233_v63, %s6848_s11 }
 0x32a   : > { %2986 = vrot.lane.b32.xlu1 %v8226_v3, %s6848_s11 }
 0x32b   : > { %v9369_v21 = vpop.permute.xlu0 %2864 }
 0x32c   : > { %13234 = vst [vmem:[#allocation115_spill] sm:$0xff] %v9369_v21  ;;  %v9371_v60 = vpop.permute.xlu1 %2874 }
 0x32d   : > { %2980 = vrot.lane.b32.xlu0 %v13235_v32, %s6848_s11 }
 0x32e   : > { %2990 = vrot.lane.b32.xlu1 %v8448_v14, %s6848_s11 }
 0x32f   : > { %v9377_v16 = vpop.permute.xlu0 %2868 }
 0x330   : > { %13236 = vst [vmem:[#allocation317_spill] sm:$0xff] %v9377_v16  ;;  %v9379_v2 = vpop.permute.xlu1 %2878 }
 0x331   : > { %13237 = vst [vmem:[#allocation318_spill] sm:$0xff] %v9379_v2  ;;  %2984 = vrot.lane.b32.xlu0 %v8145_v11, %s6848_s11 }
 0x332   : > { %2994 = vrot.lane.b32.xlu1 %v8562_v1, %s6848_s11 }
 0x333   : > { %v9385_v26 = vpop.permute.xlu0 %2872 }
 0x334   : > { %v9387_v21 = vpop.permute.xlu1 %2882 }
 0x335   : > { %13238 = vst [vmem:[#allocation319_spill] sm:$0xff] %v9387_v21  ;;  %2988 = vrot.lane.b32.xlu0 %v8289_v15, %s6848_s11 }
 0x336   : > { %2998 = vrot.lane.b32.xlu1 %v8726_v53, %s6848_s11 }
 0x337   : > { %v9393_v14 = vpop.permute.xlu0 %2876 }
 0x338   : > { %v9395_v16 = vpop.permute.xlu1 %2886 }
 0x339   : > { %13239 = vst [vmem:[#allocation320_spill] sm:$0xff] %v9395_v16  ;;  %2992 = vrot.lane.b32.xlu0 %v8478_v30, %s6848_s11  ;;  %v9399_v2 = vpop.f32.mrb[28].mxu1  ;;  %v13246_v16 = vld [vmem:[#allocation234_spill] sm:$0xff] }
 0x33a   : > { %13240 = vst [vmem:[#allocation321_spill] sm:$0xff] %v9399_v2  ;;  %3002 = vrot.lane.b32.xlu1 %v13117_v36, %s6848_s11  ;;  %v9403_v3 = vpop.f32.mrb[29].mxu1 }
 0x33b   : > { %13241 = vst [vmem:[#allocation322_spill] sm:$0xff] %v9403_v3  ;;  %v9405_v21 = vpop.permute.xlu0 %2880  ;;  %v9407_v15 = vpop.f32.mrb[30].mxu1  ;;  %v13249_v3 = vld [vmem:[#allocation249_spill] sm:$0xff] }
 0x33c   : > { %13242 = vst [vmem:[#allocation323_spill] sm:$0xff] %v9405_v21  ;;  %13243 = vst [vmem:[#allocation324_spill] sm:$0xff] %v9407_v15  ;;  %v9409_v11 = vpop.permute.xlu1 %2890  ;;  %v9411_v45 = vpop.f32.mrb[31].mxu1 }
 0x33d   : > { %13244 = vst [vmem:[#allocation325_spill] sm:$0xff] %v9409_v11  ;;  %13245 = vst [vmem:[#allocation326_spill] sm:$0xff] %v9411_v45  ;;  %2996 = vrot.lane.b32.xlu0 %v13246_v16, %s6848_s11  ;;  %v13252_v45 = vld [vmem:[#allocation107_spill] sm:$0xff] }
 0x33e   : > { %3006 = vrot.lane.b32.xlu1 %v13141_v37, %s6849_s12 }
 0x33f   : > { %v9417_v2 = vpop.permute.xlu0 %2884 }
 0x340   : > { %13247 = vst [vmem:[#allocation234_spill] sm:$0xff] %v9417_v2  ;;  %v9419_v36 = vpop.permute.xlu1 %2894 }
 0x341   : > { %13248 = vst [vmem:[#allocation327_spill] sm:$0xff] %v9419_v36  ;;  %3000 = vrot.lane.b32.xlu0 %v13249_v3, %s6848_s11 }
 0x342   : > { %3010 = vrot.lane.b32.xlu1 %v13146_v38, %s6849_s12 }
 0x343   : > { %v9425_v11 = vpop.permute.xlu0 %2888 }
 0x344   : > { %13250 = vst [vmem:[#allocation249_spill] sm:$0xff] %v9425_v11  ;;  %v9427_v21 = vpop.permute.xlu1 %2898 }
 0x345   : > { %13251 = vst [vmem:[#allocation328_spill] sm:$0xff] %v9427_v21  ;;  %3004 = vrot.lane.b32.xlu0 %v13252_v45, %s6848_s11  ;;  %v13260_v45 = vld [vmem:[#allocation255_spill] sm:$0xff] }
 0x346   : > { %3014 = vrot.lane.b32.xlu1 %v13150_v13, %s6849_s12  ;;  %v13267_v13 = vld [vmem:[#allocation233_spill] sm:$0xff] }
 0x347   : > { %v9433_v37 = vpop.permute.xlu0 %2892 }
 0x348   : > { %13253 = vst [vmem:[#allocation329_spill] sm:$0xff] %v9433_v37  ;;  %v2903_v2 = vpop.permute.xlu1 %2902 }
 0x349   : > { %3008 = vrot.lane.b32.xlu0 %v13133_v12, %s6849_s12 }
 0x34a   : > { %3018 = vrot.lane.b32.xlu1 %v13154_v7, %s6849_s12  ;;  %v13265_v7 = vld [vmem:[#allocation266_spill] sm:$0xff] }
 0x34b   : > { %v9439_v36 = vpop.permute.xlu0 %2896 }
 0x34c   : > { %13254 = vst [vmem:[#allocation330_spill] sm:$0xff] %v9439_v36  ;;  %v9441_v11 = vpop.permute.xlu1 %2906 }
 0x34d   : > { %3012 = vrot.lane.b32.xlu0 %v13137_v54, %s6849_s12 }
 0x34e   : > { %3022 = vrot.lane.b32.xlu1 %v13158_v33, %s6849_s12  ;;  %v13263_v33 = vld [vmem:[#allocation110_spill] sm:$0xff] }
 0x34f   : > { %v9447_v21 = vpop.permute.xlu0 %2900 }
 0x350   : > { %13255 = vst [vmem:[#allocation331_spill] sm:$0xff] %v9447_v21  ;;  %v9449_v37 = vpop.permute.xlu1 %2910 }
 0x351   : > { %13256 = vst [vmem:[#allocation332_spill] sm:$0xff] %v9449_v37  ;;  %3016 = vrot.lane.b32.xlu0 %v13143_v44, %s6849_s12  ;;  %v13259_v37 = vld [vmem:[#allocation258_spill] sm:$0xff]  ;;  %v13266_v44 = vld [vmem:[#allocation259_spill] sm:$0xff] }
 0x352   : > { %3026 = vrot.lane.b32.xlu1 %v13161_v24, %s6849_s12  ;;  %v3096_v30 = vsel %vm574_vm1, %v13260_v45, %v13259_v37  ;;  %v13261_v24 = vld [vmem:[#allocation214_spill] sm:$0xff] }
 0x353   : > { %v9455_v15 = vpop.permute.xlu0 %2904 }
 0x354   : > { %v9457_v36 = vpop.permute.xlu1 %2914 }
 0x355   : > { %13257 = vst [vmem:[#allocation333_spill] sm:$0xff] %v9457_v36  ;;  %3020 = vrot.lane.b32.xlu0 %v13147_v34, %s6849_s12  ;;  %v3116_v34 = vsel %vm2050_vm8, %v3096_v30, %v13263_v33 }
 0x356   : > { %3030 = vrot.lane.b32.xlu1 %v13165_v10, %s6849_s12  ;;  %v3133_v45 = vsel %vm2083_vm9, %v3116_v34, %v8562_v1  ;;  %v2615_v34 = vrot.slane %v13189_v18, 2 }
 0x357   : > { %v9463_v12 = vpop.permute.xlu0 %2908 }
 0x358   : > { %v9465_v21 = vpop.permute.xlu1 %2918 }
 0x359   : > { %13258 = vst [vmem:[#allocation334_spill] sm:$0xff] %v9465_v21  ;;  %3024 = vrot.lane.b32.xlu0 %v13261_v24, %s6849_s12  ;;  %v3100_v21 = vsel %vm574_vm1, %v13266_v44, %v13265_v7  ;;  %v13272_v44 = vld [vmem:[#allocation245_spill] sm:$0xff]  ;;  %v13273_v7 = vld [vmem:[#allocation256_spill] sm:$0xff] }
 0x35a   : > { %3034 = vrot.lane.b32.xlu1 %v9137_v0, %s6849_s12 }
 0x35b   : > { %v9474_v36 = vpop.permute.xlu0 %2912 }
 0x35c   : > { %13262 = vst [vmem:[#allocation258_spill] sm:$0xff] %v9474_v36  ;;  %v9478_v10 = vpop.permute.xlu1 %2922  ;;  %v13269_v36 = vld [vmem:[#allocation263_spill] sm:$0xff] }
 0x35d   : > { %13264 = vst [vmem:[#allocation255_spill] sm:$0xff] %v9478_v10  ;;  %3028 = vrot.lane.b32.xlu0 %v13267_v13, %s6849_s12  ;;  %v3118_v30 = vsel %vm2050_vm8, %v3100_v21, %v13269_v36  ;;  %v13271_v10 = vld [vmem:[#allocation101_spill] sm:$0xff]  ;;  %v3162_v13 = vsel %vm2116_vm10, %v3133_v45, %v13273_v7 }
 0x35e   : > { %3038 = vrot.lane.b32.xlu1 %v13176_v19, %s6850_s13  ;;  %v2616_v0 = vrot.slane %v13271_v10, 2  ;;  %v13274_v19 = vld [vmem:[#allocation178_spill] sm:$0xff]  ;;  %v3135_v21 = vsel %vm2083_vm9, %v3118_v30, %v8726_v53  ;;  %v13276_v10 = vld [vmem:[#allocation261_spill] sm:$0xff] }
 0x35f   : > { %v9489_v37 = vpop.permute.xlu0 %2916 }
 0x360   : > { %13268 = vst [vmem:[#allocation110_spill] sm:$0xff] %v9489_v37  ;;  %v9493_v33 = vpop.permute.xlu1 %2926  ;;  %v3194_v37 = vsel %vm2149_vm11, %v3162_v13, %v13274_v19  ;;  %v9515_v7 = vsel %vm12704_vm4, %v2615_v34, %v2616_v0  ;;  %v13281_v19 = vld [vmem:[#allocation264_spill] sm:$0xff]  ;;  %vm12705_vm4 = vcmask 424960  }
 0x361   : > { %13270 = vst [vmem:[#allocation266_spill] sm:$0xff] %v9493_v33  ;;  %3032 = vrot.lane.b32.xlu0 %v13272_v44, %s6849_s12  ;;  %v13277_v33 = vld [vmem:[#allocation257_spill] sm:$0xff]  ;;  %v3226_v45 = vsel %vm2182_vm12, %v3194_v37, %v9155_v59  ;;  %13278 = vst [vmem:[#allocation263_spill] sm:$0xff] %v9515_v7  ;;  %v13283_v59 = vld [vmem:[#allocation260_spill] sm:$0xff] }
 0x362   : > { %3042 = vrot.lane.b32.xlu1 %v13178_v25, %s6850_s13  ;;  %v3098_v44 = vsel %vm574_vm1, %v13277_v33, %v13276_v10  ;;  %v3258_v13 = vsel %vm2215_vm13, %v3226_v45, %v9219_v51  ;;  %v13284_v51 = vld [vmem:[#allocation184_spill] sm:$0xff] }
 0x363   : > { %v9507_v36 = vpop.permute.xlu0 %2920  ;;  %v3290_v33 = vsel %vm12770_vm15, %v3258_v13, %v9291_v9  ;;  %v3117_v37 = vsel %vm2050_vm8, %v3098_v44, %v13283_v59  ;;  %v13287_v9 = vld [vmem:[#allocation268_spill] sm:$0xff]  ;;  %v13288_v13 = vld [vmem:[#allocation262_spill] sm:$0xff] }
 0x364   : > { %13275 = vst [vmem:[#allocation259_spill] sm:$0xff] %v9507_v36  ;;  %v9517_v1 = vpop.permute.xlu1 %2930  ;;  %v3166_v36 = vsel %vm2116_vm10, %v3135_v21, %v13281_v19  ;;  %v3322_v10 = vsel %vm2308_vm14, %v3290_v33, %v9363_v17  ;;  %v3102_v19 = vsel %vm574_vm1, %v13288_v13, %v13287_v9  ;;  %v13290_v33 = vld [vmem:[#allocation106_spill] sm:$0xff]  ;;  %v3134_v9 = vsel %vm2083_vm9, %v3117_v37, %v13246_v16 }
 0x365   : > { %13279 = vst [vmem:[#allocation101_spill] sm:$0xff] %v9517_v1  ;;  %3036 = vrot.lane.b32.xlu0 %v9515_v7, %s6849_s12  ;;  %v9523_v30 = vpop.f32.mrb[32].mxu1  ;;  %v3198_v34 = vsel %vm2149_vm11, %v3166_v36, %v13284_v51  ;;  %v3355_v44 = vsel %vm3329_vm3, %v3322_v10, %v2903_v2  ;;  %v13291_v2 = vld [vmem:[#allocation265_spill] sm:$0xff] }
 0x366   : > { %13280 = vst [vmem:[#allocation256_spill] sm:$0xff] %v9523_v30  ;;  %3046 = vrot.lane.b32.xlu1 %v7644_v49, %s6850_s13  ;;  %v9531_v0 = vpop.f32.mrb[33].mxu1  ;;  %v3230_v1 = vsel %vm2182_vm12, %v3198_v34, %v9163_v55  ;;  %v3119_v34 = vsel %vm2050_vm8, %v3102_v19, %v13291_v2  ;;  %v13297_v2 = vld [vmem:[#allocation267_spill] sm:$0xff] }
 0x367   : > { %13282 = vst [vmem:[#allocation178_spill] sm:$0xff] %v9531_v0  ;;  %v9539_v45 = vpop.permute.xlu0 %2924  ;;  %v9541_v21 = vpop.f32.mrb[34].mxu1  ;;  %v3262_v17 = vsel %vm2215_vm13, %v3230_v1, %v9235_v29  ;;  %v13406_v0 = vld [vmem:[#allocation237_spill] sm:$0xff] }
 0x368   : > { %13285 = vst [vmem:[#allocation261_spill] sm:$0xff] %v9539_v45  ;;  %13286 = vst [vmem:[#allocation257_spill] sm:$0xff] %v9541_v21  ;;  %v2935_v59 = vpop.permute.xlu1 %2934  ;;  %v9549_v36 = vpop.f32.mrb[35].mxu1  ;;  %v3294_v55 = vsel %vm12770_vm15, %v3262_v17, %v9299_v6 }
 0x369   : > { %13289 = vst [vmem:[#allocation264_spill] sm:$0xff] %v9549_v36  ;;  %3040 = vrot.lane.b32.xlu0 %v13290_v33, %s6850_s13  ;;  %v9556_v51 = vsel %vm3362_vm6, %v3355_v44, %v2935_v59  ;;  %v3326_v29 = vsel %vm2308_vm14, %v3294_v55, %v9371_v60  ;;  %v13293_v44 = vld [vmem:[#allocation109_spill] sm:$0xff]  ;;  %v3136_v60 = vsel %vm2083_vm9, %v3119_v34, %v13249_v3  ;;  %v13298_v34 = vld [vmem:[#allocation112_spill] sm:$0xff] }
 0x36a   : > { %3050 = vrot.lane.b32.xlu1 %v12993_v28, %s6850_s13  ;;  %v3359_v10 = vsel %vm3329_vm3, %v3326_v29, %v9441_v11  ;;  %v3164_v37 = vsel %vm2116_vm10, %v3134_v9, %v13293_v44  ;;  %v13294_v59 = vld [vmem:[#allocation121_spill] sm:$0xff]  ;;  %v3168_v29 = vsel %vm2116_vm10, %v3136_v60, %v13297_v2 }
 0x36b   : > { %v9568_v1 = vpop.permute.xlu0 %2928  ;;  %v3196_v19 = vsel %vm2149_vm11, %v3164_v37, %v13294_v59 }
 0x36c   : > { %13292 = vst [vmem:[#allocation260_spill] sm:$0xff] %v9568_v1  ;;  %v2939_v13 = vpop.permute.xlu1 %2938  ;;  %v3228_v11 = vsel %vm2182_vm12, %v3196_v19, %v9177_v62 }
 0x36d   : > { %3044 = vrot.lane.b32.xlu0 %v7580_v27, %s6850_s13  ;;  %v3392_v6 = vsel %vm3362_vm6, %v3359_v10, %v2939_v13  ;;  %v3260_v9 = vsel %vm2215_vm13, %v3228_v11, %v9249_v43  ;;  %v3200_v13 = vsel %vm2149_vm11, %v3168_v29, %v13298_v34  ;;  %v13301_v11 = vld [vmem:[#allocation119_spill] sm:$0xff] }
 0x36e   : > { %3054 = vrot.lane.b32.xlu1 %v13006_v46, %s6850_s13  ;;  %v3292_v10 = vsel %vm12770_vm15, %v3260_v9, %v9313_v52  ;;  %v3232_v43 = vsel %vm2182_vm12, %v3200_v13, %v9185_v48  ;;  %v13306_v34 = vld [vmem:[#allocation135_spill] sm:$0xff] }
 0x36f   : > { %v9585_v17 = vpop.permute.xlu0 %2932  ;;  %v3324_v62 = vsel %vm2308_vm14, %v3292_v10, %v9385_v26  ;;  %v3264_v52 = vsel %vm2215_vm13, %v3232_v43, %v9257_v41 }
 0x370   : > { %13295 = vst [vmem:[#allocation184_spill] sm:$0xff] %v9585_v17  ;;  %v9589_v55 = vpop.permute.xlu1 %2942  ;;  %v3357_v44 = vsel %vm3329_vm3, %v3324_v62, %v9455_v15  ;;  %v3296_v26 = vsel %vm12770_vm15, %v3264_v52, %v9325_v58  ;;  %v13310_v62 = vld [vmem:[#allocation138_spill] sm:$0xff] }
 0x371   : > { %13296 = vst [vmem:[#allocation268_spill] sm:$0xff] %v9589_v55  ;;  %3048 = vrot.lane.b32.xlu0 %v7701_v20, %s6850_s13  ;;  %v3328_v48 = vsel %vm2308_vm14, %v3296_v26, %v9393_v14 }
 0x372   : > { %3058 = vrot.lane.b32.xlu1 %v7887_v50, %s6850_s13  ;;  %v3361_v41 = vsel %vm3329_vm3, %v3328_v48, %v9463_v12  ;;  %v13316_v48 = vld [vmem:[#allocation93_spill] sm:$0xff] }
 0x373   : > { %v2937_v37 = vpop.permute.xlu0 %2936 }
 0x374   : > { %v3390_v59 = vsel %vm3362_vm6, %v3357_v44, %v2937_v37  ;;  %v9610_v19 = vpop.permute.xlu1 %2946 }
 0x375   : > { %13299 = vst [vmem:[#allocation262_spill] sm:$0xff] %v9610_v19  ;;  %v9614_v60 = vpop.f32.mrb[36].mxu1  ;;  %3052 = vrot.lane.b32.xlu0 %v13301_v11, %s6850_s13 }
 0x376   : > { %13300 = vst [vmem:[#allocation106_spill] sm:$0xff] %v9614_v60  ;;  %v9620_v15 = vpop.f32.mrb[37].mxu1  ;;  %3062 = vrot.lane.b32.xlu1 %v8142_v35, %s6850_s13 }
 0x377   : > { %13302 = vst [vmem:[#allocation265_spill] sm:$0xff] %v9620_v15  ;;  %v9626_v9 = vpop.f32.mrb[38].mxu1  ;;  %v2941_v2 = vpop.permute.xlu0 %2940  ;;  %v13351_v15 = vld [vmem:[#allocation221_spill] sm:$0xff] }
 0x378   : > { %13303 = vst [vmem:[#allocation109_spill] sm:$0xff] %v9626_v9  ;;  %v3394_v58 = vsel %vm3362_vm6, %v3361_v41, %v2941_v2  ;;  %v9629_v29 = vpop.f32.mrb[39].mxu1  ;;  %v9631_v10 = vpop.permute.xlu1 %2950 }
 0x379   : > { %13304 = vst [vmem:[#allocation121_spill] sm:$0xff] %v9629_v29  ;;  %13305 = vst [vmem:[#allocation267_spill] sm:$0xff] %v9631_v10  ;;  %3056 = vrot.lane.b32.xlu0 %v13306_v34, %s6850_s13 }
 0x37a   : > { %3066 = vrot.lane.b32.xlu1 %v13189_v18, %s6850_s13 }
 0x37b   : > { %v9637_v14 = vpop.permute.xlu0 %2944 }
 0x37c   : > { %13307 = vst [vmem:[#allocation112_spill] sm:$0xff] %v9637_v14  ;;  %v9639_v13 = vpop.permute.xlu1 %2954  ;;  %v13323_v14 = vld [vmem:[#allocation169_spill] sm:$0xff] }
 0x37d   : > { %13308 = vst [vmem:[#allocation119_spill] sm:$0xff] %v9639_v13  ;;  %v9641_v12 = vpop.f32.mrb[40].mxu1  ;;  %3060 = vrot.lane.b32.xlu0 %v13310_v62, %s6850_s13  ;;  %v13321_v13 = vld [vmem:[#allocation123_spill] sm:$0xff] }
 0x37e   : > { %13309 = vst [vmem:[#allocation135_spill] sm:$0xff] %v9641_v12  ;;  %v9645_v43 = vpop.f32.mrb[41].mxu1  ;;  %3527 = vrot.lane.b32.xlu1 %v13075_v23, %s6841_s22  ;;  %v13319_v23 = vmov 0.0|0.0   ;;  %v13342_v12 = vld [vmem:[#allocation199_spill] sm:$0xff] }
 0x37f   : > { %13311 = vst [vmem:[#allocation138_spill] sm:$0xff] %v9645_v43  ;;  %v9649_v44 = vpop.f32.mrb[42].mxu1  ;;  %v9651_v37 = vpop.permute.xlu0 %2948 }
 0x380   : > { %13312 = vst [vmem:[#allocation335_spill] sm:$0xff] %v9649_v44  ;;  %13313 = vst [vmem:[#allocation336_spill] sm:$0xff] %v9651_v37  ;;  %v9653_v52 = vpop.f32.mrb[43].mxu1  ;;  %v9655_v26 = vpop.permute.xlu1 %2958  ;;  %v13339_v44 = vld [vmem:[#allocation168_spill] sm:$0xff] }
 0x381   : > { %13314 = vst [vmem:[#allocation337_spill] sm:$0xff] %v9653_v52  ;;  %13315 = vst [vmem:[#allocation338_spill] sm:$0xff] %v9655_v26  ;;  %3064 = vrot.lane.b32.xlu0 %v13316_v48, %s6850_s13 }
 0x382   : > { %3531 = vrot.lane.b32.xlu1 %v7883_v5, %s6841_s22 }
 0x383   : > { %v9661_v41 = vpop.permute.xlu0 %2952 }
 0x384   : > { %13317 = vst [vmem:[#allocation93_spill] sm:$0xff] %v9661_v41  ;;  %v9663_v2 = vpop.permute.xlu1 %2962 }
 0x385   : > { %13318 = vst [vmem:[#allocation339_spill] sm:$0xff] %v9663_v2  ;;  %3068 = vrot.lane.b32.xlu0 %v13319_v23, %s6850_s13 }
 0x386   : > { %3535 = vrot.lane.b32.xlu1 %v8129_v39, %s6841_s22 }
 0x387   : > { %v9669_v37 = vpop.permute.xlu0 %2956 }
 0x388   : > { %13320 = vst [vmem:[#allocation340_spill] sm:$0xff] %v9669_v37  ;;  %v2967_v26 = vpop.permute.xlu1 %2966 }
 0x389   : > { %3529 = vrot.lane.b32.xlu0 %v13321_v13, %s6841_s22  ;;  %v3421_v43 = vsel %vm3395_vm7, %v9556_v51, %v2967_v26 }
 0x38a   : > { %3539 = vrot.lane.b32.xlu1 %v8267_v57, %s6841_s22 }
 0x38b   : > { %v9677_v2 = vpop.permute.xlu0 %2960 }
 0x38c   : > { %13322 = vst [vmem:[#allocation123_spill] sm:$0xff] %v9677_v2  ;;  %v2971_v41 = vpop.permute.xlu1 %2970 }
 0x38d   : > { %3533 = vrot.lane.b32.xlu0 %v13323_v14, %s6841_s22  ;;  %v3425_v10 = vsel %vm3395_vm7, %v3392_v6, %v2971_v41 }
 0x38e   : > { %3543 = vrot.lane.b32.xlu1 %v8462_v4, %s6841_s22 }
 0x38f   : > { %v9684_v37 = vpop.permute.xlu0 %2964 }
 0x390   : > { %13324 = vst [vmem:[#allocation169_spill] sm:$0xff] %v9684_v37  ;;  %v9686_v19 = vpop.permute.xlu1 %2974  ;;  %v13331_v37 = vld [vmem:[#allocation111_spill] sm:$0xff] }
 0x391   : > { %13325 = vst [vmem:[#allocation341_spill] sm:$0xff] %v9686_v19  ;;  %3537 = vrot.lane.b32.xlu0 %v8216_v8, %s6841_s22 }
 0x392   : > { %3547 = vrot.lane.b32.xlu1 %v8605_v61, %s6841_s22 }
 0x393   : > { %v2969_v51 = vpop.permute.xlu0 %2968 }
 0x394   : > { %v3423_v26 = vsel %vm3395_vm7, %v3390_v59, %v2969_v51  ;;  %v9693_v2 = vpop.permute.xlu1 %2978 }
 0x395   : > { %13326 = vst [vmem:[#allocation342_spill] sm:$0xff] %v9693_v2  ;;  %3541 = vrot.lane.b32.xlu0 %v8386_v47, %s6841_s22  ;;  %v13330_v2 = vld [vmem:[#allocation242_spill] sm:$0xff] }
 0x396   : > { %3551 = vrot.lane.b32.xlu1 %v8738_v42, %s6841_s22 }
 0x397   : > { %v2973_v6 = vpop.permute.xlu0 %2972 }
 0x398   : > { %v3427_v41 = vsel %vm3395_vm7, %v3394_v58, %v2973_v6  ;;  %v9700_v19 = vpop.permute.xlu1 %2982  ;;  %v13334_v6 = vld [vmem:[#allocation100_spill] sm:$0xff] }
 0x399   : > { %13327 = vst [vmem:[#allocation343_spill] sm:$0xff] %v9700_v19  ;;  %3545 = vrot.lane.b32.xlu0 %v8551_v31, %s6841_s22  ;;  %v13335_v19 = vld [vmem:[#allocation133_spill] sm:$0xff] }
 0x39a   : > { %3555 = vrot.lane.b32.xlu1 %v13206_v40, %s6841_s22 }
 0x39b   : > { %v9706_v59 = vpop.permute.xlu0 %2976 }
 0x39c   : > { %13328 = vst [vmem:[#allocation344_spill] sm:$0xff] %v9706_v59  ;;  %v9708_v51 = vpop.permute.xlu1 %2986 }
 0x39d   : > { %13329 = vst [vmem:[#allocation345_spill] sm:$0xff] %v9708_v51  ;;  %3549 = vrot.lane.b32.xlu0 %v13330_v2, %s6841_s22  ;;  %v13338_v51 = vld [vmem:[#allocation3_spill] sm:$0xff] }
 0x39e   : > { %3559 = vrot.lane.b32.xlu1 %v13331_v37, %s6837_s18 }
 0x39f   : > { %v9714_v55 = vpop.permute.xlu0 %2980 }
 0x3a0   : > { %13332 = vst [vmem:[#allocation242_spill] sm:$0xff] %v9714_v55  ;;  %v9716_v58 = vpop.permute.xlu1 %2990  ;;  %v13341_v55 = vld [vmem:[#allocation117_spill] sm:$0xff] }
 0x3a1   : > { %13333 = vst [vmem:[#allocation111_spill] sm:$0xff] %v9716_v58  ;;  %3553 = vrot.lane.b32.xlu0 %v13334_v6, %s6841_s22 }
 0x3a2   : > { %3563 = vrot.lane.b32.xlu1 %v13335_v19, %s6837_s18 }
 0x3a3   : > { %v9722_v52 = vpop.permute.xlu0 %2984 }
 0x3a4   : > { %13336 = vst [vmem:[#allocation100_spill] sm:$0xff] %v9722_v52  ;;  %v9724_v59 = vpop.permute.xlu1 %2994 }
 0x3a5   : > { %13337 = vst [vmem:[#allocation133_spill] sm:$0xff] %v9724_v59  ;;  %3557 = vrot.lane.b32.xlu0 %v13338_v51, %s6841_s22  ;;  %v13344_v51 = vld [vmem:[#allocation157_spill] sm:$0xff] }
 0x3a6   : > { %3567 = vrot.lane.b32.xlu1 %v13339_v44, %s6837_s18 }
 0x3a7   : > { %v9730_v37 = vpop.permute.xlu0 %2988 }
 0x3a8   : > { %13340 = vst [vmem:[#allocation3_spill] sm:$0xff] %v9730_v37  ;;  %v2999_v58 = vpop.permute.xlu1 %2998 }
 0x3a9   : > { %3561 = vrot.lane.b32.xlu0 %v13341_v55, %s6837_s18  ;;  %v3454_v17 = vsel %vm12705_vm4, %v3421_v43, %v2999_v58  ;;  %v13347_v43 = vld [vmem:[#allocation186_spill] sm:$0xff] }
 0x3aa   : > { %3571 = vrot.lane.b32.xlu1 %v13342_v12, %s6837_s18 }
 0x3ab   : > { %v9737_v52 = vpop.permute.xlu0 %2992 }
 0x3ac   : > { %13343 = vst [vmem:[#allocation168_spill] sm:$0xff] %v9737_v52  ;;  %v3003_v59 = vpop.permute.xlu1 %3002 }
 0x3ad   : > { %3565 = vrot.lane.b32.xlu0 %v13344_v51, %s6837_s18  ;;  %v3458_v1 = vsel %vm12705_vm4, %v3425_v10, %v3003_v59  ;;  %v13349_v10 = vld [vmem:[#allocation205_spill] sm:$0xff] }
 0x3ae   : > { %3575 = vrot.lane.b32.xlu1 %v13221_v56, %s6837_s18 }
 0x3af   : > { %v9744_v37 = vpop.permute.xlu0 %2996 }
 0x3b0   : > { %13345 = vst [vmem:[#allocation117_spill] sm:$0xff] %v9744_v37  ;;  %v9746_v29 = vpop.permute.xlu1 %3006 }
 0x3b1   : > { %13346 = vst [vmem:[#allocation199_spill] sm:$0xff] %v9746_v29  ;;  %3569 = vrot.lane.b32.xlu0 %v13347_v43, %s6837_s18 }
 0x3b2   : > { %3591 = vrot.lane.b32.xlu1 %v13233_v63, %s6839_s20 }
 0x3b3   : > { %v3001_v58 = vpop.permute.xlu0 %3000 }
 0x3b4   : > { %v3456_v52 = vsel %vm12705_vm4, %v3423_v26, %v3001_v58  ;;  %v9753_v9 = vpop.permute.xlu1 %3010 }
 0x3b5   : > { %13348 = vst [vmem:[#allocation157_spill] sm:$0xff] %v9753_v9  ;;  %3573 = vrot.lane.b32.xlu0 %v13349_v10, %s6837_s18 }
 0x3b6   : > { %3623 = vrot.lane.b32.xlu1 %v13290_v33, %s6842_s23 }
 0x3b7   : > { %v3005_v59 = vpop.permute.xlu0 %3004 }
 0x3b8   : > { %v3460_v29 = vsel %vm12705_vm4, %v3427_v41, %v3005_v59  ;;  %v9760_v37 = vpop.permute.xlu1 %3014  ;;  %vm12706_vm4 = vcmask 457728  }
 0x3b9   : > { %13350 = vst [vmem:[#allocation186_spill] sm:$0xff] %v9760_v37  ;;  %3577 = vrot.lane.b32.xlu0 %v13351_v15, %s6837_s18  ;;  %v13401_v37 = vld [vmem:[#allocation223_spill] sm:$0xff] }
 0x3ba   : > { %3655 = vrot.lane.b32.xlu1 %v13321_v13, %s6843_s24 }
 0x3bb   : > { %v9766_v26 = vpop.permute.xlu0 %3008 }
 0x3bc   : > { %13352 = vst [vmem:[#allocation205_spill] sm:$0xff] %v9766_v26  ;;  %v9768_v58 = vpop.permute.xlu1 %3018 }
 0x3bd   : > { %13353 = vst [vmem:[#allocation221_spill] sm:$0xff] %v9768_v58  ;;  %3593 = vrot.lane.b32.xlu0 %v13106_v22, %s6839_s20  ;;  %v13399_v58 = vld [vmem:[#allocation228_spill] sm:$0xff] }
 0x3be   : > { %3687 = vrot.lane.b32.xlu1 %v13341_v55, %s6844_s27 }
 0x3bf   : > { %v9774_v33 = vpop.permute.xlu0 %3012 }
 0x3c0   : > { %13354 = vst [vmem:[#allocation346_spill] sm:$0xff] %v9774_v33  ;;  %v9776_v41 = vpop.permute.xlu1 %3022 }
 0x3c1   : > { %13355 = vst [vmem:[#allocation347_spill] sm:$0xff] %v9776_v41  ;;  %3625 = vrot.lane.b32.xlu0 %v13178_v25, %s6842_s23 }
 0x3c2   : > { %3719 = vrot.lane.b32.xlu1 %v13106_v22, %s6834_s14 }
 0x3c3   : > { %v9782_v13 = vpop.permute.xlu0 %3016 }
 0x3c4   : > { %13356 = vst [vmem:[#allocation348_spill] sm:$0xff] %v9782_v13  ;;  %v9784_v59 = vpop.permute.xlu1 %3026 }
 0x3c5   : > { %13357 = vst [vmem:[#allocation349_spill] sm:$0xff] %v9784_v59  ;;  %3657 = vrot.lane.b32.xlu0 %v7883_v5, %s6843_s24 }
 0x3c6   : > { %3751 = vrot.lane.b32.xlu1 %v13146_v38, %s6838_s19 }
 0x3c7   : > { %v9790_v55 = vpop.permute.xlu0 %3020 }
 0x3c8   : > { %13358 = vst [vmem:[#allocation350_spill] sm:$0xff] %v9790_v55  ;;  %v3031_v41 = vpop.permute.xlu1 %3030 }
 0x3c9   : > { %3689 = vrot.lane.b32.xlu0 %v13335_v19, %s6844_s27  ;;  %v3487_v25 = vsel %vm12706_vm4, %v3454_v17, %v3031_v41 }
 0x3ca   : > { %3595 = vrot.lane.b32.xlu1 %v13235_v32, %s6839_s20 }
 0x3cb   : > { %v9797_v13 = vpop.permute.xlu0 %3024 }
 0x3cc   : > { %13359 = vst [vmem:[#allocation351_spill] sm:$0xff] %v9797_v13  ;;  %v3035_v59 = vpop.permute.xlu1 %3034 }
 0x3cd   : > { %3721 = vrot.lane.b32.xlu0 %v13235_v32, %s6834_s14  ;;  %v3491_v5 = vsel %vm12706_vm4, %v3458_v1, %v3035_v59  ;;  %v13363_v1 = vld [vmem:[#allocation180_spill] sm:$0xff]  ;;  %v13423_v32 = vld [vmem:[#allocation21_spill] sm:$0xff] }
 0x3ce   : > { %3627 = vrot.lane.b32.xlu1 %v7580_v27, %s6842_s23 }
 0x3cf   : > { %v9804_v55 = vpop.permute.xlu0 %3028 }
 0x3d0   : > { %13360 = vst [vmem:[#allocation352_spill] sm:$0xff] %v9804_v55  ;;  %v9806_v33 = vpop.permute.xlu1 %3038 }
 0x3d1   : > { %13361 = vst [vmem:[#allocation353_spill] sm:$0xff] %v9806_v33  ;;  %3753 = vrot.lane.b32.xlu0 %v13137_v54, %s6838_s19 }
 0x3d2   : > { %3659 = vrot.lane.b32.xlu1 %v13323_v14, %s6843_s24 }
 0x3d3   : > { %v3033_v17 = vpop.permute.xlu0 %3032 }
 0x3d4   : > { %v3489_v19 = vsel %vm12706_vm4, %v3456_v52, %v3033_v17  ;;  %v9813_v41 = vpop.permute.xlu1 %3042 }
 0x3d5   : > { %13362 = vst [vmem:[#allocation354_spill] sm:$0xff] %v9813_v41  ;;  %3597 = vrot.lane.b32.xlu0 %v13363_v1, %s6839_s20 }
 0x3d6   : > { %3691 = vrot.lane.b32.xlu1 %v13344_v51, %s6844_s27  ;;  %v13367_v51 = vld [vmem:[#allocation165_spill] sm:$0xff] }
 0x3d7   : > { %v3037_v27 = vpop.permute.xlu0 %3036 }
 0x3d8   : > { %v3493_v59 = vsel %vm12706_vm4, %v3460_v29, %v3037_v27  ;;  %v9820_v33 = vpop.permute.xlu1 %3046  ;;  %vm3494_vm4 = vcmask 490496  }
 0x3d9   : > { %13364 = vst [vmem:[#allocation355_spill] sm:$0xff] %v9820_v33  ;;  %3629 = vrot.lane.b32.xlu0 %v7644_v49, %s6842_s23  ;;  %v13370_v49 = vld [vmem:[#allocation185_spill] sm:$0xff] }
 0x3da   : > { %3723 = vrot.lane.b32.xlu1 %v13363_v1, %s6834_s14 }
 0x3db   : > { %v9826_v14 = vpop.permute.xlu0 %3040 }
 0x3dc   : > { %13365 = vst [vmem:[#allocation356_spill] sm:$0xff] %v9826_v14  ;;  %v9828_v52 = vpop.permute.xlu1 %3050 }
 0x3dd   : > { %13366 = vst [vmem:[#allocation357_spill] sm:$0xff] %v9828_v52  ;;  %3661 = vrot.lane.b32.xlu0 %v8129_v39, %s6843_s24  ;;  %v13377_v52 = vld [vmem:[#allocation197_spill] sm:$0xff] }
 0x3de   : > { %3755 = vrot.lane.b32.xlu1 %v13367_v51, %s6838_s19 }
 0x3df   : > { %v9834_v17 = vpop.permute.xlu0 %3044 }
 0x3e0   : > { %13368 = vst [vmem:[#allocation165_spill] sm:$0xff] %v9834_v17  ;;  %v9836_v29 = vpop.permute.xlu1 %3054  ;;  %v13374_v17 = vld [vmem:[#allocation177_spill] sm:$0xff] }
 0x3e1   : > { %13369 = vst [vmem:[#allocation358_spill] sm:$0xff] %v9836_v29  ;;  %3693 = vrot.lane.b32.xlu0 %v13339_v44, %s6844_s27 }
 0x3e2   : > { %3599 = vrot.lane.b32.xlu1 %v13370_v49, %s6839_s20 }
 0x3e3   : > { %v9842_v27 = vpop.permute.xlu0 %3048 }
 0x3e4   : > { %13371 = vst [vmem:[#allocation359_spill] sm:$0xff] %v9842_v27  ;;  %v9844_v14 = vpop.permute.xlu1 %3058 }
 0x3e5   : > { %13372 = vst [vmem:[#allocation360_spill] sm:$0xff] %v9844_v14  ;;  %3725 = vrot.lane.b32.xlu0 %v13370_v49, %s6834_s14 }
 0x3e6   : > { %3631 = vrot.lane.b32.xlu1 %v7701_v20, %s6842_s23 }
 0x3e7   : > { %v9850_v39 = vpop.permute.xlu0 %3052 }
 0x3e8   : > { %13373 = vst [vmem:[#allocation361_spill] sm:$0xff] %v9850_v39  ;;  %v3063_v29 = vpop.permute.xlu1 %3062 }
 0x3e9   : > { %3757 = vrot.lane.b32.xlu0 %v13374_v17, %s6838_s19  ;;  %v9855_v44 = vsel %vm3494_vm4, %v3487_v25, %v3063_v29 }
 0x3ea   : > { %13375 = vst [vmem:[#allocation362_spill] sm:$0xff] %v9855_v44  ;;  %3663 = vrot.lane.b32.xlu1 %v8216_v8, %s6843_s24 }
 0x3eb   : > { %v9859_v14 = vpop.permute.xlu0 %3056 }
 0x3ec   : > { %13376 = vst [vmem:[#allocation363_spill] sm:$0xff] %v9859_v14  ;;  %v3067_v27 = vpop.permute.xlu1 %3066  ;;  %v13393_v14 = vld [vmem:[#allocation208_spill] sm:$0xff] }
 0x3ed   : > { %3601 = vrot.lane.b32.xlu0 %v13377_v52, %s6839_s20  ;;  %v9864_v20 = vsel %vm3494_vm4, %v3491_v5, %v3067_v27 }
 0x3ee   : > { %13378 = vst [vmem:[#allocation364_spill] sm:$0xff] %v9864_v20  ;;  %3695 = vrot.lane.b32.xlu1 %v13347_v43, %s6844_s27  ;;  %v13381_v43 = vld [vmem:[#allocation192_spill] sm:$0xff] }
 0x3ef   : > { %v9868_v39 = vpop.permute.xlu0 %3060 }
 0x3f0   : > { %13379 = vst [vmem:[#allocation365_spill] sm:$0xff] %v9868_v39  ;;  %v9870_v33 = vpop.permute.xlu1 %3527 }
 0x3f1   : > { %3633 = vrot.lane.b32.xlu0 %v12993_v28, %s6842_s23 }
 0x3f2   : > { %3727 = vrot.lane.b32.xlu1 %v13377_v52, %s6834_s14  ;;  %v6807_v52 = vld [vmem:[%s6935_s17 + $0x48] sm:$0xff]  }
 0x3f3   : > { %v3065_v8 = vpop.permute.xlu0 %3064  ;;  %v10108_v17 = vunpack.c.h.bf16 %v6807_v52 }
 0x3f4   : > { %v9877_v25 = vsel %vm3494_vm4, %v3489_v19, %v3065_v8  ;;  %v9879_v29 = vpop.permute.xlu1 %3531  ;;  %v13383_v19 = vld [vmem:[#allocation202_spill] sm:$0xff] }
 0x3f5   : > { %13380 = vst [vmem:[#allocation366_spill] sm:$0xff] %v9877_v25  ;;  %3665 = vrot.lane.b32.xlu0 %v8267_v57, %s6843_s24  ;;  %v13388_v25 = vld [vmem:[#allocation215_spill] sm:$0xff]  ;;  %13426 = vst [vmem:[#allocation21_spill] sm:$0xff] %v10108_v17 }
 0x3f6   : > { %3759 = vrot.lane.b32.xlu1 %v13381_v43, %s6838_s19 }
 0x3f7   : > { %v3069_v5 = vpop.permute.xlu0 %3068 }
 0x3f8   : > { %v9886_v27 = vsel %vm3494_vm4, %v3493_v59, %v3069_v5  ;;  %v9888_v28 = vpop.permute.xlu1 %3535  ;;  %v13386_v5 = vld [vmem:[#allocation201_spill] sm:$0xff] }
 0x3f9   : > { %13382 = vst [vmem:[#allocation192_spill] sm:$0xff] %v9886_v27  ;;  %3697 = vrot.lane.b32.xlu0 %v13342_v12, %s6844_s27 }
 0x3fa   : > { %3603 = vrot.lane.b32.xlu1 %v13383_v19, %s6839_s20 }
 0x3fb   : > { %v9894_v8 = vpop.permute.xlu0 %3529 }
 0x3fc   : > { %v9896_v20 = vpop.permute.xlu1 %3539 }
 0x3fd   : > { %13384 = vst [vmem:[#allocation367_spill] sm:$0xff] %v9896_v20  ;;  %3729 = vrot.lane.b32.xlu0 %v13383_v19, %s6834_s14  ;;  %v6810_v20 = vld [vmem:[%s6935_s17 + $0x28] sm:$0xff]  }
 0x3fe   : > { %3635 = vrot.lane.b32.xlu1 %v13301_v11, %s6842_s23 }
 0x3ff   : > { %v9902_v57 = vpop.permute.xlu0 %3533 }
 0x400   : > { %v9904_v59 = vpop.permute.xlu1 %3543 }
 0x401   : > { %13385 = vst [vmem:[#allocation368_spill] sm:$0xff] %v9904_v59  ;;  %3761 = vrot.lane.b32.xlu0 %v13386_v5, %s6838_s19  ;;  %v4439_v59 = vunpack.c.l.bf16 %v6807_v52  ;;  %v13424_v5 = vld [vmem:[#allocation22_spill] sm:$0xff] }
 0x402   : > { %3667 = vrot.lane.b32.xlu1 %v8386_v47, %s6843_s24 }
 0x403   : > { %v9910_v12 = vpop.permute.xlu0 %3537 }
 0x404   : > { %v9912_v27 = vpop.permute.xlu1 %3547 }
 0x405   : > { %13387 = vst [vmem:[#allocation369_spill] sm:$0xff] %v9912_v27  ;;  %3605 = vrot.lane.b32.xlu0 %v13388_v25, %s6839_s20 }
 0x406   : > { %3699 = vrot.lane.b32.xlu1 %v13349_v10, %s6844_s27 }
 0x407   : > { %v9918_v11 = vpop.permute.xlu0 %3541 }
 0x408   : > { %13389 = vst [vmem:[#allocation370_spill] sm:$0xff] %v9918_v11  ;;  %v9920_v44 = vpop.permute.xlu1 %3551 }
 0x409   : > { %13390 = vst [vmem:[#allocation371_spill] sm:$0xff] %v9920_v44  ;;  %3637 = vrot.lane.b32.xlu0 %v13006_v46, %s6842_s23  ;;  %v13395_v46 = vld [vmem:[#allocation219_spill] sm:$0xff]  ;;  %v13403_v44 = vld [vmem:[#allocation230_spill] sm:$0xff] }
 0x40a   : > { %3731 = vrot.lane.b32.xlu1 %v13388_v25, %s6834_s14 }
 0x40b   : > { %v9926_v47 = vpop.permute.xlu0 %3545 }
 0x40c   : > { %13391 = vst [vmem:[#allocation372_spill] sm:$0xff] %v9926_v47  ;;  %v9928_v39 = vpop.permute.xlu1 %3555 }
 0x40d   : > { %13392 = vst [vmem:[#allocation373_spill] sm:$0xff] %v9928_v39  ;;  %3669 = vrot.lane.b32.xlu0 %v8462_v4, %s6843_s24 }
 0x40e   : > { %3763 = vrot.lane.b32.xlu1 %v13393_v14, %s6838_s19  ;;  %v13433_v14 = vld [vmem:[#allocation104_spill] sm:$0xff] }
 0x40f   : > { %v9934_v10 = vpop.permute.xlu0 %3549 }
 0x410   : > { %13394 = vst [vmem:[#allocation374_spill] sm:$0xff] %v9934_v10  ;;  %v9936_v41 = vpop.permute.xlu1 %3559 }
 0x411   : > { %3701 = vrot.lane.b32.xlu0 %v13221_v56, %s6844_s27 }
 0x412   : > { %3607 = vrot.lane.b32.xlu1 %v13395_v46, %s6839_s20 }
 0x413   : > { %v9942_v55 = vpop.permute.xlu0 %3553 }
 0x414   : > { %13396 = vst [vmem:[#allocation375_spill] sm:$0xff] %v9942_v55  ;;  %v9944_v13 = vpop.permute.xlu1 %3563 }
 0x415   : > { %3733 = vrot.lane.b32.xlu0 %v13395_v46, %s6834_s14 }
 0x416   : > { %3639 = vrot.lane.b32.xlu1 %v13306_v34, %s6842_s23 }
 0x417   : > { %v9950_v4 = vpop.permute.xlu0 %3557 }
 0x418   : > { %13397 = vst [vmem:[#allocation376_spill] sm:$0xff] %v9950_v4  ;;  %v9952_v39 = vpop.permute.xlu1 %3567 }
 0x419   : > { %3765 = vrot.lane.b32.xlu0 %v13261_v24, %s6838_s19  ;;  %v13416_v24 = vld [vmem:[#allocation96_spill] sm:$0xff] }
 0x41a   : > { %3671 = vrot.lane.b32.xlu1 %v8551_v31, %s6843_s24 }
 0x41b   : > { %v9958_v56 = vpop.permute.xlu0 %3561 }
 0x41c   : > { %v9960_v55 = vpop.permute.xlu1 %3571 }
 0x41d   : > { %13398 = vst [vmem:[#allocation377_spill] sm:$0xff] %v9960_v55  ;;  %3609 = vrot.lane.b32.xlu0 %v13399_v58, %s6839_s20  ;;  %v10118_v55 = vunpack.c.l.bf16 %v6810_v20 }
 0x41e   : > { %3703 = vrot.lane.b32.xlu1 %v13351_v15, %s6844_s27 }
 0x41f   : > { %v9966_v34 = vpop.permute.xlu0 %3565 }
 0x420   : > { %v9968_v4 = vpop.permute.xlu1 %3575 }
 0x421   : > { %13400 = vst [vmem:[#allocation228_spill] sm:$0xff] %v9968_v4  ;;  %3641 = vrot.lane.b32.xlu0 %v7887_v50, %s6842_s23  ;;  %v13404_v50 = vld [vmem:[#allocation233_spill] sm:$0xff]  ;;  %v6808_v4 = vld [vmem:[%s6935_s17 + $0xd0] sm:$0xff]  }
 0x422   : > { %3735 = vrot.lane.b32.xlu1 %v13399_v58, %s6834_s14  ;;  %v10097_v49 = vunpack.c.l.bf16 %v6808_v4 }
 0x423   : > { %v9974_v31 = vpop.permute.xlu0 %3569 }
 0x424   : > { %v9976_v26 = vpop.permute.xlu1 %3591  ;;  %13421 = vst [vmem:[#allocation384_spill] sm:$0xff] %v10097_v49 }
 0x425   : > { %3673 = vrot.lane.b32.xlu0 %v8605_v61, %s6843_s24 }
 0x426   : > { %3767 = vrot.lane.b32.xlu1 %v13401_v37, %s6838_s19  ;;  %v13411_v37 = vld [vmem:[#allocation241_spill] sm:$0xff] }
 0x427   : > { %v9982_v15 = vpop.permute.xlu0 %3573 }
 0x428   : > { %13402 = vst [vmem:[#allocation378_spill] sm:$0xff] %v9982_v15  ;;  %v9984_v9 = vpop.permute.xlu1 %3623 }
 0x429   : > { %3705 = vrot.lane.b32.xlu0 %v13403_v44, %s6844_s27 }
 0x42a   : > { %3769 = vrot.lane.b32.xlu1 %v13404_v50, %s6838_s19  ;;  %v13409_v50 = vld [vmem:[#allocation240_spill] sm:$0xff] }
 0x42b   : > { %v9990_v58 = vpop.permute.xlu0 %3577 }
 0x42c   : > { %13405 = vst [vmem:[#allocation230_spill] sm:$0xff] %v9990_v58  ;;  %v9992_v60 = vpop.permute.xlu1 %3655 }
 0x42d   : > { %3737 = vrot.lane.b32.xlu0 %v13246_v16, %s6834_s14 }
 0x42e   : > { %3611 = vrot.lane.b32.xlu1 %v13246_v16, %s6839_s20 }
 0x42f   : > { %v9998_v61 = vpop.permute.xlu0 %3593 }
 0x430   : > { %v10000_v45 = vpop.permute.xlu1 %3687 }
 0x431   : > { %3579 = vrot.lane.b32.xlu0 %v13403_v44, %s6837_s18 }
 0x432   : > { %3643 = vrot.lane.b32.xlu1 %v13310_v62, %s6842_s23 }
 0x433   : > { %v10006_v36 = vpop.permute.xlu0 %3625 }
 0x434   : > { %v10008_v21 = vpop.permute.xlu1 %3719 }
 0x435   : > { %3581 = vrot.lane.b32.xlu0 %v13406_v0, %s6837_s18 }
 0x436   : > { %3675 = vrot.lane.b32.xlu1 %v13330_v2, %s6843_s24 }
 0x437   : > { %v10014_v16 = vpop.permute.xlu0 %3657 }
 0x438   : > { %v10016_v10 = vpop.permute.xlu1 %3751 }
 0x439   : > { %13407 = vst [vmem:[#allocation237_spill] sm:$0xff] %v10016_v10  ;;  %3613 = vrot.lane.b32.xlu0 %v8726_v53, %s6839_s20 }
 0x43a   : > { %3707 = vrot.lane.b32.xlu1 %v13406_v0, %s6844_s27 }
 0x43b   : > { %v10022_v62 = vpop.permute.xlu0 %3689 }
 0x43c   : > { %v10024_v44 = vpop.permute.xlu1 %3595 }
 0x43d   : > { %3645 = vrot.lane.b32.xlu0 %v8142_v35, %s6842_s23  ;;  %v13412_v35 = vld [vmem:[#allocation245_spill] sm:$0xff] }
 0x43e   : > { %3739 = vrot.lane.b32.xlu1 %v8726_v53, %s6834_s14 }
 0x43f   : > { %v10030_v2 = vpop.permute.xlu0 %3721 }
 0x440   : > { %v10032_v30 = vpop.permute.xlu1 %3627 }
 0x441   : > { %13408 = vst [vmem:[#allocation379_spill] sm:$0xff] %v10032_v30  ;;  %3677 = vrot.lane.b32.xlu0 %v8738_v42, %s6843_s24  ;;  %v6813_v30 = vld [vmem:[%s6935_s17 + $0x78] sm:$0xff]  }
 0x442   : > { %3771 = vrot.lane.b32.xlu1 %v13409_v50, %s6838_s19 }
 0x443   : > { %v10038_v0 = vpop.permute.xlu0 %3753 }
 0x444   : > { %v10040_v27 = vpop.permute.xlu1 %3659 }
 0x445   : > { %13410 = vst [vmem:[#allocation380_spill] sm:$0xff] %v10040_v27  ;;  %3709 = vrot.lane.b32.xlu0 %v13411_v37, %s6844_s27 }
 0x446   : > { %3773 = vrot.lane.b32.xlu1 %v13412_v35, %s6838_s19 }
 0x447   : > { %v10046_v53 = vpop.permute.xlu0 %3597 }
 0x448   : > { %v10048_v47 = vpop.permute.xlu1 %3691 }
 0x449   : > { %13413 = vst [vmem:[#allocation241_spill] sm:$0xff] %v10048_v47  ;;  %3741 = vrot.lane.b32.xlu0 %v13249_v3, %s6834_s14 }
 0x44a   : > { %3615 = vrot.lane.b32.xlu1 %v13249_v3, %s6839_s20 }
 0x44b   : > { %v10054_v42 = vpop.permute.xlu0 %3629 }
 0x44c   : > { %v10056_v50 = vpop.permute.xlu1 %3723 }
 0x44d   : > { %13414 = vst [vmem:[#allocation381_spill] sm:$0xff] %v10056_v50  ;;  %3583 = vrot.lane.b32.xlu0 %v13411_v37, %s6837_s18  ;;  %v13418_v37 = vld [vmem:[#allocation102_spill] sm:$0xff] }
 0x44e   : > { %3647 = vrot.lane.b32.xlu1 %v13316_v48, %s6842_s23  ;;  %v13428_v50 = vld [vmem:[#allocation26_spill] sm:$0xff] }
 0x44f   : > { %v10062_v35 = vpop.permute.xlu0 %3661  ;;  %13429 = vst [vmem:[#allocation26_spill] sm:$0xff] %v10118_v55  ;;  %v10177_v55 = vunpack.c.h.bf16 %v6813_v30 }
 0x450   : > { %v10064_v58 = vpop.permute.xlu1 %3755 }
 0x451   : > { %13415 = vst [vmem:[#allocation382_spill] sm:$0xff] %v10064_v58  ;;  %3585 = vrot.lane.b32.xlu0 %v13416_v24, %s6837_s18  ;;  %v10122_v58 = vsel %vm398_vm2, %v4439_v59, -3e+38  ;;  %v13435_v59 = vld [vmem:[#allocation17_spill] sm:$0xff]  ;;  %13448 = vst [vmem:[#allocation389_spill] sm:$0xff] %v10177_v55 }
 0x452   : > { %3679 = vrot.lane.b32.xlu1 %v13334_v6, %s6843_s24  ;;  %13431 = vst [vmem:[#allocation2_spill] sm:$0xff] %v10122_v58  ;;  %v4606_v49 = vrot.slane %v10122_v58, 1 }
 0x453   : > { %v10070_v3 = vpop.permute.xlu0 %3693 }
 0x454   : > { %v10072_v46 = vpop.permute.xlu1 %3599 }
 0x455   : > { %13417 = vst [vmem:[#allocation96_spill] sm:$0xff] %v10072_v46  ;;  %3617 = vrot.lane.b32.xlu0 %v13418_v37, %s6839_s20  ;;  %v6812_v46 = vld [vmem:[%s6935_s17 + $0x40] sm:$0xff]  }
 0x456   : > { %3711 = vrot.lane.b32.xlu1 %v13416_v24, %s6844_s27  ;;  %v6775_v24 = vld [vmem:[%s12384_s5] sm:$0xff]  }
 0x457   : > { %v10078_v48 = vpop.permute.xlu0 %3725  ;;  %6617 = vmatprep.subr.bf16.mxu1 %v6775_v24 }
 0x458   : > { %v10080_v25 = vpop.permute.xlu1 %3631  ;;  %6618 = vmatpush3.bf16.msra.mxu1 %v6775_v24 }
 0x459   : > { %13419 = vst [vmem:[#allocation102_spill] sm:$0xff] %v10080_v25  ;;  %3649 = vrot.lane.b32.xlu0 %v13189_v18, %s6842_s23  ;;  %v6809_v18 = vld [vmem:[%s6935_s17 + $0x60] sm:$0xff]  }
 0x45a   : > { %3743 = vrot.lane.b32.xlu1 %v13418_v37, %s6834_s14  ;;  %v4445_v1 = vunpack.c.l.bf16 %v6809_v18  ;;  %v13422_v37 = vld [vmem:[#allocation271_spill] sm:$0xff]  ;;  %v10124_v52 = vunpack.c.h.bf16 %v6809_v18  ;;  %v13437_v18 = vld [vmem:[#allocation24_spill] sm:$0xff] }
 0x45b   : > { %v10086_v6 = vpop.permute.xlu0 %3757 }
 0x45c   : > { %v10088_v19 = vpop.permute.xlu1 %3663  ;;  %13432 = vst [vmem:[#allocation385_spill] sm:$0xff] %v10124_v52  ;;  %v10133_v20 = vsel %vm398_vm2, %v4445_v1, -3e+38 }
 0x45d   : > { %13420 = vst [vmem:[#allocation383_spill] sm:$0xff] %v10088_v19  ;;  %3681 = vrot.lane.b32.xlu0 %v13206_v40, %s6843_s24  ;;  %v4933_v19 = vmax.f32 %v13424_v5, %v13423_v32  ;;  %v4935_v32 = vmax.f32 %v13424_v5, %v13428_v50  ;;  %13434 = vst [vmem:[#allocation104_spill] sm:$0xff] %v10133_v20  ;;  %v10138_v50 = vrot.slane %v13435_v59, 2  ;;  %v10145_v40 = vunpack.c.l.bf16 %v6812_v46  ;;  %v13442_v46 = vld [vmem:[#allocation28_spill] sm:$0xff] }
 0x45e   : > { %3775 = vrot.lane.b32.xlu1 %v13422_v37, %s6838_s19  ;;  %v6776_v37 = vld [vmem:[%s12384_s5 + $0x8] sm:$0xff]   ;;  %v4451_v59 = vunpack.c.l.bf16 %v6813_v30  ;;  %v4616_v27 = vrot.slane %v10133_v20, 1 }
 0x45f   : > { %v10104_v25 = vpop.permute.xlu0 %3601  ;;  %6619 = vmatprep.subr.bf16.mxu1 %v6776_v37  ;;  %13436 = vst [vmem:[#allocation386_spill] sm:$0xff] %v10138_v50  ;;  %v10141_v22 = vmax.f32 %v4933_v19, %v13437_v18  ;;  %13440 = vst [vmem:[#allocation387_spill] sm:$0xff] %v10145_v40  ;;  %v6777_v19 = vld [vmem:[%s12384_s5 + $0x10] sm:$0xff]   ;;  %v10159_v18 = vmax.f32 %v4935_v32, %v13442_v46  ;;  %v6814_v32 = vld [vmem:[%s6935_s17 + $0x68] sm:$0xff]  }
 0x460   : > { %v10110_v4 = vpop.permute.xlu1 %3695  ;;  %6620 = vmatpush3.bf16.msra.mxu1 %v6776_v37  ;;  %v4448_v46 = vunpack.c.h.bf16 %v6814_v32  ;;  %v6815_v37 = vld [vmem:[%s6935_s17 + $0x90] sm:$0xff]   ;;  %v6817_v32 = vld [vmem:[%s6935_s17 + $0x80] sm:$0xff]   ;;  %v6820_v40 = vld [vmem:[%s6935_s17 + $0x98] sm:$0xff]  }
 0x461   : > { %13427 = vst [vmem:[#allocation22_spill] sm:$0xff] %v10110_v4  ;;  %3713 = vrot.lane.b32.xlu0 %v13433_v14, %s6844_s27  ;;  %v6811_v4 = vld [vmem:[%s6935_s17 + $0x50] sm:$0xff]   ;;  %13438 = vst [vmem:[#allocation24_spill] sm:$0xff] %v10141_v22  ;;  %6621 = vmatprep.subr.bf16.mxu1 %v6777_v19  ;;  %v4457_v10 = vunpack.c.l.bf16 %v6815_v37  ;;  %v10193_v22 = vsel %vm398_vm2, %v4451_v59, -3e+38  ;;  %v6778_v59 = vld [vmem:[%s12384_s5 + $0x18] sm:$0xff]  }
 0x462   : > { %v4442_v5 = vunpack.c.h.bf16 %v6811_v4  ;;  %3777 = vrot.lane.b32.xlu1 %v9515_v7, %s6838_s19  ;;  %13443 = vst [vmem:[#allocation28_spill] sm:$0xff] %v10159_v18  ;;  %v13444_v7 = vld [vmem:[#allocation107_spill] sm:$0xff]  ;;  %v13457_v18 = vld [vmem:[#allocation126_spill] sm:$0xff] }
 0x463   : > { %v10147_v4 = vpop.permute.xlu0 %3633  ;;  %v6821_v20 = vld [vmem:[%s6935_s17 + $0x88] sm:$0xff]  }
 0x464   : > { %v10153_v50 = vpop.permute.xlu1 %3727  ;;  %v10170_v54 = vsel %vm398_vm2, %v4442_v5, -3e+38  ;;  %v13449_v5 = vrot.slane %v10108_v17, 1  ;;  %6622 = vmatpush3.bf16.msra.mxu1 %v6777_v19  ;;  %v10212_v19 = vsel %vm398_vm2, %v4448_v46, -3e+38  ;;  %v10214_v17 = vunpack.c.h.bf16 %v6815_v37  ;;  %v13466_v37 = vld [vmem:[#allocation4_spill] sm:$0xff] }
 0x465   : > { %13441 = vst [vmem:[#allocation388_spill] sm:$0xff] %v10153_v50  ;;  %3745 = vrot.lane.b32.xlu0 %v13444_v7, %s6834_s14  ;;  %13446 = vst [vmem:[#allocation107_spill] sm:$0xff] %v10170_v54  ;;  %6623 = vmatprep.subr.bf16.mxu1 %v6778_v59 }
 0x466   : > { %3619 = vrot.lane.b32.xlu1 %v13444_v7, %s6839_s20  ;;  %v10185_v24 = vsel %vm1500_vm5, %v4606_v49, %v13449_v5  ;;  %v6816_v7 = vld [vmem:[%s6935_s17 + $0x58] sm:$0xff]   ;;  %v13453_v49 = vrot.slane %v10124_v52, 1  ;;  %13455 = vst [vmem:[#allocation394_spill] sm:$0xff] %v10212_v19  ;;  %13456 = vst [vmem:[#allocation395_spill] sm:$0xff] %v10214_v17  ;;  %v6736_v52 = vunpack.i.h.bf16 %v13457_v18  ;;  %v13472_v19 = vld [vmem:[#allocation136_spill] sm:$0xff] }
 0x467   : > { %v10180_v50 = vpop.permute.xlu0 %3665  ;;  %13450 = vst [vmem:[#allocation390_spill] sm:$0xff] %v10185_v24  ;;  %v10189_v11 = vunpack.c.l.bf16 %v6816_v7  ;;  %v4454_v7 = vunpack.c.h.bf16 %v6817_v32  ;;  %v10223_v32 = vsel %vm398_vm2, %v4457_v10, -3e+38  ;;  %v6779_v10 = vld [vmem:[%s12384_s5 + $0x20] sm:$0xff]   ;;  %v10265_v24 = vunpack.c.l.bf16 %v6821_v20 }
 0x468   : > { %v10195_v30 = vpop.permute.xlu1 %3759  ;;  %v10202_v5 = vsel %vm1500_vm5, %v4616_v27, %v13453_v49  ;;  %v4626_v27 = vrot.slane %v10193_v22, 1  ;;  %13458 = vst [vmem:[#allocation126_spill] sm:$0xff] %v10223_v32  ;;  %v6818_v49 = vld [vmem:[%s6935_s17 + $0xa8] sm:$0xff]   ;;  %6624 = vmatpush3.bf16.msra.mxu1 %v6778_v59  ;;  %v4636_v59 = vrot.slane %v10223_v32, 1 }
 0x469   : > { %13451 = vst [vmem:[#allocation391_spill] sm:$0xff] %v10189_v11  ;;  %13452 = vst [vmem:[#allocation392_spill] sm:$0xff] %v10195_v30  ;;  %3587 = vrot.lane.b32.xlu0 %v13433_v14, %s6837_s18  ;;  %v4463_v54 = vunpack.c.l.bf16 %v6818_v49  ;;  %v6819_v30 = vld [vmem:[%s6935_s17 + $0x70] sm:$0xff]   ;;  %v10245_v1 = vsel %vm398_vm2, %v4454_v7, -3e+38  ;;  %v13463_v11 = vld [vmem:[#allocation5_spill] sm:$0xff]  ;;  %v10252_v58 = vunpack.c.h.bf16 %v6818_v49  ;;  %6625 = vmatprep.subr.bf16.mxu1 %v6779_v10 }
 0x46a   : > { %13454 = vst [vmem:[#allocation393_spill] sm:$0xff] %v10202_v5  ;;  %3651 = vrot.lane.b32.xlu1 %v13319_v23, %s6842_s23  ;;  %v10233_v15 = vunpack.c.l.bf16 %v6819_v30  ;;  %13462 = vst [vmem:[#allocation399_spill] sm:$0xff] %v10245_v1  ;;  %v4460_v30 = vunpack.c.h.bf16 %v6820_v40  ;;  %v13467_v40 = vrot.slane %v10177_v55, 1  ;;  %v13471_v55 = vunpack.i.l.bf16 %v13457_v18  ;;  %v6823_v7 = vld [vmem:[%s6935_s17 + $0xb0] sm:$0xff]   ;;  %v13476_v18 = vld [vmem:[#allocation146_spill] sm:$0xff] }
 0x46b   : > { %v10226_v46 = vpop.permute.xlu0 %3697  ;;  %13464 = vst [vmem:[#allocation5_spill] sm:$0xff] %v10252_v58  ;;  %v10269_v49 = vsel %vm398_vm2, %v4463_v54, -3e+38  ;;  %v6780_v54 = vld [vmem:[%s12384_s5 + $0x28] sm:$0xff]  }
 0x46c   : > { %13459 = vst [vmem:[#allocation396_spill] sm:$0xff] %v10226_v46  ;;  %13460 = vst [vmem:[#allocation397_spill] sm:$0xff] %v10233_v15  ;;  %v10235_v14 = vpop.permute.xlu1 %3603  ;;  %v10262_v5 = vsel %vm1500_vm5, %v4626_v27, %v13467_v40  ;;  %v3074_v27 = vsel %vm574_vm1, %v13472_v19, %v13471_v55  ;;  %6626 = vmatpush3.bf16.msra.mxu1 %v6779_v10  ;;  %v10287_v20 = vsel %vm398_vm2, %v4460_v30, -3e+38  ;;  %v4466_v15 = vunpack.c.h.bf16 %v6823_v7  ;;  %v13477_v55 = vld [vmem:[#allocation8_spill] sm:$0xff]  ;;  %v13490_v7 = vld [vmem:[#allocation118_spill] sm:$0xff] }
 0x46d   : > { %13461 = vst [vmem:[#allocation398_spill] sm:$0xff] %v10235_v14  ;;  %3589 = vrot.lane.b32.xlu0 %v13463_v11, %s6837_s18  ;;  %v13465_v14 = vld [vmem:[#allocation137_spill] sm:$0xff]  ;;  %13469 = vst [vmem:[#allocation4_spill] sm:$0xff] %v10269_v49  ;;  %v13478_v10 = vrot.slane %v10214_v17, 1  ;;  %v4646_v30 = vrot.slane %v10269_v49, 1  ;;  %6627 = vmatprep.subr.bf16.mxu1 %v6780_v54  ;;  %v13480_v19 = vld [vmem:[#allocation132_spill] sm:$0xff] }
 0x46e   : > { %v3072_v46 = vsel %vm574_vm1, %v13465_v14, %v6736_v52  ;;  %6738 = vrot.lane.b32.xlu1 %v13466_v37, %s6843_s24  ;;  %13468 = vst [vmem:[#allocation137_spill] sm:$0xff] %v10262_v5  ;;  %13474 = vst [vmem:[#allocation401_spill] sm:$0xff] %v10287_v20  ;;  %v6822_v14 = vld [vmem:[%s6935_s17 + $0xa0] sm:$0xff]   ;;  %v3105_v17 = vsel %vm2050_vm8, %v3074_v27, %v13480_v19  ;;  %v10329_v19 = vsel %vm398_vm2, %v4466_v15, -3e+38 }
 0x46f   : > { %v10271_v52 = vpop.permute.xlu0 %3729  ;;  %v10290_v37 = vunpack.c.l.bf16 %v6822_v14  ;;  %13481 = vst [vmem:[#allocation8_spill] sm:$0xff] %v10329_v19  ;;  %v3122_v15 = vsel %vm2083_vm9, %v3105_v17, %v13477_v55 }
 0x470   : > { %13470 = vst [vmem:[#allocation400_spill] sm:$0xff] %v10271_v52  ;;  %v10280_v40 = vpop.permute.xlu1 %3635  ;;  %v3104_v52 = vsel %vm2050_vm8, %v3072_v46, %v13476_v18  ;;  %v3788_v46 = vsel %vm574_vm1, %v9894_v8, %v9958_v56  ;;  %6628 = vmatpush3.bf16.msra.mxu1 %v6780_v54  ;;  %v6781_v8 = vld [vmem:[%s12384_s5 + $0x30] ss:$0 sps:$4 sm:$0x33]   ;;  %v13482_v56 = vrot.slane %v10252_v58, 1 }
 0x471   : > { %13473 = vst [vmem:[#allocation136_spill] sm:$0xff] %v10280_v40  ;;  %13475 = vst [vmem:[#allocation402_spill] sm:$0xff] %v10290_v37  ;;  %3621 = vrot.lane.b32.xlu0 %v13477_v55, %s6839_s20  ;;  %v10302_v40 = vsel %vm1500_vm5, %v4636_v59, %v13478_v10  ;;  %v3121_v14 = vsel %vm2083_vm9, %v3104_v52, %v13477_v55  ;;  %v3834_v52 = vsel %vm2050_vm8, %v3788_v46, %v9998_v61  ;;  %v13484_v10 = vld [vmem:[#allocation190_spill] sm:$0xff]  ;;  %v13485_v59 = vld [vmem:[#allocation172_spill] sm:$0xff] }
 0x472   : > { %13479 = vst [vmem:[#allocation146_spill] sm:$0xff] %v10302_v40  ;;  %3717 = vrot.lane.b32.xlu1 %v13463_v11, %s6844_s27  ;;  %v10341_v54 = vsel %vm1500_vm5, %v4646_v30, %v13482_v56  ;;  %v3076_v61 = vsel %vm574_vm1, %v13485_v59, %v13484_v10  ;;  %v13486_v46 = vld [vmem:[#allocation142_spill] sm:$0xff]  ;;  %v13487_v30 = vld [vmem:[#allocation191_spill] sm:$0xff]  ;;  %6702 = vmatprep.subr.msk.bf16.mxu1 %vm665_vm0, %v6781_v8  ;;  %v4229_v17 = vsel %vm665_vm0, %v6781_v8, 0  ;;  %v6824_v10 = vld [vmem:[%s6935_s17 + $0xb8] sm:$0xff]  }
 0x473   : > { %v10313_v5 = vpop.permute.xlu0 %3761  ;;  %13483 = vst [vmem:[#allocation132_spill] sm:$0xff] %v10341_v54  ;;  %v3138_v27 = vsel %vm2116_vm10, %v3121_v14, %v13486_v46  ;;  %v3106_v56 = vsel %vm2050_vm8, %v3076_v61, %v13487_v30  ;;  %v10363_v18 = vunpack.c.l.bf16 %v6824_v10  ;;  %v3866_v14 = vsel %vm2083_vm9, %v3834_v52, %v13146_v38  ;;  %v13489_v61 = vld [vmem:[#allocation158_spill] sm:$0xff]  ;;  %v13491_v8 = vld [vmem:[#allocation188_spill] sm:$0xff] }
 0x474   : > { %v10322_v1 = vpop.permute.xlu1 %3667  ;;  %6630 = vmatpush3.bf16.msra.mxu1 %v4229_v17  ;;  %v3140_v30 = vsel %vm2116_vm10, %v3122_v15, %v13489_v61  ;;  %v3078_v59 = vsel %vm574_vm1, %v13491_v8, %v13490_v7  ;;  %v3898_v10 = vsel %vm2116_vm10, %v3866_v14, %v10006_v36  ;;  %v13492_v38 = vld [vmem:[#allocation156_spill] sm:$0xff]  ;;  %v3785_v7 = vsel %vm574_vm1, %v9870_v33, %v9936_v41  ;;  %v13497_v41 = vld [vmem:[#allocation193_spill] sm:$0xff] }
 0x475   : > { %3653 = vrot.lane.b32.xlu0 %v13319_v23, %s6842_s23  ;;  %13488 = vst [vmem:[#allocation190_spill] sm:$0xff] %v10363_v18  ;;  %v3794_v23 = vsel %vm574_vm1, %v9902_v57, %v9966_v34  ;;  %v10385_v57 = vsel %vm2149_vm11, %v3138_v27, %v13492_v38  ;;  %v13493_v34 = vld [vmem:[#allocation116_spill] sm:$0xff]  ;;  %v3930_v36 = vsel %vm2149_vm11, %v3898_v10, %v10014_v16 }
 0x476   : > { %3749 = vrot.lane.b32.xlu1 %v13477_v55, %s6834_s14  ;;  %v3838_v54 = vsel %vm2050_vm8, %v3794_v23, %v10046_v53  ;;  %v3123_v52 = vsel %vm2083_vm9, %v3106_v56, %v13493_v34  ;;  %v13494_v15 = vld [vmem:[#allocation20_spill] sm:$0xff]  ;;  %v13496_v23 = vld [vmem:[#allocation194_spill] sm:$0xff]  ;;  %v3832_v56 = vsel %vm2050_vm8, %v3785_v7, %v9976_v26  ;;  %v3962_v17 = vsel %vm2182_vm12, %v3930_v36, %v10022_v62 }
 0x477   : > { %v10357_v47 = vpop.permute.xlu0 %3605  ;;  %v13495_v53 = vld [vmem:[#allocation176_spill] sm:$0xff]  ;;  %v3142_v27 = vsel %vm2116_vm10, %v3123_v52, %v13496_v23  ;;  %v3107_v16 = vsel %vm2050_vm8, %v3078_v59, %v13497_v41  ;;  %v3800_v14 = vsel %vm574_vm1, %v9910_v12, %v9974_v31  ;;  %v3994_v61 = vsel %vm2215_vm13, %v3962_v17, %v10030_v2  ;;  %v5435_v26 = vld [vmem:[%s12386_s7] sm:$0x3]  ;;  %v13498_v2 = vld [vmem:[#allocation207_spill] sm:$0xff] }
 0x478   : > { %v10370_v46 = vpop.permute.xlu1 %3699  ;;  %v4026_v62 = vsel %vm12770_vm15, %v3994_v61, %v10038_v0  ;;  %v3842_v12 = vsel %vm2050_vm8, %v3800_v14, %v10104_v25  ;;  %6703 = vmatprep.subr.msk.bf16.mxu0 %vm665_vm0, %v5435_v26  ;;  %v13500_v0 = vld [vmem:[#allocation114_spill] sm:$0xff]  ;;  %v3124_v25 = vsel %vm2083_vm9, %v3107_v16, %v13233_v63  ;;  %v13503_v23 = vld [vmem:[#allocation127_spill] sm:$0xff]  ;;  %v13506_v16 = vld [vmem:[#allocation237_spill] sm:$0xff] }
 0x479   : > { %3715 = vrot.lane.b32.xlu0 %v13463_v11, %s6844_s27  ;;  %v10398_v11 = vsel %vm2149_vm11, %v3140_v30, %v13495_v53  ;;  %v3870_v30 = vsel %vm2083_vm9, %v3838_v54, %v13367_v51  ;;  %v5492_v51 = vsel %vm665_vm0, %v5435_v26, 0  ;;  %v13499_v54 = vld [vmem:[#allocation203_spill] sm:$0xff]  ;;  %v3864_v38 = vsel %vm2083_vm9, %v3832_v56, %v13500_v0  ;;  %s6851_s27 = smov 64   ;;  %v13505_v17 = vld [vmem:[#allocation370_spill] sm:$0xff]  ;;  %v13507_v61 = vld [vmem:[#allocation140_spill] sm:$0xff] }
 0x47a   : > { %3781 = vrot.lane.b32.xlu1 %v13494_v15, %s6838_s19  ;;  %v3902_v59 = vsel %vm2116_vm10, %v3870_v30, %v10054_v42  ;;  %v3080_v10 = vsel %vm574_vm1, %v13499_v54, %v13498_v2  ;;  %6664 = vmatpush3.bf16.msra.mxu0 %v5492_v51  ;;  %v3896_v34 = vsel %vm2116_vm10, %v3864_v38, %v9984_v9  ;;  %v13508_v26 = vld [vmem:[#allocation396_spill] sm:$0xff]  ;;  %v13513_v38 = vld [vmem:[#allocation189_spill] sm:$0xff]  ;;  %vm13720_vm0 = vcmask 424960  }
 0x47b   : > { %v10406_v33 = vpop.permute.xlu0 %3637  ;;  %v3934_v42 = vsel %vm2149_vm11, %v3902_v59, %v10062_v35  ;;  %v3928_v35 = vsel %vm2149_vm11, %v3896_v34, %v9992_v60  ;;  %v3874_v53 = vsel %vm2083_vm9, %v3842_v12, %v13381_v43  ;;  %v3797_v56 = vsel %vm574_vm1, %v9888_v28, %v9952_v39  ;;  %v13511_v12 = vld [vmem:[#allocation400_spill] sm:$0xff]  ;;  %vm13722_vm2 = vmmov %vm13720_vm0 }
 0x47c   : > { %v10417_v8 = vpop.permute.xlu1 %3731  ;;  %v3966_v52 = vsel %vm2182_vm12, %v3934_v42, %v10070_v3  ;;  %v3960_v3 = vsel %vm2182_vm12, %v3928_v35, %v10000_v45  ;;  %v10504_v42 = vsel %vm2149_vm11, %v3142_v27, %v13513_v38  ;;  %v13515_v35 = vld [vmem:[#allocation122_spill] sm:$0xff]  ;;  %v13518_v27 = vld [vmem:[#allocation241_spill] sm:$0xff]  ;;  %v13534_v38 = vld [vmem:[#allocation247_spill] sm:$0xff] }
 0x47d   : > { %3747 = vrot.lane.b32.xlu0 %v13477_v55, %s6834_s14  ;;  %v3791_v55 = vsel %vm574_vm1, %v9879_v29, %v9944_v13  ;;  %v3998_v63 = vsel %vm2215_vm13, %v3966_v52, %v10078_v48  ;;  %v13501_v29 = vld [vmem:[#allocation200_spill] sm:$0xff]  ;;  %v13502_v48 = vld [vmem:[#allocation217_spill] sm:$0xff]  ;;  %v3992_v45 = vsel %vm2215_vm13, %v3960_v3, %v10008_v21  ;;  %v13509_v21 = vld [vmem:[#allocation379_spill] sm:$0xff] }
 0x47e   : > { %4073 = vrot.lane.b32.xlu1 %v4026_v62, %s6851_s27  ;;  %v3836_v36 = vsel %vm2050_vm8, %v3791_v55, %v10024_v44  ;;  %v3108_v9 = vsel %vm2050_vm8, %v3080_v10, %v13501_v29  ;;  %v4030_v60 = vsel %vm12770_vm15, %v3998_v63, %v10086_v6  ;;  %v3906_v44 = vsel %vm2116_vm10, %v3874_v53, %v10147_v4  ;;  %v13504_v4 = vld [vmem:[#allocation378_spill] sm:$0xff]  ;;  %v13514_v55 = vld [vmem:[#allocation380_spill] sm:$0xff]  ;;  %v13519_v3 = vld [vmem:[#allocation377_spill] sm:$0xff] }
 0x47f   : > { %v3670_v7 = vpop.permute.xlu0 %3669  ;;  %v3082_v43 = vsel %vm574_vm1, %v13503_v23, %v13502_v48  ;;  %v3938_v6 = vsel %vm2149_vm11, %v3906_v44, %v10180_v50  ;;  %v3806_v41 = vsel %vm574_vm1, %v13505_v17, %v13504_v4  ;;  %v4024_v14 = vsel %vm12770_vm15, %v3992_v45, %v13506_v16  ;;  %v13510_v50 = vld [vmem:[#allocation96_spill] sm:$0xff]  ;;  %v13512_v10 = vld [vmem:[#allocation198_spill] sm:$0xff]  ;;  %v13521_v44 = vld [vmem:[#allocation381_spill] sm:$0xff] }
 0x480   : > { %v10458_v13 = vpop.permute.xlu1 %3763  ;;  %v3868_v30 = vsel %vm2083_vm9, %v3836_v36, %v13507_v61  ;;  %v3970_v39 = vsel %vm2182_vm12, %v3938_v6, %v13508_v26  ;;  %v3840_v59 = vsel %vm2050_vm8, %v3797_v56, %v13510_v50  ;;  %v3846_v2 = vsel %vm2050_vm8, %v3806_v41, %v10357_v47  ;;  %v13516_v36 = vld [vmem:[#allocation125_spill] sm:$0xff]  ;;  %v13523_v45 = vld [vmem:[#allocation208_spill] sm:$0xff]  ;;  %v13525_v17 = vld [vmem:[#allocation102_spill] sm:$0xff] }
 0x481   : > { %3779 = vrot.lane.b32.xlu0 %v13494_v15, %s6838_s19  ;;  %v3900_v62 = vsel %vm2116_vm10, %v3868_v30, %v13509_v21  ;;  %v4002_v51 = vsel %vm2215_vm13, %v3970_v39, %v13511_v12  ;;  %v3144_v0 = vsel %vm2116_vm10, %v3124_v25, %v13512_v10  ;;  %v3125_v63 = vsel %vm2083_vm9, %v3108_v9, %v13516_v36  ;;  %v13517_v25 = vld [vmem:[#allocation134_spill] sm:$0xff]  ;;  %v13522_v23 = vld [vmem:[#allocation177_spill] sm:$0xff]  ;;  %v13531_v12 = vld [vmem:[#allocation383_spill] sm:$0xff] }
 0x482   : > { %4077 = vrot.lane.b32.xlu1 %v4030_v60, %s6851_s27  ;;  %v3932_v34 = vsel %vm2149_vm11, %v3900_v62, %v13514_v55  ;;  %v4034_v52 = vsel %vm12770_vm15, %v4002_v51, %v10313_v5  ;;  %v10513_v47 = vsel %vm2149_vm11, %v3144_v0, %v13515_v35  ;;  %v3109_v53 = vsel %vm2050_vm8, %v3082_v43, %v13517_v25  ;;  %v13520_v60 = vld [vmem:[#allocation367_spill] sm:$0xff]  ;;  %v13524_v43 = vld [vmem:[#allocation382_spill] sm:$0xff]  ;;  %v13527_v26 = vld [vmem:[#allocation225_spill] sm:$0xff] }
 0x483   : > { %v3702_v28 = vpop.permute.xlu0 %3701  ;;  %v3964_v29 = vsel %vm2182_vm12, %v3932_v34, %v13518_v27  ;;  %v3803_v5 = vsel %vm574_vm1, %v13520_v60, %v13519_v3  ;;  %v3872_v56 = vsel %vm2083_vm9, %v3840_v59, %v13522_v23  ;;  %v3878_v9 = vsel %vm2083_vm9, %v3846_v2, %v13523_v45  ;;  %v13526_v16 = vld [vmem:[#allocation398_spill] sm:$0xff]  ;;  %v13529_v62 = vld [vmem:[#allocation231_spill] sm:$0xff]  ;;  %v13537_v25 = vld [vmem:[#allocation253_spill] sm:$0xff] }
 0x484   : > { %v10498_v54 = vpop.permute.xlu1 %3607  ;;  %v3996_v48 = vsel %vm2215_vm13, %v3964_v29, %v13521_v44  ;;  %v3904_v41 = vsel %vm2116_vm10, %v3872_v56, %v13525_v17  ;;  %v3910_v61 = vsel %vm2116_vm10, %v3878_v9, %v10406_v33  ;;  %v13528_v39 = vld [vmem:[#allocation210_spill] sm:$0xff]  ;;  %v13532_v10 = vld [vmem:[#allocation239_spill] sm:$0xff]  ;;  %v13540_v60 = vld [vmem:[#allocation201_spill] sm:$0xff] }
 0x485   : > { %4071 = vrot.lane.b32.xlu0 %v4024_v14, %s6851_s27  ;;  %v4028_v4 = vsel %vm12770_vm15, %v3996_v48, %v13524_v43  ;;  %v3844_v14 = vsel %vm2050_vm8, %v3803_v5, %v13526_v16  ;;  %v3084_v21 = vsel %vm574_vm1, %v13528_v39, %v13527_v26  ;;  %v13530_v50 = vld [vmem:[#allocation218_spill] sm:$0xff]  ;;  %v3936_v51 = vsel %vm2149_vm11, %v3904_v41, %v13531_v12  ;;  %v13533_v0 = vld [vmem:[#allocation235_spill] sm:$0xff]  ;;  %v13541_v23 = vld [vmem:[#allocation113_spill] sm:$0xff] }
 0x486   : > { %4081 = vrot.lane.b32.xlu1 %v4034_v52, %s6851_s27  ;;  %v3086_v59 = vsel %vm574_vm1, %v13530_v50, %v13529_v62  ;;  %v3942_v2 = vsel %vm2149_vm11, %v3910_v61, %v3670_v7  ;;  %v3088_v33 = vsel %vm574_vm1, %v13533_v0, %v13532_v10  ;;  %v13535_v55 = vld [vmem:[#allocation238_spill] sm:$0xff]  ;;  %v13538_v27 = vld [vmem:[#allocation243_spill] sm:$0xff]  ;;  %v13539_v7 = vld [vmem:[#allocation388_spill] sm:$0xff]  ;;  %v3876_v5 = vsel %vm2083_vm9, %v3844_v14, %v13540_v60 }
 0x487   : > { %v3734_v6 = vpop.permute.xlu0 %3733  ;;  %v3090_v34 = vsel %vm574_vm1, %v13535_v55, %v13534_v38  ;;  %v13536_v52 = vld [vmem:[#allocation22_spill] sm:$0xff]  ;;  %v3974_v36 = vsel %vm2182_vm12, %v3942_v2, %v3702_v28  ;;  %v3092_v29 = vsel %vm574_vm1, %v13538_v27, %v13537_v25  ;;  %v13542_v56 = vld [vmem:[#allocation248_spill] sm:$0xff]  ;;  %v13552_v55 = vld [vmem:[#allocation141_spill] sm:$0xff] }
 0x488   : > { %v10539_v30 = vpop.permute.xlu1 %3639  ;;  %v3968_v35 = vsel %vm2182_vm12, %v3936_v51, %v13536_v52  ;;  %v4006_v44 = vsel %vm2215_vm13, %v3974_v36, %v3734_v6  ;;  %v3094_v45 = vsel %vm574_vm1, %v13542_v56, %v13541_v23  ;;  %v13543_v9 = vld [vmem:[#allocation392_spill] sm:$0xff]  ;;  %v13550_v10 = vld [vmem:[#allocation250_spill] sm:$0xff]  ;;  %v13622_v16 = vld [vmem:[#allocation307_spill] sm:$0xff] }
 0x489   : > { %4075 = vrot.lane.b32.xlu0 %v4028_v4, %s6851_s27  ;;  %v4000_v3 = vsel %vm2215_vm13, %v3968_v35, %v13539_v7  ;;  %v13544_v43 = vld [vmem:[#allocation136_spill] sm:$0xff]  ;;  %v3114_v0 = vsel %vm2050_vm8, %v3092_v29, %v13550_v10  ;;  %v13569_v10 = vld [vmem:[#allocation229_spill] sm:$0xff] }
 0x48a   : > { %v4032_v28 = vsel %vm12770_vm15, %v4000_v3, %v13543_v9  ;;  %v3908_v4 = vsel %vm2116_vm10, %v3876_v5, %v13544_v43  ;;  %v13545_v61 = vld [vmem:[#allocation220_spill] sm:$0xff]  ;;  %v13562_v43 = vld [vmem:[#allocation215_spill] sm:$0xff] }
 0x48b   : > { %v3766_v48 = vpop.permute.xlu0 %3765  ;;  %v3110_v14 = vsel %vm2050_vm8, %v3084_v21, %v13545_v61  ;;  %v13546_v6 = vld [vmem:[#allocation224_spill] sm:$0xff]  ;;  %v3940_v39 = vsel %vm2149_vm11, %v3908_v4, %v10322_v1  ;;  %v10592_v21 = vld [vmem:[%s12383_s4] ss:$0 sm:$0xff]  ;;  %v3131_v4 = vsel %vm2083_vm9, %v3114_v0, %v13562_v43 }
 0x48c   : > { %v4038_v17 = vsel %vm12770_vm15, %v4006_v44, %v3766_v48  ;;  %v3672_v41 = vpop.permute.xlu1 %3671  ;;  %v3111_v26 = vsel %vm2050_vm8, %v3086_v59, %v13546_v6  ;;  %v13547_v62 = vld [vmem:[#allocation232_spill] sm:$0xff]  ;;  %v3972_v1 = vsel %vm2182_vm12, %v3940_v39, %v10370_v46  ;;  %v13559_v48 = vld [vmem:[#allocation202_spill] sm:$0xff] }
 0x48d   : > { %4079 = vrot.lane.b32.xlu0 %v4032_v28, %s6851_s27  ;;  %4085 = vrot.lane.b32.xlu1 %v4038_v17, %s6851_s27  ;;  %v3112_v50 = vsel %vm2050_vm8, %v3088_v33, %v13547_v62  ;;  %v13548_v12 = vld [vmem:[#allocation244_spill] sm:$0xff]  ;;  %v4004_v52 = vsel %vm2215_vm13, %v3972_v1, %v10417_v8  ;;  %v13558_v8 = vld [vmem:[#allocation197_spill] sm:$0xff]  ;;  %v13563_v17 = vld [vmem:[#allocation219_spill] sm:$0xff] }
 0x48e   : > { %v3113_v51 = vsel %vm2050_vm8, %v3090_v34, %v13548_v12  ;;  %v13549_v2 = vld [vmem:[#allocation204_spill] sm:$0xff]  ;;  %v3126_v34 = vsel %vm2083_vm9, %v3109_v53, %v13552_v55  ;;  %v4036_v3 = vsel %vm12770_vm15, %v4004_v52, %v10458_v13  ;;  %v13557_v53 = vld [vmem:[#allocation159_spill] sm:$0xff]  ;;  %v3129_v44 = vsel %vm2083_vm9, %v3112_v50, %v13558_v8  ;;  %v13561_v13 = vld [vmem:[#allocation166_spill] sm:$0xff] }
 0x48f   : > { %v3146_v59 = vsel %vm2116_vm10, %v3125_v63, %v13549_v2  ;;  %v13551_v38 = vld [vmem:[#allocation252_spill] sm:$0xff]  ;;  %v3610_v35 = vpop.permute.xlu0 %3609  ;;  %v13554_v63 = vld [vmem:[#allocation185_spill] sm:$0xff]  ;;  %v10617_v5 = vadd.f32 %v13557_v53, %v10592_v21  ;;  %v3130_v23 = vsel %vm2083_vm9, %v3113_v51, %v13559_v48  ;;  %v10632_v28 = vadd.f32 %v13561_v13, %v10592_v21  ;;  %v13571_v55 = vld [vmem:[#allocation214_spill] sm:$0xff] }
 0x490   : > { %v3115_v33 = vsel %vm2050_vm8, %v3094_v45, %v13551_v38  ;;  %v13553_v36 = vld [vmem:[#allocation180_spill] sm:$0xff]  ;;  %v3128_v27 = vsel %vm2083_vm9, %v3111_v26, %v13554_v63  ;;  %v3704_v60 = vpop.permute.xlu1 %3703  ;;  %v13560_v45 = vld [vmem:[#allocation167_spill] sm:$0xff]  ;;  %v13570_v38 = vld [vmem:[#allocation246_spill] sm:$0xff] }
 0x491   : > { %v3127_v25 = vsel %vm2083_vm9, %v3110_v14, %v13553_v36  ;;  %v13555_v46 = vld [vmem:[#allocation228_spill] sm:$0xff]  ;;  %4083 = vrot.lane.b32.xlu0 %v4036_v3, %s6851_s27  ;;  %v10628_v9 = vadd.f32 %v10592_v21, %v13560_v45  ;;  %v3132_v61 = vsel %vm2083_vm9, %v3115_v33, %v13563_v17  ;;  %v13564_v14 = vld [vmem:[#allocation222_spill] sm:$0xff]  ;;  %v3152_v0 = vsel %vm2116_vm10, %v3128_v27, %v13569_v10  ;;  %v13574_v3 = vld [vmem:[#allocation171_spill] sm:$0xff] }
 0x492   : > { %v13556_v7 = vld [vmem:[#allocation368_spill] sm:$0xff]  ;;  %v3150_v6 = vsel %vm2116_vm10, %v3127_v25, %v13564_v14  ;;  %v3156_v33 = vsel %vm2116_vm10, %v3130_v23, %v13570_v38  ;;  %v13575_v48 = vld [vmem:[#allocation182_spill] sm:$0xff]  ;;  %v13578_v17 = vld [vmem:[#allocation183_spill] sm:$0xff] }
 0x493   : > { %v3809_v29 = vsel %vm574_vm1, %v13556_v7, %v13555_v46  ;;  %v13566_v39 = vld [vmem:[#allocation216_spill] sm:$0xff]  ;;  %v3642_v51 = vpop.permute.xlu0 %3641  ;;  %v3182_v53 = vsel %vm2149_vm11, %v3150_v6, %v13574_v3  ;;  %v13579_v14 = vld [vmem:[#allocation230_spill] sm:$0xff]  ;;  %v13583_v38 = vld [vmem:[#allocation173_spill] sm:$0xff] }
 0x494   : > { %v3848_v56 = vsel %vm2050_vm8, %v3809_v29, %v10498_v54  ;;  %v13565_v54 = vld [vmem:[#allocation160_spill] sm:$0xff]  ;;  %v3148_v62 = vsel %vm2116_vm10, %v3126_v34, %v13566_v39  ;;  %v3736_v36 = vpop.permute.xlu1 %3735  ;;  %v13572_v34 = vld [vmem:[#allocation251_spill] sm:$0xff]  ;;  %v13656_v27 = vld [vmem:[#allocation318_spill] sm:$0xff] }
 0x495   : > { %v10642_v26 = vadd.f32 %v10592_v21, %v13565_v54  ;;  %v13567_v50 = vld [vmem:[#allocation128_spill] sm:$0xff]  ;;  %v3880_v52 = vsel %vm2083_vm9, %v3848_v56, %v13571_v55  ;;  %v3158_v63 = vsel %vm2116_vm10, %v3131_v4, %v13572_v34  ;;  %v13576_v56 = vld [vmem:[#allocation170_spill] sm:$0xff]  ;;  %v13584_v55 = vld [vmem:[#allocation187_spill] sm:$0xff] }
 0x496   : > { %v3178_v12 = vsel %vm2149_vm11, %v3146_v59, %v13567_v50  ;;  %v13568_v2 = vld [vmem:[#allocation236_spill] sm:$0xff]  ;;  %v13573_v59 = vld [vmem:[#allocation254_spill] sm:$0xff]  ;;  %v3912_v7 = vsel %vm2116_vm10, %v3880_v52, %v10539_v30  ;;  %v3180_v45 = vsel %vm2149_vm11, %v3148_v62, %v13576_v56  ;;  %v13581_v50 = vld [vmem:[#allocation181_spill] sm:$0xff]  ;;  %v3202_v52 = vsel %vm2182_vm12, %v10385_v57, %v13584_v55 }
 0x497   : > { %v3154_v1 = vsel %vm2116_vm10, %v3129_v44, %v13568_v2  ;;  %v3160_v46 = vsel %vm2116_vm10, %v3132_v61, %v13573_v59  ;;  %v3944_v8 = vsel %vm2149_vm11, %v3912_v7, %v3672_v41  ;;  %v3674_v30 = vpop.permute.xlu0 %3673  ;;  %v13577_v43 = vld [vmem:[#allocation164_spill] sm:$0xff]  ;;  %v3184_v61 = vsel %vm2149_vm11, %v3152_v0, %v13578_v17  ;;  %v13582_v62 = vld [vmem:[#allocation273_spill] sm:$0xff]  ;;  %v13588_v7 = vld [vmem:[#allocation130_spill] sm:$0xff] }
 0x498   : > { %v3186_v23 = vsel %vm2149_vm11, %v3154_v1, %v13575_v48  ;;  %v3976_v13 = vsel %vm2182_vm12, %v3944_v8, %v3704_v60  ;;  %v3190_v4 = vsel %vm2149_vm11, %v3158_v63, %v13577_v43  ;;  %v13580_v6 = vld [vmem:[#allocation372_spill] sm:$0xff]  ;;  %v3768_v39 = vpop.permute.xlu1 %3767  ;;  %v3188_v2 = vsel %vm2149_vm11, %v3156_v33, %v13581_v50  ;;  %v13586_v33 = vld [vmem:[#allocation275_spill] sm:$0xff]  ;;  %v13590_v8 = vld [vmem:[#allocation277_spill] sm:$0xff] }
 0x499   : > { %v3812_v41 = vsel %vm574_vm1, %v13580_v6, %v13579_v14  ;;  %v4008_v54 = vsel %vm2215_vm13, %v3976_v13, %v3736_v36  ;;  %v10686_v60 = vadd.f32 %v13582_v62, %v10592_v21  ;;  %v3192_v0 = vsel %vm2149_vm11, %v3160_v46, %v13583_v38  ;;  %v13585_v36 = vld [vmem:[#allocation274_spill] sm:$0xff]  ;;  %v13589_v3 = vld [vmem:[#allocation120_spill] sm:$0xff]  ;;  %v13591_v13 = vld [vmem:[#allocation269_spill] sm:$0xff] }
 0x49a   : > { %v3850_v1 = vsel %vm2050_vm8, %v3812_v41, %v3610_v35  ;;  %v4040_v10 = vsel %vm12770_vm15, %v4008_v54, %v3768_v39  ;;  %v10697_v34 = vadd.f32 %v10592_v21, %v13585_v36  ;;  %v10701_v63 = vadd.f32 %v13586_v33, %v10592_v21  ;;  %v13587_v35 = vld [vmem:[#allocation124_spill] sm:$0xff]  ;;  %v13592_v17 = vld [vmem:[#allocation98_spill] sm:$0xff]  ;;  %v13598_v33 = vld [vmem:[#allocation103_spill] sm:$0xff] }
 0x49b   : > { %4087 = vrot.lane.b32.xlu0 %v4040_v10, %s6851_s27  ;;  %v3206_v59 = vsel %vm2182_vm12, %v10504_v42, %v13587_v35  ;;  %v3210_v46 = vsel %vm2182_vm12, %v3178_v12, %v13588_v7  ;;  %v3204_v57 = vsel %vm2182_vm12, %v10398_v11, %v13589_v3  ;;  %v10714_v48 = vadd.f32 %v10592_v21, %v13590_v8  ;;  %v3706_v56 = vpop.permute.xlu0 %3705  ;;  %v13593_v42 = vld [vmem:[#allocation270_spill] sm:$0xff]  ;;  %v13594_v12 = vld [vmem:[#allocation223_spill] sm:$0xff]  ;;  %v13595_v11 = vld [vmem:[#allocation92_spill] sm:$0xff] }
 0x49c   : > { %v3214_v43 = vsel %vm2182_vm12, %v3182_v53, %v13591_v13  ;;  %v3208_v14 = vsel %vm2182_vm12, %v10513_v47, %v13592_v17  ;;  %v3218_v6 = vsel %vm2182_vm12, %v3186_v23, %v13593_v42  ;;  %v3882_v41 = vsel %vm2083_vm9, %v3850_v1, %v13594_v12  ;;  %v3770_v54 = vpop.permute.xlu1 %3769  ;;  %v13596_v50 = vld [vmem:[#allocation272_spill] sm:$0xff]  ;;  %v13600_v3 = vld [vmem:[#allocation287_spill] sm:$0xff]  ;;  %v13603_v12 = vld [vmem:[#allocation278_spill] sm:$0xff] }
 0x49d   : > { %v3212_v39 = vsel %vm2182_vm12, %v3180_v45, %v13595_v11  ;;  %v3222_v62 = vsel %vm2182_vm12, %v3190_v4, %v13596_v50  ;;  %v3914_v53 = vsel %vm2116_vm10, %v3882_v41, %v3642_v51  ;;  %v13597_v38 = vld [vmem:[#allocation276_spill] sm:$0xff]  ;;  %v3220_v45 = vsel %vm2182_vm12, %v3188_v2, %v13598_v33  ;;  %v13605_v11 = vld [vmem:[#allocation291_spill] sm:$0xff]  ;;  %v13607_v33 = vld [vmem:[#allocation281_spill] sm:$0xff] }
 0x49e   : > { %v3216_v47 = vsel %vm2182_vm12, %v3184_v61, %v13597_v38  ;;  %v3946_v1 = vsel %vm2149_vm11, %v3914_v53, %v3674_v30  ;;  %v13599_v35 = vld [vmem:[#allocation108_spill] sm:$0xff]  ;;  %v10744_v61 = vadd.f32 %v13600_v3, %v10592_v21  ;;  %v13602_v30 = vld [vmem:[#allocation289_spill] sm:$0xff]  ;;  %v10761_v50 = vadd.f32 %v10592_v21, %v13605_v11  ;;  %v13609_v3 = vld [vmem:[#allocation283_spill] sm:$0xff] }
 0x49f   : > { %v3224_v4 = vsel %vm2182_vm12, %v3192_v0, %v13599_v35  ;;  %v3978_v7 = vsel %vm2182_vm12, %v3946_v1, %v3706_v56  ;;  %v3738_v51 = vpop.permute.xlu0 %3737  ;;  %v13601_v8 = vld [vmem:[#allocation288_spill] sm:$0xff]  ;;  %v10752_v17 = vadd.f32 %v13602_v30, %v10592_v21  ;;  %v3234_v0 = vsel %vm2215_vm13, %v3202_v52, %v13603_v12  ;;  %v13604_v56 = vld [vmem:[#allocation279_spill] sm:$0xff]  ;;  %v13611_v30 = vld [vmem:[#allocation285_spill] sm:$0xff] }
 0x4a0   : > { %v10748_v13 = vadd.f32 %v10592_v21, %v13601_v8  ;;  %v4010_v2 = vsel %vm2215_vm13, %v3978_v7, %v3738_v51  ;;  %v3612_v42 = vpop.permute.xlu1 %3611  ;;  %v3238_v41 = vsel %vm2215_vm13, %v3206_v59, %v13604_v56  ;;  %v13606_v38 = vld [vmem:[#allocation280_spill] sm:$0xff]  ;;  %v3236_v35 = vsel %vm2215_vm13, %v3204_v57, %v13607_v33  ;;  %v13608_v7 = vld [vmem:[#allocation282_spill] sm:$0xff]  ;;  %v13613_v12 = vld [vmem:[#allocation97_spill] sm:$0xff] }
 0x4a1   : > { %v4042_v53 = vsel %vm12770_vm15, %v4010_v2, %v3770_v54  ;;  %v3242_v1 = vsel %vm2215_vm13, %v3210_v46, %v13606_v38  ;;  %v3246_v51 = vsel %vm2215_vm13, %v3214_v43, %v13608_v7  ;;  %v3240_v52 = vsel %vm2215_vm13, %v3208_v14, %v13609_v3  ;;  %v13610_v59 = vld [vmem:[#allocation284_spill] sm:$0xff]  ;;  %v13612_v2 = vld [vmem:[#allocation286_spill] sm:$0xff]  ;;  %v13630_v38 = vld [vmem:[#allocation301_spill] sm:$0xff] }
 0x4a2   : > { %4089 = vrot.lane.b32.xlu1 %v4042_v53, %s6851_s27  ;;  %v3250_v8 = vsel %vm2215_vm13, %v3218_v6, %v13610_v59  ;;  %v3244_v54 = vsel %vm2215_vm13, %v3212_v39, %v13611_v30  ;;  %v3254_v46 = vsel %vm2215_vm13, %v3222_v62, %v13612_v2  ;;  %v3248_v57 = vsel %vm2215_vm13, %v3216_v47, %v13613_v12  ;;  %v13614_v11 = vld [vmem:[#allocation290_spill] sm:$0xff]  ;;  %v13615_v39 = vld [vmem:[#allocation292_spill] sm:$0xff]  ;;  %v13616_v62 = vld [vmem:[#allocation293_spill] sm:$0xff] }
 0x4a3   : > { %v3580_v56 = vpop.permute.xlu0 %3579  ;;  %v3252_v43 = vsel %vm2215_vm13, %v3220_v45, %v13614_v11  ;;  %v3256_v7 = vsel %vm2215_vm13, %v3224_v4, %v13615_v39  ;;  %v3266_v3 = vsel %vm12770_vm15, %v3234_v0, %v13616_v62  ;;  %v13617_v47 = vld [vmem:[#allocation294_spill] sm:$0xff]  ;;  %v13618_v30 = vld [vmem:[#allocation295_spill] sm:$0xff]  ;;  %v13619_v2 = vld [vmem:[#allocation296_spill] sm:$0xff]  ;;  %v10803_v14 = vadd.f32 %v10592_v21, %v13622_v16 }
 0x4a4   : > { %v3644_v6 = vpop.permute.xlu1 %3643  ;;  %v3270_v59 = vsel %vm12770_vm15, %v3238_v41, %v13617_v47  ;;  %v3274_v45 = vsel %vm12770_vm15, %v3242_v1, %v13618_v30  ;;  %v3268_v12 = vsel %vm12770_vm15, %v3236_v35, %v13619_v2  ;;  %v13620_v11 = vld [vmem:[#allocation306_spill] sm:$0xff]  ;;  %v13624_v4 = vld [vmem:[#allocation297_spill] sm:$0xff]  ;;  %v13626_v62 = vld [vmem:[#allocation308_spill] sm:$0xff] }
 0x4a5   : > { %v10799_v31 = vadd.f32 %v13620_v11, %v10592_v21  ;;  %13623 = vst [vmem:[#allocation142_spill] sm:$0xff] %v10803_v14  ;;  %v3278_v0 = vsel %vm12770_vm15, %v3246_v51, %v13624_v4  ;;  %v13625_v39 = vld [vmem:[#allocation298_spill] sm:$0xff]  ;;  %v10811_v1 = vadd.f32 %v13626_v62, %v10592_v21  ;;  %v13628_v2 = vld [vmem:[#allocation299_spill] sm:$0xff]  ;;  %v13629_v16 = vld [vmem:[#allocation300_spill] sm:$0xff]  ;;  %v3286_v51 = vsel %vm12770_vm15, %v3254_v46, %v13630_v38 }
 0x4a6   : > { %v3272_v41 = vsel %vm12770_vm15, %v3240_v52, %v13625_v39  ;;  %v13627_v47 = vld [vmem:[#allocation310_spill] sm:$0xff]  ;;  %v3282_v11 = vsel %vm12770_vm15, %v3250_v8, %v13628_v2  ;;  %v3276_v53 = vsel %vm12770_vm15, %v3244_v54, %v13629_v16  ;;  %v13631_v4 = vld [vmem:[#allocation369_spill] sm:$0xff]  ;;  %v13634_v55 = vld [vmem:[#allocation303_spill] sm:$0xff] }
 0x4a7   : > { %13621 = vst [vmem:[#allocation172_spill] sm:$0xff] %v10799_v31  ;;  %v10815_v35 = vadd.f32 %v10592_v21, %v13627_v47  ;;  %v3582_v30 = vpop.permute.xlu0 %3581  ;;  %v3815_v52 = vsel %vm574_vm1, %v13631_v4, %v3580_v56  ;;  %v13632_v62 = vld [vmem:[#allocation105_spill] sm:$0xff]  ;;  %v13633_v33 = vld [vmem:[#allocation302_spill] sm:$0xff]  ;;  %v3288_v23 = vsel %vm12770_vm15, %v3256_v7, %v13634_v55  ;;  %v13635_v8 = vld [vmem:[#allocation304_spill] sm:$0xff] }
 0x4a8   : > { %v3676_v39 = vpop.permute.xlu1 %3675  ;;  %v3280_v10 = vsel %vm12770_vm15, %v3248_v57, %v13632_v62  ;;  %v3284_v47 = vsel %vm12770_vm15, %v3252_v43, %v13633_v33  ;;  %v3298_v2 = vsel %vm2308_vm14, %v3266_v3, %v13635_v8  ;;  %v13636_v54 = vld [vmem:[#allocation305_spill] sm:$0xff]  ;;  %v3852_v7 = vsel %vm2050_vm8, %v3815_v52, %v3612_v42  ;;  %v13639_v62 = vld [vmem:[#allocation311_spill] sm:$0xff]  ;;  %v13640_v8 = vld [vmem:[#allocation312_spill] sm:$0xff] }
 0x4a9   : > { %v3302_v16 = vsel %vm2308_vm14, %v3270_v59, %v13636_v54  ;;  %v13637_v38 = vld [vmem:[#allocation309_spill] sm:$0xff]  ;;  %v3310_v59 = vsel %vm2308_vm14, %v3278_v0, %v13639_v62  ;;  %v3304_v54 = vsel %vm2308_vm14, %v3272_v41, %v13640_v8  ;;  %v13646_v42 = vld [vmem:[#allocation314_spill] sm:$0xff]  ;;  %v13647_v0 = vld [vmem:[#allocation324_spill] sm:$0xff]  ;;  %v3331_v29 = vsel %vm3329_vm3, %v3298_v2, %v13656_v27 }
 0x4aa   : > { %v3306_v4 = vsel %vm2308_vm14, %v3274_v45, %v13637_v38  ;;  %v13638_v33 = vld [vmem:[#allocation209_spill] sm:$0xff]  ;;  %v13643_v45 = vld [vmem:[#allocation322_spill] sm:$0xff]  ;;  %v3308_v52 = vsel %vm2308_vm14, %v3276_v53, %v13646_v42  ;;  %v13653_v36 = vld [vmem:[#allocation115_spill] sm:$0xff] }
 0x4ab   : > { %v3300_v55 = vsel %vm2308_vm14, %v3268_v12, %v13638_v33  ;;  %v3614_v3 = vpop.permute.xlu0 %3613  ;;  %v13641_v46 = vld [vmem:[#allocation321_spill] sm:$0xff]  ;;  %v10854_v38 = vadd.f32 %v10592_v21, %v13643_v45  ;;  %v10862_v33 = vadd.f32 %v13647_v0, %v10592_v21  ;;  %v13649_v41 = vld [vmem:[#allocation326_spill] sm:$0xff]  ;;  %v13652_v45 = vld [vmem:[#allocation316_spill] sm:$0xff] }
 0x4ac   : > { %v10850_v56 = vadd.f32 %v13641_v46, %v10592_v21  ;;  %v3708_v57 = vpop.permute.xlu1 %3707  ;;  %v13645_v43 = vld [vmem:[#allocation313_spill] sm:$0xff]  ;;  %v10866_v62 = vadd.f32 %v10592_v21, %v13649_v41  ;;  %v13651_v46 = vld [vmem:[#allocation315_spill] sm:$0xff]  ;;  %v3312_v25 = vsel %vm2308_vm14, %v3280_v10, %v13652_v45  ;;  %v13658_v18 = vld [vmem:[#allocation320_spill] sm:$0xff] }
 0x4ad   : > { %13644 = vst [vmem:[#allocation158_spill] sm:$0xff] %v10854_v38  ;;  %v3314_v12 = vsel %vm2308_vm14, %v3282_v11, %v13645_v43  ;;  %13648 = vst [vmem:[#allocation118_spill] sm:$0xff] %v10862_v33  ;;  %v3318_v8 = vsel %vm2308_vm14, %v3286_v51, %v13651_v46  ;;  %v3316_v11 = vsel %vm2308_vm14, %v3284_v47, %v13653_v36  ;;  %v13654_v43 = vld [vmem:[#allocation233_spill] sm:$0xff]  ;;  %v13657_v41 = vld [vmem:[#allocation319_spill] sm:$0xff] }
 0x4ae   : > { %13642 = vst [vmem:[#allocation191_spill] sm:$0xff] %v10850_v56  ;;  %13650 = vst [vmem:[#allocation188_spill] sm:$0xff] %v10866_v62  ;;  %v3884_v53 = vsel %vm2083_vm9, %v3852_v7, %v13654_v43  ;;  %v13655_v42 = vld [vmem:[#allocation317_spill] sm:$0xff]  ;;  %v3335_v44 = vsel %vm3329_vm3, %v3302_v16, %v13657_v41  ;;  %v3339_v51 = vsel %vm3329_vm3, %v3306_v4, %v13658_v18  ;;  %v13659_v10 = vld [vmem:[#allocation323_spill] sm:$0xff] }
 0x4af   : > { %v3320_v0 = vsel %vm2308_vm14, %v3288_v23, %v13655_v42  ;;  %v3646_v46 = vpop.permute.xlu0 %3645  ;;  %v3333_v45 = vsel %vm3329_vm3, %v3300_v55, %v13659_v10  ;;  %v13660_v7 = vld [vmem:[#allocation325_spill] sm:$0xff]  ;;  %v13661_v16 = vld [vmem:[#allocation234_spill] sm:$0xff]  ;;  %v3916_v18 = vsel %vm2116_vm10, %v3884_v53, %v3644_v6  ;;  %v13662_v4 = vld [vmem:[#allocation327_spill] sm:$0xff] }
 0x4b0   : > { %v3343_v23 = vsel %vm3329_vm3, %v3310_v59, %v13660_v7  ;;  %v3740_v43 = vpop.permute.xlu1 %3739  ;;  %v3337_v42 = vsel %vm3329_vm3, %v3304_v54, %v13661_v16  ;;  %v3347_v55 = vsel %vm3329_vm3, %v3314_v12, %v13662_v4  ;;  %v13663_v41 = vld [vmem:[#allocation249_spill] sm:$0xff]  ;;  %v13664_v36 = vld [vmem:[#allocation328_spill] sm:$0xff]  ;;  %v3948_v59 = vsel %vm2149_vm11, %v3916_v18, %v3676_v39  ;;  %v13666_v2 = vld [vmem:[#allocation330_spill] sm:$0xff] }
 0x4b1   : > { %v3341_v10 = vsel %vm3329_vm3, %v3308_v52, %v13663_v41  ;;  %v3351_v47 = vsel %vm3329_vm3, %v3318_v8, %v13664_v36  ;;  %v13665_v7 = vld [vmem:[#allocation329_spill] sm:$0xff]  ;;  %v3349_v19 = vsel %vm3329_vm3, %v3316_v11, %v13666_v2  ;;  %v13667_v54 = vld [vmem:[#allocation331_spill] sm:$0xff]  ;;  %v3980_v53 = vsel %vm2182_vm12, %v3948_v59, %v3708_v57  ;;  %v13668_v16 = vld [vmem:[#allocation332_spill] sm:$0xff] }
 0x4b2   : > { %v3345_v27 = vsel %vm3329_vm3, %v3312_v25, %v13665_v7  ;;  %v3353_v6 = vsel %vm3329_vm3, %v3320_v0, %v13667_v54  ;;  %v3364_v52 = vsel %vm3362_vm6, %v3331_v29, %v13668_v16  ;;  %v13669_v4 = vld [vmem:[#allocation256_spill] sm:$0xff]  ;;  %v13671_v39 = vld [vmem:[#allocation374_spill] sm:$0xff]  ;;  %v4012_v25 = vsel %vm2215_vm13, %v3980_v53, %v3740_v43  ;;  %v13674_v57 = vld [vmem:[#allocation257_spill] sm:$0xff] }
 0x4b3   : > { %v3678_v12 = vpop.permute.xlu0 %3677  ;;  %v10913_v8 = vadd.f32 %v13669_v4, %v10592_v21  ;;  %v3818_v36 = vsel %vm574_vm1, %v13671_v39, %v3582_v30  ;;  %v13672_v11 = vld [vmem:[#allocation178_spill] sm:$0xff]  ;;  %v10924_v0 = vadd.f32 %v13674_v57, %v10592_v21  ;;  %v13676_v59 = vld [vmem:[#allocation333_spill] sm:$0xff]  ;;  %v13679_v16 = vld [vmem:[#allocation255_spill] sm:$0xff] }
 0x4b4   : > { %v3772_v18 = vpop.permute.xlu1 %3771  ;;  %v10920_v2 = vadd.f32 %v10592_v21, %v13672_v11  ;;  %v3854_v29 = vsel %vm2050_vm8, %v3818_v36, %v3614_v3  ;;  %v3368_v7 = vsel %vm3362_vm6, %v3335_v44, %v13676_v59  ;;  %v13677_v54 = vld [vmem:[#allocation334_spill] sm:$0xff]  ;;  %v3376_v4 = vsel %vm3362_vm6, %v3343_v23, %v13679_v16  ;;  %v13686_v23 = vld [vmem:[#allocation261_spill] sm:$0xff]  ;;  %vm13724_vm14 = vmmov %vm13720_vm0 }
 0x4b5   : > { %13670 = vst [vmem:[#allocation156_spill] sm:$0xff] %v10913_v8  ;;  %13675 = vst [vmem:[#allocation20_spill] sm:$0xff] %v10924_v0  ;;  %v4044_v41 = vsel %vm12770_vm15, %v4012_v25, %v3772_v18  ;;  %v3372_v30 = vsel %vm3362_vm6, %v3339_v51, %v13677_v54  ;;  %v13678_v43 = vld [vmem:[#allocation258_spill] sm:$0xff]  ;;  %v13682_v25 = vld [vmem:[#allocation259_spill] sm:$0xff] }
 0x4b6   : > { %13673 = vst [vmem:[#allocation116_spill] sm:$0xff] %v10920_v2  ;;  %v3366_v53 = vsel %vm3362_vm6, %v3333_v45, %v13678_v43  ;;  %4091 = vrot.lane.b32.xlu0 %v4044_v41, %s6851_s27  ;;  %v13680_v39 = vld [vmem:[#allocation110_spill] sm:$0xff]  ;;  %v3374_v44 = vsel %vm3362_vm6, %v3341_v10, %v13682_v25  ;;  %v13683_v18 = vld [vmem:[#allocation264_spill] sm:$0xff]  ;;  %v13685_v45 = vld [vmem:[#allocation101_spill] sm:$0xff]  ;;  %v3378_v41 = vsel %vm3362_vm6, %v3345_v27, %v13686_v23 }
 0x4b7   : > { %v3370_v11 = vsel %vm3362_vm6, %v3337_v42, %v13680_v39  ;;  %v13681_v3 = vld [vmem:[#allocation266_spill] sm:$0xff]  ;;  %v10945_v51 = vadd.f32 %v10592_v21, %v13683_v18  ;;  %v3710_v57 = vpop.permute.xlu0 %3709  ;;  %v3384_v59 = vsel %vm3362_vm6, %v3351_v47, %v13685_v45  ;;  %v13687_v42 = vld [vmem:[#allocation240_spill] sm:$0xff]  ;;  %v13690_v47 = vld [vmem:[#allocation265_spill] sm:$0xff] }
 0x4b8   : > { %v3380_v36 = vsel %vm3362_vm6, %v3347_v55, %v13681_v3  ;;  %v3886_v43 = vsel %vm2083_vm9, %v3854_v29, %v13687_v42  ;;  %v3774_v55 = vpop.permute.xlu1 %3773  ;;  %v13688_v39 = vld [vmem:[#allocation106_spill] sm:$0xff]  ;;  %v10963_v18 = vadd.f32 %v10592_v21, %v13690_v47  ;;  %v13692_v27 = vld [vmem:[#allocation109_spill] sm:$0xff]  ;;  %v13704_v54 = vld [vmem:[#allocation268_spill] sm:$0xff] }
 0x4b9   : > { %13684 = vst [vmem:[#allocation176_spill] sm:$0xff] %v10945_v51  ;;  %v10958_v3 = vadd.f32 %v13688_v39, %v10592_v21  ;;  %v3918_v25 = vsel %vm2116_vm10, %v3886_v43, %v3646_v46  ;;  %v10967_v45 = vadd.f32 %v13692_v27, %v10592_v21  ;;  %v13694_v29 = vld [vmem:[#allocation121_spill] sm:$0xff]  ;;  %v13696_v39 = vld [vmem:[#allocation260_spill] sm:$0xff]  ;;  %v13697_v46 = vld [vmem:[#allocation135_spill] sm:$0xff] }
 0x4ba   : > { %13691 = vst [vmem:[#allocation193_spill] sm:$0xff] %v10963_v18  ;;  %v10971_v23 = vadd.f32 %v10592_v21, %v13694_v29  ;;  %v3950_v42 = vsel %vm2149_vm11, %v3918_v25, %v3678_v12  ;;  %v3382_v16 = vsel %vm3362_vm6, %v3349_v19, %v13696_v39  ;;  %v10979_v43 = vadd.f32 %v13697_v46, %v10592_v21  ;;  %v13699_v27 = vld [vmem:[#allocation184_spill] sm:$0xff]  ;;  %v13700_v29 = vld [vmem:[#allocation335_spill] sm:$0xff]  ;;  %v13702_v12 = vld [vmem:[#allocation337_spill] sm:$0xff] }
 0x4bb   : > { %13689 = vst [vmem:[#allocation194_spill] sm:$0xff] %v10958_v3  ;;  %13693 = vst [vmem:[#allocation207_spill] sm:$0xff] %v10967_v45  ;;  %v3982_v47 = vsel %vm2182_vm12, %v3950_v42, %v3710_v57  ;;  %v3742_v10 = vpop.permute.xlu0 %3741  ;;  %v3386_v8 = vsel %vm3362_vm6, %v3353_v6, %v13699_v27  ;;  %v10986_v58 = vadd.f32 %v13700_v29, %v10592_v21  ;;  %v13705_v42 = vld [vmem:[#allocation262_spill] sm:$0xff]  ;;  %v13706_v2 = vld [vmem:[#allocation267_spill] sm:$0xff] }
 0x4bc   : > { %13695 = vst [vmem:[#allocation203_spill] sm:$0xff] %v10971_v23  ;;  %13698 = vst [vmem:[#allocation114_spill] sm:$0xff] %v10979_v43  ;;  %v10990_v25 = vadd.f32 %v10592_v21, %v13702_v12  ;;  %v4014_v19 = vsel %vm2215_vm13, %v3982_v47, %v3742_v10  ;;  %v3616_v39 = vpop.permute.xlu1 %3615  ;;  %v3397_v46 = vsel %vm3395_vm7, %v3364_v52, %v13704_v54  ;;  %v13707_v47 = vld [vmem:[#allocation112_spill] sm:$0xff]  ;;  %v13708_v57 = vld [vmem:[#allocation138_spill] sm:$0xff] }
 0x4bd   : > { %13701 = vst [vmem:[#allocation200_spill] sm:$0xff] %v10986_v58  ;;  %v3401_v49 = vsel %vm3395_vm7, %v3368_v7, %v13705_v42  ;;  %v4046_v6 = vsel %vm12770_vm15, %v4014_v19, %v3774_v55  ;;  %v3405_v10 = vsel %vm3395_vm7, %v3372_v30, %v13706_v2  ;;  %v3399_v52 = vsel %vm3395_vm7, %v3366_v53, %v13707_v47  ;;  %v13710_v55 = vld [vmem:[#allocation119_spill] sm:$0xff]  ;;  %v13711_v29 = vld [vmem:[#allocation336_spill] sm:$0xff]  ;;  %v13713_v54 = vld [vmem:[#allocation93_spill] sm:$0xff] }
 0x4be   : > { %13703 = vst [vmem:[#allocation217_spill] sm:$0xff] %v10990_v25  ;;  %4093 = vrot.lane.b32.xlu1 %v4046_v6, %s6851_s27  ;;  %v11010_v7 = vadd.f32 %v10592_v21, %v13708_v57  ;;  %v3409_v19 = vsel %vm3395_vm7, %v3376_v4, %v13710_v55  ;;  %v3403_v2 = vsel %vm3395_vm7, %v3370_v11, %v13711_v29  ;;  %v13712_v6 = vld [vmem:[#allocation338_spill] sm:$0xff]  ;;  %v13714_v21 = vld [vmem:[#allocation339_spill] sm:$0xff]  ;;  %v13715_v43 = vld [vmem:[#allocation340_spill] sm:$0xff] }
 0x4bf   : > { %v3584_v42 = vpop.permute.xlu0 %3583  ;;  %v3413_v53 = vsel %vm3395_vm7, %v3380_v36, %v13712_v6  ;;  %v3407_v12 = vsel %vm3395_vm7, %v3374_v44, %v13713_v54  ;;  %v3417_v57 = vsel %vm3395_vm7, %v3384_v59, %v13714_v21  ;;  %v3411_v4 = vsel %vm3395_vm7, %v3378_v41, %v13715_v43  ;;  %v13716_v55 = vld [vmem:[#allocation371_spill] sm:$0xff]  ;;  %v13718_v29 = vld [vmem:[#allocation169_spill] sm:$0xff]  ;;  %v13725_v21 = vld [vmem:[#allocation344_spill] sm:$0xff] }
 0x4c0   : > { %13709 = vst [vmem:[#allocation127_spill] sm:$0xff] %v11010_v7  ;;  %v3648_v47 = vpop.permute.xlu1 %3647  ;;  %v3821_v27 = vsel %vm574_vm1, %v13716_v55, %v3584_v42  ;;  %v13717_v58 = vld [vmem:[#allocation123_spill] sm:$0xff]  ;;  %v3419_v30 = vsel %vm3395_vm7, %v3386_v8, %v13718_v29  ;;  %v13719_v36 = vld [vmem:[#allocation341_spill] sm:$0xff]  ;;  %v13721_v7 = vld [vmem:[#allocation342_spill] sm:$0xff] }
 0x4c1   : > { %v3415_v11 = vsel %vm3395_vm7, %v3382_v16, %v13717_v58  ;;  %v3430_v6 = vsel %vm13720_vm0, %v3397_v46, %v13719_v36  ;;  %v3434_v44 = vsel %vm13722_vm2, %v3401_v49, %v13721_v7  ;;  %v13723_v54 = vld [vmem:[#allocation343_spill] sm:$0xff]  ;;  %vm13726_vm3 = vmmov %vm13720_vm0  ;;  %v13727_v43 = vld [vmem:[#allocation345_spill] sm:$0xff] }
 0x4c2   : > { %v3438_v59 = vsel %vm13724_vm14, %v3405_v10, %v13723_v54  ;;  %v3432_v41 = vsel %vm13726_vm3, %v3399_v52, %v13725_v21  ;;  %vm13728_vm6 = vmmov %vm13720_vm0  ;;  %v13729_v55 = vld [vmem:[#allocation242_spill] sm:$0xff]  ;;  %v13731_v8 = vld [vmem:[#allocation111_spill] sm:$0xff]  ;;  %v3856_v10 = vsel %vm2050_vm8, %v3821_v27, %v3616_v39 }
 0x4c3   : > { %v3442_v42 = vsel %vm13728_vm6, %v3409_v19, %v13727_v43  ;;  %vm13730_vm15 = vmmov %vm13720_vm0  ;;  %v3586_v16 = vpop.permute.xlu0 %3585  ;;  %v13733_v46 = vld [vmem:[#allocation100_spill] sm:$0xff]  ;;  %v13734_v49 = vld [vmem:[#allocation133_spill] sm:$0xff]  ;;  %vm13743_vm6 = vcmask 457728  }
 0x4c4   : > { %v3436_v58 = vsel %vm13730_vm15, %v3403_v2, %v13729_v55  ;;  %vm13732_vm7 = vmmov %vm13720_vm0  ;;  %v3440_v36 = vsel %vm13720_vm0, %v3407_v12, %v13733_v46  ;;  %v3680_v54 = vpop.permute.xlu1 %3679  ;;  %v13736_v52 = vld [vmem:[#allocation3_spill] sm:$0xff]  ;;  %v13738_v19 = vld [vmem:[#allocation168_spill] sm:$0xff] }
 0x4c5   : > { %v3446_v29 = vsel %vm13732_vm7, %v3413_v53, %v13731_v8  ;;  %vm13735_vm2 = vmmov %vm13720_vm0  ;;  %v13740_v2 = vld [vmem:[#allocation117_spill] sm:$0xff]  ;;  %v13742_v3 = vld [vmem:[#allocation199_spill] sm:$0xff] }
 0x4c6   : > { %v3450_v7 = vsel %vm13735_vm2, %v3417_v57, %v13734_v49  ;;  %vm13737_vm14 = vmmov %vm13720_vm0  ;;  %v3463_v53 = vsel %vm13743_vm6, %v3430_v6, %v13742_v3  ;;  %v13744_v8 = vld [vmem:[#allocation157_spill] sm:$0xff]  ;;  %v13746_v46 = vld [vmem:[#allocation186_spill] sm:$0xff] }
 0x4c7   : > { %v3444_v21 = vsel %vm13737_vm14, %v3411_v4, %v13736_v52  ;;  %vm13739_vm3 = vmmov %vm13720_vm0  ;;  %v13748_v39 = vld [vmem:[#allocation205_spill] sm:$0xff]  ;;  %v13752_v52 = vld [vmem:[#allocation346_spill] sm:$0xff] }
 0x4c8   : > { %v3448_v43 = vsel %vm13739_vm3, %v3415_v11, %v13738_v19  ;;  %vm13741_vm15 = vmmov %vm13720_vm0  ;;  %v13750_v49 = vld [vmem:[#allocation221_spill] sm:$0xff]  ;;  %v13754_v19 = vld [vmem:[#allocation347_spill] sm:$0xff] }
 0x4c9   : > { %v3452_v55 = vsel %vm13741_vm15, %v3419_v30, %v13740_v2  ;;  %vm13745_vm7 = vmmov %vm13743_vm6  ;;  %v13756_v2 = vld [vmem:[#allocation348_spill] sm:$0xff]  ;;  %v13758_v6 = vld [vmem:[#allocation245_spill] sm:$0xff] }
 0x4ca   : > { %v3467_v12 = vsel %vm13745_vm7, %v3434_v44, %v13744_v8  ;;  %vm13747_vm0 = vmmov %vm13743_vm6  ;;  %v3888_v44 = vsel %vm2083_vm9, %v3856_v10, %v13758_v6  ;;  %v3618_v8 = vpop.permute.xlu0 %3617  ;;  %v13768_v6 = vld [vmem:[#allocation354_spill] sm:$0xff]  ;;  %v13797_v18 = vld [vmem:[#allocation36_spill] sm:$0xff] }
 0x4cb   : > { %v3471_v57 = vsel %vm13747_vm0, %v3438_v59, %v13746_v46  ;;  %vm13749_vm2 = vmmov %vm13747_vm0  ;;  %v13759_v59 = vld [vmem:[#allocation349_spill] sm:$0xff]  ;;  %v13800_v0 = vld [vmem:[#allocation24_spill] sm:$0xff] }
 0x4cc   : > { %v3465_v27 = vsel %vm13749_vm2, %v3432_v41, %v13748_v39  ;;  %vm13751_vm14 = vmmov %vm13747_vm0  ;;  %v13761_v41 = vld [vmem:[#allocation350_spill] sm:$0xff]  ;;  %v13799_v23 = vld [vmem:[#allocation25_spill] sm:$0xff] }
 0x4cd   : > { %v3475_v4 = vsel %vm13751_vm14, %v3442_v42, %v13750_v49  ;;  %vm13753_vm3 = vmmov %vm13747_vm0  ;;  %v3477_v39 = vsel %vm13747_vm0, %v3444_v21, %v13761_v41  ;;  %v13762_v42 = vld [vmem:[#allocation351_spill] sm:$0xff]  ;;  %v13770_v41 = vld [vmem:[#allocation356_spill] sm:$0xff]  ;;  %v5048_v56 = vmax.f32 %v13800_v0, %v13799_v23 }
 0x4ce   : > { %v3469_v11 = vsel %vm13753_vm3, %v3436_v58, %v13752_v52  ;;  %vm13755_vm15 = vmmov %vm13747_vm0  ;;  %v13764_v58 = vld [vmem:[#allocation375_spill] sm:$0xff]  ;;  %v13804_v51 = vld [vmem:[#allocation29_spill] sm:$0xff] }
 0x4cf   : > { %v3479_v30 = vsel %vm13755_vm15, %v3446_v29, %v13754_v19  ;;  %vm13757_vm6 = vmmov %vm13747_vm0  ;;  %v3824_v52 = vsel %vm574_vm1, %v13764_v58, %v3586_v16  ;;  %v3712_v29 = vpop.permute.xlu1 %3711  ;;  %v13765_v19 = vld [vmem:[#allocation352_spill] sm:$0xff]  ;;  %v11100_v16 = vsel %vm3494_vm4, %v3465_v27, %v13770_v41  ;;  %v13772_v58 = vld [vmem:[#allocation165_spill] sm:$0xff]  ;;  %vm13801_vm15 = vcmask 261120  }
 0x4d0   : > { %v3473_v3 = vsel %vm13757_vm6, %v3440_v36, %v13756_v2  ;;  %vm13760_vm7 = vmmov %vm13747_vm0  ;;  %v13767_v2 = vld [vmem:[#allocation353_spill] sm:$0xff]  ;;  %v3858_v21 = vsel %vm2050_vm8, %v3824_v52, %v3618_v8  ;;  %v13805_v38 = vld [vmem:[#allocation28_spill] sm:$0xff] }
 0x4d1   : > { %v3483_v46 = vsel %vm13760_vm7, %v3450_v7, %v13759_v59  ;;  %vm13763_vm2 = vmmov %vm13747_vm0  ;;  %v11087_v10 = vsel %vm3494_vm4, %v3463_v53, %v13767_v2  ;;  %v11091_v7 = vsel %vm3494_vm4, %v3467_v12, %v13768_v6  ;;  %v13769_v59 = vld [vmem:[#allocation355_spill] sm:$0xff]  ;;  %v3920_v53 = vsel %vm2116_vm10, %v3888_v44, %v3648_v47  ;;  %v3650_v2 = vpop.permute.xlu0 %3649  ;;  %v13775_v6 = vld [vmem:[#allocation360_spill] sm:$0xff] }
 0x4d2   : > { %v3481_v49 = vsel %vm13763_vm2, %v3448_v43, %v13762_v42  ;;  %vm13766_vm14 = vmmov %vm13747_vm0  ;;  %v11096_v43 = vsel %vm3494_vm4, %v3471_v57, %v13769_v59  ;;  %v13771_v42 = vld [vmem:[#allocation357_spill] sm:$0xff]  ;;  %v11109_v12 = vsel %vm3494_vm4, %v3469_v11, %v13772_v58  ;;  %v13774_v57 = vld [vmem:[#allocation359_spill] sm:$0xff]  ;;  %v3952_v27 = vsel %vm2149_vm11, %v3920_v53, %v3680_v54 }
 0x4d3   : > { %v3485_v36 = vsel %vm13766_vm14, %v3452_v55, %v13765_v19  ;;  %v11104_v55 = vsel %vm3494_vm4, %v3475_v4, %v13771_v42  ;;  %v13773_v19 = vld [vmem:[#allocation358_spill] sm:$0xff]  ;;  %v11117_v52 = vsel %vm3494_vm4, %v3473_v3, %v13774_v57  ;;  %v11122_v4 = vsel %vm3494_vm4, %v3483_v46, %v13775_v6  ;;  %v13777_v47 = vld [vmem:[#allocation361_spill] sm:$0xff]  ;;  %v13778_v59 = vld [vmem:[#allocation271_spill] sm:$0xff]  ;;  %v3744_v41 = vpop.permute.xlu1 %3743 }
 0x4d4   : > { %v11113_v8 = vsel %vm3494_vm4, %v3479_v30, %v13773_v19  ;;  %13776 = vst [vmem:[#allocation378_spill] sm:$0xff] %v11122_v4  ;;  %v11126_v44 = vsel %vm3494_vm4, %v3477_v39, %v13777_v47  ;;  %v3984_v11 = vsel %vm2182_vm12, %v3952_v27, %v3712_v29  ;;  %v3890_v30 = vsel %vm2083_vm9, %v3858_v21, %v13778_v59  ;;  %v13779_v42 = vld [vmem:[#allocation363_spill] sm:$0xff]  ;;  %v13781_v54 = vld [vmem:[#allocation365_spill] sm:$0xff]  ;;  %v13783_v39 = vld [vmem:[#allocation26_spill] sm:$0xff] }
 0x4d5   : > { %v11133_v3 = vsel %vm3494_vm4, %v3481_v49, %v13779_v42  ;;  %v11137_v53 = vsel %vm3494_vm4, %v3485_v36, %v13781_v54  ;;  %v3922_v46 = vsel %vm2116_vm10, %v3890_v30, %v3650_v2  ;;  %v4016_v58 = vsel %vm2215_vm13, %v3984_v11, %v3744_v41  ;;  %v13785_v57 = vld [vmem:[#allocation27_spill] sm:$0xff]  ;;  %v13789_v47 = vld [vmem:[#allocation40_spill] sm:$0xff]  ;;  %v13790_v59 = vld [vmem:[#allocation37_spill] sm:$0xff]  ;;  %v3682_v11 = vpop.permute.xlu0 %3681 }
 0x4d6   : > { %13780 = vst [vmem:[#allocation370_spill] sm:$0xff] %v11133_v3  ;;  %13782 = vst [vmem:[#allocation237_spill] sm:$0xff] %v11137_v53  ;;  %v13784_v19 = vrot.slane %v13783_v39, 1  ;;  %v13786_v29 = vrot.slane %v13785_v57, 1  ;;  %v13787_v21 = vld [vmem:[#allocation35_spill] sm:$0xff]  ;;  %v13791_v42 = vrot.slane %v13790_v59, 1  ;;  %v3954_v25 = vsel %vm2149_vm11, %v3922_v46, %v3682_v11 }
 0x4d7   : > { %v4768_v2 = vrot.slane %v13783_v39, 2  ;;  %v13792_v54 = vld [vmem:[#allocation34_spill] sm:$0xff]  ;;  %v3776_v4 = vpop.permute.xlu1 %3775  ;;  %vm13796_vm4 = vcmask 1045504   ;;  %v13803_v46 = vld [vmem:[#allocation32_spill] sm:$0xff]  ;;  %vm13819_vm7 = vmmov %vm13801_vm15  ;;  %vm4103_vm14 = vcmask 523264  }
 0x4d8   : > { %v4593_v27 = vsel %vm1500_vm5, %v13786_v29, %v13784_v19  ;;  %v13788_v6 = vmov %v13784_v19  ;;  %v11154_v36 = vsel %vm1500_vm5, %v13791_v42, %v13789_v47  ;;  %v4937_v19 = vmax.f32 %v13792_v54, %v13783_v39  ;;  %v13793_v29 = vld [vmem:[#allocation30_spill] sm:$0xff]  ;;  %vm13798_vm3 = vmmov %vm13796_vm4 }
 0x4d9   : > { %v4595_v49 = vsel %vm1500_vm5, %v13788_v6, %v13787_v21  ;;  %v4715_v30 = vmax.f32 %v13785_v57, %v4593_v27  ;;  %v13794_v53 = vmax.f32 %v13793_v29, %v13785_v57  ;;  %v13795_v47 = vrot.slane %v13785_v57, 2  ;;  %v3714_v33 = vpop.permute.xlu0 %3713  ;;  %v13806_v31 = vld [vmem:[#allocation38_spill] sm:$0xff]  ;;  %vm13809_vm6 = vmmov %vm13798_vm3 }
 0x4da   : > { %v4716_v41 = vmax.f32 %v13783_v39, %v4595_v49  ;;  %v4771_v45 = vsel %vm13798_vm3, %v4768_v2, %v13797_v18  ;;  %v4048_v37 = vsel %vm13801_vm15, %v4016_v58, %v3776_v4  ;;  %v4996_v29 = vmax.f32 %v4937_v19, %v4595_v49  ;;  %v13807_v58 = vld [vmem:[#allocation41_spill] sm:$0xff]  ;;  %vm13821_vm0 = vmmov %vm13798_vm3 }
 0x4db   : > { %v4995_v6 = vmax.f32 %v13794_v53, %v4593_v27  ;;  %v4769_v42 = vsel %vm13796_vm4, %v13795_v47, %v4768_v2  ;;  %4095 = vrot.lane.b32.xlu0 %v4048_v37, %s6851_s27  ;;  %v13802_v53 = vld [vmem:[#allocation31_spill] sm:$0xff]  ;;  %v5050_v47 = vmax.f32 %v13805_v38, %v13804_v51  ;;  %v5096_v2 = vmax.f32 %v5048_v56, %v13785_v57  ;;  %v3778_v19 = vpop.permute.xlu1 %3777  ;;  %v13810_v51 = vld [vmem:[#allocation33_spill] sm:$0xff]  ;;  %vm13823_vm2 = vmmov %vm13821_vm0 }
 0x4dc   : > { %v4891_v54 = vmax.f32 %v4715_v30, %v4769_v42  ;;  %v11173_v20 = vmax.f32 %v4716_v41, %v4771_v45  ;;  %v5049_v11 = vmax.f32 %v13803_v46, %v13802_v53  ;;  %v5052_v4 = vmax.f32 %v4996_v29, %v4771_v45  ;;  %v13813_v53 = vld [vmem:[#allocation43_spill] sm:$0xff]  ;;  %vm13839_vm4 = vmmov %vm13821_vm0 }
 0x4dd   : > { %v5051_v40 = vmax.f32 %v4995_v6, %v4769_v42  ;;  %v13808_v30 = vrot.slane %v13790_v59, 2  ;;  %v3986_v41 = vsel %vm2182_vm12, %v3954_v25, %v3714_v33  ;;  %v5098_v56 = vmax.f32 %v5050_v47, %v13810_v51  ;;  %v3746_v47 = vpop.permute.xlu0 %3745  ;;  %vm13841_vm3 = vmmov %vm13821_vm0 }
 0x4de   : > { %v4939_v0 = vmax.f32 %v4891_v54, %v13806_v31  ;;  %v4940_v23 = vmax.f32 %v11173_v20, %v13790_v59  ;;  %v5097_v38 = vmax.f32 %v5049_v11, %v13783_v39  ;;  %v5100_v6 = vmax.f32 %v5052_v4, %v13790_v59  ;;  %v13811_v20 = vld [vmem:[#allocation387_spill] sm:$0xff]  ;;  %vm13853_vm15 = vmmov %vm13821_vm0 }
 0x4df   : > { %v11188_v37 = vsel %vm13809_vm6, %v13808_v30, %v13807_v58  ;;  %v5099_v57 = vmax.f32 %v5051_v40, %v13806_v31  ;;  %v5155_v54 = vmax.f32 %v5096_v2, %v4593_v27  ;;  %v13812_v29 = vrot.slane %v13811_v20, 1  ;;  %v13815_v30 = vld [vmem:[#allocation48_spill] sm:$0xff]  ;;  %v13817_v40 = vld [vmem:[#allocation39_spill] sm:$0xff]  ;;  %vm13855_vm6 = vmmov %vm13821_vm0 }
 0x4e0   : > { %v13814_v46 = vrot.slane %v13813_v53, 1  ;;  %v5156_v39 = vmax.f32 %v5097_v38, %v4595_v49  ;;  %v5157_v11 = vmax.f32 %v5098_v56, %v13787_v21  ;;  %v4719_v27 = vmax.f32 %v13790_v59, %v11154_v36  ;;  %v3620_v49 = vpop.permute.xlu1 %3619  ;;  %v13818_v56 = vld [vmem:[#allocation42_spill] sm:$0xff] }
 0x4e1   : > { %v13816_v33 = vmov %v13812_v29  ;;  %v5158_v31 = vmax.f32 %v5099_v57, %v13817_v40  ;;  %v5159_v2 = vmax.f32 %v5100_v6, %v11154_v36  ;;  %v5211_v4 = vmax.f32 %v5155_v54, %v4769_v42 }
 0x4e2   : > { %v11200_v3 = vsel %vm1500_vm5, %v13814_v46, %v13812_v29  ;;  %v11206_v25 = vsel %vm1500_vm5, %v13816_v33, %v13815_v30  ;;  %v4018_v46 = vsel %vm2215_vm13, %v3986_v41, %v3746_v47  ;;  %v5212_v38 = vmax.f32 %v5156_v39, %v4771_v45  ;;  %v3588_v47 = vpop.permute.xlu0 %3587 }
 0x4e3   : > { %v4721_v51 = vmax.f32 %v13813_v53, %v11200_v3  ;;  %v4722_v29 = vmax.f32 %v13811_v20, %v11206_v25  ;;  %v5213_v21 = vmax.f32 %v5157_v11, %v13797_v18  ;;  %v5214_v57 = vmax.f32 %v5158_v31, %v13818_v56 }
 0x4e4   : > { %v4050_v59 = vsel %vm13819_vm7, %v4018_v46, %v3778_v19  ;;  %v5307_v33 = vrot.slane %v5211_v4, 1  ;;  %v5215_v6 = vmax.f32 %v5159_v2, %v11188_v37  ;;  %v4778_v42 = vrot.slane %v13811_v20, 2  ;;  %v13822_v19 = vld [vmem:[#allocation50_spill] sm:$0xff]  ;;  %v13824_v2 = vld [vmem:[#allocation373_spill] sm:$0xff]  ;;  %v3652_v46 = vpop.permute.xlu1 %3651 }
 0x4e5   : > { %4097 = vrot.lane.b32.xlu1 %v4050_v59, %s6851_s27  ;;  %v5308_v54 = vrot.slane %v5212_v38, 1  ;;  %v5310_v32 = vrot.slane %v5213_v21, 1  ;;  %v5312_v62 = vrot.slane %v5214_v57, 1  ;;  %v4895_v41 = vmax.f32 %v4719_v27, %v11188_v37 }
 0x4e6   : > { %v5313_v45 = vrot.slane %v5215_v6, 1  ;;  %v13820_v18 = vrot.slane %v13813_v53, 2  ;;  %v11232_v11 = vsel %vm13823_vm2, %v4778_v42, %v13822_v19  ;;  %v4998_v31 = vmax.f32 %v4939_v0, %v13817_v40  ;;  %v13827_v0 = vld [vmem:[#allocation263_spill] sm:$0xff]  ;;  %vm13883_vm2 = vmmov %vm13821_vm0 }
 0x4e7   : > { %v3827_v4 = vsel %vm574_vm1, %v13824_v2, %v3588_v47  ;;  %v5309_v38 = vsel %vm1500_vm5, %v5307_v33, %v5308_v54  ;;  %v5311_v27 = vsel %vm1500_vm5, %v5308_v54, %v5310_v32  ;;  %v4898_v2 = vmax.f32 %v4722_v29, %v11232_v11 }
 0x4e8   : > { %v11228_v39 = vsel %vm13821_vm0, %v13820_v18, %v4778_v42  ;;  %v3860_v57 = vsel %vm2050_vm8, %v3827_v4, %v3620_v49  ;;  %v5419_v59 = vpack.c.bf16 %v5311_v27, %v5309_v38  ;;  %v5314_v6 = vsel %vm1500_vm5, %v5312_v62, %v5313_v45  ;;  %v13825_v18 = vld [vmem:[#allocation47_spill] sm:$0xff]  ;;  %v13828_v49 = vld [vmem:[#allocation2_spill] sm:$0xff]  ;;  %v13829_v4 = vld [vmem:[#allocation44_spill] sm:$0xff]  ;;  %v6739_v29 = vpop.permute.xlu1 %6738 }
 0x4e9   : > { %v4897_v21 = vmax.f32 %v4721_v51, %v11228_v39  ;;  %v13826_v42 = vrot.slane %v13825_v18, 1  ;;  %v3892_v40 = vsel %vm2083_vm9, %v3860_v57, %v13827_v0  ;;  %v4943_v33 = vmax.f32 %v4895_v41, %v13811_v20  ;;  %v3590_v51 = vpop.permute.xlu0 %3589  ;;  %v13831_v27 = vld [vmem:[#allocation376_spill] sm:$0xff]  ;;  %v13832_v41 = vld [vmem:[#allocation21_spill] sm:$0xff] }
 0x4ea   : > { %v3924_v32 = vsel %vm2116_vm10, %v3892_v40, %v3652_v46  ;;  %6665 = vmatprep.mubr.msk.bf16.mxu0 %vm574_vm1, %v5419_v59  ;;  %v4999_v62 = vmax.f32 %v4940_v23, %v11154_v36  ;;  %v4946_v46 = vmax.f32 %v4898_v2, %v13832_v41  ;;  %v5054_v59 = vmax.f32 %v4998_v31, %v13818_v56  ;;  %v13833_v23 = vld [vmem:[#allocation45_spill] sm:$0xff] }
 0x4eb   : > { %v5316_v14 = vsel %vm1500_vm5, %v5313_v45, %v13826_v42  ;;  %v4945_v54 = vmax.f32 %v4897_v21, %v13828_v49  ;;  %v13830_v45 = vmax.f32 %v13829_v4, %v13813_v53  ;;  %v5002_v57 = vmax.f32 %v4943_v33, %v11206_v25 }
 0x4ec   : > { %v5420_v47 = vpack.c.bf16 %v5316_v14, %v5314_v6  ;;  %v3830_v14 = vsel %vm574_vm1, %v13831_v27, %v3590_v51  ;;  %v6741_v21 = vunpack.i.h.bf16 %v6739_v29  ;;  %v6740_v6 = vunpack.i.l.bf16 %v6739_v29  ;;  %v13837_v27 = vld [vmem:[#allocation390_spill] sm:$0xff] }
 0x4ed   : > { %v5001_v38 = vmax.f32 %v13830_v45, %v11200_v3  ;;  %v5055_v36 = vmax.f32 %v4999_v62, %v11188_v37  ;;  %v5056_v18 = vmax.f32 %v13833_v23, %v13807_v58  ;;  %v5058_v0 = vmax.f32 %v5002_v57, %v11232_v11  ;;  %v3622_v51 = vpop.permute.xlu0 %3621  ;;  %v13836_v37 = vld [vmem:[#allocation46_spill] sm:$0xff]  ;;  %v3718_v45 = vpop.permute.xlu1 %3717 }
 0x4ee   : > { %6666 = vmatmul.mubr.msk.bf16.vlgmr.msra.gmra.mrb[48].mxu0 %vm574_vm1, %v5420_v47  ;;  %v5102_v40 = vmax.f32 %v5054_v59, %v13813_v53  ;;  %v13834_v47 = vld [vmem:[#allocation52_spill] sm:$0xff]  ;;  %v13835_v2 = vrot.slane %v13832_v41, 1  ;;  %v3956_v56 = vsel %vm2149_vm11, %v3924_v32, %v6740_v6  ;;  %v3862_v4 = vsel %vm2050_vm8, %v3830_v14, %v3622_v51 }
 0x4ef   : > { %v5057_v42 = vmax.f32 %v5001_v38, %v11228_v39  ;;  %v5103_v31 = vmax.f32 %v5055_v36, %v13811_v20  ;;  %v5104_v62 = vmax.f32 %v5056_v18, %v13836_v37  ;;  %v4783_v53 = vrot.slane %v13832_v41, 2  ;;  %v13840_v36 = vld [vmem:[#allocation53_spill] sm:$0xff] }
 0x4f0   : > { %v4610_v33 = vsel %vm1500_vm5, %v13835_v2, %v13834_v47  ;;  %v5161_v38 = vmax.f32 %v5102_v40, %v11200_v3  ;;  %v11281_v29 = vmax.f32 %v4945_v54, %v13837_v27  ;;  %v3894_v57 = vsel %vm2083_vm9, %v3862_v4, %v13494_v15  ;;  %v13842_v15 = vld [vmem:[#allocation51_spill] sm:$0xff]  ;;  %vm13847_vm9 = vmmov %vm13819_vm7 }
 0x4f1   : > { %v4725_v58 = vmax.f32 %v13832_v41, %v4610_v33  ;;  %v5162_v32 = vmax.f32 %v5103_v31, %v11206_v25  ;;  %v5163_v20 = vmax.f32 %v5104_v62, %v13815_v30  ;;  %v11287_v59 = vmax.f32 %v4946_v46, %v4610_v33  ;;  %v3654_v25 = vpop.permute.xlu0 %3653  ;;  %v3750_v51 = vpop.permute.xlu1 %3749 }
 0x4f2   : > { %v5217_v14 = vmax.f32 %v5161_v38, %v11228_v39  ;;  %v13838_v6 = vrot.slane %v13828_v49, 2  ;;  %v11297_v54 = vsel %vm13841_vm3, %v4783_v53, %v13840_v36  ;;  %v5059_v23 = vmax.f32 %v13842_v15, %v13822_v19  ;;  %v13844_v38 = vld [vmem:[#allocation107_spill] sm:$0xff]  ;;  %vm13897_vm3 = vmmov %vm13821_vm0 }
 0x4f3   : > { %v5218_v30 = vmax.f32 %v5162_v32, %v11232_v11  ;;  %v5219_v46 = vmax.f32 %v5163_v20, %v13822_v19  ;;  %v13843_v39 = vmax.f32 %v13828_v49, %v13837_v27  ;;  %v4901_v40 = vmax.f32 %v4725_v58, %v11297_v54  ;;  %v13845_v20 = vld [vmem:[#allocation391_spill] sm:$0xff] }
 0x4f4   : > { %v11293_v3 = vsel %vm13839_vm4, %v13838_v6, %v4783_v53  ;;  %v3926_v2 = vsel %vm2116_vm10, %v3894_v57, %v3654_v25  ;;  %v5317_v31 = vrot.slane %v5217_v14, 1  ;;  %v5061_v62 = vmax.f32 %v11287_v59, %v11297_v54  ;;  %vm13886_vm4 = vmmov %vm13821_vm0 }
 0x4f5   : > { %v4900_v18 = vmax.f32 %v13843_v39, %v11293_v3  ;;  %v5060_v37 = vmax.f32 %v11281_v29, %v11293_v3  ;;  %v3958_v11 = vsel %vm2149_vm11, %v3926_v2, %v6741_v21  ;;  %v5318_v19 = vrot.slane %v5218_v30, 1  ;;  %v3716_v29 = vpop.permute.xlu0 %3715  ;;  %v13846_v21 = vld [vmem:[#allocation49_spill] sm:$0xff]  ;;  %v13850_v2 = vld [vmem:[#allocation56_spill] sm:$0xff] }
 0x4f6   : > { %v5320_v4 = vrot.slane %v5219_v46, 1  ;;  %v3990_v32 = vsel %vm2182_vm12, %v3958_v11, %v3718_v45  ;;  %v4949_v58 = vmax.f32 %v4901_v40, %v13845_v20  ;;  %v5105_v57 = vmax.f32 %v5057_v42, %v13828_v49  ;;  %v3782_v46 = vpop.permute.xlu1 %3781 }
 0x4f7   : > { %v4948_v53 = vmax.f32 %v4900_v18, %v13844_v38  ;;  %v5106_v14 = vmax.f32 %v5058_v0, %v13832_v41  ;;  %v4022_v6 = vsel %vm2215_vm13, %v3990_v32, %v3750_v51  ;;  %v5319_v15 = vsel %vm1500_vm5, %v5317_v31, %v5318_v19 }
 0x4f8   : > { %v5321_v59 = vsel %vm1500_vm5, %v5318_v19, %v5320_v4  ;;  %v5107_v25 = vmax.f32 %v5059_v23, %v13846_v21  ;;  %v3988_v30 = vsel %vm2182_vm12, %v3956_v56, %v3716_v29  ;;  %v5164_v45 = vmax.f32 %v5105_v57, %v13837_v27  ;;  %v13854_v21 = vld [vmem:[#allocation61_spill] sm:$0xff] }
 0x4f9   : > { %v5421_v39 = vpack.c.bf16 %v5321_v59, %v5319_v15  ;;  %v5165_v18 = vmax.f32 %v5106_v14, %v4610_v33  ;;  %v4054_v49 = vsel %vm13847_vm9, %v4022_v6, %v3782_v46  ;;  %v13848_v42 = vrot.slane %v13845_v20, 1  ;;  %v3748_v31 = vpop.permute.xlu0 %3747  ;;  %vm13899_vm9 = vmmov %vm13821_vm0 }
 0x4fa   : > { %v5166_v41 = vmax.f32 %v5107_v25, %v13834_v47  ;;  %v13849_v0 = vrot.slane %v13844_v38, 1  ;;  %4101 = vrot.lane.b32.xlu1 %v4054_v49, %s6851_s27  ;;  %vm4195_vm11 = vcmask 818176   ;;  %v5220_v33 = vmax.f32 %v5164_v45, %v11293_v3  ;;  %v4074_v14 = vpop.permute.xlu1 %4073 }
 0x4fb   : > { %v13851_v23 = vmov %v13848_v42  ;;  %6669 = vmatprep.mubr.msk.bf16.mxu0 %vm574_vm1, %v5421_v39  ;;  %v5221_v47 = vmax.f32 %v5165_v18, %v11297_v54  ;;  %v4788_v51 = vrot.slane %v13845_v20, 2  ;;  %v4020_v57 = vsel %vm2215_vm13, %v3988_v30, %v3748_v31  ;;  %v13857_v39 = vld [vmem:[#allocation54_spill] sm:$0xff]  ;;  %vm13859_vm13 = vmmov %vm13819_vm7 }
 0x4fc   : > { %v4613_v40 = vsel %vm1500_vm5, %v13849_v0, %v13848_v42  ;;  %v4615_v56 = vsel %vm1500_vm5, %v13851_v23, %v13850_v2  ;;  %v5222_v11 = vmax.f32 %v5166_v41, %v13840_v36  ;;  %v5322_v6 = vrot.slane %v5220_v33, 1  ;;  %v13858_v41 = vld [vmem:[#allocation104_spill] sm:$0xff]  ;;  %vm13868_vm7 = vmmov %vm13821_vm0 }
 0x4fd   : > { %v4727_v27 = vmax.f32 %v13844_v38, %v4613_v40  ;;  %v4728_v19 = vmax.f32 %v13845_v20, %v4615_v56  ;;  %v11344_v4 = vmax.f32 %v4948_v53, %v4613_v40  ;;  %v11346_v32 = vmax.f32 %v4949_v58, %v4615_v56  ;;  %v3780_v49 = vpop.permute.xlu0 %3779 }
 0x4fe   : > { %v5323_v3 = vrot.slane %v5221_v47, 1  ;;  %v13852_v54 = vrot.slane %v13844_v38, 2  ;;  %v4107_v15 = vsel %vm4103_vm14, %v11100_v16, %v4074_v14  ;;  %v5325_v59 = vrot.slane %v5222_v11, 1  ;;  %v4078_v33 = vpop.permute.xlu1 %4077  ;;  %v13861_v11 = vld [vmem:[#allocation55_spill] sm:$0xff]  ;;  %v13865_v14 = vld [vmem:[#allocation393_spill] sm:$0xff] }
 0x4ff   : > { %v4791_v25 = vsel %vm13855_vm6, %v4788_v51, %v13854_v21  ;;  %v13856_v58 = vmax.f32 %v10642_v26, 0.0  ;;  %v5062_v45 = vmax.f32 %v13857_v39, %v13840_v36  ;;  %v5108_v23 = vmax.f32 %v5060_v37, %v13844_v38  ;;  %vm13917_vm6 = vmmov %vm13821_vm0 }
 0x500   : > { %v4789_v29 = vsel %vm13853_vm15, %v13852_v54, %v4788_v51  ;;  %v5324_v30 = vsel %vm1500_vm5, %v5322_v6, %v5323_v3  ;;  %v4904_v46 = vmax.f32 %v4728_v19, %v4791_v25  ;;  %v5326_v16 = vsel %vm1500_vm5, %v5323_v3, %v5325_v59  ;;  %vm13915_vm15 = vmmov %vm13821_vm0 }
 0x501   : > { %v4903_v53 = vmax.f32 %v4727_v27, %v4789_v29  ;;  %5721 = vrot.lane.b32.xlu1 %v13856_v58, %s6843_s24  ;;  %v5063_v18 = vmax.f32 %v11344_v4, %v4789_v29  ;;  %v5064_v0 = vmax.f32 %v11346_v32, %v4791_v25  ;;  %v4052_v26 = vsel %vm13859_vm13, %v4020_v57, %v3780_v49  ;;  %v13860_v27 = vld [vmem:[#allocation385_spill] sm:$0xff]  ;;  %v13862_v32 = vld [vmem:[#allocation59_spill] sm:$0xff]  ;;  %vm13933_vm13 = vmmov %vm13821_vm0 }
 0x502   : > { %v5422_v47 = vpack.c.bf16 %v5326_v16, %v5324_v30  ;;  %v4952_v51 = vmax.f32 %v4904_v46, %v13860_v27  ;;  %v5109_v31 = vmax.f32 %v5061_v62, %v13845_v20  ;;  %4099 = vrot.lane.b32.xlu0 %v4052_v26, %s6851_s27  ;;  %v11373_v36 = vsel %vm4103_vm14, %v11109_v12, %v4078_v33 }
 0x503   : > { %v4951_v42 = vmax.f32 %v4903_v53, %v13858_v41  ;;  %v5110_v19 = vmax.f32 %v5062_v45, %v13861_v11  ;;  %v5167_v4 = vmax.f32 %v5108_v23, %v4613_v40  ;;  %v13863_v37 = vrot.slane %v13860_v27, 1  ;;  %v4072_v40 = vpop.permute.xlu0 %4071  ;;  %v13866_v53 = vld [vmem:[#allocation58_spill] sm:$0xff]  ;;  %v13869_v45 = vld [vmem:[#allocation60_spill] sm:$0xff] }
 0x504   : > { %v13864_v57 = vmax.f32 %v10632_v28, 0.0  ;;  %6670 = vmatmul.mubr.msk.bf16.gmra.mrb[52].mxu0 %vm574_vm1, %v5422_v47  ;;  %v5168_v62 = vmax.f32 %v5109_v31, %v4615_v56  ;;  %v4793_v12 = vrot.slane %v13860_v27, 2  ;;  %v5065_v28 = vmax.f32 %v13866_v53, %v13854_v21  ;;  %v4082_v56 = vpop.permute.xlu1 %4081 }
 0x505   : > { %v4620_v38 = vsel %vm1500_vm5, %v13863_v37, %v13862_v32  ;;  %v11387_v6 = vmax.f32 %v4951_v42, %v13865_v14  ;;  %v5169_v3 = vmax.f32 %v5110_v19, %v13850_v2  ;;  %v5223_v54 = vmax.f32 %v5167_v4, %v4789_v29  ;;  %v13874_v4 = vld [vmem:[#allocation397_spill] sm:$0xff] }
 0x506   : > { %5725 = vrot.lane.b32.xlu1 %v13864_v57, %s6843_s24  ;;  %v4731_v20 = vmax.f32 %v13860_v27, %v4620_v38  ;;  %v11390_v59 = vmax.f32 %v4952_v51, %v4620_v38  ;;  %v4105_v58 = vsel %vm4103_vm14, %v11087_v10, %v4072_v40  ;;  %v5224_v30 = vmax.f32 %v5168_v62, %v4791_v25  ;;  %v13873_v51 = vld [vmem:[#allocation394_spill] sm:$0xff]  ;;  %v13875_v57 = vld [vmem:[#allocation57_spill] sm:$0xff] }
 0x507   : > { %v13867_v46 = vrot.slane %v13858_v41, 2  ;;  %v11401_v49 = vsel %vm13821_vm0, %v4793_v12, %v13869_v45  ;;  %v13870_v2 = vmax.f32 %v10628_v9, 0.0  ;;  %6631 = vmatprep.mubr.msk.bf16.mxu1 %vm4195_vm11, %v4105_v58  ;;  %v11409_v29 = vsel %vm4103_vm14, %v11117_v52, %v4082_v56 }
 0x508   : > { %v5225_v10 = vmax.f32 %v5169_v3, %v13854_v21  ;;  %v5327_v25 = vrot.slane %v5223_v54, 1  ;;  %v13871_v16 = vmax.f32 %v13858_v41, %v13865_v14  ;;  %6632 = vmatmul.mubr.msk.bf16.vlgmr.msra.gmra.mrb[44].mxu1 %vm4195_vm11, %v4107_v15  ;;  %v13872_v23 = vmax.f32 %v10714_v48, 0.0  ;;  %v4076_v21 = vpop.permute.xlu0 %4075  ;;  %v13880_v54 = vld [vmem:[#allocation63_spill] sm:$0xff] }
 0x509   : > { %v4794_v39 = vsel %vm13868_vm7, %v13867_v46, %v4793_v12  ;;  %5719 = vrot.lane.b32.xlu0 %v13870_v2, %s6843_s24  ;;  %v5328_v9 = vrot.slane %v5224_v30, 1  ;;  %v4907_v26 = vmax.f32 %v4731_v20, %v11401_v49  ;;  %v5067_v52 = vmax.f32 %v11390_v59, %v11401_v49  ;;  %vm13935_vm7 = vmmov %vm13821_vm0 }
 0x50a   : > { %v4906_v42 = vmax.f32 %v13871_v16, %v4794_v39  ;;  %5729 = vrot.lane.b32.xlu1 %v13872_v23, %s6843_s24  ;;  %v5066_v33 = vmax.f32 %v11387_v6, %v4794_v39  ;;  %v5330_v47 = vrot.slane %v5225_v10, 1  ;;  %v5111_v11 = vmax.f32 %v5063_v18, %v13858_v41  ;;  %v13885_v16 = vld [vmem:[#allocation65_spill] sm:$0xff] }
 0x50b   : > { %v5112_v15 = vmax.f32 %v5064_v0, %v13860_v27  ;;  %v4109_v48 = vsel %vm4103_vm14, %v11091_v7, %v4076_v21  ;;  %v5329_v19 = vsel %vm1500_vm5, %v5327_v25, %v5328_v9  ;;  %v4955_v37 = vmax.f32 %v4907_v26, %v13874_v4 }
 0x50c   : > { %v4954_v31 = vmax.f32 %v4906_v42, %v13873_v51  ;;  %v5113_v62 = vmax.f32 %v5065_v28, %v13875_v57  ;;  %v13876_v20 = vmax.f32 %v10617_v5, 0.0  ;;  %6635 = vmatprep.mubr.msk.bf16.mxu1 %vm4195_vm11, %v4109_v48  ;;  %v5331_v12 = vsel %vm1500_vm5, %v5328_v9, %v5330_v47  ;;  %v4080_v53 = vpop.permute.xlu0 %4079  ;;  %v13889_v57 = vld [vmem:[#allocation389_spill] sm:$0xff] }
 0x50d   : > { %v5170_v18 = vmax.f32 %v5111_v11, %v13865_v14  ;;  %v5171_v41 = vmax.f32 %v5112_v15, %v4620_v38  ;;  %v4798_v0 = vrot.slane %v13874_v4, 2  ;;  %v13877_v7 = vmax.f32 %v10701_v63, 0.0  ;;  %v4086_v14 = vpop.permute.xlu1 %4085  ;;  %v13888_v15 = vld [vmem:[#allocation64_spill] sm:$0xff] }
 0x50e   : > { %5723 = vrot.lane.b32.xlu0 %v13876_v20, %s6843_s24  ;;  %v5423_v27 = vpack.c.bf16 %v5331_v12, %v5329_v19  ;;  %v5172_v6 = vmax.f32 %v5113_v62, %v13862_v32  ;;  %v13878_v40 = vrot.slane %v13874_v4, 1  ;;  %v13879_v5 = vrot.slane %v13873_v51, 1 }
 0x50f   : > { %5733 = vrot.lane.b32.xlu1 %v13877_v7, %s6843_s24  ;;  %v5226_v28 = vmax.f32 %v5170_v18, %v4794_v39  ;;  %v5227_v63 = vmax.f32 %v5171_v41, %v11401_v49  ;;  %v11456_v56 = vsel %vm4103_vm14, %v11126_v44, %v4086_v14  ;;  %v4113_v30 = vsel %vm4103_vm14, %v11096_v43, %v4080_v53  ;;  %v13891_v41 = vld [vmem:[#allocation62_spill] sm:$0xff]  ;;  %v13898_v14 = vld [vmem:[#allocation69_spill] sm:$0xff] }
 0x510   : > { %v4623_v3 = vsel %vm1500_vm5, %v13879_v5, %v13878_v40  ;;  %v13881_v59 = vmov %v13878_v40  ;;  %6673 = vmatprep.mubr.msk.bf16.mxu0 %vm574_vm1, %v5423_v27  ;;  %v5228_v46 = vmax.f32 %v5172_v6, %v13869_v45  ;;  %v13882_v2 = vrot.slane %v13873_v51, 2  ;;  %6636 = vmatmul.mubr.msk.bf16.gmra.mrb[48].mxu1 %vm4195_vm11, %v11373_v36 }
 0x511   : > { %v4625_v38 = vsel %vm1500_vm5, %v13881_v59, %v13880_v54  ;;  %v4733_v58 = vmax.f32 %v13873_v51, %v4623_v3  ;;  %v13884_v49 = vmax.f32 %v10697_v34, 0.0  ;;  %v5332_v10 = vrot.slane %v5226_v28, 1  ;;  %6639 = vmatprep.mubr.msk.bf16.mxu1 %vm4195_vm11, %v4113_v30  ;;  %v4084_v34 = vpop.permute.xlu0 %4083  ;;  %v13900_v28 = vld [vmem:[#allocation66_spill] sm:$0xff] }
 0x512   : > { %v4734_v32 = vmax.f32 %v13874_v4, %v4625_v38  ;;  %v4799_v39 = vsel %vm13883_vm2, %v13882_v2, %v4798_v0  ;;  %v5333_v25 = vrot.slane %v5227_v63, 1  ;;  %v4801_v44 = vsel %vm13886_vm4, %v4798_v0, %v13885_v16  ;;  %vm13956_vm2 = vmmov %vm13821_vm0 }
 0x513   : > { %5727 = vrot.lane.b32.xlu0 %v13884_v49, %s6843_s24  ;;  %v4909_v42 = vmax.f32 %v4733_v58, %v4799_v39  ;;  %v13887_v43 = vmax.f32 %v10761_v50, 0.0  ;;  %v5335_v23 = vrot.slane %v5228_v46, 1  ;;  %v5013_v26 = vmax.f32 %v4954_v31, %v4623_v3  ;;  %vm13972_vm4 = vmmov %vm13821_vm0 }
 0x514   : > { %v4910_v9 = vmax.f32 %v4734_v32, %v4801_v44  ;;  %v5014_v21 = vmax.f32 %v4955_v37, %v4625_v38  ;;  %v5334_v47 = vsel %vm1500_vm5, %v5332_v10, %v5333_v25  ;;  %v5068_v48 = vmax.f32 %v13888_v15, %v13869_v45 }
 0x515   : > { %5737 = vrot.lane.b32.xlu1 %v13887_v43, %s6843_s24  ;;  %v4957_v11 = vmax.f32 %v4909_v42, %v10193_v22  ;;  %v5114_v36 = vmax.f32 %v5066_v33, %v13873_v51  ;;  %v4117_v50 = vsel %vm4103_vm14, %v11104_v55, %v4084_v34  ;;  %v5336_v19 = vsel %vm1500_vm5, %v5333_v25, %v5335_v23  ;;  %v13893_v51 = vld [vmem:[#allocation68_spill] sm:$0xff]  ;;  %v4088_v23 = vpop.permute.xlu0 %4087 }
 0x516   : > { %v4958_v31 = vmax.f32 %v4910_v9, %v13889_v57  ;;  %v5069_v37 = vmax.f32 %v5013_v26, %v4799_v39  ;;  %v13890_v62 = vmax.f32 %v10686_v60, 0.0  ;;  %v5424_v20 = vpack.c.bf16 %v5336_v19, %v5334_v47  ;;  %v13895_v60 = vld [vmem:[#allocation137_spill] sm:$0xff]  ;;  %v13905_v9 = vld [vmem:[#allocation67_spill] sm:$0xff] }
 0x517   : > { %v5070_v12 = vmax.f32 %v5014_v21, %v4801_v44  ;;  %v5115_v18 = vmax.f32 %v5067_v52, %v13874_v4  ;;  %v5116_v45 = vmax.f32 %v5068_v48, %v13891_v41  ;;  %v13892_v33 = vmax.f32 %v10752_v17, 0.0 }
 0x518   : > { %5731 = vrot.lane.b32.xlu0 %v13890_v62, %s6843_s24  ;;  %v5173_v55 = vmax.f32 %v5114_v36, %v4623_v3  ;;  %v13894_v0 = vrot.slane %v13889_v57, 1  ;;  %v4803_v27 = vrot.slane %v13889_v57, 2  ;;  %v5016_v6 = vmax.f32 %v4957_v11, %v13895_v60  ;;  %6674 = vmatmul.mubr.msk.bf16.gmra.mrb[56].mxu0 %vm574_vm1, %v5424_v20  ;;  %v13909_v36 = vld [vmem:[#allocation72_spill] sm:$0xff] }
 0x519   : > { %5741 = vrot.lane.b32.xlu1 %v13892_v33, %s6843_s24  ;;  %v5174_v40 = vmax.f32 %v5115_v18, %v4625_v38  ;;  %v5175_v52 = vmax.f32 %v5116_v45, %v13880_v54  ;;  %v13896_v3 = vrot.slane %v10193_v22, 2  ;;  %v5071_v63 = vmax.f32 %v13900_v28, %v13885_v16  ;;  %6640 = vmatmul.mubr.msk.bf16.gmra.mrb[52].mxu1 %vm4195_vm11, %v11409_v29 }
 0x51a   : > { %v4630_v7 = vsel %vm1500_vm5, %v13894_v0, %v13893_v51  ;;  %v5229_v17 = vmax.f32 %v5173_v55, %v4799_v39  ;;  %v4806_v53 = vsel %vm13899_vm9, %v4803_v27, %v13898_v14  ;;  %v13901_v58 = vmax.f32 %v10748_v13, 0.0  ;;  %6643 = vmatprep.mubr.msk.bf16.mxu1 %vm4195_vm11, %v4117_v50  ;;  %v13912_v55 = vld [vmem:[#allocation142_spill] sm:$0xff]  ;;  %vm13990_vm9 = vmmov %vm13821_vm0 }
 0x51b   : > { %v4737_v4 = vmax.f32 %v13889_v57, %v4630_v7  ;;  %v5017_v5 = vmax.f32 %v4958_v31, %v4630_v7  ;;  %v4804_v59 = vsel %vm13897_vm3, %v13896_v3, %v4803_v27  ;;  %v5230_v38 = vmax.f32 %v5174_v40, %v4801_v44  ;;  %v13904_v44 = vld [vmem:[#allocation399_spill] sm:$0xff]  ;;  %v13916_v27 = vld [vmem:[#allocation74_spill] sm:$0xff]  ;;  %vm13974_vm3 = vmmov %vm13821_vm0 }
 0x51c   : > { %5735 = vrot.lane.b32.xlu0 %v13901_v58, %s6843_s24  ;;  %v5231_v54 = vmax.f32 %v5175_v52, %v13885_v16  ;;  %v13902_v32 = vmax.f32 %v10193_v22, %v13895_v60  ;;  %v13903_v2 = vmax.f32 %v10815_v35, 0.0  ;;  %v5337_v39 = vrot.slane %v5229_v17, 1 }
 0x51d   : > { %v4913_v46 = vmax.f32 %v4737_v4, %v4806_v53  ;;  %v5072_v49 = vmax.f32 %v5016_v6, %v4804_v59  ;;  %v5073_v10 = vmax.f32 %v5017_v5, %v4806_v53  ;;  %v5117_v13 = vmax.f32 %v5069_v37, %v10193_v22  ;;  %v13918_v6 = vld [vmem:[#allocation71_spill] sm:$0xff]  ;;  %v13919_v4 = vld [vmem:[#allocation188_spill] sm:$0xff] }
 0x51e   : > { %v4912_v30 = vmax.f32 %v13902_v32, %v4804_v59  ;;  %5745 = vrot.lane.b32.xlu1 %v13903_v2, %s6843_s24  ;;  %v5338_v25 = vrot.slane %v5230_v38, 1  ;;  %v5340_v16 = vrot.slane %v5231_v54, 1  ;;  %v5118_v29 = vmax.f32 %v5070_v12, %v13889_v57  ;;  %v4090_v54 = vpop.permute.xlu1 %4089  ;;  %v13923_v2 = vld [vmem:[#allocation395_spill] sm:$0xff] }
 0x51f   : > { %v4961_v43 = vmax.f32 %v4913_v46, %v10265_v24  ;;  %v5119_v26 = vmax.f32 %v5071_v63, %v13905_v9  ;;  %v5176_v35 = vmax.f32 %v5117_v13, %v13895_v60  ;;  %v13906_v21 = vrot.slane %v10265_v24, 1 }
 0x520   : > { %v4960_v42 = vmax.f32 %v4912_v30, %v13904_v44  ;;  %v13907_v34 = vrot.slane %v13904_v44, 1  ;;  %v13908_v47 = vmax.f32 %v10744_v61, 0.0  ;;  %v4121_v11 = vsel %vm4103_vm14, %v11113_v8, %v4088_v23  ;;  %v13922_v30 = vld [vmem:[#allocation126_spill] sm:$0xff] }
 0x521   : > { %v5339_v15 = vsel %vm1500_vm5, %v5337_v39, %v5338_v25  ;;  %v5341_v48 = vsel %vm1500_vm5, %v5338_v25, %v5340_v16  ;;  %v13910_v50 = vmov %v13906_v21  ;;  %v13911_v57 = vmax.f32 %v10811_v1, 0.0  ;;  %6644 = vmatmul.mubr.msk.bf16.gmra.mrb[56].mxu1 %vm4195_vm11, %v11456_v56  ;;  %v13925_v25 = vld [vmem:[#allocation172_spill] sm:$0xff] }
 0x522   : > { %v4633_v22 = vsel %vm1500_vm5, %v13907_v34, %v13906_v21  ;;  %5739 = vrot.lane.b32.xlu0 %v13908_v47, %s6843_s24  ;;  %v4635_v19 = vsel %vm1500_vm5, %v13910_v50, %v13909_v36  ;;  %v5425_v31 = vpack.c.bf16 %v5341_v48, %v5339_v15  ;;  %v5177_v37 = vmax.f32 %v5118_v29, %v4630_v7  ;;  %v13929_v29 = vld [vmem:[#allocation76_spill] sm:$0xff]  ;;  %v13931_v21 = vld [vmem:[#allocation146_spill] sm:$0xff] }
 0x523   : > { %5749 = vrot.lane.b32.xlu1 %v13911_v57, %s6843_s24  ;;  %v5178_v61 = vmax.f32 %v5119_v26, %v13893_v51  ;;  %v5232_v62 = vmax.f32 %v5176_v35, %v4804_v59  ;;  %v4739_v8 = vmax.f32 %v13904_v44, %v4633_v22  ;;  %v4740_v20 = vmax.f32 %v10265_v24, %v4635_v19 }
 0x524   : > { %v4808_v12 = vrot.slane %v10265_v24, 2  ;;  %v5019_v18 = vmax.f32 %v4960_v42, %v4633_v22  ;;  %6677 = vmatprep.mubr.msk.bf16.mxu0 %vm574_vm1, %v5425_v31  ;;  %v5233_v41 = vmax.f32 %v5177_v37, %v4806_v53  ;;  %v5020_v1 = vmax.f32 %v4961_v43, %v4635_v19  ;;  %6647 = vmatprep.mubr.msk.bf16.mxu1 %vm4195_vm11, %v4121_v11  ;;  %v13927_v42 = vld [vmem:[#allocation118_spill] sm:$0xff]  ;;  %v13936_v31 = vld [vmem:[#allocation73_spill] sm:$0xff] }
 0x525   : > { %v5234_v45 = vmax.f32 %v5178_v61, %v13898_v14  ;;  %v5342_v33 = vrot.slane %v5232_v62, 1  ;;  %v13913_v0 = vmax.f32 %v13912_v55, 0.0  ;;  %v13914_v51 = vrot.slane %v13904_v44, 2  ;;  %v13937_v61 = vld [vmem:[#allocation158_spill] sm:$0xff] }
 0x526   : > { %v4811_v60 = vsel %vm13917_vm6, %v4808_v12, %v13916_v27  ;;  %v5074_v40 = vmax.f32 %v13918_v6, %v13898_v14  ;;  %v5120_v52 = vmax.f32 %v5072_v49, %v13904_v44  ;;  %v13920_v5 = vmax.f32 %v13919_v4, 0.0  ;;  %v13921_v14 = vld [vmem:[#allocation70_spill] sm:$0xff]  ;;  %vm14006_vm6 = vmmov %vm13821_vm0 }
 0x527   : > { %5743 = vrot.lane.b32.xlu0 %v13913_v0, %s6843_s24  ;;  %v4809_v7 = vsel %vm13915_vm15, %v13914_v51, %v4808_v12  ;;  %v5343_v17 = vrot.slane %v5233_v41, 1  ;;  %v5345_v3 = vrot.slane %v5234_v45, 1  ;;  %v4916_v53 = vmax.f32 %v4740_v20, %v4811_v60  ;;  %v13924_v49 = vld [vmem:[#allocation370_spill] sm:$0xff]  ;;  %v13940_v45 = vld [vmem:[#allocation176_spill] sm:$0xff]  ;;  %vm13997_vm15 = vmmov %vm13821_vm0 }
 0x528   : > { %5753 = vrot.lane.b32.xlu1 %v13920_v5, %s6843_s24  ;;  %v4915_v59 = vmax.f32 %v4739_v8, %v4809_v7  ;;  %v5075_v28 = vmax.f32 %v5019_v18, %v4809_v7  ;;  %v5076_v63 = vmax.f32 %v5020_v1, %v4811_v60  ;;  %v5121_v58 = vmax.f32 %v5073_v10, %v10265_v24  ;;  %v13943_v6 = vld [vmem:[#allocation402_spill] sm:$0xff]  ;;  %v13944_v5 = vld [vmem:[#allocation75_spill] sm:$0xff] }
 0x529   : > { %v5122_v38 = vmax.f32 %v5074_v40, %v13921_v14  ;;  %v5344_v32 = vsel %vm1500_vm5, %v5342_v33, %v5343_v17  ;;  %v5346_v56 = vsel %vm1500_vm5, %v5343_v17, %v5345_v3  ;;  %v4964_v39 = vmax.f32 %v4916_v53, %v13923_v2 }
 0x52a   : > { %v4963_v46 = vmax.f32 %v4915_v59, %v13922_v30  ;;  %v4123_v13 = vsel %vm4103_vm14, %v13924_v49, %v4090_v54  ;;  %v13926_v16 = vmax.f32 %v13925_v25, 0.0  ;;  %v5426_v44 = vpack.c.bf16 %v5346_v56, %v5344_v32  ;;  %v13949_v32 = vld [vmem:[#allocation80_spill] sm:$0xff] }
 0x52b   : > { %v5179_v24 = vmax.f32 %v5120_v52, %v4633_v22  ;;  %v5180_v10 = vmax.f32 %v5121_v58, %v4635_v19  ;;  %v13928_v43 = vmax.f32 %v13927_v42, 0.0  ;;  %v5181_v23 = vmax.f32 %v5122_v38, %v13909_v36  ;;  %v13934_v19 = vld [vmem:[#allocation77_spill] sm:$0xff]  ;;  %6648 = vmatmul.mubr.msk.bf16.gmra.mrb[60].mxu1 %vm4195_vm11, %v4123_v13  ;;  %v13947_v58 = vld [vmem:[#allocation191_spill] sm:$0xff] }
 0x52c   : > { %5747 = vrot.lane.b32.xlu0 %v13926_v16, %s6843_s24  ;;  %v13930_v9 = vrot.slane %v13923_v2, 1  ;;  %v4813_v35 = vrot.slane %v13923_v2, 2  ;;  %v5022_v34 = vmax.f32 %v4963_v46, %v13931_v21  ;;  %6678 = vmatmul.mubr.msk.bf16.gmra.mrb[60].mxu0 %vm574_vm1, %v5426_v44  ;;  %v13932_v36 = vrot.slane %v13922_v30, 2  ;;  %v13951_v46 = vld [vmem:[#allocation20_spill] sm:$0xff] }
 0x52d   : > { %5757 = vrot.lane.b32.xlu1 %v13928_v43, %s6843_s24  ;;  %v5235_v47 = vmax.f32 %v5179_v24, %v4809_v7  ;;  %v5236_v22 = vmax.f32 %v5180_v10, %v4811_v60  ;;  %v5237_v48 = vmax.f32 %v5181_v23, %v13916_v27  ;;  %v5077_v37 = vmax.f32 %v13936_v31, %v13916_v27  ;;  %v13942_v27 = vld [vmem:[#allocation401_spill] sm:$0xff]  ;;  %v13953_v10 = vld [vmem:[#allocation78_spill] sm:$0xff] }
 0x52e   : > { %v4640_v26 = vsel %vm1500_vm5, %v13930_v9, %v13929_v29  ;;  %v4814_v50 = vsel %vm13933_vm13, %v13932_v36, %v4813_v35  ;;  %v4816_v57 = vsel %vm13935_vm7, %v4813_v35, %v13934_v19  ;;  %v13938_v62 = vmax.f32 %v13937_v61, 0.0  ;;  %v13961_v61 = vld [vmem:[#allocation4_spill] sm:$0xff]  ;;  %vm14026_vm13 = vmmov %vm13821_vm0 }
 0x52f   : > { %v4743_v11 = vmax.f32 %v13923_v2, %v4640_v26  ;;  %v5023_v15 = vmax.f32 %v4964_v39, %v4640_v26  ;;  %v5347_v8 = vrot.slane %v5235_v47, 1  ;;  %v5348_v20 = vrot.slane %v5236_v22, 1  ;;  %vm14029_vm7 = vmmov %vm13821_vm0 }
 0x530   : > { %5751 = vrot.lane.b32.xlu0 %v13938_v62, %s6843_s24  ;;  %v13939_v12 = vmax.f32 %v13922_v30, %v13931_v21  ;;  %v13941_v33 = vmax.f32 %v13940_v45, 0.0  ;;  %v5350_v1 = vrot.slane %v5237_v48, 1  ;;  %v5078_v55 = vmax.f32 %v5022_v34, %v4814_v50  ;;  %v13959_v48 = vld [vmem:[#allocation203_spill] sm:$0xff] }
 0x531   : > { %v4919_v41 = vmax.f32 %v4743_v11, %v4816_v57  ;;  %v5079_v0 = vmax.f32 %v5023_v15, %v4816_v57  ;;  %v5123_v51 = vmax.f32 %v5075_v28, %v13922_v30  ;;  %v5349_v7 = vsel %vm1500_vm5, %v5347_v8, %v5348_v20  ;;  %v13962_v8 = vld [vmem:[#allocation5_spill] sm:$0xff] }
 0x532   : > { %v4918_v18 = vmax.f32 %v13939_v12, %v4814_v50  ;;  %5761 = vrot.lane.b32.xlu1 %v13941_v33, %s6843_s24  ;;  %v5124_v52 = vmax.f32 %v5076_v63, %v13923_v2  ;;  %v5351_v4 = vsel %vm1500_vm5, %v5348_v20, %v5350_v1  ;;  %v5125_v17 = vmax.f32 %v5077_v37, %v13944_v5  ;;  %v13963_v12 = vld [vmem:[#allocation79_spill] sm:$0xff]  ;;  %v13964_v1 = vld [vmem:[#allocation84_spill] sm:$0xff] }
 0x533   : > { %v4967_v40 = vmax.f32 %v4919_v41, %v13943_v6  ;;  %v5182_v3 = vmax.f32 %v5123_v51, %v13931_v21  ;;  %v13945_v59 = vrot.slane %v13943_v6, 1  ;;  %v13946_v53 = vrot.slane %v13942_v27, 1  ;;  %v13957_v21 = vld [vmem:[#allocation116_spill] sm:$0xff] }
 0x534   : > { %v4966_v60 = vmax.f32 %v4918_v18, %v13942_v27  ;;  %v13948_v14 = vmax.f32 %v13947_v58, 0.0  ;;  %v5427_v38 = vpack.c.bf16 %v5351_v4, %v5349_v7  ;;  %v5183_v54 = vmax.f32 %v5124_v52, %v4640_v26  ;;  %v13955_v26 = vld [vmem:[#allocation82_spill] sm:$0xff]  ;;  %v13968_v52 = vld [vmem:[#allocation207_spill] sm:$0xff] }
 0x535   : > { %v4643_v28 = vsel %vm1500_vm5, %v13946_v53, %v13945_v59  ;;  %v13950_v63 = vmov %v13945_v59  ;;  %v13952_v2 = vmax.f32 %v13951_v46, 0.0  ;;  %v5184_v39 = vmax.f32 %v5125_v17, %v13929_v29 }
 0x536   : > { %5755 = vrot.lane.b32.xlu0 %v13948_v14, %s6843_s24  ;;  %v4645_v56 = vsel %vm1500_vm5, %v13950_v63, %v13949_v32  ;;  %v4745_v30 = vmax.f32 %v13942_v27, %v4643_v28  ;;  %v5238_v49 = vmax.f32 %v5182_v3, %v4814_v50  ;;  %v4818_v25 = vrot.slane %v13943_v6, 2  ;;  %6681 = vmatprep.mubr.msk.bf16.mxu0 %vm574_vm1, %v5427_v38  ;;  %v13970_v3 = vld [vmem:[#allocation132_spill] sm:$0xff]  ;;  %v13973_v38 = vld [vmem:[#allocation86_spill] sm:$0xff] }
 0x537   : > { %5765 = vrot.lane.b32.xlu1 %v13952_v2, %s6843_s24  ;;  %v4746_v13 = vmax.f32 %v13943_v6, %v4645_v56  ;;  %v5239_v16 = vmax.f32 %v5183_v54, %v4816_v57  ;;  %v5025_v44 = vmax.f32 %v4966_v60, %v4643_v28  ;;  %v5026_v24 = vmax.f32 %v4967_v40, %v4645_v56 }
 0x538   : > { %v5080_v42 = vmax.f32 %v13953_v10, %v13934_v19  ;;  %v5240_v43 = vmax.f32 %v5184_v39, %v13934_v19  ;;  %v5352_v23 = vrot.slane %v5238_v49, 1  ;;  %v13954_v9 = vrot.slane %v13942_v27, 2 }
 0x539   : > { %v4821_v35 = vsel %vm13956_vm2, %v4818_v25, %v13955_v26  ;;  %v13958_v34 = vmax.f32 %v13957_v21, 0.0  ;;  %v5353_v47 = vrot.slane %v5239_v16, 1  ;;  %v13960_v36 = vmax.f32 %v13959_v48, 0.0  ;;  %v13979_v16 = vld [vmem:[#allocation378_spill] sm:$0xff]  ;;  %v13984_v48 = vld [vmem:[#allocation83_spill] sm:$0xff] }
 0x53a   : > { %v4819_v29 = vsel %vm13821_vm0, %v13954_v9, %v4818_v25  ;;  %v4922_v11 = vmax.f32 %v4746_v13, %v4821_v35  ;;  %v5355_v50 = vrot.slane %v5240_v43, 1  ;;  %v5082_v19 = vmax.f32 %v5026_v24, %v4821_v35  ;;  %v13977_v13 = vld [vmem:[#allocation193_spill] sm:$0xff] }
 0x53b   : > { %5759 = vrot.lane.b32.xlu0 %v13958_v34, %s6843_s24  ;;  %v4921_v22 = vmax.f32 %v4745_v30, %v4819_v29  ;;  %v5081_v15 = vmax.f32 %v5025_v44, %v4819_v29  ;;  %5769 = vrot.lane.b32.xlu1 %v13960_v36, %s6843_s24  ;;  %v5126_v57 = vmax.f32 %v5078_v55, %v13942_v27  ;;  %v13965_v51 = vrot.slane %v13962_v8, 1  ;;  %v13966_v55 = vld [vmem:[#allocation156_spill] sm:$0xff]  ;;  %v13980_v43 = vld [vmem:[#allocation217_spill] sm:$0xff] }
 0x53c   : > { %v5127_v31 = vmax.f32 %v5079_v0, %v13943_v6  ;;  %v5354_v37 = vsel %vm1500_vm5, %v5352_v23, %v5353_v47  ;;  %v4970_v20 = vmax.f32 %v4922_v11, %v13962_v8  ;;  %v5128_v18 = vmax.f32 %v5080_v42, %v13963_v12 }
 0x53d   : > { %v4969_v62 = vmax.f32 %v4921_v22, %v13961_v61  ;;  %v5356_v41 = vsel %vm1500_vm5, %v5353_v47, %v5355_v50  ;;  %v5185_v45 = vmax.f32 %v5126_v57, %v4643_v28  ;;  %v4650_v7 = vsel %vm1500_vm5, %v13965_v51, %v13964_v1  ;;  %v13993_v51 = vld [vmem:[#allocation127_spill] sm:$0xff] }
 0x53e   : > { %v5186_v33 = vmax.f32 %v5127_v31, %v4645_v56  ;;  %v13967_v0 = vmax.f32 %v13966_v55, 0.0  ;;  %v5428_v27 = vpack.c.bf16 %v5356_v41, %v5354_v37  ;;  %v5187_v60 = vmax.f32 %v5128_v18, %v13949_v32  ;;  %v13975_v32 = vld [vmem:[#allocation81_spill] sm:$0xff]  ;;  %v4092_v56 = vpop.permute.xlu0 %4091 }
 0x53f   : > { %v4749_v6 = vmax.f32 %v13962_v8, %v4650_v7  ;;  %v4823_v40 = vrot.slane %v13962_v8, 2  ;;  %v13969_v4 = vmax.f32 %v13968_v52, 0.0  ;;  %v5241_v5 = vmax.f32 %v5185_v45, %v4819_v29  ;;  %v13982_v29 = vld [vmem:[#allocation8_spill] sm:$0xff] }
 0x540   : > { %5763 = vrot.lane.b32.xlu0 %v13967_v0, %s6843_s24  ;;  %v5242_v17 = vmax.f32 %v5186_v33, %v4821_v35  ;;  %v5028_v59 = vmax.f32 %v4969_v62, %v13970_v3  ;;  %v5029_v53 = vmax.f32 %v4970_v20, %v4650_v7  ;;  %6682 = vmatmul.mubr.msk.bf16.gmra.mrb[64].mxu0 %vm574_vm1, %v5428_v27  ;;  %v13971_v58 = vrot.slane %v13961_v61, 2  ;;  %v13983_v35 = vld [vmem:[#allocation190_spill] sm:$0xff]  ;;  %v13987_v62 = vld [vmem:[#allocation87_spill] sm:$0xff]  ;;  %v13994_v0 = vld [vmem:[#allocation200_spill] sm:$0xff] }
 0x541   : > { %5773 = vrot.lane.b32.xlu1 %v13969_v4, %s6843_s24  ;;  %v5243_v28 = vmax.f32 %v5187_v60, %v13955_v26  ;;  %v4826_v54 = vsel %vm13974_vm3, %v4823_v40, %v13973_v38  ;;  %v5083_v63 = vmax.f32 %v13975_v32, %v13955_v26  ;;  %v5357_v30 = vrot.slane %v5241_v5, 1  ;;  %v13999_v32 = vld [vmem:[#allocation237_spill] sm:$0xff] }
 0x542   : > { %v4824_v14 = vsel %vm13972_vm4, %v13971_v58, %v4823_v40  ;;  %v5358_v46 = vrot.slane %v5242_v17, 1  ;;  %v13976_v2 = vmax.f32 %v13961_v61, %v13970_v3  ;;  %v4925_v49 = vmax.f32 %v4749_v6, %v4826_v54  ;;  %v13996_v6 = vld [vmem:[#allocation89_spill] sm:$0xff]  ;;  %v4094_v17 = vpop.permute.xlu1 %4093 }
 0x543   : > { %v13978_v25 = vmax.f32 %v13977_v13, 0.0  ;;  %v4125_v44 = vsel %vm4103_vm14, %v13979_v16, %v4092_v56  ;;  %v5360_v24 = vrot.slane %v5243_v28, 1  ;;  %v5084_v10 = vmax.f32 %v5028_v59, %v4824_v14 }
 0x544   : > { %v4924_v39 = vmax.f32 %v13976_v2, %v4824_v14  ;;  %v5085_v42 = vmax.f32 %v5029_v53, %v4826_v54  ;;  %v13981_v23 = vmax.f32 %v13980_v43, 0.0  ;;  %6651 = vmatprep.mubr.msk.bf16.mxu1 %vm4195_vm11, %v4125_v44  ;;  %v5359_v9 = vsel %vm1500_vm5, %v5357_v30, %v5358_v46  ;;  %v13998_v53 = vld [vmem:[#allocation88_spill] sm:$0xff]  ;;  %v14002_v44 = vld [vmem:[#allocation11_spill] sm:$0xff] }
 0x545   : > { %5767 = vrot.lane.b32.xlu0 %v13978_v25, %s6843_s24  ;;  %v4973_v21 = vmax.f32 %v4925_v49, %v13983_v35  ;;  %v4828_v34 = vrot.slane %v13983_v35, 2  ;;  %v5361_v47 = vsel %vm1500_vm5, %v5358_v46, %v5360_v24  ;;  %v5129_v22 = vmax.f32 %v5081_v15, %v13961_v61  ;;  %v14001_v25 = vld [vmem:[#allocation85_spill] sm:$0xff] }
 0x546   : > { %5777 = vrot.lane.b32.xlu1 %v13981_v23, %s6843_s24  ;;  %v4972_v26 = vmax.f32 %v4924_v39, %v13982_v29  ;;  %v5130_v11 = vmax.f32 %v5082_v19, %v13962_v8  ;;  %v5131_v36 = vmax.f32 %v5083_v63, %v13984_v48  ;;  %v5429_v50 = vpack.c.bf16 %v5361_v47, %v5359_v9  ;;  %v13991_v19 = vld [vmem:[#allocation194_spill] sm:$0xff]  ;;  %v14010_v48 = vld [vmem:[#allocation9_spill] sm:$0xff] }
 0x547   : > { %v13985_v57 = vrot.slane %v13983_v35, 1  ;;  %v13986_v31 = vrot.slane %v13982_v29, 1  ;;  %v13989_v18 = vrot.slane %v13982_v29, 2  ;;  %v13992_v61 = vmax.f32 %v13991_v19, 0.0 }
 0x548   : > { %v5188_v8 = vmax.f32 %v5129_v22, %v13970_v3  ;;  %v5189_v41 = vmax.f32 %v5130_v11, %v4650_v7  ;;  %v5190_v45 = vmax.f32 %v5131_v36, %v13964_v1  ;;  %v2533_v55 = vmax.f32 %v13993_v51, 0.0  ;;  %6685 = vmatprep.mubr.msk.bf16.mxu0 %vm574_vm1, %v5429_v50  ;;  %v14009_v22 = vld [vmem:[#allocation91_spill] sm:$0xff] }
 0x549   : > { %v4653_v37 = vsel %vm1500_vm5, %v13986_v31, %v13985_v57  ;;  %v13988_v20 = vmov %v13985_v57  ;;  %v4829_v15 = vsel %vm13990_vm9, %v13989_v18, %v4828_v34  ;;  %5771 = vrot.lane.b32.xlu0 %v13992_v61, %s6843_s24  ;;  %v13995_v27 = vmax.f32 %v13994_v0, 0.0  ;;  %v14011_v18 = vld [vmem:[#allocation10_spill] sm:$0xff] }
 0x54a   : > { %v4655_v12 = vsel %vm1500_vm5, %v13988_v20, %v13987_v62  ;;  %v4751_v33 = vmax.f32 %v13982_v29, %v4653_v37  ;;  %v4831_v40 = vsel %vm13997_vm15, %v4828_v34, %v13996_v6  ;;  %v5031_v52 = vmax.f32 %v4972_v26, %v4653_v37 }
 0x54b   : > { %5781 = vrot.lane.b32.xlu1 %v13995_v27, %s6843_s24  ;;  %v4752_v60 = vmax.f32 %v13983_v35, %v4655_v12  ;;  %v5244_v4 = vmax.f32 %v5188_v8, %v4824_v14  ;;  %v5245_v7 = vmax.f32 %v5189_v41, %v4826_v54  ;;  %v5246_v1 = vmax.f32 %v5190_v45, %v13973_v38  ;;  %v14000_v14 = vld [vmem:[#allocation7_spill] sm:$0xff] }
 0x54c   : > { %v4927_v5 = vmax.f32 %v4751_v33, %v4829_v15  ;;  %v5032_v59 = vmax.f32 %v4973_v21, %v4655_v12  ;;  %v5086_v28 = vmax.f32 %v13998_v53, %v13973_v38  ;;  %v5087_v58 = vmax.f32 %v5031_v52, %v4829_v15  ;;  %v14004_v21 = vld [vmem:[#allocation14_spill] sm:$0xff] }
 0x54d   : > { %v4928_v3 = vmax.f32 %v4752_v60, %v4831_v40  ;;  %v4127_v63 = vsel %vm4103_vm14, %v13999_v32, %v4094_v17  ;;  %5775 = vrot.lane.b32.xlu0 %v2533_v55, %s6843_s24  ;;  %v5362_v56 = vrot.slane %v5244_v4, 1  ;;  %v5363_v30 = vrot.slane %v5245_v7, 1  ;;  %v14016_v7 = vld [vmem:[#allocation16_spill] sm:$0xff] }
 0x54e   : > { %v5365_v46 = vrot.slane %v5246_v1, 1  ;;  %6652 = vmatmul.mubr.msk.bf16.gmra.mrb[64].mxu1 %vm4195_vm11, %v4127_v63  ;;  %v5088_v2 = vmax.f32 %v5032_v59, %v4831_v40  ;;  %v5132_v39 = vmax.f32 %v5084_v10, %v13982_v29  ;;  %v5133_v49 = vmax.f32 %v5085_v42, %v13983_v35  ;;  %v14007_v42 = vld [vmem:[#allocation114_spill] sm:$0xff] }
 0x54f   : > { %v4976_v54 = vmax.f32 %v4928_v3, %v14000_v14  ;;  %v5364_v38 = vsel %vm1500_vm5, %v5362_v56, %v5363_v30  ;;  %v5134_v16 = vmax.f32 %v5086_v28, %v14001_v25  ;;  %v14003_v24 = vrot.slane %v14000_v14, 1  ;;  %v14018_v28 = vld [vmem:[#allocation19_spill] sm:$0xff] }
 0x550   : > { %v5366_v13 = vsel %vm1500_vm5, %v5363_v30, %v5365_v46  ;;  %v5191_v9 = vmax.f32 %v5132_v39, %v4653_v37  ;;  %v5192_v26 = vmax.f32 %v5133_v49, %v4655_v12  ;;  %v14005_v34 = vrot.slane %v14000_v14, 2  ;;  %v14020_v30 = vld [vmem:[#allocation90_spill] sm:$0xff] }
 0x551   : > { %v4660_v43 = vsel %vm1500_vm5, %v14003_v24, %v14002_v44  ;;  %v5430_v23 = vpack.c.bf16 %v5366_v13, %v5364_v38  ;;  %v14008_v29 = vmax.f32 %v14007_v42, 0.0  ;;  %v5193_v35 = vmax.f32 %v5134_v16, %v13987_v62  ;;  %v14012_v62 = vld [vmem:[#allocation13_spill] sm:$0xff] }
 0x552   : > { %v4836_v10 = vsel %vm14006_vm6, %v14005_v34, %v14004_v21  ;;  %v5035_v47 = vmax.f32 %v4976_v54, %v4660_v43  ;;  %v5089_v11 = vmax.f32 %v14009_v22, %v13996_v6  ;;  %v5135_v36 = vmax.f32 %v5087_v58, %v14010_v48  ;;  %v14030_v22 = vld [vmem:[#allocation17_spill] sm:$0xff] }
 0x553   : > { %5779 = vrot.lane.b32.xlu0 %v14008_v29, %s6843_s24  ;;  %6686 = vmatmul.mubr.msk.bf16.gmra.mrb[68].mxu0 %vm574_vm1, %v5430_v23  ;;  %v5247_v50 = vmax.f32 %v5191_v9, %v4829_v15  ;;  %v5248_v57 = vmax.f32 %v5192_v26, %v4831_v40  ;;  %v5136_v31 = vmax.f32 %v5088_v2, %v14000_v14  ;;  %v14013_v15 = vld [vmem:[#allocation15_spill] sm:$0xff]  ;;  %v14017_v1 = vrot.slane %v14016_v7, 1  ;;  %v14022_v2 = vld [vmem:[#allocation18_spill] sm:$0xff] }
 0x554   : > { %v4755_v37 = vmax.f32 %v14000_v14, %v4660_v43  ;;  %v5249_v20 = vmax.f32 %v5193_v35, %v13996_v6  ;;  %v5091_v12 = vmax.f32 %v5035_v47, %v4836_v10  ;;  %v5137_v19 = vmax.f32 %v5089_v11, %v14011_v18  ;;  %v14014_v6 = vld [vmem:[#allocation384_spill] sm:$0xff] }
 0x555   : > { %v5194_v61 = vmax.f32 %v5135_v36, %v14012_v62  ;;  %v5367_v8 = vrot.slane %v5247_v50, 1  ;;  %v5368_v41 = vrot.slane %v5248_v57, 1  ;;  %v5195_v45 = vmax.f32 %v5136_v31, %v4660_v43  ;;  %v14027_v43 = vld [vmem:[#allocation386_spill] sm:$0xff] }
 0x556   : > { %v4931_v33 = vmax.f32 %v4755_v37, %v4836_v10  ;;  %v5370_v51 = vrot.slane %v5249_v20, 1  ;;  %v5196_v55 = vmax.f32 %v5137_v19, %v14002_v44  ;;  %v4975_v27 = vmax.f32 %v4927_v5, %v14010_v48  ;;  %v14031_v48 = vld [vmem:[#allocation23_spill] sm:$0xff]  ;;  %v14032_v19 = vld [vmem:[#allocation6_spill] sm:$0xff] }
 0x557   : > { %v5250_v0 = vmax.f32 %v5194_v61, %v14013_v15  ;;  %v5369_v60 = vsel %vm1500_vm5, %v5367_v8, %v5368_v41  ;;  %v5251_v40 = vmax.f32 %v5195_v45, %v4836_v10  ;;  %v14015_v4 = vrot.slane %v14014_v6, 1  ;;  %v4096_v61 = vpop.permute.xlu0 %4095 }
 0x558   : > { %v4979_v52 = vmax.f32 %v4931_v33, %v14014_v6  ;;  %v5371_v3 = vsel %vm1500_vm5, %v5368_v41, %v5370_v51  ;;  %v5252_v59 = vmax.f32 %v5196_v55, %v14004_v21  ;;  %v5034_v56 = vmax.f32 %v4975_v27, %v14012_v62  ;;  %v14033_v33 = vld [vmem:[#allocation362_spill] sm:$0xff] }
 0x559   : > { %v4986_v17 = vsel %vm1500_vm5, %v14017_v1, %v14015_v4  ;;  %v5372_v53 = vrot.slane %v5250_v0, 1  ;;  %v14019_v58 = vmov %v14015_v4  ;;  %v5431_v32 = vpack.c.bf16 %v5371_v3, %v5369_v60 }
 0x55a   : > { %v4988_v5 = vsel %vm1500_vm5, %v14019_v58, %v14018_v28  ;;  %v5373_v63 = vrot.slane %v5251_v40, 1  ;;  %v14021_v46 = vmax.f32 %v14020_v30, %v14011_v18  ;;  %v5375_v54 = vrot.slane %v5252_v59, 1  ;;  %v4098_v58 = vpop.permute.xlu1 %4097  ;;  %v14036_v30 = vld [vmem:[#allocation139_spill] sm:$0xff] }
 0x55b   : > { %v14023_v39 = vmax.f32 %v14022_v2, %v14016_v7  ;;  %v5038_v38 = vmax.f32 %v4979_v52, %v4988_v5  ;;  %v14024_v13 = vrot.slane %v14014_v6, 2  ;;  %v14025_v25 = vrot.slane %v14016_v7, 2  ;;  %6689 = vmatprep.mubr.msk.bf16.mxu0 %vm574_vm1, %v5431_v32 }
 0x55c   : > { %v5036_v14 = vmax.f32 %v14021_v46, %v14002_v44  ;;  %v5374_v24 = vsel %vm1500_vm5, %v5372_v53, %v5373_v63  ;;  %v5090_v9 = vmax.f32 %v5034_v56, %v14013_v15  ;;  %v5376_v34 = vsel %vm1500_vm5, %v5373_v63, %v5375_v54  ;;  %v14034_v15 = vld [vmem:[#allocation12_spill] sm:$0xff] }
 0x55d   : > { %v5037_v49 = vmax.f32 %v14023_v39, %v4986_v17  ;;  %v5042_v16 = vsel %vm14026_vm13, %v14025_v25, %v14024_v13  ;;  %v14028_v23 = vmov %v14024_v13  ;;  %v5139_v29 = vmax.f32 %v5091_v12, %v14014_v6  ;;  %v14038_v54 = vld [vmem:[#allocation364_spill] sm:$0xff]  ;;  %v14040_v13 = vld [vmem:[#allocation143_spill] sm:$0xff] }
 0x55e   : > { %v5044_v44 = vsel %vm14029_vm7, %v14028_v23, %v14027_v43  ;;  %v5092_v26 = vmax.f32 %v5036_v14, %v14004_v21  ;;  %v5432_v35 = vpack.c.bf16 %v5376_v34, %v5374_v24  ;;  %v5138_v47 = vmax.f32 %v5090_v9, %v14016_v7  ;;  %v14041_v24 = vld [vmem:[#allocation99_spill] sm:$0xff]  ;;  %v14043_v9 = vld [vmem:[#allocation145_spill] sm:$0xff] }
 0x55f   : > { %v5093_v10 = vmax.f32 %v5037_v49, %v5042_v16  ;;  %v5094_v42 = vmax.f32 %v5038_v38, %v5044_v44  ;;  %v5095_v36 = vmax.f32 %v14031_v48, %v14027_v43  ;;  %v5198_v31 = vmax.f32 %v5139_v29, %v4988_v5  ;;  %v14035_v5 = vld [vmem:[#allocation366_spill] sm:$0xff]  ;;  %v14039_v49 = vld [vmem:[#allocation192_spill] sm:$0xff] }
 0x560   : > { %v5140_v11 = vmax.f32 %v5092_v26, %v14030_v22  ;;  %6690 = vmatmul.mubr.msk.bf16.gmra.mrb[72].mxu0 %vm574_vm1, %v5432_v35  ;;  %v5197_v21 = vmax.f32 %v5138_v47, %v4986_v17  ;;  %v4129_v51 = vsel %vm4103_vm14, %v14033_v33, %v4096_v61  ;;  %v4131_v32 = vsel %vm4103_vm14, %v14035_v5, %v4098_v58  ;;  %v14045_v47 = vld [vmem:[#allocation149_spill] sm:$0xff]  ;;  %v14046_v48 = vld [vmem:[#allocation150_spill] sm:$0xff] }
 0x561   : > { %v5141_v50 = vmax.f32 %v5093_v10, -3e+38  ;;  %v5142_v57 = vmax.f32 %v5094_v42, -3e+38  ;;  %v5143_v20 = vmax.f32 %v5095_v36, -3e+38  ;;  %v5254_v18 = vmax.f32 %v5198_v31, %v5044_v44  ;;  %6655 = vmatprep.mubr.msk.bf16.mxu1 %vm4195_vm11, %v4129_v51 }
 0x562   : > { %v5199_v37 = vmax.f32 %v5140_v11, %v14018_v28  ;;  %v5253_v8 = vmax.f32 %v5197_v21, %v5042_v16  ;;  %6656 = vmatmul.mubr.msk.bf16.gmra.mrb[68].mxu1 %vm4195_vm11, %v4131_v32  ;;  %v14044_v10 = vld [vmem:[#allocation147_spill] sm:$0xff]  ;;  %v14050_v61 = vld [vmem:[#allocation153_spill] sm:$0xff]  ;;  %v14062_v32 = vld [vmem:[#allocation196_spill] sm:$0xff] }
 0x563   : > { %v5200_v12 = vmax.f32 %v5141_v50, %v14032_v19  ;;  %v5201_v62 = vmax.f32 %v5142_v57, %v14032_v19  ;;  %v5202_v45 = vmax.f32 %v5143_v20, %v14032_v19  ;;  %v5378_v55 = vrot.slane %v5254_v18, 1  ;;  %v14047_v57 = vld [vmem:[#allocation151_spill] sm:$0xff]  ;;  %v14049_v19 = vld [vmem:[#allocation161_spill] sm:$0xff] }
 0x564   : > { %v5255_v41 = vmax.f32 %v5199_v37, %v14027_v43  ;;  %v5377_v60 = vrot.slane %v5253_v8, 1  ;;  %v14048_v37 = vld [vmem:[#allocation152_spill] sm:$0xff] }
 0x565   : > { %v5256_v0 = vmax.f32 %v5200_v12, %v14034_v15  ;;  %v5257_v27 = vmax.f32 %v5201_v62, %v14034_v15  ;;  %v5258_v6 = vmax.f32 %v5202_v45, %v14034_v15  ;;  %v14051_v45 = vld [vmem:[#allocation174_spill] sm:$0xff] }
 0x566   : > { %v5380_v40 = vrot.slane %v5255_v41, 1  ;;  %v5379_v7 = vsel %vm1500_vm5, %v5377_v60, %v5378_v55 }
 0x567   : > { %v5382_v52 = vrot.slane %v5256_v0, 1  ;;  %v5383_v4 = vrot.slane %v5257_v27, 1  ;;  %v5385_v17 = vrot.slane %v5258_v6, 1  ;;  %v14053_v27 = vld [vmem:[#allocation175_spill] sm:$0xff] }
 0x568   : > { %v5381_v1 = vsel %vm1500_vm5, %v5378_v55, %v5380_v40  ;;  %v14052_v55 = vld [vmem:[#allocation162_spill] sm:$0xff]  ;;  %v14055_v6 = vld [vmem:[#allocation163_spill] sm:$0xff] }
 0x569   : > { %v5433_v3 = vpack.c.bf16 %v5381_v1, %v5379_v7  ;;  %v5384_v59 = vsel %vm1500_vm5, %v5382_v52, %v5383_v4  ;;  %v5386_v53 = vsel %vm1500_vm5, %v5383_v4, %v5385_v17  ;;  %v14056_v7 = vld [vmem:[#allocation195_spill] sm:$0xff] }
 0x56a   : > { %v5434_v28 = vpack.c.bf16 %v5386_v53, %v5384_v59 }
 0x56b   : > { %6693 = vmatprep.mubr.msk.bf16.mxu0 %vm574_vm1, %v5433_v3  ;;  %v14058_v3 = vld [vmem:[#allocation179_spill] sm:$0xff] }
 0x56c   : > { %6694 = vmatmul.mubr.msk.bf16.gmra.mrb[76].mxu0 %vm574_vm1, %v5434_v28  ;;  %v4102_v63 = vpop.permute.xlu1 %4101  ;;  %v14060_v28 = vld [vmem:[#allocation129_spill] sm:$0xff] }
 0x56d   : > { %v4135_v38 = vsel %vm4103_vm14, %v14039_v49, %v4102_v63 }
 0x573   : > { %v5722_v56 = vpop.permute.xlu1 %5721 }
 0x574   : > { %v11829_v46 = vsel %vm2050_vm8, %v14036_v30, %v5722_v56  ;;  %v4100_v14 = vpop.permute.xlu0 %4099  ;;  %v14064_v30 = vld [vmem:[#allocation211_spill] sm:$0xff] }
 0x575   : > { %14037 = vst [vmem:[#allocation140_spill] sm:$0xff] %v11829_v46  ;;  %v4133_v2 = vsel %vm4103_vm14, %v14038_v54, %v4100_v14 }
 0x576   : > { %6659 = vmatprep.mubr.msk.bf16.mxu1 %vm4195_vm11, %v4133_v2  ;;  %v14066_v2 = vld [vmem:[#allocation131_spill] sm:$0xff] }
 0x577   : > { %6660 = vmatmul.mubr.msk.bf16.gmra.mrb[72].mxu1 %vm4195_vm11, %v4135_v38  ;;  %v14068_v38 = vld [vmem:[#allocation212_spill] sm:$0xff] }
 0x578   : > { %v5726_v39 = vpop.permute.xlu1 %5725 }
 0x579   : > { %v11838_v25 = vsel %vm2050_vm8, %v14040_v13, %v5726_v39 }
 0x57b   : > { %v5720_v16 = vpop.permute.xlu0 %5719 }
 0x57c   : > { %v11843_v43 = vsel %vm2050_vm8, %v14041_v24, %v5720_v16  ;;  %v11845_v23 = vpop.permute.xlu1 %5729  ;;  %v14070_v24 = vld [vmem:[#allocation206_spill] sm:$0xff] }
 0x57d   : > { %14042 = vst [vmem:[#allocation396_spill] sm:$0xff] %v11843_v43 }
 0x580   : > { %v5724_v44 = vpop.permute.xlu0 %5723 }
 0x581   : > { %v11849_v26 = vsel %vm2050_vm8, %v14043_v9, %v5724_v44  ;;  %v5734_v34 = vpop.permute.xlu1 %5733 }
 0x582   : > { %v11853_v42 = vsel %vm2050_vm8, %v14044_v10, %v5734_v34  ;;  %v14072_v34 = vld [vmem:[#allocation226_spill] sm:$0xff] }
 0x585   : > { %v11855_v29 = vpop.permute.xlu0 %5727 }
 0x587   : > { %v5738_v35 = vpop.permute.xlu1 %5737 }
 0x588   : > { %v11859_v22 = vsel %vm2050_vm8, %v14045_v47, %v5738_v35  ;;  %v14074_v47 = vld [vmem:[#allocation213_spill] sm:$0xff] }
 0x58a   : > { %v5732_v11 = vpop.permute.xlu0 %5731 }
 0x58b   : > { %v11863_v36 = vsel %vm2050_vm8, %v14046_v48, %v5732_v11  ;;  %v5742_v50 = vpop.permute.xlu1 %5741 }
 0x58c   : > { %v11867_v31 = vsel %vm2050_vm8, %v14047_v57, %v5742_v50  ;;  %v14076_v50 = vld [vmem:[#allocation94_spill] sm:$0xff] }
 0x58e   : > { %v5736_v21 = vpop.permute.xlu0 %5735 }
 0x58f   : > { %v11871_v20 = vsel %vm2050_vm8, %v14048_v37, %v5736_v21  ;;  %v14077_v37 = vld [vmem:[#allocation227_spill] sm:$0xff] }
 0x590   : > { %v5746_v18 = vpop.permute.xlu1 %5745 }
 0x591   : > { %v11875_v12 = vsel %vm2050_vm8, %v14049_v19, %v5746_v18 }
 0x594   : > { %v5740_v62 = vpop.permute.xlu0 %5739 }
 0x595   : > { %v11879_v8 = vsel %vm2050_vm8, %v14050_v61, %v5740_v62  ;;  %v5750_v41 = vpop.permute.xlu1 %5749  ;;  %v14079_v62 = vld [vmem:[#allocation95_spill] sm:$0xff] }
 0x596   : > { %v11883_v33 = vsel %vm2050_vm8, %v14051_v45, %v5750_v41 }
 0x599   : > { %v5744_v51 = vpop.permute.xlu0 %5743 }
 0x59a   : > { %v11887_v15 = vsel %vm2050_vm8, %v14052_v55, %v5744_v51  ;;  %v5754_v0 = vpop.permute.xlu1 %5753 }
 0x59b   : > { %v11891_v60 = vsel %vm2050_vm8, %v14053_v27, %v5754_v0 }
 0x59c   : > { %14054 = vst [vmem:[#allocation379_spill] sm:$0xff] %v11891_v60 }
 0x59e   : > { %v5748_v40 = vpop.permute.xlu0 %5747 }
 0x59f   : > { %v11895_v52 = vsel %vm2050_vm8, %v14055_v6, %v5748_v40  ;;  %v5758_v4 = vpop.permute.xlu1 %5757  ;;  %v11966_v6 = vld [vmem:[%s12385_s6] ss:$0 sm:$0xff] }
 0x5a0   : > { %v11899_v1 = vsel %vm2050_vm8, %v14056_v7, %v5758_v4 }
 0x5a1   : > { %14057 = vst [vmem:[#allocation96_spill] sm:$0xff] %v11899_v1 }
 0x5a2   : > { %v5752_v17 = vpop.permute.xlu0 %5751 }
 0x5a3   : > { %v11903_v59 = vsel %vm2050_vm8, %v14058_v3, %v5752_v17 }
 0x5a4   : > { %14059 = vst [vmem:[#allocation400_spill] sm:$0xff] %v11903_v59  ;;  %v5762_v53 = vpop.permute.xlu1 %5761 }
 0x5a5   : > { %v11907_v58 = vsel %vm2050_vm8, %v14060_v28, %v5762_v53 }
 0x5a6   : > { %14061 = vst [vmem:[#allocation198_spill] sm:$0xff] %v11907_v58 }
 0x5a8   : > { %v5756_v5 = vpop.permute.xlu0 %5755 }
 0x5a9   : > { %v11911_v63 = vsel %vm2050_vm8, %v14062_v32, %v5756_v5  ;;  %v5766_v56 = vpop.permute.xlu1 %5765 }
 0x5aa   : > { %14063 = vst [vmem:[#allocation189_spill] sm:$0xff] %v11911_v63  ;;  %v11915_v14 = vsel %vm2050_vm8, %v14064_v30, %v5766_v56 }
 0x5ab   : > { %14065 = vst [vmem:[#allocation380_spill] sm:$0xff] %v11915_v14 }
 0x5ad   : > { %v5760_v54 = vpop.permute.xlu0 %5759  ;;  %v5770_v49 = vpop.permute.xlu1 %5769 }
 0x5ae   : > { %v11919_v39 = vsel %vm2050_vm8, %v14066_v2, %v5760_v54  ;;  %v11923_v13 = vsel %vm2050_vm8, %v14068_v38, %v5770_v49 }
 0x5af   : > { %14067 = vst [vmem:[#allocation122_spill] sm:$0xff] %v11919_v39  ;;  %14069 = vst [vmem:[#allocation125_spill] sm:$0xff] %v11923_v13 }
 0x5b2   : > { %v5764_v16 = vpop.permute.xlu0 %5763 }
 0x5b3   : > { %v11927_v44 = vsel %vm2050_vm8, %v14070_v24, %v5764_v16  ;;  %v5774_v9 = vpop.permute.xlu1 %5773 }
 0x5b4   : > { %14071 = vst [vmem:[#allocation134_spill] sm:$0xff] %v11927_v44  ;;  %v11931_v10 = vsel %vm2050_vm8, %v14072_v34, %v5774_v9 }
 0x5b5   : > { %14073 = vst [vmem:[#allocation241_spill] sm:$0xff] %v11931_v10 }
 0x5b7   : > { %v5768_v35 = vpop.permute.xlu0 %5767 }
 0x5b8   : > { %v11935_v11 = vsel %vm2050_vm8, %v14074_v47, %v5768_v35  ;;  %v5778_v48 = vpop.permute.xlu1 %5777 }
 0x5b9   : > { %14075 = vst [vmem:[#allocation377_spill] sm:$0xff] %v11935_v11  ;;  %v11939_v57 = vsel %vm2050_vm8, %v14076_v50, %v5778_v48 }
 0x5bb   : > { %v5772_v21 = vpop.permute.xlu0 %5771 }
 0x5bc   : > { %v11943_v18 = vsel %vm2050_vm8, %v14077_v37, %v5772_v21 }
 0x5bd   : > { %14078 = vst [vmem:[#allocation367_spill] sm:$0xff] %v11943_v18 }
 0x5bf   : > { %v5776_v19 = vpop.permute.xlu0 %5775 }
 0x5c0   : > { %v11947_v61 = vsel %vm2050_vm8, %v14079_v62, %v5776_v19 }
 0x5c1   : > { %v11949_v41 = vpop.f32.mrb[48].mxu0 }
 0x5c2   : > { %v11951_v45 = vpop.f32.mrb[49].mxu0 }
 0x5c3   : > { %v11953_v51 = vpop.f32.mrb[50].mxu0 }
 0x5c4   : > { %v11955_v55 = vpop.f32.mrb[51].mxu0 }
 0x5d7   : > { %v11957_v0 = vpop.f32.mrb[52].mxu0 }
 0x5d8   : > { %v11959_v27 = vpop.f32.mrb[53].mxu0 }
 0x5d9   : > { %v11961_v40 = vpop.f32.mrb[54].mxu0 }
 0x5da   : > { %v11968_v4 = vpop.f32.mrb[55].mxu0 }
 0x5db   : > { %v6633_v7 = vpop.f32.mrb[44].mxu1 }
 0x5dc   : > { %v4265_v17 = vpop.f32.mrb[45].mxu1  ;;  %v4274_v5 = vadd.f32 %v6633_v7, %v11966_v6 }
 0x5dd   : > { %v4266_v3 = vadd.f32 %v11966_v6, %v4265_v17  ;;  %v6634_v53 = vpop.f32.mrb[46].mxu1 }
 0x5de   : > { %v4268_v28 = vpop.f32.mrb[47].mxu1  ;;  %v4277_v30 = vadd.f32 %v6634_v53, %v11966_v6  ;;  %v4394_v2 = vmax.f32 %v4274_v5, 0.0 }
 0x5df   : > { %v4392_v32 = vmax.f32 %v4266_v3, 0.0  ;;  %v4269_v56 = vadd.f32 %v11966_v6, %v4268_v28 }
 0x5e0   : > { %v4395_v16 = vmax.f32 %v4277_v30, 0.0 }
 0x5e1   : > { %v4393_v54 = vmax.f32 %v4269_v56, 0.0  ;;  %5847 = vrot.lane.b32.xlu0 %v4392_v32, %s6834_s14 }
 0x5e3   : > { %5849 = vrot.lane.b32.xlu1 %v4393_v54, %s6834_s14  ;;  %v6637_v49 = vpop.f32.mrb[48].mxu1 }
 0x5e4   : > { %v4281_v38 = vpop.f32.mrb[49].mxu1  ;;  %v4290_v35 = vadd.f32 %v6637_v49, %v11966_v6 }
 0x5e5   : > { %v4282_v24 = vadd.f32 %v11966_v6, %v4281_v38  ;;  %5851 = vrot.lane.b32.xlu0 %v4394_v2, %s6834_s14  ;;  %v6638_v9 = vpop.f32.mrb[50].mxu1 }
 0x5e6   : > { %v4284_v34 = vpop.f32.mrb[51].mxu1  ;;  %v4293_v21 = vadd.f32 %v6638_v9, %v11966_v6  ;;  %v4398_v7 = vmax.f32 %v4290_v35, 0.0 }
 0x5e7   : > { %v4396_v47 = vmax.f32 %v4282_v24, 0.0  ;;  %v4285_v48 = vadd.f32 %v11966_v6, %v4284_v34  ;;  %5853 = vrot.lane.b32.xlu1 %v4395_v16, %s6834_s14 }
 0x5e8   : > { %v4399_v28 = vmax.f32 %v4293_v21, 0.0 }
 0x5e9   : > { %v4397_v37 = vmax.f32 %v4285_v48, 0.0  ;;  %5855 = vrot.lane.b32.xlu0 %v4396_v47, %s6834_s14 }
 0x5eb   : > { %v11981_v50 = vpop.f32.mrb[56].mxu0  ;;  %5857 = vrot.lane.b32.xlu1 %v4397_v37, %s6834_s14 }
 0x5ec   : > { %v11985_v19 = vpop.f32.mrb[57].mxu0  ;;  %v6641_v17 = vpop.f32.mrb[52].mxu1 }
 0x5ed   : > { %v11987_v62 = vpop.f32.mrb[58].mxu0  ;;  %v4297_v53 = vpop.f32.mrb[53].mxu1  ;;  %5859 = vrot.lane.b32.xlu0 %v4398_v7, %s6834_s14  ;;  %v4306_v30 = vadd.f32 %v6641_v17, %v11966_v6 }
 0x5ee   : > { %v11990_v3 = vpop.f32.mrb[59].mxu0  ;;  %v4298_v5 = vadd.f32 %v11966_v6, %v4297_v53  ;;  %v6642_v32 = vpop.f32.mrb[54].mxu1 }
 0x5ef   : > { %v4300_v56 = vpop.f32.mrb[55].mxu1  ;;  %5861 = vrot.lane.b32.xlu1 %v4399_v28, %s6834_s14  ;;  %v4309_v49 = vadd.f32 %v6642_v32, %v11966_v6  ;;  %v4402_v16 = vmax.f32 %v4306_v30, 0.0 }
 0x5f0   : > { %v4400_v54 = vmax.f32 %v4298_v5, 0.0  ;;  %v4301_v2 = vadd.f32 %v11966_v6, %v4300_v56 }
 0x5f1   : > { %v4403_v34 = vmax.f32 %v4309_v49, 0.0 }
 0x5f2   : > { %v4401_v38 = vmax.f32 %v4301_v2, 0.0  ;;  %5863 = vrot.lane.b32.xlu0 %v4400_v54, %s6834_s14 }
 0x5f4   : > { %5865 = vrot.lane.b32.xlu1 %v4401_v38, %s6834_s14  ;;  %v6645_v24 = vpop.f32.mrb[56].mxu1 }
 0x5f5   : > { %v4313_v9 = vpop.f32.mrb[57].mxu1  ;;  %v4322_v21 = vadd.f32 %v6645_v24, %v11966_v6 }
 0x5f6   : > { %v4314_v35 = vadd.f32 %v11966_v6, %v4313_v9  ;;  %5867 = vrot.lane.b32.xlu0 %v4402_v16, %s6834_s14  ;;  %v6646_v47 = vpop.f32.mrb[58].mxu1 }
 0x5f7   : > { %v4316_v48 = vpop.f32.mrb[59].mxu1  ;;  %v4325_v53 = vadd.f32 %v6646_v47, %v11966_v6  ;;  %v4406_v56 = vmax.f32 %v4322_v21, 0.0 }
 0x5f8   : > { %v4404_v37 = vmax.f32 %v4314_v35, 0.0  ;;  %v4317_v7 = vadd.f32 %v11966_v6, %v4316_v48  ;;  %5869 = vrot.lane.b32.xlu1 %v4403_v34, %s6834_s14 }
 0x5f9   : > { %v4407_v49 = vmax.f32 %v4325_v53, 0.0 }
 0x5fa   : > { %v4405_v28 = vmax.f32 %v4317_v7, 0.0  ;;  %5871 = vrot.lane.b32.xlu0 %v4404_v37, %s6834_s14 }
 0x5fc   : > { %5873 = vrot.lane.b32.xlu1 %v4405_v28, %s6834_s14 }
 0x5fe   : > { %v6649_v30 = vpop.f32.mrb[60].mxu1  ;;  %5875 = vrot.lane.b32.xlu0 %v4406_v56, %s6834_s14 }
 0x5ff   : > { %v12005_v17 = vpop.f32.mrb[60].mxu0  ;;  %v4329_v2 = vpop.f32.mrb[61].mxu1  ;;  %v4338_v9 = vadd.f32 %v6649_v30, %v11966_v6 }
 0x600   : > { %v12009_v5 = vpop.f32.mrb[61].mxu0  ;;  %v4330_v38 = vadd.f32 %v11966_v6, %v4329_v2  ;;  %v6650_v16 = vpop.f32.mrb[62].mxu1  ;;  %5877 = vrot.lane.b32.xlu1 %v4407_v49, %s6834_s14 }
 0x601   : > { %v12011_v32 = vpop.f32.mrb[62].mxu0  ;;  %v4332_v24 = vpop.f32.mrb[63].mxu1  ;;  %v4341_v47 = vadd.f32 %v6650_v16, %v11966_v6  ;;  %v4410_v21 = vmax.f32 %v4338_v9, 0.0 }
 0x602   : > { %v12014_v54 = vpop.f32.mrb[63].mxu0  ;;  %v4408_v34 = vmax.f32 %v4330_v38, 0.0  ;;  %v4333_v35 = vadd.f32 %v11966_v6, %v4332_v24 }
 0x603   : > { %v4411_v37 = vmax.f32 %v4341_v47, 0.0 }
 0x604   : > { %v4409_v48 = vmax.f32 %v4333_v35, 0.0  ;;  %5879 = vrot.lane.b32.xlu0 %v4408_v34, %s6834_s14 }
 0x606   : > { %5881 = vrot.lane.b32.xlu1 %v4409_v48, %s6834_s14 }
 0x608   : > { %5883 = vrot.lane.b32.xlu0 %v4410_v21, %s6834_s14 }
 0x60a   : > { %5885 = vrot.lane.b32.xlu1 %v4411_v37, %s6834_s14 }
 0x613   : > { %v12026_v7 = vpop.f32.mrb[64].mxu0 }
 0x614   : > { %v12028_v53 = vpop.f32.mrb[65].mxu0 }
 0x615   : > { %v12030_v28 = vpop.f32.mrb[66].mxu0 }
 0x616   : > { %v12032_v56 = vpop.f32.mrb[67].mxu0 }
 0x621   : > { %v6653_v30 = vpop.f32.mrb[64].mxu1 }
 0x622   : > { %v4345_v2 = vpop.f32.mrb[65].mxu1  ;;  %v4354_v24 = vadd.f32 %v6653_v30, %v11966_v6 }
 0x623   : > { %v4346_v49 = vadd.f32 %v11966_v6, %v4345_v2  ;;  %v6654_v38 = vpop.f32.mrb[66].mxu1 }
 0x624   : > { %v4348_v16 = vpop.f32.mrb[67].mxu1  ;;  %v4357_v48 = vadd.f32 %v6654_v38, %v11966_v6  ;;  %v4414_v2 = vmax.f32 %v4354_v24, 0.0 }
 0x625   : > { %v4412_v9 = vmax.f32 %v4346_v49, 0.0  ;;  %v4349_v34 = vadd.f32 %v11966_v6, %v4348_v16 }
 0x626   : > { %v12037_v35 = vpop.f32.mrb[68].mxu0  ;;  %v4415_v30 = vmax.f32 %v4357_v48, 0.0 }
 0x627   : > { %v12039_v47 = vpop.f32.mrb[69].mxu0  ;;  %v4413_v21 = vmax.f32 %v4349_v34, 0.0  ;;  %5887 = vrot.lane.b32.xlu0 %v4412_v9, %s6834_s14 }
 0x628   : > { %v12043_v37 = vpop.f32.mrb[70].mxu0 }
 0x629   : > { %v12045_v10 = vpop.f32.mrb[71].mxu0  ;;  %5889 = vrot.lane.b32.xlu1 %v4413_v21, %s6834_s14 }
 0x62b   : > { %5891 = vrot.lane.b32.xlu0 %v4414_v2, %s6834_s14 }
 0x62d   : > { %5893 = vrot.lane.b32.xlu1 %v4415_v30, %s6834_s14 }
 0x633   : > { %v12050_v49 = vpop.f32.mrb[72].mxu0 }
 0x634   : > { %v12052_v16 = vpop.f32.mrb[73].mxu0 }
 0x635   : > { %v12054_v38 = vpop.f32.mrb[74].mxu0  ;;  %v6657_v18 = vpop.f32.mrb[68].mxu1 }
 0x636   : > { %v12056_v34 = vpop.f32.mrb[75].mxu0  ;;  %v4361_v24 = vpop.f32.mrb[69].mxu1  ;;  %v4370_v14 = vadd.f32 %v6657_v18, %v11966_v6 }
 0x637   : > { %v4362_v48 = vadd.f32 %v11966_v6, %v4361_v24  ;;  %v6658_v2 = vpop.f32.mrb[70].mxu1 }
 0x638   : > { %v4364_v11 = vpop.f32.mrb[71].mxu1  ;;  %v4373_v39 = vadd.f32 %v6658_v2, %v11966_v6  ;;  %v4418_v63 = vmax.f32 %v4370_v14, 0.0 }
 0x639   : > { %v4416_v44 = vmax.f32 %v4362_v48, 0.0  ;;  %v4365_v58 = vadd.f32 %v11966_v6, %v4364_v11  ;;  %v12075_v11 = vpop.permute.xlu0 %5779 }
 0x63a   : > { %v4419_v60 = vmax.f32 %v4373_v39, 0.0 }
 0x63b   : > { %v4417_v1 = vmax.f32 %v4365_v58, 0.0  ;;  %5895 = vrot.lane.b32.xlu0 %v4416_v44, %s6834_s14 }
 0x63d   : > { %5897 = vrot.lane.b32.xlu1 %v4417_v1, %s6834_s14  ;;  %v12082_v1 = vld [vmem:[%s12387_s8] ss:$0 sm:$0xff] }
 0x63f   : > { %v12058_v9 = vpop.f32.mrb[76].mxu0  ;;  %5899 = vrot.lane.b32.xlu0 %v4418_v63, %s6834_s14  ;;  %v12084_v63 = vpop.permute.xlu1 %5781 }
 0x640   : > { %v12060_v13 = vpop.f32.mrb[77].mxu0 }
 0x641   : > { %v12062_v21 = vpop.f32.mrb[78].mxu0  ;;  %5901 = vrot.lane.b32.xlu1 %v4419_v60, %s6834_s14 }
 0x642   : > { %v12065_v30 = vpop.f32.mrb[79].mxu0 }
 0x64a   : > { %v6661_v24 = vpop.f32.mrb[72].mxu1 }
 0x64b   : > { %v4377_v59 = vpop.f32.mrb[73].mxu1  ;;  %v4386_v58 = vadd.f32 %v6661_v24, %v11966_v6 }
 0x64c   : > { %v4378_v18 = vadd.f32 %v11966_v6, %v4377_v59  ;;  %v6662_v48 = vpop.f32.mrb[74].mxu1  ;;  %v5529_v59 = vadd.f32 %v12082_v1, %v11951_v45 }
 0x64d   : > { %v4380_v46 = vpop.f32.mrb[75].mxu1  ;;  %v4389_v60 = vadd.f32 %v6662_v48, %v11966_v6  ;;  %v4422_v44 = vmax.f32 %v4386_v58, 0.0 }
 0x64e   : > { %v4420_v2 = vmax.f32 %v4378_v18, 0.0  ;;  %v4381_v14 = vadd.f32 %v11966_v6, %v4380_v46  ;;  %v5532_v46 = vadd.f32 %v12082_v1, %v11955_v55  ;;  %v5537_v6 = vadd.f32 %v11949_v41, %v12082_v1  ;;  %v14080_v41 = vld [vmem:[#allocation148_spill] sm:$0xff] }
 0x64f   : > { %v4423_v18 = vmax.f32 %v4389_v60, 0.0  ;;  %v5655_v48 = vmax.f32 %v5529_v59, 0.0 }
 0x650   : > { %v4421_v39 = vmax.f32 %v4381_v14, 0.0  ;;  %5903 = vrot.lane.b32.xlu0 %v4420_v2, %s6834_s14  ;;  %v5540_v2 = vadd.f32 %v11953_v51, %v12082_v1  ;;  %v5656_v55 = vmax.f32 %v5532_v46, 0.0  ;;  %v5657_v59 = vmax.f32 %v5537_v6, 0.0  ;;  %v14081_v46 = vld [vmem:[#allocation144_spill] sm:$0xff] }
 0x652   : > { %5905 = vrot.lane.b32.xlu1 %v4421_v39, %s6834_s14  ;;  %v6075_v39 = vsel %vm2050_vm8, %v14080_v41, %v11855_v29  ;;  %v5593_v29 = vadd.f32 %v12082_v1, %v12028_v53 }
 0x653   : > { %v12091_v24 = vpop.permute.xlu0 %5847 }
 0x654   : > { %5907 = vrot.lane.b32.xlu0 %v4422_v44, %s6834_s14 }
 0x655   : > { %v12095_v43 = vpop.permute.xlu1 %5849 }
 0x656   : > { %5909 = vrot.lane.b32.xlu1 %v4423_v18, %s6834_s14  ;;  %v6076_v18 = vsel %vm2050_vm8, %v14081_v46, %v11845_v23  ;;  %s6426_s14 = sshll.u32 %s14099_s10, 6 }
 0x657   : > { %v5852_v45 = vpop.permute.xlu0 %5851  ;;  %s332_s11 = scalar_lea.vmem %s12388_s9, %s6426_s14 }
 0x658   : > { %v12103_v58 = vsel %vm2116_vm10, %v11849_v26, %v5852_v45  ;;  %5975 = vrot.lane.b32.xlu0 %v5655_v48, %s6840_s21  ;;  %v5545_v26 = vadd.f32 %v12082_v1, %v11959_v27  ;;  %v5548_v48 = vadd.f32 %v12082_v1, %v11968_v4  ;;  %v5596_v4 = vadd.f32 %v12082_v1, %v12032_v56 }
 0x659   : > { %v5854_v14 = vpop.permute.xlu1 %5853  ;;  %v5604_v56 = vadd.f32 %v12030_v28, %v12082_v1 }
 0x65a   : > { %v12110_v60 = vsel %vm2116_vm10, %v11838_v25, %v5854_v14  ;;  %5977 = vrot.lane.b32.xlu1 %v5656_v55, %s6840_s21  ;;  %v5658_v25 = vmax.f32 %v5540_v2, 0.0  ;;  %v5659_v45 = vmax.f32 %v5545_v26, 0.0  ;;  %v5660_v2 = vmax.f32 %v5548_v48, 0.0 }
 0x65b   : > { %v5856_v44 = vpop.permute.xlu0 %5855  ;;  %v5671_v14 = vmax.f32 %v5593_v29, 0.0  ;;  %v5672_v26 = vmax.f32 %v5596_v4, 0.0 }
 0x65c   : > { %v12119_v51 = vsel %vm2116_vm10, %v6075_v39, %v5856_v44  ;;  %5979 = vrot.lane.b32.xlu0 %v5657_v59, %s6840_s21  ;;  %v5601_v39 = vadd.f32 %v12026_v7, %v12082_v1 }
 0x65d   : > { %v5858_v6 = vpop.permute.xlu1 %5857 }
 0x65e   : > { %v12130_v27 = vsel %vm2116_vm10, %v6076_v18, %v5858_v6  ;;  %5981 = vrot.lane.b32.xlu1 %v5658_v25, %s6840_s21  ;;  %v5673_v46 = vmax.f32 %v5601_v39, 0.0  ;;  %v5674_v25 = vmax.f32 %v5604_v56, 0.0  ;;  %v5617_v6 = vadd.f32 %v12037_v35, %v12082_v1 }
 0x65f   : > { %v5860_v55 = vpop.permute.xlu0 %5859  ;;  %v5564_v56 = vadd.f32 %v12082_v1, %v11990_v3 }
 0x660   : > { %v12135_v23 = vsel %vm2116_vm10, %v11863_v36, %v5860_v55  ;;  %5983 = vrot.lane.b32.xlu0 %v5659_v45, %s6840_s21  ;;  %v5677_v35 = vmax.f32 %v5617_v6, 0.0 }
 0x661   : > { %v5862_v53 = vpop.permute.xlu1 %5861 }
 0x662   : > { %v12142_v41 = vsel %vm2116_vm10, %v11853_v42, %v5862_v53  ;;  %5985 = vrot.lane.b32.xlu1 %v5660_v2, %s6840_s21  ;;  %v5609_v42 = vadd.f32 %v12082_v1, %v12039_v47  ;;  %v5553_v47 = vadd.f32 %v11957_v0, %v12082_v1  ;;  %v5556_v0 = vadd.f32 %v11961_v40, %v12082_v1 }
 0x663   : > { %v5561_v40 = vadd.f32 %v12082_v1, %v11985_v19  ;;  %v5569_v19 = vadd.f32 %v11981_v50, %v12082_v1 }
 0x664   : > { %v5864_v59 = vpop.permute.xlu0 %5863  ;;  %6007 = vrot.lane.b32.xlu0 %v5671_v14, %s6840_s21  ;;  %v5675_v48 = vmax.f32 %v5609_v42, 0.0  ;;  %v5661_v2 = vmax.f32 %v5553_v47, 0.0  ;;  %v5662_v39 = vmax.f32 %v5556_v0, 0.0 }
 0x665   : > { %v12149_v36 = vsel %vm2116_vm10, %v11871_v20, %v5864_v59  ;;  %v5612_v20 = vadd.f32 %v12082_v1, %v12045_v10  ;;  %v5665_v3 = vmax.f32 %v5569_v19, 0.0 }
 0x666   : > { %v5866_v44 = vpop.permute.xlu1 %5865  ;;  %6009 = vrot.lane.b32.xlu1 %v5672_v26, %s6840_s21 }
 0x667   : > { %v12158_v7 = vsel %vm2116_vm10, %v11859_v22, %v5866_v44  ;;  %v5676_v10 = vmax.f32 %v5612_v20, 0.0  ;;  %v5664_v44 = vmax.f32 %v5564_v56, 0.0  ;;  %v5641_v20 = vadd.f32 %v12082_v1, %v12060_v13 }
 0x668   : > { %v5868_v18 = vpop.permute.xlu0 %5867  ;;  %6011 = vrot.lane.b32.xlu0 %v5673_v46, %s6840_s21  ;;  %v5572_v46 = vadd.f32 %v11987_v62, %v12082_v1  ;;  %v5649_v13 = vadd.f32 %v12058_v9, %v12082_v1 }
 0x669   : > { %v12165_v28 = vsel %vm2116_vm10, %v11879_v8, %v5868_v18 }
 0x66a   : > { %v5870_v29 = vpop.permute.xlu1 %5869  ;;  %6013 = vrot.lane.b32.xlu1 %v5674_v25, %s6840_s21  ;;  %v5666_v50 = vmax.f32 %v5572_v46, 0.0  ;;  %v14084_v46 = vld [vmem:[#allocation396_spill] sm:$0xff] }
 0x66b   : > { %v12170_v22 = vsel %vm2116_vm10, %v11867_v31, %v5870_v29  ;;  %v5683_v29 = vmax.f32 %v5641_v20, 0.0 }
 0x66c   : > { %v5872_v8 = vpop.permute.xlu0 %5871  ;;  %6015 = vrot.lane.b32.xlu0 %v5675_v48, %s6840_s21  ;;  %v5580_v48 = vadd.f32 %v12082_v1, %v12014_v54 }
 0x66d   : > { %v12179_v45 = vsel %vm2116_vm10, %v11887_v15, %v5872_v8  ;;  %v5620_v15 = vadd.f32 %v12043_v37, %v12082_v1  ;;  %v5663_v37 = vmax.f32 %v5561_v40, 0.0  ;;  %v5685_v8 = vmax.f32 %v5649_v13, 0.0 }
 0x66e   : > { %v5874_v55 = vpop.permute.xlu1 %5873  ;;  %6017 = vrot.lane.b32.xlu1 %v5676_v10, %s6840_s21  ;;  %v5668_v47 = vmax.f32 %v5580_v48, 0.0  ;;  %v5588_v10 = vadd.f32 %v12011_v32, %v12082_v1 }
 0x66f   : > { %v12184_v31 = vsel %vm2116_vm10, %v11875_v12, %v5874_v55  ;;  %v5678_v59 = vmax.f32 %v5620_v15, 0.0 }
 0x670   : > { %v5876_v14 = vpop.permute.xlu0 %5875  ;;  %5987 = vrot.lane.b32.xlu0 %v5661_v2, %s6840_s21 }
 0x671   : > { %v12191_v4 = vsel %vm2116_vm10, %v11895_v52, %v5876_v14  ;;  %v5625_v52 = vadd.f32 %v12082_v1, %v12052_v16  ;;  %v5633_v16 = vadd.f32 %v12050_v49, %v12082_v1  ;;  %v5577_v49 = vadd.f32 %v12082_v1, %v12009_v5 }
 0x672   : > { %v5878_v53 = vpop.permute.xlu1 %5877  ;;  %6019 = vrot.lane.b32.xlu1 %v5677_v35, %s6840_s21  ;;  %v5585_v5 = vadd.f32 %v12005_v17, %v12082_v1  ;;  %v5670_v17 = vmax.f32 %v5588_v10, 0.0 }
 0x673   : > { %v12198_v12 = vsel %vm2116_vm10, %v11883_v33, %v5878_v53  ;;  %v5679_v26 = vmax.f32 %v5625_v52, 0.0  ;;  %v5628_v33 = vadd.f32 %v12082_v1, %v12056_v34  ;;  %v5681_v18 = vmax.f32 %v5633_v16, 0.0  ;;  %v14083_v16 = vld [vmem:[#allocation154_spill] sm:$0xff] }
 0x674   : > { %5989 = vrot.lane.b32.xlu0 %v5662_v39, %s6840_s21  ;;  %v5636_v34 = vadd.f32 %v12054_v38, %v12082_v1  ;;  %v5667_v62 = vmax.f32 %v5577_v49, 0.0  ;;  %v5644_v38 = vadd.f32 %v12082_v1, %v12065_v30  ;;  %v5669_v54 = vmax.f32 %v5585_v5, 0.0 }
 0x675   : > { %v5680_v42 = vmax.f32 %v5628_v33, 0.0  ;;  %v5652_v30 = vadd.f32 %v12062_v21, %v12082_v1 }
 0x676   : > { %6021 = vrot.lane.b32.xlu1 %v5678_v59, %s6840_s21  ;;  %v5682_v25 = vmax.f32 %v5636_v34, 0.0  ;;  %v5684_v6 = vmax.f32 %v5644_v38, 0.0  ;;  %v5880_v55 = vpop.permute.xlu0 %5879 }
 0x677   : > { %v5686_v9 = vmax.f32 %v5652_v30, 0.0 }
 0x678   : > { %5991 = vrot.lane.b32.xlu0 %v5663_v37, %s6840_s21  ;;  %v5882_v2 = vpop.permute.xlu1 %5881 }
 0x67a   : > { %6023 = vrot.lane.b32.xlu1 %v5679_v26, %s6840_s21  ;;  %v5884_v0 = vpop.permute.xlu0 %5883  ;;  %v14082_v26 = vld [vmem:[#allocation155_spill] sm:$0xff] }
 0x67b   : > { %v6101_v33 = vsel %vm2050_vm8, %v14082_v26, %v12075_v11 }
 0x67c   : > { %5993 = vrot.lane.b32.xlu0 %v5664_v44, %s6840_s21  ;;  %v5886_v32 = vpop.permute.xlu1 %5885 }
 0x67e   : > { %6025 = vrot.lane.b32.xlu1 %v5680_v42, %s6840_s21  ;;  %v6102_v42 = vsel %vm2050_vm8, %v14083_v16, %v12084_v63 }
 0x680   : > { %5995 = vrot.lane.b32.xlu0 %v5665_v3, %s6840_s21 }
 0x682   : > { %6027 = vrot.lane.b32.xlu1 %v5681_v18, %s6840_s21 }
 0x684   : > { %5997 = vrot.lane.b32.xlu0 %v5666_v50, %s6840_s21  ;;  %v14085_v50 = vld [vmem:[#allocation140_spill] sm:$0xff] }
 0x685   : > { %v6104_v49 = vsel %vm2116_vm10, %v14085_v50, %v12095_v43  ;;  %v14092_v50 = vld [vmem:[#allocation134_spill] sm:$0xff] }
 0x686   : > { %6029 = vrot.lane.b32.xlu1 %v5682_v25, %s6840_s21 }
 0x688   : > { %5999 = vrot.lane.b32.xlu0 %v5667_v62, %s6840_s21 }
 0x68a   : > { %6031 = vrot.lane.b32.xlu1 %v5683_v29, %s6840_s21 }
 0x68c   : > { %6001 = vrot.lane.b32.xlu0 %v5668_v47, %s6840_s21 }
 0x68e   : > { %6033 = vrot.lane.b32.xlu1 %v5684_v6, %s6840_s21  ;;  %v14087_v6 = vld [vmem:[#allocation379_spill] sm:$0xff] }
 0x690   : > { %6003 = vrot.lane.b32.xlu0 %v5669_v54, %s6840_s21  ;;  %v6120_v54 = vsel %vm2116_vm10, %v14087_v6, %v5882_v2  ;;  %v14089_v2 = vld [vmem:[#allocation96_spill] sm:$0xff] }
 0x691   : > { %v6122_v26 = vsel %vm2116_vm10, %v14089_v2, %v5886_v32  ;;  %v14091_v32 = vld [vmem:[#allocation198_spill] sm:$0xff] }
 0x692   : > { %6035 = vrot.lane.b32.xlu1 %v5685_v8, %s6840_s21 }
 0x694   : > { %6005 = vrot.lane.b32.xlu0 %v5670_v17, %s6840_s21  ;;  %v14088_v17 = vld [vmem:[#allocation189_spill] sm:$0xff] }
 0x696   : > { %6037 = vrot.lane.b32.xlu1 %v5686_v9, %s6840_s21  ;;  %v6121_v9 = vsel %vm2116_vm10, %v14088_v17, %v5884_v0  ;;  %v14090_v0 = vld [vmem:[#allocation122_spill] sm:$0xff] }
 0x699   : > { %v5888_v35 = vpop.permute.xlu0 %5887 }
 0x69b   : > { %v12251_v14 = vpop.permute.xlu1 %5889 }
 0x69d   : > { %v12253_v15 = vpop.permute.xlu0 %5891 }
 0x69f   : > { %v12255_v21 = vpop.permute.xlu1 %5893 }
 0x6ad   : > { %v12257_v1 = vpop.permute.xlu0 %5895 }
 0x6af   : > { %v12259_v53 = vpop.permute.xlu1 %5897 }
 0x6b1   : > { %v12261_v39 = vpop.permute.xlu0 %5899 }
 0x6b3   : > { %v12263_v40 = vpop.permute.xlu1 %5901 }
 0x6c2   : > { %v5904_v52 = vpop.permute.xlu0 %5903 }
 0x6c3   : > { %v12267_v59 = vsel %vm2116_vm10, %v11947_v61, %v5904_v52 }
 0x6c4   : > { %v5906_v37 = vpop.permute.xlu1 %5905 }
 0x6c5   : > { %v12271_v56 = vsel %vm2116_vm10, %v11939_v57, %v5906_v37  ;;  %v6103_v57 = vsel %vm2116_vm10, %v14084_v46, %v12091_v24  ;;  %v14086_v24 = vld [vmem:[#allocation400_spill] sm:$0xff] }
 0x6c6   : > { %v5908_v19 = vpop.permute.xlu0 %5907  ;;  %v6119_v38 = vsel %vm2116_vm10, %v14086_v24, %v5880_v55  ;;  %v14094_v24 = vld [vmem:[#allocation377_spill] sm:$0xff] }
 0x6c7   : > { %v12277_v44 = vsel %vm2116_vm10, %v6101_v33, %v5908_v19 }
 0x6c8   : > { %v5910_v3 = vpop.permute.xlu1 %5909 }
 0x6c9   : > { %v12283_v61 = vsel %vm2116_vm10, %v6102_v42, %v5910_v3  ;;  %v6123_v42 = vsel %vm2116_vm10, %v14090_v0, %v5888_v35 }
 0x6ca   : > { %v5976_v18 = vpop.permute.xlu0 %5975 }
 0x6cb   : > { %v6135_v34 = vsel %vm2182_vm12, %v6103_v57, %v5976_v18  ;;  %v6124_v18 = vsel %vm2116_vm10, %v14091_v32, %v12251_v14 }
 0x6cc   : > { %v5978_v11 = vpop.permute.xlu1 %5977  ;;  %6167 = vxpose.xlu0.b32.start [1/16] (narrow) %v6135_v34, 32 }
 0x6cd   : > { %v6136_v63 = vsel %vm2182_vm12, %v6104_v49, %v5978_v11 }
 0x6ce   : > { %v5980_v20 = vpop.permute.xlu0 %5979 }
 0x6cf   : > { %v6137_v48 = vsel %vm2182_vm12, %v12103_v58, %v5980_v20 }
 0x6d0   : > { %v5982_v25 = vpop.permute.xlu1 %5981  ;;  %6168 = vxpose.xlu0.b32.cont [2/16] (narrow) %v6136_v63, 32 }
 0x6d1   : > { %v6138_v43 = vsel %vm2182_vm12, %v12110_v60, %v5982_v25  ;;  %v14093_v25 = vld [vmem:[#allocation380_spill] sm:$0xff] }
 0x6d2   : > { %v5984_v62 = vpop.permute.xlu0 %5983 }
 0x6d3   : > { %v6139_v8 = vsel %vm2182_vm12, %v12119_v51, %v5984_v62 }
 0x6d4   : > { %v5986_v29 = vpop.permute.xlu1 %5985  ;;  %6169 = vxpose.xlu0.b32.cont [3/16] (narrow) %v6137_v48, 32 }
 0x6d5   : > { %v6140_v52 = vsel %vm2182_vm12, %v12130_v27, %v5986_v29 }
 0x6d6   : > { %v6008_v5 = vpop.permute.xlu0 %6007 }
 0x6d7   : > { %v6151_v47 = vsel %vm2182_vm12, %v6119_v38, %v6008_v5 }
 0x6d8   : > { %v6010_v13 = vpop.permute.xlu1 %6009  ;;  %6199 = vxpose.xlu1.b32.start [1/16] (narrow) %v6151_v47, 32  ;;  %6170 = vxpose.xlu0.b32.cont [4/16] (narrow) %v6138_v43, 32  ;;  %v14095_v43 = vld [vmem:[#allocation125_spill] sm:$0xff] }
 0x6d9   : > { %v6152_v58 = vsel %vm2182_vm12, %v6120_v54, %v6010_v13 }
 0x6da   : > { %v6012_v10 = vpop.permute.xlu0 %6011 }
 0x6db   : > { %v6153_v60 = vsel %vm2182_vm12, %v6121_v9, %v6012_v10 }
 0x6dc   : > { %v6014_v30 = vpop.permute.xlu1 %6013  ;;  %6200 = vxpose.xlu1.b32.cont [2/16] (narrow) %v6152_v58, 32  ;;  %6171 = vxpose.xlu0.b32.cont [5/16] (narrow) %v6139_v8, 32 }
 0x6dd   : > { %v6154_v51 = vsel %vm2182_vm12, %v6122_v26, %v6014_v30 }
 0x6de   : > { %v6016_v55 = vpop.permute.xlu0 %6015 }
 0x6df   : > { %v6155_v27 = vsel %vm2182_vm12, %v6123_v42, %v6016_v55 }
 0x6e0   : > { %v6018_v37 = vpop.permute.xlu1 %6017  ;;  %6201 = vxpose.xlu1.b32.cont [3/16] (narrow) %v6153_v60, 32  ;;  %6172 = vxpose.xlu0.b32.cont [6/16] (narrow) %v6140_v52, 32 }
 0x6e1   : > { %v6156_v34 = vsel %vm2182_vm12, %v6124_v18, %v6018_v37 }
 0x6e2   : > { %v5988_v33 = vpop.permute.xlu0 %5987 }
 0x6e3   : > { %v6141_v19 = vsel %vm2182_vm12, %v12135_v23, %v5988_v33 }
 0x6e4   : > { %v6020_v16 = vpop.permute.xlu1 %6019  ;;  %6202 = vxpose.xlu1.b32.cont [4/16] (narrow) %v6154_v51, 32  ;;  %6173 = vxpose.xlu0.b32.cont [7/16] (narrow) %v6141_v19, 32 }
 0x6e6   : > { %v5990_v3 = vpop.permute.xlu0 %5989 }
 0x6e7   : > { %v6142_v46 = vsel %vm2182_vm12, %v12142_v41, %v5990_v3  ;;  %v6125_v41 = vsel %vm2116_vm10, %v14092_v50, %v12253_v15 }
 0x6e8   : > { %v6022_v57 = vpop.permute.xlu1 %6021  ;;  %6203 = vxpose.xlu1.b32.cont [5/16] (narrow) %v6155_v27, 32  ;;  %6174 = vxpose.xlu0.b32.cont [8/16] (narrow) %v6142_v46, 32  ;;  %v6157_v20 = vsel %vm2182_vm12, %v6125_v41, %v6020_v16 }
 0x6ea   : > { %v5992_v23 = vpop.permute.xlu0 %5991 }
 0x6eb   : > { %v6143_v11 = vsel %vm2182_vm12, %v12149_v36, %v5992_v23  ;;  %v6126_v36 = vsel %vm2116_vm10, %v14093_v25, %v12255_v21 }
 0x6ec   : > { %v6024_v35 = vpop.permute.xlu1 %6023  ;;  %6204 = vxpose.xlu1.b32.cont [6/16] (narrow) %v6156_v34, 32  ;;  %6175 = vxpose.xlu0.b32.cont [9/16] (narrow) %v6143_v11, 32  ;;  %v6158_v48 = vsel %vm2182_vm12, %v6126_v36, %v6022_v57 }
 0x6ee   : > { %v5994_v49 = vpop.permute.xlu0 %5993 }
 0x6ef   : > { %v6144_v63 = vsel %vm2182_vm12, %v12158_v7, %v5994_v49  ;;  %v6127_v7 = vsel %vm2116_vm10, %v14094_v24, %v12257_v1  ;;  %v14096_v1 = vld [vmem:[#allocation367_spill] sm:$0xff] }
 0x6f0   : > { %v6026_v14 = vpop.permute.xlu1 %6025  ;;  %6205 = vxpose.xlu1.b32.cont [7/16] (narrow) %v6157_v20, 32  ;;  %6176 = vxpose.xlu0.b32.cont [10/16] (narrow) %v6144_v63, 32  ;;  %v6159_v5 = vsel %vm2182_vm12, %v6127_v7, %v6024_v35  ;;  %v6129_v10 = vsel %vm2116_vm10, %v14096_v1, %v12261_v39 }
 0x6f2   : > { %v5996_v62 = vpop.permute.xlu0 %5995 }
 0x6f3   : > { %v6145_v29 = vsel %vm2182_vm12, %v12165_v28, %v5996_v62  ;;  %v6128_v28 = vsel %vm2116_vm10, %v14095_v43, %v12259_v53  ;;  %v14097_v53 = vld [vmem:[#allocation241_spill] sm:$0xff] }
 0x6f4   : > { %v6028_v15 = vpop.permute.xlu1 %6027  ;;  %6206 = vxpose.xlu1.b32.cont [8/16] (narrow) %v6158_v48, 32  ;;  %6177 = vxpose.xlu0.b32.cont [11/16] (narrow) %v6145_v29, 32  ;;  %v6160_v6 = vsel %vm2182_vm12, %v6128_v28, %v6026_v14  ;;  %v6130_v17 = vsel %vm2116_vm10, %v14097_v53, %v12263_v40 }
 0x6f5   : > { %v6161_v8 = vsel %vm2182_vm12, %v6129_v10, %v6028_v15 }
 0x6f6   : > { %v5998_v38 = vpop.permute.xlu0 %5997 }
 0x6f7   : > { %v6146_v47 = vsel %vm2182_vm12, %v12170_v22, %v5998_v38 }
 0x6f8   : > { %v6030_v21 = vpop.permute.xlu1 %6029  ;;  %6207 = vxpose.xlu1.b32.cont [9/16] (narrow) %v6159_v5, 32  ;;  %6178 = vxpose.xlu0.b32.cont [12/16] (narrow) %v6146_v47, 32 }
 0x6f9   : > { %v6162_v9 = vsel %vm2182_vm12, %v6130_v17, %v6030_v21 }
 0x6fa   : > { %v6000_v13 = vpop.permute.xlu0 %5999 }
 0x6fb   : > { %v6147_v54 = vsel %vm2182_vm12, %v12179_v45, %v6000_v13 }
 0x6fc   : > { %6208 = vxpose.xlu1.b32.cont [10/16] (narrow) %v6160_v6, 32  ;;  %6179 = vxpose.xlu0.b32.cont [13/16] (narrow) %v6147_v54, 32  ;;  %v6032_v22 = vpop.permute.xlu1 %6031 }
 0x6fe   : > { %v6002_v58 = vpop.permute.xlu0 %6001 }
 0x6ff   : > { %v6148_v30 = vsel %vm2182_vm12, %v12184_v31, %v6002_v58  ;;  %v6163_v31 = vsel %vm2182_vm12, %v12267_v59, %v6032_v22 }
 0x700   : > { %6209 = vxpose.xlu1.b32.cont [11/16] (narrow) %v6161_v8, 32  ;;  %6180 = vxpose.xlu0.b32.cont [14/16] (narrow) %v6148_v30, 32  ;;  %v6034_v39 = vpop.permute.xlu1 %6033 }
 0x701   : > { %v6164_v37 = vsel %vm2182_vm12, %v12271_v56, %v6034_v39 }
 0x702   : > { %v6004_v45 = vpop.permute.xlu0 %6003 }
 0x703   : > { %v6149_v55 = vsel %vm2182_vm12, %v12191_v4, %v6004_v45 }
 0x704   : > { %6210 = vxpose.xlu1.b32.cont [12/16] (narrow) %v6162_v9, 32  ;;  %6181 = vxpose.xlu0.b32.cont [15/16] (narrow) %v6149_v55, 32  ;;  %v6036_v40 = vpop.permute.xlu1 %6035 }
 0x705   : > { %v6165_v4 = vsel %vm2182_vm12, %v12277_v44, %v6036_v40 }
 0x706   : > { %v6006_v60 = vpop.permute.xlu0 %6005 }
 0x707   : > { %v6150_v52 = vsel %vm2182_vm12, %v12198_v12, %v6006_v60 }
 0x708   : > { %6211 = vxpose.xlu1.b32.cont [13/16] (narrow) %v6163_v31, 32  ;;  %6182 = vxpose.xlu0.b32.end [16/16] (narrow) %v6150_v52, 32  ;;  %v6038_v2 = vpop.permute.xlu1 %6037 }
 0x709   : > { %v6166_v26 = vsel %vm2182_vm12, %v12283_v61, %v6038_v2 }
 0x70c   : > { %6212 = vxpose.xlu1.b32.cont [14/16] (narrow) %v6164_v37, 32 }
 0x710   : > { %6213 = vxpose.xlu1.b32.cont [15/16] (narrow) %v6165_v4, 32 }
 0x714   : > { %6214 = vxpose.xlu1.b32.end [16/16] (narrow) %v6166_v26, 32 }
 0x74c   : > { %v6183_v12 = vpop.trf.xlu0 }
 0x74d   : > { %6231 = vst [vmem:[%s332_s11] sm:$0xff] %v6183_v12 }
 0x750   : > { %v6184_v59 = vpop.trf.xlu0 }
 0x751   : > { %6233 = vst [vmem:[%s332_s11 + $0x10] sm:$0xff] %v6184_v59 }
 0x754   : > { %v6185_v56 = vpop.trf.xlu0 }
 0x755   : > { %6235 = vst [vmem:[%s332_s11 + $0x20] sm:$0xff] %v6185_v56 }
 0x758   : > { %v6215_v33 = vpop.trf.xlu1  ;;  %v6186_v51 = vpop.trf.xlu0 }
 0x759   : > { %6232 = vst [vmem:[%s332_s11 + $0x8] sm:$0xff] %v6215_v33  ;;  %6237 = vst [vmem:[%s332_s11 + $0x30] sm:$0xff] %v6186_v51 }
 0x75c   : > { %v6216_v44 = vpop.trf.xlu1 }
 0x75d   : > { %6234 = vst [vmem:[%s332_s11 + $0x18] sm:$0xff] %v6216_v44 }
 0x760   : > { %v6217_v19 = vpop.trf.xlu1 }
 0x761   : > { %6236 = vst [vmem:[%s332_s11 + $0x28] sm:$0xff] %v6217_v19 }
 0x764   : > { %v6218_v61 = vpop.trf.xlu1 }
 0x765   : > { %6238 = vst [vmem:[%s332_s11 + $0x38] sm:$0xff] %v6218_v61 }
 0x766 PF: > { %s19_s30 = sadd.s32 1, %s6831_s30  }
 0x767   : > { %p16_p4 = scmp.ge.s32.totalorder %s19_s30, 4  }
 0x769   :  { %18 = sbr.rel (!%p16_p4) target bundleno = 1 (0x1), region = 86 }

</bundles_post_ra>
